<compile_context>
chip_gen: v7x
topology: tpu7x:2x2x1
jax: 0.10.0
libtpu: 0.0.40
codegen_flags: <defaults>
</compile_context>

<pallas_src>
import functools

import jax
import jax.numpy as jnp
from jax.experimental import pallas as pl
from jax.experimental.pallas import tpu as pltpu


# ----------------------------- Pallas kernel ------------------------------ #

def _matmul_act_kernel(x_ref, w_ref, o_ref, acc_ref, *, alpha, apply_act):
    """One (tm, tn) output tile; K is the last ("arbitrary") grid axis."""
    @pl.when(pl.program_id(2) == 0)
    def _init():
        acc_ref[...] = jnp.zeros_like(acc_ref)

    acc_ref[...] += jnp.dot(x_ref[...], w_ref[...],
                            preferred_element_type=jnp.float32)

    @pl.when(pl.program_id(2) == pl.num_programs(2) - 1)
    def _finalize():
        y = acc_ref[...]
        if apply_act:                       # static; final layer skips the VPU op
            y = jnp.where(y >= 0, y, alpha * y)
        o_ref[...] = y.astype(o_ref.dtype)


def _round_up(x, m):
    return (x + m - 1) // m * m


def _largest_tile(total, target, step):
    """Largest multiple of `step` that divides `total`, capped at `target`."""
    best = step
    d = step
    cap = min(target, total)
    while d <= cap:
        if total % d == 0:
            best = d
        d += step
    return best


def _choose_tiles(M_pad, N_pad, K_pad, out_bytes, budget=20 * 1024 * 1024):
    """Pick (tm, tn, tk) that exactly divide the padded dims and whose
    double-buffered VMEM footprint stays under `budget` (safe on v5e/v6e/v7x)."""
    tn = _largest_tile(N_pad, 512, 128)

    def footprint(tm, tk):
        return (2 * tm * tk * 2        # X tiles (bf16, double-buffered)
                + 2 * tk * tn * 2      # W tiles (bf16, double-buffered)
                + 2 * tm * tn * out_bytes   # output tiles
                + tm * tn * 4)         # f32 accumulator scratch

    for tk_cap in (2048, 1024, 512, 256, 128):
        tk = _largest_tile(K_pad, tk_cap, 128)
        for tm_cap in (1024, 512, 256, 128, 64, 32, 16):
            tm = _largest_tile(M_pad, tm_cap, 16)
            if footprint(tm, tk) <= budget:
                return tm, tn, tk
    return 16, tn, 128   # minimal fallback, always fits


def matmul_act(x, w_packed, n_out, *, alpha, apply_act, out_dtype):
    """leaky_relu(x @ w)[:M, :n_out].

    x:        [M, K]       (cast to bf16, zero-padded to [M_pad, K_pad])
    w_packed: [K_pad, N_pad] bf16, K/N already zero-padded to multiples of 128.
    """
    M, K = x.shape
    K_pad, N_pad = w_packed.shape
    assert K_pad >= K and K_pad % 128 == 0 and N_pad % 128 == 0

    M_pad = _round_up(M, 16)
    x = x.astype(jnp.bfloat16)
    if (M_pad, K_pad) != (M, K):
        x = jnp.pad(x, ((0, M_pad - M), (0, K_pad - K)))

    out_bytes = jnp.dtype(out_dtype).itemsize
    tm, tn, tk = _choose_tiles(M_pad, N_pad, K_pad, out_bytes)
    # Give v7x's second TensorCore a parallel grid step on the small layers.
    if (M_pad // tm) * (N_pad // tn) == 1 and M_pad % 32 == 0:
        tm = M_pad // 2

    grid = (M_pad // tm, N_pad // tn, K_pad // tk)

    out = pl.pallas_call(
        functools.partial(_matmul_act_kernel, alpha=alpha, apply_act=apply_act),
        out_shape=jax.ShapeDtypeStruct((M_pad, N_pad), out_dtype),
        grid_spec=pltpu.PrefetchScalarGridSpec(
            num_scalar_prefetch=0,
            grid=grid,
            in_specs=[
                pl.BlockSpec((tm, tk), lambda i, j, k: (i, k)),   # X tile
                pl.BlockSpec((tk, tn), lambda i, j, k: (k, j)),   # W tile
            ],
            out_specs=pl.BlockSpec((tm, tn), lambda i, j, k: (i, j)),
            scratch_shapes=[pltpu.VMEM((tm, tn), jnp.float32)],
        ),
        compiler_params=pltpu.CompilerParams(
            dimension_semantics=("parallel", "parallel", "arbitrary"),
            vmem_limit_bytes=48 * 1024 * 1024),
    )(x, w_packed)
    return out[:M, :n_out]


# ------------------------------ JAX glue ---------------------------------- #

def _extract_patches(x_nhwc, kh, kw, stride, pad):
    """im2col in NHWC. Returns ([B*Ho*Wo, kh*kw*C], Ho, Wo); patch order kh, kw, c."""
    B, H, W, C = x_nhwc.shape
    xp = jnp.pad(x_nhwc, ((0, 0), (pad, pad), (pad, pad), (0, 0)))
    Ho = (H + 2 * pad - kh) // stride + 1
    Wo = (W + 2 * pad - kw) // stride + 1
    cols = []
    for i in range(kh):
        for j in range(kw):
            cols.append(xp[:, i:i + stride * Ho:stride,
                           j:j + stride * Wo:stride, :])
    patches = jnp.concatenate(cols, axis=-1)          # [B, Ho, Wo, kh*kw*C]
    return patches.reshape(B * Ho * Wo, kh * kw * C), Ho, Wo


def _conv_layer_nhwc(h, w_packed, c_out, *, stride, pad, alpha, apply_act,
                     out_dtype):
    """Conv2d(kernel=4, stride, pad, bias=False) [+ LeakyReLU(alpha)] in NHWC."""
    B = h.shape[0]
    patches, Ho, Wo = _extract_patches(h, 4, 4, stride, pad)
    y = matmul_act(patches, w_packed, c_out,
                   alpha=alpha, apply_act=apply_act, out_dtype=out_dtype)
    return y.reshape(B, Ho, Wo, c_out)


def _spectral_normalize(w, n_iter=30):
    """W / sigma_max(W.reshape(C_out, -1)) — deterministic power iteration.
    (PyTorch's spectral_norm updates u/v statefully per forward; this is an
    init-time preprocessing equivalent.)"""
    c_out = w.shape[0]
    wm = w.reshape(c_out, -1).astype(jnp.float32)
    u = jnp.ones((c_out,), jnp.float32) / jnp.sqrt(jnp.float32(c_out))
    v = jnp.zeros((wm.shape[1],), jnp.float32)
    for _ in range(n_iter):
        v = wm.T @ u
        v = v / (jnp.linalg.norm(v) + 1e-12)
        u = wm @ v
        u = u / (jnp.linalg.norm(u) + 1e-12)
    sigma = u @ (wm @ v)
    return w / sigma


def _pack_weight(w):
    """[C_out, C_in, KH, KW] -> bf16 [K_pad, N_pad]; K order (kh, kw, c_in)."""
    c_out, c_in, kh, kw = w.shape
    K = kh * kw * c_in
    wmat = jnp.transpose(w, (2, 3, 1, 0)).reshape(K, c_out)
    K_pad = _round_up(K, 128)
    N_pad = _round_up(c_out, 128)
    wmat = jnp.pad(wmat, ((0, K_pad - K), (0, N_pad - c_out)))
    return wmat.astype(jnp.bfloat16)


def init_discriminator_params(key, hidden_size, image_channels):
    chs = [image_channels, hidden_size // 2, hidden_size,
           hidden_size * 2, hidden_size * 4, hidden_size * 8]
    packed = []
    for i in range(5):  # spectral-normed conv layers
        key, sub = jax.random.split(key)
        w = 0.02 * jax.random.normal(sub, (chs[i + 1], chs[i], 4, 4), jnp.float32)
        packed.append(_pack_weight(_spectral_normalize(w)))
    key, sub = jax.random.split(key)  # final conv (no spectral norm in reference)
    w = 0.02 * jax.random.normal(sub, (1, chs[5], 4, 4), jnp.float32)
    packed.append(_pack_weight(w))
    return packed


def make_discriminator_forward(hidden_size, image_channels):
    c_outs = [hidden_size // 2, hidden_size, hidden_size * 2,
              hidden_size * 4, hidden_size * 8, 1]

    def forward(params, x):
        """x: NCHW float32; spatial must be 128 so the final 4x4 valid conv -> 1x1."""
        h = jnp.transpose(x, (0, 2, 3, 1)).astype(jnp.bfloat16)   # NCHW -> NHWC
        for li in range(5):
            h = _conv_layer_nhwc(h, params[li], c_outs[li], stride=2, pad=1,
                                 alpha=0.2, apply_act=True,
                                 out_dtype=jnp.bfloat16)
        h = _conv_layer_nhwc(h, params[5], c_outs[5], stride=1, pad=0,
                             alpha=1.0, apply_act=False,
                             out_dtype=jnp.float32)
        return jnp.transpose(h, (0, 3, 1, 2))                     # back to NCHW

    return forward


# --------------------------------- main ------------------------------------ #

if __name__ == "__main__":
    hidden_size = 32      # scaled-down from 256 for a small synthetic run
    image_channels = 3
    batch = 2
    spatial = 128         # 5 stride-2 convs (128 -> 4) then 4x4 valid conv -> 1x1

    key = jax.random.PRNGKey(0)
    kp, kx = jax.random.split(key)
    params = init_discriminator_params(kp, hidden_size, image_channels)
    x = jax.random.normal(kx, (batch, image_channels, spatial, spatial),
                          jnp.float32)

    fwd = jax.jit(make_discriminator_forward(hidden_size, image_channels))
    out = jax.block_until_ready(fwd(params, x))

    assert out.shape == (batch, 1, 1, 1), out.shape
    assert out.dtype == jnp.float32
    assert bool(jnp.all(jnp.isfinite(out)))
    print("KERNEL_OK")
</pallas_src>

<mosaic_0001>
module attributes {stable_mosaic.version = 11 : i64} {
  func.func @_matmul_act_kernel(%arg0: i32, %arg1: i32, %arg2: i32, %arg3: memref<1024x128xbf16, #tpu.memory_space<vmem>>, %arg4: memref<128x128xbf16, #tpu.memory_space<vmem>>, %arg5: memref<1024x128xbf16, #tpu.memory_space<vmem>>, %arg6: memref<1024x128xf32, #tpu.memory_space<vmem>>) attributes {dimension_semantics = [#tpu.dimension_semantics<parallel>, #tpu.dimension_semantics<parallel>, #tpu.dimension_semantics<arbitrary>], iteration_bounds = array<i64: 8, 1, 1>, scalar_prefetch = 0 : i64, scratch_operands = 1 : i64, tpu.core_type = #tpu.core_type<tc>, window_params = [{transform_indices = @transform_0, window_bounds = array<i64: 1024, 128>}, {transform_indices = @transform_1, window_bounds = array<i64: 128, 128>}, {transform_indices = @transform_2, window_bounds = array<i64: 1024, 128>}]} {
    %c0_i32 = arith.constant 0 : i32
    %0 = arith.cmpi eq, %arg2, %c0_i32 : i32
    %1 = arith.extui %0 : i1 to i32
    %c0_i32_0 = arith.constant 0 : i32
    %2 = arith.cmpi ne, %1, %c0_i32_0 : i32
    scf.if %2 {
      %cst_10 = arith.constant 0.000000e+00 : f32
      %12 = vector.broadcast %cst_10 : f32 to vector<1024x128xf32>
      %c0_11 = arith.constant 0 : index
      %c0_12 = arith.constant 0 : index
      %13 = vector.load %arg6[%c0_11, %c0_12] : memref<1024x128xf32, #tpu.memory_space<vmem>>, vector<1024x128xf32>
      tpu.vector_store %arg6[%c0_11, %c0_12], %12 {strides = array<i32>} : memref<1024x128xf32, #tpu.memory_space<vmem>>, vector<1024x128xf32>,
    } else {
    }
    %c0 = arith.constant 0 : index
    %c0_1 = arith.constant 0 : index
    %3 = vector.load %arg6[%c0, %c0_1] : memref<1024x128xf32, #tpu.memory_space<vmem>>, vector<1024x128xf32>
    %c0_2 = arith.constant 0 : index
    %c0_3 = arith.constant 0 : index
    %4 = vector.load %arg3[%c0_2, %c0_3] : memref<1024x128xbf16, #tpu.memory_space<vmem>>, vector<1024x128xbf16>
    %c0_4 = arith.constant 0 : index
    %c0_5 = arith.constant 0 : index
    %5 = vector.load %arg4[%c0_4, %c0_5] : memref<128x128xbf16, #tpu.memory_space<vmem>>, vector<128x128xbf16>
    %cst = arith.constant dense<0.000000e+00> : vector<1024x128xf32>
    %6 = tpu.matmul %4, %5, %cst {dimension_numbers = #tpu.dot_dimension_numbers<[1], [0], [0], [1], [0, 0, 1, 1], [], []>} : vector<1024x128xbf16>, vector<128x128xbf16>, vector<1024x128xf32> -> vector<1024x128xf32>
    %7 = arith.addf %3, %6 : vector<1024x128xf32>
    %c0_6 = arith.constant 0 : index
    %c0_7 = arith.constant 0 : index
    %8 = vector.load %arg6[%c0_6, %c0_7] : memref<1024x128xf32, #tpu.memory_space<vmem>>, vector<1024x128xf32>
    tpu.vector_store %arg6[%c0_6, %c0_7], %7 {strides = array<i32>} : memref<1024x128xf32, #tpu.memory_space<vmem>>, vector<1024x128xf32>,
    %c0_i32_8 = arith.constant 0 : i32
    %9 = arith.cmpi eq, %arg2, %c0_i32_8 : i32
    %10 = arith.extui %9 : i1 to i32
    %c0_i32_9 = arith.constant 0 : i32
    %11 = arith.cmpi ne, %10, %c0_i32_9 : i32
    scf.if %11 {
      %c0_10 = arith.constant 0 : index
      %c0_11 = arith.constant 0 : index
      %12 = vector.load %arg6[%c0_10, %c0_11] : memref<1024x128xf32, #tpu.memory_space<vmem>>, vector<1024x128xf32>
      %cst_12 = arith.constant 0.000000e+00 : f32
      %13 = vector.broadcast %cst_12 : f32 to vector<1024x128xf32>
      %14 = arith.cmpf oge, %12, %13 : vector<1024x128xf32>
      %cst_13 = arith.constant 2.000000e-01 : f32
      %15 = vector.broadcast %cst_13 : f32 to vector<1024x128xf32>
      %16 = arith.mulf %15, %12 : vector<1024x128xf32>
      %17 = arith.select %14, %12, %16 : vector<1024x128xi1>, vector<1024x128xf32>
      %18 = arith.truncf %17 : vector<1024x128xf32> to vector<1024x128xbf16>
      %c0_14 = arith.constant 0 : index
      %c0_15 = arith.constant 0 : index
      %19 = vector.load %arg5[%c0_14, %c0_15] : memref<1024x128xbf16, #tpu.memory_space<vmem>>, vector<1024x128xbf16>
      tpu.vector_store %arg5[%c0_14, %c0_15], %18 {strides = array<i32>} : memref<1024x128xbf16, #tpu.memory_space<vmem>>, vector<1024x128xbf16>,
    } else {
    }
    return
  }
  func.func @transform_0(%arg0: i32, %arg1: i32, %arg2: i32) -> (i32, i32) {
    %c0_i32 = arith.constant 0 : i32
    return %arg0, %arg2 : i32, i32
  }
  func.func @transform_1(%arg0: i32, %arg1: i32, %arg2: i32) -> (i32, i32) {
    %c0_i32 = arith.constant 0 : i32
    return %arg2, %arg1 : i32, i32
  }
  func.func @transform_2(%arg0: i32, %arg1: i32, %arg2: i32) -> (i32, i32) {
    %c0_i32 = arith.constant 0 : i32
    return %arg0, %arg1 : i32, i32
  }
}

module attributes {stable_mosaic.version = 11 : i64} {
  func.func @_matmul_act_kernel(%arg0: i32, %arg1: i32, %arg2: i32, %arg3: memref<1024x256xbf16, #tpu.memory_space<vmem>>, %arg4: memref<256x128xbf16, #tpu.memory_space<vmem>>, %arg5: memref<1024x128xbf16, #tpu.memory_space<vmem>>, %arg6: memref<1024x128xf32, #tpu.memory_space<vmem>>) attributes {dimension_semantics = [#tpu.dimension_semantics<parallel>, #tpu.dimension_semantics<parallel>, #tpu.dimension_semantics<arbitrary>], iteration_bounds = array<i64: 2, 1, 1>, scalar_prefetch = 0 : i64, scratch_operands = 1 : i64, tpu.core_type = #tpu.core_type<tc>, window_params = [{transform_indices = @transform_0, window_bounds = array<i64: 1024, 256>}, {transform_indices = @transform_1, window_bounds = array<i64: 256, 128>}, {transform_indices = @transform_2, window_bounds = array<i64: 1024, 128>}]} {
    %c0_i32 = arith.constant 0 : i32
    %0 = arith.cmpi eq, %arg2, %c0_i32 : i32
    %1 = arith.extui %0 : i1 to i32
    %c0_i32_0 = arith.constant 0 : i32
    %2 = arith.cmpi ne, %1, %c0_i32_0 : i32
    scf.if %2 {
      %cst_10 = arith.constant 0.000000e+00 : f32
      %12 = vector.broadcast %cst_10 : f32 to vector<1024x128xf32>
      %c0_11 = arith.constant 0 : index
      %c0_12 = arith.constant 0 : index
      %13 = vector.load %arg6[%c0_11, %c0_12] : memref<1024x128xf32, #tpu.memory_space<vmem>>, vector<1024x128xf32>
      tpu.vector_store %arg6[%c0_11, %c0_12], %12 {strides = array<i32>} : memref<1024x128xf32, #tpu.memory_space<vmem>>, vector<1024x128xf32>,
    } else {
    }
    %c0 = arith.constant 0 : index
    %c0_1 = arith.constant 0 : index
    %3 = vector.load %arg6[%c0, %c0_1] : memref<1024x128xf32, #tpu.memory_space<vmem>>, vector<1024x128xf32>
    %c0_2 = arith.constant 0 : index
    %c0_3 = arith.constant 0 : index
    %4 = vector.load %arg3[%c0_2, %c0_3] : memref<1024x256xbf16, #tpu.memory_space<vmem>>, vector<1024x256xbf16>
    %c0_4 = arith.constant 0 : index
    %c0_5 = arith.constant 0 : index
    %5 = vector.load %arg4[%c0_4, %c0_5] : memref<256x128xbf16, #tpu.memory_space<vmem>>, vector<256x128xbf16>
    %cst = arith.constant dense<0.000000e+00> : vector<1024x128xf32>
    %6 = tpu.matmul %4, %5, %cst {dimension_numbers = #tpu.dot_dimension_numbers<[1], [0], [0], [1], [0, 0, 1, 1], [], []>} : vector<1024x256xbf16>, vector<256x128xbf16>, vector<1024x128xf32> -> vector<1024x128xf32>
    %7 = arith.addf %3, %6 : vector<1024x128xf32>
    %c0_6 = arith.constant 0 : index
    %c0_7 = arith.constant 0 : index
    %8 = vector.load %arg6[%c0_6, %c0_7] : memref<1024x128xf32, #tpu.memory_space<vmem>>, vector<1024x128xf32>
    tpu.vector_store %arg6[%c0_6, %c0_7], %7 {strides = array<i32>} : memref<1024x128xf32, #tpu.memory_space<vmem>>, vector<1024x128xf32>,
    %c0_i32_8 = arith.constant 0 : i32
    %9 = arith.cmpi eq, %arg2, %c0_i32_8 : i32
    %10 = arith.extui %9 : i1 to i32
    %c0_i32_9 = arith.constant 0 : i32
    %11 = arith.cmpi ne, %10, %c0_i32_9 : i32
    scf.if %11 {
      %c0_10 = arith.constant 0 : index
      %c0_11 = arith.constant 0 : index
      %12 = vector.load %arg6[%c0_10, %c0_11] : memref<1024x128xf32, #tpu.memory_space<vmem>>, vector<1024x128xf32>
      %cst_12 = arith.constant 0.000000e+00 : f32
      %13 = vector.broadcast %cst_12 : f32 to vector<1024x128xf32>
      %14 = arith.cmpf oge, %12, %13 : vector<1024x128xf32>
      %cst_13 = arith.constant 2.000000e-01 : f32
      %15 = vector.broadcast %cst_13 : f32 to vector<1024x128xf32>
      %16 = arith.mulf %15, %12 : vector<1024x128xf32>
      %17 = arith.select %14, %12, %16 : vector<1024x128xi1>, vector<1024x128xf32>
      %18 = arith.truncf %17 : vector<1024x128xf32> to vector<1024x128xbf16>
      %c0_14 = arith.constant 0 : index
      %c0_15 = arith.constant 0 : index
      %19 = vector.load %arg5[%c0_14, %c0_15] : memref<1024x128xbf16, #tpu.memory_space<vmem>>, vector<1024x128xbf16>
      tpu.vector_store %arg5[%c0_14, %c0_15], %18 {strides = array<i32>} : memref<1024x128xbf16, #tpu.memory_space<vmem>>, vector<1024x128xbf16>,
    } else {
    }
    return
  }
  func.func @transform_0(%arg0: i32, %arg1: i32, %arg2: i32) -> (i32, i32) {
    %c0_i32 = arith.constant 0 : i32
    return %arg0, %arg2 : i32, i32
  }
  func.func @transform_1(%arg0: i32, %arg1: i32, %arg2: i32) -> (i32, i32) {
    %c0_i32 = arith.constant 0 : i32
    return %arg2, %arg1 : i32, i32
  }
  func.func @transform_2(%arg0: i32, %arg1: i32, %arg2: i32) -> (i32, i32) {
    %c0_i32 = arith.constant 0 : i32
    return %arg0, %arg1 : i32, i32
  }
}

module attributes {stable_mosaic.version = 11 : i64} {
  func.func @_matmul_act_kernel(%arg0: i32, %arg1: i32, %arg2: i32, %arg3: memref<256x512xbf16, #tpu.memory_space<vmem>>, %arg4: memref<512x128xbf16, #tpu.memory_space<vmem>>, %arg5: memref<256x128xbf16, #tpu.memory_space<vmem>>, %arg6: memref<256x128xf32, #tpu.memory_space<vmem>>) attributes {dimension_semantics = [#tpu.dimension_semantics<parallel>, #tpu.dimension_semantics<parallel>, #tpu.dimension_semantics<arbitrary>], iteration_bounds = array<i64: 2, 1, 1>, scalar_prefetch = 0 : i64, scratch_operands = 1 : i64, tpu.core_type = #tpu.core_type<tc>, window_params = [{transform_indices = @transform_0, window_bounds = array<i64: 256, 512>}, {transform_indices = @transform_1, window_bounds = array<i64: 512, 128>}, {transform_indices = @transform_2, window_bounds = array<i64: 256, 128>}]} {
    %c0_i32 = arith.constant 0 : i32
    %0 = arith.cmpi eq, %arg2, %c0_i32 : i32
    %1 = arith.extui %0 : i1 to i32
    %c0_i32_0 = arith.constant 0 : i32
    %2 = arith.cmpi ne, %1, %c0_i32_0 : i32
    scf.if %2 {
      %cst_10 = arith.constant 0.000000e+00 : f32
      %12 = vector.broadcast %cst_10 : f32 to vector<256x128xf32>
      %c0_11 = arith.constant 0 : index
      %c0_12 = arith.constant 0 : index
      %13 = vector.load %arg6[%c0_11, %c0_12] : memref<256x128xf32, #tpu.memory_space<vmem>>, vector<256x128xf32>
      tpu.vector_store %arg6[%c0_11, %c0_12], %12 {strides = array<i32>} : memref<256x128xf32, #tpu.memory_space<vmem>>, vector<256x128xf32>,
    } else {
    }
    %c0 = arith.constant 0 : index
    %c0_1 = arith.constant 0 : index
    %3 = vector.load %arg6[%c0, %c0_1] : memref<256x128xf32, #tpu.memory_space<vmem>>, vector<256x128xf32>
    %c0_2 = arith.constant 0 : index
    %c0_3 = arith.constant 0 : index
    %4 = vector.load %arg3[%c0_2, %c0_3] : memref<256x512xbf16, #tpu.memory_space<vmem>>, vector<256x512xbf16>
    %c0_4 = arith.constant 0 : index
    %c0_5 = arith.constant 0 : index
    %5 = vector.load %arg4[%c0_4, %c0_5] : memref<512x128xbf16, #tpu.memory_space<vmem>>, vector<512x128xbf16>
    %cst = arith.constant dense<0.000000e+00> : vector<256x128xf32>
    %6 = tpu.matmul %4, %5, %cst {dimension_numbers = #tpu.dot_dimension_numbers<[1], [0], [0], [1], [0, 0, 1, 1], [], []>} : vector<256x512xbf16>, vector<512x128xbf16>, vector<256x128xf32> -> vector<256x128xf32>
    %7 = arith.addf %3, %6 : vector<256x128xf32>
    %c0_6 = arith.constant 0 : index
    %c0_7 = arith.constant 0 : index
    %8 = vector.load %arg6[%c0_6, %c0_7] : memref<256x128xf32, #tpu.memory_space<vmem>>, vector<256x128xf32>
    tpu.vector_store %arg6[%c0_6, %c0_7], %7 {strides = array<i32>} : memref<256x128xf32, #tpu.memory_space<vmem>>, vector<256x128xf32>,
    %c0_i32_8 = arith.constant 0 : i32
    %9 = arith.cmpi eq, %arg2, %c0_i32_8 : i32
    %10 = arith.extui %9 : i1 to i32
    %c0_i32_9 = arith.constant 0 : i32
    %11 = arith.cmpi ne, %10, %c0_i32_9 : i32
    scf.if %11 {
      %c0_10 = arith.constant 0 : index
      %c0_11 = arith.constant 0 : index
      %12 = vector.load %arg6[%c0_10, %c0_11] : memref<256x128xf32, #tpu.memory_space<vmem>>, vector<256x128xf32>
      %cst_12 = arith.constant 0.000000e+00 : f32
      %13 = vector.broadcast %cst_12 : f32 to vector<256x128xf32>
      %14 = arith.cmpf oge, %12, %13 : vector<256x128xf32>
      %cst_13 = arith.constant 2.000000e-01 : f32
      %15 = vector.broadcast %cst_13 : f32 to vector<256x128xf32>
      %16 = arith.mulf %15, %12 : vector<256x128xf32>
      %17 = arith.select %14, %12, %16 : vector<256x128xi1>, vector<256x128xf32>
      %18 = arith.truncf %17 : vector<256x128xf32> to vector<256x128xbf16>
      %c0_14 = arith.constant 0 : index
      %c0_15 = arith.constant 0 : index
      %19 = vector.load %arg5[%c0_14, %c0_15] : memref<256x128xbf16, #tpu.memory_space<vmem>>, vector<256x128xbf16>
      tpu.vector_store %arg5[%c0_14, %c0_15], %18 {strides = array<i32>} : memref<256x128xbf16, #tpu.memory_space<vmem>>, vector<256x128xbf16>,
    } else {
    }
    return
  }
  func.func @transform_0(%arg0: i32, %arg1: i32, %arg2: i32) -> (i32, i32) {
    %c0_i32 = arith.constant 0 : i32
    return %arg0, %arg2 : i32, i32
  }
  func.func @transform_1(%arg0: i32, %arg1: i32, %arg2: i32) -> (i32, i32) {
    %c0_i32 = arith.constant 0 : i32
    return %arg2, %arg1 : i32, i32
  }
  func.func @transform_2(%arg0: i32, %arg1: i32, %arg2: i32) -> (i32, i32) {
    %c0_i32 = arith.constant 0 : i32
    return %arg0, %arg1 : i32, i32
  }
}

module attributes {stable_mosaic.version = 11 : i64} {
  func.func @_matmul_act_kernel(%arg0: i32, %arg1: i32, %arg2: i32, %arg3: memref<64x1024xbf16, #tpu.memory_space<vmem>>, %arg4: memref<1024x128xbf16, #tpu.memory_space<vmem>>, %arg5: memref<64x128xbf16, #tpu.memory_space<vmem>>, %arg6: memref<64x128xf32, #tpu.memory_space<vmem>>) attributes {dimension_semantics = [#tpu.dimension_semantics<parallel>, #tpu.dimension_semantics<parallel>, #tpu.dimension_semantics<arbitrary>], iteration_bounds = array<i64: 2, 1, 1>, scalar_prefetch = 0 : i64, scratch_operands = 1 : i64, tpu.core_type = #tpu.core_type<tc>, window_params = [{transform_indices = @transform_0, window_bounds = array<i64: 64, 1024>}, {transform_indices = @transform_1, window_bounds = array<i64: 1024, 128>}, {transform_indices = @transform_2, window_bounds = array<i64: 64, 128>}]} {
    %c0_i32 = arith.constant 0 : i32
    %0 = arith.cmpi eq, %arg2, %c0_i32 : i32
    %1 = arith.extui %0 : i1 to i32
    %c0_i32_0 = arith.constant 0 : i32
    %2 = arith.cmpi ne, %1, %c0_i32_0 : i32
    scf.if %2 {
      %cst_10 = arith.constant 0.000000e+00 : f32
      %12 = vector.broadcast %cst_10 : f32 to vector<64x128xf32>
      %c0_11 = arith.constant 0 : index
      %c0_12 = arith.constant 0 : index
      %13 = vector.load %arg6[%c0_11, %c0_12] : memref<64x128xf32, #tpu.memory_space<vmem>>, vector<64x128xf32>
      tpu.vector_store %arg6[%c0_11, %c0_12], %12 {strides = array<i32>} : memref<64x128xf32, #tpu.memory_space<vmem>>, vector<64x128xf32>,
    } else {
    }
    %c0 = arith.constant 0 : index
    %c0_1 = arith.constant 0 : index
    %3 = vector.load %arg6[%c0, %c0_1] : memref<64x128xf32, #tpu.memory_space<vmem>>, vector<64x128xf32>
    %c0_2 = arith.constant 0 : index
    %c0_3 = arith.constant 0 : index
    %4 = vector.load %arg3[%c0_2, %c0_3] : memref<64x1024xbf16, #tpu.memory_space<vmem>>, vector<64x1024xbf16>
    %c0_4 = arith.constant 0 : index
    %c0_5 = arith.constant 0 : index
    %5 = vector.load %arg4[%c0_4, %c0_5] : memref<1024x128xbf16, #tpu.memory_space<vmem>>, vector<1024x128xbf16>
    %cst = arith.constant dense<0.000000e+00> : vector<64x128xf32>
    %6 = tpu.matmul %4, %5, %cst {dimension_numbers = #tpu.dot_dimension_numbers<[1], [0], [0], [1], [0, 0, 1, 1], [], []>} : vector<64x1024xbf16>, vector<1024x128xbf16>, vector<64x128xf32> -> vector<64x128xf32>
    %7 = arith.addf %3, %6 : vector<64x128xf32>
    %c0_6 = arith.constant 0 : index
    %c0_7 = arith.constant 0 : index
    %8 = vector.load %arg6[%c0_6, %c0_7] : memref<64x128xf32, #tpu.memory_space<vmem>>, vector<64x128xf32>
    tpu.vector_store %arg6[%c0_6, %c0_7], %7 {strides = array<i32>} : memref<64x128xf32, #tpu.memory_space<vmem>>, vector<64x128xf32>,
    %c0_i32_8 = arith.constant 0 : i32
    %9 = arith.cmpi eq, %arg2, %c0_i32_8 : i32
    %10 = arith.extui %9 : i1 to i32
    %c0_i32_9 = arith.constant 0 : i32
    %11 = arith.cmpi ne, %10, %c0_i32_9 : i32
    scf.if %11 {
      %c0_10 = arith.constant 0 : index
      %c0_11 = arith.constant 0 : index
      %12 = vector.load %arg6[%c0_10, %c0_11] : memref<64x128xf32, #tpu.memory_space<vmem>>, vector<64x128xf32>
      %cst_12 = arith.constant 0.000000e+00 : f32
      %13 = vector.broadcast %cst_12 : f32 to vector<64x128xf32>
      %14 = arith.cmpf oge, %12, %13 : vector<64x128xf32>
      %cst_13 = arith.constant 2.000000e-01 : f32
      %15 = vector.broadcast %cst_13 : f32 to vector<64x128xf32>
      %16 = arith.mulf %15, %12 : vector<64x128xf32>
      %17 = arith.select %14, %12, %16 : vector<64x128xi1>, vector<64x128xf32>
      %18 = arith.truncf %17 : vector<64x128xf32> to vector<64x128xbf16>
      %c0_14 = arith.constant 0 : index
      %c0_15 = arith.constant 0 : index
      %19 = vector.load %arg5[%c0_14, %c0_15] : memref<64x128xbf16, #tpu.memory_space<vmem>>, vector<64x128xbf16>
      tpu.vector_store %arg5[%c0_14, %c0_15], %18 {strides = array<i32>} : memref<64x128xbf16, #tpu.memory_space<vmem>>, vector<64x128xbf16>,
    } else {
    }
    return
  }
  func.func @transform_0(%arg0: i32, %arg1: i32, %arg2: i32) -> (i32, i32) {
    %c0_i32 = arith.constant 0 : i32
    return %arg0, %arg2 : i32, i32
  }
  func.func @transform_1(%arg0: i32, %arg1: i32, %arg2: i32) -> (i32, i32) {
    %c0_i32 = arith.constant 0 : i32
    return %arg2, %arg1 : i32, i32
  }
  func.func @transform_2(%arg0: i32, %arg1: i32, %arg2: i32) -> (i32, i32) {
    %c0_i32 = arith.constant 0 : i32
    return %arg0, %arg1 : i32, i32
  }
}

module attributes {stable_mosaic.version = 11 : i64} {
  func.func @_matmul_act_kernel(%arg0: i32, %arg1: i32, %arg2: i32, %arg3: memref<16x2048xbf16, #tpu.memory_space<vmem>>, %arg4: memref<2048x256xbf16, #tpu.memory_space<vmem>>, %arg5: memref<16x256xbf16, #tpu.memory_space<vmem>>, %arg6: memref<16x256xf32, #tpu.memory_space<vmem>>) attributes {dimension_semantics = [#tpu.dimension_semantics<parallel>, #tpu.dimension_semantics<parallel>, #tpu.dimension_semantics<arbitrary>], iteration_bounds = array<i64: 2, 1, 1>, scalar_prefetch = 0 : i64, scratch_operands = 1 : i64, tpu.core_type = #tpu.core_type<tc>, window_params = [{transform_indices = @transform_0, window_bounds = array<i64: 16, 2048>}, {transform_indices = @transform_1, window_bounds = array<i64: 2048, 256>}, {transform_indices = @transform_2, window_bounds = array<i64: 16, 256>}]} {
    %c0_i32 = arith.constant 0 : i32
    %0 = arith.cmpi eq, %arg2, %c0_i32 : i32
    %1 = arith.extui %0 : i1 to i32
    %c0_i32_0 = arith.constant 0 : i32
    %2 = arith.cmpi ne, %1, %c0_i32_0 : i32
    scf.if %2 {
      %cst_10 = arith.constant 0.000000e+00 : f32
      %12 = vector.broadcast %cst_10 : f32 to vector<16x256xf32>
      %c0_11 = arith.constant 0 : index
      %c0_12 = arith.constant 0 : index
      %13 = vector.load %arg6[%c0_11, %c0_12] : memref<16x256xf32, #tpu.memory_space<vmem>>, vector<16x256xf32>
      tpu.vector_store %arg6[%c0_11, %c0_12], %12 {strides = array<i32>} : memref<16x256xf32, #tpu.memory_space<vmem>>, vector<16x256xf32>,
    } else {
    }
    %c0 = arith.constant 0 : index
    %c0_1 = arith.constant 0 : index
    %3 = vector.load %arg6[%c0, %c0_1] : memref<16x256xf32, #tpu.memory_space<vmem>>, vector<16x256xf32>
    %c0_2 = arith.constant 0 : index
    %c0_3 = arith.constant 0 : index
    %4 = vector.load %arg3[%c0_2, %c0_3] : memref<16x2048xbf16, #tpu.memory_space<vmem>>, vector<16x2048xbf16>
    %c0_4 = arith.constant 0 : index
    %c0_5 = arith.constant 0 : index
    %5 = vector.load %arg4[%c0_4, %c0_5] : memref<2048x256xbf16, #tpu.memory_space<vmem>>, vector<2048x256xbf16>
    %cst = arith.constant dense<0.000000e+00> : vector<16x256xf32>
    %6 = tpu.matmul %4, %5, %cst {dimension_numbers = #tpu.dot_dimension_numbers<[1], [0], [0], [1], [0, 0, 1, 1], [], []>} : vector<16x2048xbf16>, vector<2048x256xbf16>, vector<16x256xf32> -> vector<16x256xf32>
    %7 = arith.addf %3, %6 : vector<16x256xf32>
    %c0_6 = arith.constant 0 : index
    %c0_7 = arith.constant 0 : index
    %8 = vector.load %arg6[%c0_6, %c0_7] : memref<16x256xf32, #tpu.memory_space<vmem>>, vector<16x256xf32>
    tpu.vector_store %arg6[%c0_6, %c0_7], %7 {strides = array<i32>} : memref<16x256xf32, #tpu.memory_space<vmem>>, vector<16x256xf32>,
    %c0_i32_8 = arith.constant 0 : i32
    %9 = arith.cmpi eq, %arg2, %c0_i32_8 : i32
    %10 = arith.extui %9 : i1 to i32
    %c0_i32_9 = arith.constant 0 : i32
    %11 = arith.cmpi ne, %10, %c0_i32_9 : i32
    scf.if %11 {
      %c0_10 = arith.constant 0 : index
      %c0_11 = arith.constant 0 : index
      %12 = vector.load %arg6[%c0_10, %c0_11] : memref<16x256xf32, #tpu.memory_space<vmem>>, vector<16x256xf32>
      %cst_12 = arith.constant 0.000000e+00 : f32
      %13 = vector.broadcast %cst_12 : f32 to vector<16x256xf32>
      %14 = arith.cmpf oge, %12, %13 : vector<16x256xf32>
      %cst_13 = arith.constant 2.000000e-01 : f32
      %15 = vector.broadcast %cst_13 : f32 to vector<16x256xf32>
      %16 = arith.mulf %15, %12 : vector<16x256xf32>
      %17 = arith.select %14, %12, %16 : vector<16x256xi1>, vector<16x256xf32>
      %18 = arith.truncf %17 : vector<16x256xf32> to vector<16x256xbf16>
      %c0_14 = arith.constant 0 : index
      %c0_15 = arith.constant 0 : index
      %19 = vector.load %arg5[%c0_14, %c0_15] : memref<16x256xbf16, #tpu.memory_space<vmem>>, vector<16x256xbf16>
      tpu.vector_store %arg5[%c0_14, %c0_15], %18 {strides = array<i32>} : memref<16x256xbf16, #tpu.memory_space<vmem>>, vector<16x256xbf16>,
    } else {
    }
    return
  }
  func.func @transform_0(%arg0: i32, %arg1: i32, %arg2: i32) -> (i32, i32) {
    %c0_i32 = arith.constant 0 : i32
    return %arg0, %arg2 : i32, i32
  }
  func.func @transform_1(%arg0: i32, %arg1: i32, %arg2: i32) -> (i32, i32) {
    %c0_i32 = arith.constant 0 : i32
    return %arg2, %arg1 : i32, i32
  }
  func.func @transform_2(%arg0: i32, %arg1: i32, %arg2: i32) -> (i32, i32) {
    %c0_i32 = arith.constant 0 : i32
    return %arg0, %arg1 : i32, i32
  }
}

module attributes {stable_mosaic.version = 11 : i64} {
  func.func @_matmul_act_kernel(%arg0: i32, %arg1: i32, %arg2: i32, %arg3: memref<16x2048xbf16, #tpu.memory_space<vmem>>, %arg4: memref<2048x128xbf16, #tpu.memory_space<vmem>>, %arg5: memref<16x128xf32, #tpu.memory_space<vmem>>, %arg6: memref<16x128xf32, #tpu.memory_space<vmem>>) attributes {dimension_semantics = [#tpu.dimension_semantics<parallel>, #tpu.dimension_semantics<parallel>, #tpu.dimension_semantics<arbitrary>], iteration_bounds = array<i64: 1, 1, 2>, scalar_prefetch = 0 : i64, scratch_operands = 1 : i64, tpu.core_type = #tpu.core_type<tc>, window_params = [{transform_indices = @transform_0, window_bounds = array<i64: 16, 2048>}, {transform_indices = @transform_1, window_bounds = array<i64: 2048, 128>}, {transform_indices = @transform_2, window_bounds = array<i64: 16, 128>}]} {
    %c0_i32 = arith.constant 0 : i32
    %0 = arith.cmpi eq, %arg2, %c0_i32 : i32
    %1 = arith.extui %0 : i1 to i32
    %c0_i32_0 = arith.constant 0 : i32
    %2 = arith.cmpi ne, %1, %c0_i32_0 : i32
    scf.if %2 {
      %cst_9 = arith.constant 0.000000e+00 : f32
      %12 = vector.broadcast %cst_9 : f32 to vector<16x128xf32>
      %c0_10 = arith.constant 0 : index
      %c0_11 = arith.constant 0 : index
      %13 = vector.load %arg6[%c0_10, %c0_11] : memref<16x128xf32, #tpu.memory_space<vmem>>, vector<16x128xf32>
      tpu.vector_store %arg6[%c0_10, %c0_11], %12 {strides = array<i32>} : memref<16x128xf32, #tpu.memory_space<vmem>>, vector<16x128xf32>,
    } else {
    }
    %c0 = arith.constant 0 : index
    %c0_1 = arith.constant 0 : index
    %3 = vector.load %arg6[%c0, %c0_1] : memref<16x128xf32, #tpu.memory_space<vmem>>, vector<16x128xf32>
    %c0_2 = arith.constant 0 : index
    %c0_3 = arith.constant 0 : index
    %4 = vector.load %arg3[%c0_2, %c0_3] : memref<16x2048xbf16, #tpu.memory_space<vmem>>, vector<16x2048xbf16>
    %c0_4 = arith.constant 0 : index
    %c0_5 = arith.constant 0 : index
    %5 = vector.load %arg4[%c0_4, %c0_5] : memref<2048x128xbf16, #tpu.memory_space<vmem>>, vector<2048x128xbf16>
    %cst = arith.constant dense<0.000000e+00> : vector<16x128xf32>
    %6 = tpu.matmul %4, %5, %cst {dimension_numbers = #tpu.dot_dimension_numbers<[1], [0], [0], [1], [0, 0, 1, 1], [], []>} : vector<16x2048xbf16>, vector<2048x128xbf16>, vector<16x128xf32> -> vector<16x128xf32>
    %7 = arith.addf %3, %6 : vector<16x128xf32>
    %c0_6 = arith.constant 0 : index
    %c0_7 = arith.constant 0 : index
    %8 = vector.load %arg6[%c0_6, %c0_7] : memref<16x128xf32, #tpu.memory_space<vmem>>, vector<16x128xf32>
    tpu.vector_store %arg6[%c0_6, %c0_7], %7 {strides = array<i32>} : memref<16x128xf32, #tpu.memory_space<vmem>>, vector<16x128xf32>,
    %c1_i32 = arith.constant 1 : i32
    %9 = arith.cmpi eq, %arg2, %c1_i32 : i32
    %10 = arith.extui %9 : i1 to i32
    %c0_i32_8 = arith.constant 0 : i32
    %11 = arith.cmpi ne, %10, %c0_i32_8 : i32
    scf.if %11 {
      %c0_9 = arith.constant 0 : index
      %c0_10 = arith.constant 0 : index
      %12 = vector.load %arg6[%c0_9, %c0_10] : memref<16x128xf32, #tpu.memory_space<vmem>>, vector<16x128xf32>
      %c0_11 = arith.constant 0 : index
      %c0_12 = arith.constant 0 : index
      %13 = vector.load %arg5[%c0_11, %c0_12] : memref<16x128xf32, #tpu.memory_space<vmem>>, vector<16x128xf32>
      tpu.vector_store %arg5[%c0_11, %c0_12], %12 {strides = array<i32>} : memref<16x128xf32, #tpu.memory_space<vmem>>, vector<16x128xf32>,
    } else {
    }
    return
  }
  func.func @transform_0(%arg0: i32, %arg1: i32, %arg2: i32) -> (i32, i32) {
    %c0_i32 = arith.constant 0 : i32
    return %arg0, %arg2 : i32, i32
  }
  func.func @transform_1(%arg0: i32, %arg1: i32, %arg2: i32) -> (i32, i32) {
    %c0_i32 = arith.constant 0 : i32
    return %arg2, %arg1 : i32, i32
  }
  func.func @transform_2(%arg0: i32, %arg1: i32, %arg2: i32) -> (i32, i32) {
    %c0_i32 = arith.constant 0 : i32
    return %arg0, %arg1 : i32, i32
  }
}

</mosaic_0001>

<bundles_post_ra>
// kernel: forward.6
= control target key start
LH: loop header
LB: loop body
LE: loop exit
PB: predicated region body
PF: predicated region fallthrough
CT: control target
= control target key end

     0   :  { %s4200_s9 = smov 0   ;;  %s4202_s10 = smov 0   ;;  %s4411_s0 = inlined_call_operand.vmem [shape: bf16[8192,128], index: 0, kind: input, shape index: {}]   ;;  %s4412_s1 = inlined_call_operand.vmem [shape: bf16[128,128], index: 1, kind: input, shape index: {}]   ;;  %s4413_s2 = inlined_call_operand.vmem [shape: bf16[8192,128], index: 2, kind: output, shape index: {}]  }
   0x1   :  { %s4204_s11 = smov 0  }
   0x2 LB: > { %s31_s12 = sadd.s32 1, %s4179_s10  ;;  %p3115_p0 = scmp.ge.s32.totalorder %s4183_s11, 1  ;;  %s4183_s11 = sphi %s4204_s11, %s12_s11   ;;  %s4179_s10 = sphi %s4202_s10, %s4415_s10   ;;  %s4175_s9 = sphi %s4200_s9, %s4414_s9  }
   0x3   : > { %p33_p1 = scmp.ge.s32.totalorder %s31_s12, 8  ;;  %p155_p2 = scmp.lt.s32.totalorder %s4183_s11, 9 }
   0x5   : > { %s4417_s12 = smov (%p33_p1, %s31_s12), 0  ;;  %p156_p3 = pnand %p3115_p0, %p155_p2 }
   0x6   : > { %v4089_v0 = vld [vmem:[%s4412_s1] sm:$0xff] (!%p156_p3)   ;;  %s3116_s15 = sshll.u32 (!%p156_p3), %s4175_s9, 7  ;;  %v4090_v1 = vld [vmem:[%s4412_s1 + $0x8] sm:$0xff] (!%p156_p3)   ;;  %v4091_v2 = vld [vmem:[%s4412_s1 + $0x10] sm:$0xff] (!%p156_p3)  }
   0x7   : > { %159 = sbr.rel (%p156_p3) target bundleno = 382 (0x17e), region = 28  ;;  %p192_p4 = scmp.lt.s32.totalorder (!%p156_p3), %s3116_s15, 1023  ;;  %3905 = vmatprep.subr.bf16.mxu0 (!%p156_p3), %v4089_v0  ;;  %4049 = vmatprep.subr.bf16.mxu1 (!%p156_p3), %v4089_v0  ;;  %v4092_v3 = vld [vmem:[%s4412_s1 + $0x18] sm:$0xff] (!%p156_p3)   ;;  %v4093_v6 = vld [vmem:[%s4412_s1 + $0x20] sm:$0xff] (!%p156_p3)   ;;  %v4094_v7 = vld [vmem:[%s4412_s1 + $0x28] sm:$0xff] (!%p156_p3)  }
   0x8   : > { %3906 = vmatpush3.bf16.msra.mxu0 (!%p156_p3), %v4089_v0  ;;  %4057 = vmatpush3.bf16.msra.mxu1 (!%p156_p3), %v4089_v0  ;;  %v4095_v8 = vld [vmem:[%s4412_s1 + $0x30] sm:$0xff] (!%p156_p3)   ;;  %v4096_v9 = vld [vmem:[%s4412_s1 + $0x38] sm:$0xff] (!%p156_p3)  }
   0x9   : > { %3907 = vmatprep.subr.bf16.mxu0 (!%p156_p3), %v4090_v1  ;;  %4050 = vmatprep.subr.bf16.mxu1 (!%p156_p3), %v4090_v1 }
   0xc   : > { %3908 = vmatpush3.bf16.msra.mxu0 (!%p156_p3), %v4090_v1  ;;  %4058 = vmatpush3.bf16.msra.mxu1 (!%p156_p3), %v4090_v1 }
   0xd   : > { %3909 = vmatprep.subr.bf16.mxu0 (!%p156_p3), %v4091_v2  ;;  %4051 = vmatprep.subr.bf16.mxu1 (!%p156_p3), %v4091_v2 }
   0xe   : > { %s4419_s15 = smov (!%p192_p4, %s3116_s15), 1023 }
   0xf   : > { %s3117_s20 = sshll.u32 %s4419_s15, 2 }
  0x10   : > { %s4235_s23 = scalar_lea.vmem %s4411_s0, %s3117_s20  ;;  %3910 = vmatpush3.bf16.msra.mxu0 %v4091_v2  ;;  %4059 = vmatpush3.bf16.msra.mxu1 %v4091_v2  ;;  %s4321_s8 = scalar_lea.vmem %s4413_s2, %s3117_s20 }
  0x11   : > { %v4097_v4 = vld [vmem:[%s4235_s23] sm:$0xff]   ;;  %3911 = vmatprep.subr.bf16.mxu0 %v4092_v3  ;;  %4052 = vmatprep.subr.bf16.mxu1 %v4092_v3  ;;  %v4099_v10 = vld [vmem:[%s4235_s23 + $0x8] sm:$0xff]   ;;  %v4101_v12 = vld [vmem:[%s4235_s23 + $0x10] sm:$0xff]  }
  0x12   : > { %v4098_v5 = vld [vmem:[%s4235_s23 + $0x100] sm:$0xff]   ;;  %3921 = vmatprep.mubr.bf16.mxu0 %v4097_v4  ;;  %v4100_v11 = vld [vmem:[%s4235_s23 + $0x108] sm:$0xff]   ;;  %v4102_v13 = vld [vmem:[%s4235_s23 + $0x110] sm:$0xff]  }
  0x13   : > { %3985 = vmatprep.mubr.bf16.mxu1 %v4098_v5  ;;  %v4103_v14 = vld [vmem:[%s4235_s23 + $0x18] sm:$0xff]   ;;  %v4105_v16 = vld [vmem:[%s4235_s23 + $0x20] sm:$0xff]   ;;  %v4107_v18 = vld [vmem:[%s4235_s23 + $0x28] sm:$0xff]  }
  0x14   : > { %3912 = vmatpush3.bf16.msra.mxu0 %v4092_v3  ;;  %4060 = vmatpush3.bf16.msra.mxu1 %v4092_v3  ;;  %v4104_v15 = vld [vmem:[%s4235_s23 + $0x118] sm:$0xff]   ;;  %v4106_v17 = vld [vmem:[%s4235_s23 + $0x120] sm:$0xff]   ;;  %v4108_v19 = vld [vmem:[%s4235_s23 + $0x128] sm:$0xff]  }
  0x15   : > { %3913 = vmatprep.subr.bf16.mxu0 %v4093_v6  ;;  %4053 = vmatprep.subr.bf16.mxu1 %v4093_v6  ;;  %v4109_v20 = vld [vmem:[%s4235_s23 + $0x30] sm:$0xff]   ;;  %v4111_v22 = vld [vmem:[%s4235_s23 + $0x38] sm:$0xff]   ;;  %v4113_v24 = vld [vmem:[%s4235_s23 + $0x40] sm:$0xff]  }
  0x16   : > { %v4110_v21 = vld [vmem:[%s4235_s23 + $0x130] sm:$0xff]   ;;  %v4112_v23 = vld [vmem:[%s4235_s23 + $0x138] sm:$0xff]   ;;  %v4114_v25 = vld [vmem:[%s4235_s23 + $0x140] sm:$0xff]  }
  0x17   : > { %v4115_v26 = vld [vmem:[%s4235_s23 + $0x48] sm:$0xff]   ;;  %v4117_v28 = vld [vmem:[%s4235_s23 + $0x50] sm:$0xff]   ;;  %v4119_v30 = vld [vmem:[%s4235_s23 + $0x58] sm:$0xff]  }
  0x18   : > { %3914 = vmatpush3.bf16.msra.mxu0 %v4093_v6  ;;  %4061 = vmatpush3.bf16.msra.mxu1 %v4093_v6  ;;  %v4116_v27 = vld [vmem:[%s4235_s23 + $0x148] sm:$0xff]   ;;  %v4118_v29 = vld [vmem:[%s4235_s23 + $0x150] sm:$0xff]   ;;  %v4120_v31 = vld [vmem:[%s4235_s23 + $0x158] sm:$0xff]  }
  0x19   : > { %3915 = vmatprep.subr.bf16.mxu0 %v4094_v7  ;;  %4054 = vmatprep.subr.bf16.mxu1 %v4094_v7  ;;  %v4121_v32 = vld [vmem:[%s4235_s23 + $0x60] sm:$0xff]   ;;  %v4123_v34 = vld [vmem:[%s4235_s23 + $0x68] sm:$0xff]   ;;  %v4125_v36 = vld [vmem:[%s4235_s23 + $0x70] sm:$0xff]  }
  0x1a   : > { %v4122_v33 = vld [vmem:[%s4235_s23 + $0x160] sm:$0xff]   ;;  %v4124_v35 = vld [vmem:[%s4235_s23 + $0x168] sm:$0xff]   ;;  %v4126_v37 = vld [vmem:[%s4235_s23 + $0x170] sm:$0xff]  }
  0x1b   : > { %v4127_v38 = vld [vmem:[%s4235_s23 + $0x78] sm:$0xff]   ;;  %v4129_v40 = vld [vmem:[%s4235_s23 + $0x80] sm:$0xff]   ;;  %v4131_v42 = vld [vmem:[%s4235_s23 + $0x88] sm:$0xff]  }
  0x1c   : > { %3916 = vmatpush3.bf16.msra.mxu0 %v4094_v7  ;;  %4062 = vmatpush3.bf16.msra.mxu1 %v4094_v7  ;;  %v4128_v39 = vld [vmem:[%s4235_s23 + $0x178] sm:$0xff]   ;;  %v4130_v41 = vld [vmem:[%s4235_s23 + $0x180] sm:$0xff]   ;;  %v4132_v43 = vld [vmem:[%s4235_s23 + $0x188] sm:$0xff]  }
  0x1d   : > { %3917 = vmatprep.subr.bf16.mxu0 %v4095_v8  ;;  %4055 = vmatprep.subr.bf16.mxu1 %v4095_v8  ;;  %v4133_v44 = vld [vmem:[%s4235_s23 + $0x90] sm:$0xff]   ;;  %v4135_v46 = vld [vmem:[%s4235_s23 + $0x98] sm:$0xff]   ;;  %v4137_v48 = vld [vmem:[%s4235_s23 + $0xa0] sm:$0xff]  }
  0x1e   : > { %v4134_v45 = vld [vmem:[%s4235_s23 + $0x190] sm:$0xff]   ;;  %v4136_v47 = vld [vmem:[%s4235_s23 + $0x198] sm:$0xff]   ;;  %v4138_v49 = vld [vmem:[%s4235_s23 + $0x1a0] sm:$0xff]  }
  0x1f   : > { %v4139_v50 = vld [vmem:[%s4235_s23 + $0xa8] sm:$0xff]   ;;  %v4141_v52 = vld [vmem:[%s4235_s23 + $0xb0] sm:$0xff]   ;;  %v4143_v54 = vld [vmem:[%s4235_s23 + $0xb8] sm:$0xff]  }
  0x20   : > { %3918 = vmatpush3.bf16.msra.mxu0 %v4095_v8  ;;  %4063 = vmatpush3.bf16.msra.mxu1 %v4095_v8  ;;  %v4140_v51 = vld [vmem:[%s4235_s23 + $0x1a8] sm:$0xff]   ;;  %v4142_v53 = vld [vmem:[%s4235_s23 + $0x1b0] sm:$0xff]   ;;  %v4144_v55 = vld [vmem:[%s4235_s23 + $0x1b8] sm:$0xff]  }
  0x21   : > { %3919 = vmatprep.subr.bf16.mxu0 %v4096_v9  ;;  %4056 = vmatprep.subr.bf16.mxu1 %v4096_v9  ;;  %v4145_v56 = vld [vmem:[%s4235_s23 + $0xc0] sm:$0xff]   ;;  %v4147_v58 = vld [vmem:[%s4235_s23 + $0xc8] sm:$0xff]   ;;  %v4149_v60 = vld [vmem:[%s4235_s23 + $0xd0] sm:$0xff]  }
  0x22   : > { %v4146_v57 = vld [vmem:[%s4235_s23 + $0x1c0] sm:$0xff]   ;;  %v4148_v59 = vld [vmem:[%s4235_s23 + $0x1c8] sm:$0xff]   ;;  %v4150_v61 = vld [vmem:[%s4235_s23 + $0x1d0] sm:$0xff]  }
  0x23   : > { %v4151_v62 = vld [vmem:[%s4235_s23 + $0xd8] sm:$0xff]   ;;  %v4153_v0 = vld [vmem:[%s4235_s23 + $0xe0] sm:$0xff]   ;;  %v4155_v2 = vld [vmem:[%s4235_s23 + $0xe8] sm:$0xff]  }
  0x24   : > { %3920 = vmatpush3.bf16.msra.mxu0 %v4096_v9  ;;  %4064 = vmatpush3.bf16.msra.mxu1 %v4096_v9  ;;  %v4152_v63 = vld [vmem:[%s4235_s23 + $0x1d8] sm:$0xff]   ;;  %v4154_v1 = vld [vmem:[%s4235_s23 + $0x1e0] sm:$0xff]   ;;  %v4156_v3 = vld [vmem:[%s4235_s23 + $0x1e8] sm:$0xff]  }
  0x25   : > { %v4157_v4 = vld [vmem:[%s4235_s23 + $0xf0] sm:$0xff]   ;;  %v4159_v6 = vld [vmem:[%s4235_s23 + $0xf8] sm:$0xff]  }
  0x26   : > { %v4158_v5 = vld [vmem:[%s4235_s23 + $0x1f0] sm:$0xff]   ;;  %v4160_v7 = vld [vmem:[%s4235_s23 + $0x1f8] sm:$0xff]  }
  0x27   : > { %3922 = vmatmul.mubr.bf16.vlgmr.msra.gmra.mrb[0].mxu0 %v4099_v10  ;;  %3986 = vmatmul.mubr.bf16.vlgmr.msra.gmra.mrb[0].mxu1 %v4100_v11 }
  0x28   : > { %3925 = vmatprep.mubr.bf16.mxu0 %v4101_v12  ;;  %3989 = vmatprep.mubr.bf16.mxu1 %v4102_v13 }
  0x2f   : > { %3926 = vmatmul.mubr.bf16.gmra.mrb[4].mxu0 %v4103_v14  ;;  %3990 = vmatmul.mubr.bf16.gmra.mrb[4].mxu1 %v4104_v15 }
  0x30   : > { %3929 = vmatprep.mubr.bf16.mxu0 %v4105_v16  ;;  %3993 = vmatprep.mubr.bf16.mxu1 %v4106_v17 }
  0x37   : > { %3930 = vmatmul.mubr.bf16.gmra.mrb[8].mxu0 %v4107_v18  ;;  %3994 = vmatmul.mubr.bf16.gmra.mrb[8].mxu1 %v4108_v19 }
  0x38   : > { %3933 = vmatprep.mubr.bf16.mxu0 %v4109_v20  ;;  %3997 = vmatprep.mubr.bf16.mxu1 %v4110_v21 }
  0x3f   : > { %3934 = vmatmul.mubr.bf16.gmra.mrb[12].mxu0 %v4111_v22  ;;  %3998 = vmatmul.mubr.bf16.gmra.mrb[12].mxu1 %v4112_v23 }
  0x40   : > { %3937 = vmatprep.mubr.bf16.mxu0 %v4113_v24  ;;  %4001 = vmatprep.mubr.bf16.mxu1 %v4114_v25 }
  0x47   : > { %3938 = vmatmul.mubr.bf16.gmra.mrb[16].mxu0 %v4115_v26  ;;  %4002 = vmatmul.mubr.bf16.gmra.mrb[16].mxu1 %v4116_v27 }
  0x48   : > { %3941 = vmatprep.mubr.bf16.mxu0 %v4117_v28  ;;  %4005 = vmatprep.mubr.bf16.mxu1 %v4118_v29 }
  0x4f   : > { %3942 = vmatmul.mubr.bf16.gmra.mrb[20].mxu0 %v4119_v30  ;;  %4006 = vmatmul.mubr.bf16.gmra.mrb[20].mxu1 %v4120_v31 }
  0x50   : > { %3945 = vmatprep.mubr.bf16.mxu0 %v4121_v32  ;;  %4009 = vmatprep.mubr.bf16.mxu1 %v4122_v33 }
  0x57   : > { %3946 = vmatmul.mubr.bf16.gmra.mrb[24].mxu0 %v4123_v34  ;;  %4010 = vmatmul.mubr.bf16.gmra.mrb[24].mxu1 %v4124_v35 }
  0x58   : > { %3949 = vmatprep.mubr.bf16.mxu0 %v4125_v36  ;;  %4013 = vmatprep.mubr.bf16.mxu1 %v4126_v37 }
  0x5f   : > { %3950 = vmatmul.mubr.bf16.gmra.mrb[28].mxu0 %v4127_v38  ;;  %4014 = vmatmul.mubr.bf16.gmra.mrb[28].mxu1 %v4128_v39 }
  0x60   : > { %3953 = vmatprep.mubr.bf16.mxu0 %v4129_v40  ;;  %4017 = vmatprep.mubr.bf16.mxu1 %v4130_v41 }
  0x67   : > { %3954 = vmatmul.mubr.bf16.gmra.mrb[32].mxu0 %v4131_v42  ;;  %4018 = vmatmul.mubr.bf16.gmra.mrb[32].mxu1 %v4132_v43 }
  0x68   : > { %3957 = vmatprep.mubr.bf16.mxu0 %v4133_v44  ;;  %4021 = vmatprep.mubr.bf16.mxu1 %v4134_v45 }
  0x6f   : > { %3958 = vmatmul.mubr.bf16.gmra.mrb[36].mxu0 %v4135_v46  ;;  %4022 = vmatmul.mubr.bf16.gmra.mrb[36].mxu1 %v4136_v47 }
  0x70   : > { %3961 = vmatprep.mubr.bf16.mxu0 %v4137_v48  ;;  %4025 = vmatprep.mubr.bf16.mxu1 %v4138_v49 }
  0x77   : > { %3962 = vmatmul.mubr.bf16.gmra.mrb[40].mxu0 %v4139_v50  ;;  %4026 = vmatmul.mubr.bf16.gmra.mrb[40].mxu1 %v4140_v51 }
  0x78   : > { %3965 = vmatprep.mubr.bf16.mxu0 %v4141_v52  ;;  %4029 = vmatprep.mubr.bf16.mxu1 %v4142_v53 }
  0x7f   : > { %3966 = vmatmul.mubr.bf16.gmra.mrb[44].mxu0 %v4143_v54  ;;  %4030 = vmatmul.mubr.bf16.gmra.mrb[44].mxu1 %v4144_v55 }
  0x80   : > { %3969 = vmatprep.mubr.bf16.mxu0 %v4145_v56  ;;  %4033 = vmatprep.mubr.bf16.mxu1 %v4146_v57 }
  0x87   : > { %3970 = vmatmul.mubr.bf16.gmra.mrb[48].mxu0 %v4147_v58  ;;  %4034 = vmatmul.mubr.bf16.gmra.mrb[48].mxu1 %v4148_v59 }
  0x88   : > { %3973 = vmatprep.mubr.bf16.mxu0 %v4149_v60  ;;  %4037 = vmatprep.mubr.bf16.mxu1 %v4150_v61 }
  0x8f   : > { %3974 = vmatmul.mubr.bf16.gmra.mrb[52].mxu0 %v4151_v62  ;;  %4038 = vmatmul.mubr.bf16.gmra.mrb[52].mxu1 %v4152_v63 }
  0x90   : > { %3977 = vmatprep.mubr.bf16.mxu0 %v4153_v0  ;;  %4041 = vmatprep.mubr.bf16.mxu1 %v4154_v1 }
  0x97   : > { %3978 = vmatmul.mubr.bf16.gmra.mrb[56].mxu0 %v4155_v2  ;;  %4042 = vmatmul.mubr.bf16.gmra.mrb[56].mxu1 %v4156_v3 }
  0x98   : > { %3981 = vmatprep.mubr.bf16.mxu0 %v4157_v4  ;;  %4045 = vmatprep.mubr.bf16.mxu1 %v4158_v5 }
  0x9f   : > { %3982 = vmatmul.mubr.bf16.gmra.mrb[60].mxu0 %v4159_v6  ;;  %4046 = vmatmul.mubr.bf16.gmra.mrb[60].mxu1 %v4160_v7 }
  0xfa   : > { %v3923_v8 = vpop.f32.mrb[0].mxu0  ;;  %v3987_v9 = vpop.f32.mrb[0].mxu1 }
  0xfb   : > { %vm1989_vm0 = vcmp.ge.f32.partialorder %v3923_v8, 0.0  ;;  %v2117_v10 = vmul.f32 0.2, %v3923_v8  ;;  %v2181_v11 = vmul.f32 0.2, %v3987_v9  ;;  %vm2053_vm1 = vcmp.ge.f32.partialorder %v3987_v9, 0.0 }
  0xfc   : > { %v1089_v12 = vpop.f32.mrb[1].mxu0  ;;  %v1345_v13 = vpop.f32.mrb[1].mxu1 }
  0xfd   : > { %v2115_v14 = vmul.f32 0.2, %v1089_v12  ;;  %v3924_v15 = vpop.f32.mrb[2].mxu0  ;;  %v3988_v16 = vpop.f32.mrb[2].mxu1  ;;  %v2245_v17 = vsel %vm1989_vm0, %v3923_v8, %v2117_v10  ;;  %v2179_v18 = vmul.f32 0.2, %v1345_v13  ;;  %v2309_v20 = vsel %vm2053_vm1, %v3987_v9, %v2181_v11 }
  0xfe   : > { %vm1990_vm2 = vcmp.ge.f32.partialorder %v3924_v15, 0.0  ;;  %v2118_v19 = vmul.f32 0.2, %v3924_v15  ;;  %vm1987_vm3 = vcmp.ge.f32.partialorder %v1089_v12, 0.0  ;;  %vm2054_vm4 = vcmp.ge.f32.partialorder %v3988_v16, 0.0  ;;  %v1092_v22 = vpop.f32.mrb[3].mxu0 }
  0xff   : > { %v2182_v21 = vmul.f32 0.2, %v3988_v16  ;;  %v1348_v23 = vpop.f32.mrb[3].mxu1  ;;  %vm2051_vm5 = vcmp.ge.f32.partialorder %v1345_v13, 0.0  ;;  %vm1988_vm6 = vcmp.ge.f32.partialorder %v1092_v22, 0.0  ;;  %v2243_v29 = vsel %vm1987_vm3, %v1089_v12, %v2115_v14 }
 0x100   : > { %v2246_v24 = vsel %vm1990_vm2, %v3924_v15, %v2118_v19  ;;  %v2116_v25 = vmul.f32 0.2, %v1092_v22  ;;  %vm2052_vm7 = vcmp.ge.f32.partialorder %v1348_v23, 0.0  ;;  %v2180_v28 = vmul.f32 0.2, %v1348_v23 }
 0x101   : > { %v3458_v26 = vpack.c.bf16 %v2246_v24, %v2245_v17  ;;  %v2310_v27 = vsel %vm2054_vm4, %v3988_v16, %v2182_v21  ;;  %v2307_v34 = vsel %vm2051_vm5, %v1345_v13, %v2179_v18 }
 0x102   : > { %v3618_v30 = vpack.c.bf16 %v2310_v27, %v2309_v20  ;;  %v2244_v31 = vsel %vm1988_vm6, %v1092_v22, %v2116_v25  ;;  %v3927_v32 = vpop.f32.mrb[4].mxu0  ;;  %v3991_v33 = vpop.f32.mrb[4].mxu1  ;;  %v2308_v36 = vsel %vm2052_vm7, %v1348_v23, %v2180_v28 }
 0x103   : > { %3770 = vst [vmem:[%s4321_s8 + $0x8] sm:$0xff] %v3458_v26   ;;  %v3453_v35 = vpack.c.bf16 %v2244_v31, %v2243_v29  ;;  %v2121_v37 = vmul.f32 0.2, %v3927_v32  ;;  %v1105_v38 = vpop.f32.mrb[5].mxu0  ;;  %v1361_v39 = vpop.f32.mrb[5].mxu1  ;;  %v3613_v40 = vpack.c.bf16 %v2308_v36, %v2307_v34  ;;  %vm1993_vm8 = vcmp.ge.f32.partialorder %v3927_v32, 0.0 }
 0x104   : > { %3802 = vst [vmem:[%s4321_s8 + $0x108] sm:$0xff] %v3618_v30   ;;  %v2185_v41 = vmul.f32 0.2, %v3991_v33  ;;  %v3928_v42 = vpop.f32.mrb[6].mxu0  ;;  %v3992_v43 = vpop.f32.mrb[6].mxu1  ;;  %vm2057_vm9 = vcmp.ge.f32.partialorder %v3991_v33, 0.0 }
 0x105   : > { %3454 = vst [vmem:[%s4321_s8] sm:$0xff] %v3453_v35   ;;  %v2119_v44 = vmul.f32 0.2, %v1105_v38  ;;  %v2183_v45 = vmul.f32 0.2, %v1361_v39  ;;  %v1108_v46 = vpop.f32.mrb[7].mxu0  ;;  %3801 = vst [vmem:[%s4321_s8 + $0x100] sm:$0xff] %v3613_v40   ;;  %v2249_v49 = vsel %vm1993_vm8, %v3927_v32, %v2121_v37 }
 0x106   : > { %vm1991_vm10 = vcmp.ge.f32.partialorder %v1105_v38, 0.0  ;;  %vm1994_vm11 = vcmp.ge.f32.partialorder %v3928_v42, 0.0  ;;  %v2122_v47 = vmul.f32 0.2, %v3928_v42  ;;  %vm2058_vm12 = vcmp.ge.f32.partialorder %v3992_v43, 0.0  ;;  %v1364_v48 = vpop.f32.mrb[7].mxu1 }
 0x107   : > { %vm2055_vm13 = vcmp.ge.f32.partialorder %v1361_v39, 0.0  ;;  %v2186_v50 = vmul.f32 0.2, %v3992_v43  ;;  %vm1992_vm14 = vcmp.ge.f32.partialorder %v1108_v46, 0.0  ;;  %v2120_v52 = vmul.f32 0.2, %v1108_v46 }
 0x108   : > { %v2250_v51 = vsel %vm1994_vm11, %v3928_v42, %v2122_v47  ;;  %vm2056_vm15 = vcmp.ge.f32.partialorder %v1364_v48, 0.0  ;;  %v2184_v53 = vmul.f32 0.2, %v1364_v48  ;;  %v2313_v54 = vsel %vm2057_vm9, %v3991_v33, %v2185_v41 }
 0x109   : > { %v2247_v55 = vsel %vm1991_vm10, %v1105_v38, %v2119_v44  ;;  %v3468_v56 = vpack.c.bf16 %v2250_v51, %v2249_v49  ;;  %v2314_v57 = vsel %vm2058_vm12, %v3992_v43, %v2186_v50  ;;  %v2311_v58 = vsel %vm2055_vm13, %v1361_v39, %v2183_v45 }
 0x10a   : > { %v3628_v59 = vpack.c.bf16 %v2314_v57, %v2313_v54  ;;  %v2248_v60 = vsel %vm1992_vm14, %v1108_v46, %v2120_v52  ;;  %v2312_v61 = vsel %vm2056_vm15, %v1364_v48, %v2184_v53  ;;  %v3931_v62 = vpop.f32.mrb[8].mxu0  ;;  %v3995_v63 = vpop.f32.mrb[8].mxu1 }
 0x10b   : > { %3772 = vst [vmem:[%s4321_s8 + $0x18] sm:$0xff] %v3468_v56   ;;  %v3463_v0 = vpack.c.bf16 %v2248_v60, %v2247_v55  ;;  %v3623_v1 = vpack.c.bf16 %v2312_v61, %v2311_v58  ;;  %vm1997_vm0 = vcmp.ge.f32.partialorder %v3931_v62, 0.0  ;;  %v2125_v2 = vmul.f32 0.2, %v3931_v62  ;;  %v1121_v3 = vpop.f32.mrb[9].mxu0  ;;  %v1377_v4 = vpop.f32.mrb[9].mxu1 }
 0x10c   : > { %3804 = vst [vmem:[%s4321_s8 + $0x118] sm:$0xff] %v3628_v59   ;;  %vm2061_vm1 = vcmp.ge.f32.partialorder %v3995_v63, 0.0  ;;  %v2189_v5 = vmul.f32 0.2, %v3995_v63  ;;  %v2123_v6 = vmul.f32 0.2, %v1121_v3 }
 0x10d   : > { %3771 = vst [vmem:[%s4321_s8 + $0x10] sm:$0xff] %v3463_v0   ;;  %3803 = vst [vmem:[%s4321_s8 + $0x110] sm:$0xff] %v3623_v1   ;;  %v2187_v7 = vmul.f32 0.2, %v1377_v4  ;;  %v3932_v8 = vpop.f32.mrb[10].mxu0  ;;  %v3996_v9 = vpop.f32.mrb[10].mxu1  ;;  %v2253_v10 = vsel %vm1997_vm0, %v3931_v62, %v2125_v2 }
 0x10e   : > { %vm1995_vm2 = vcmp.ge.f32.partialorder %v1121_v3, 0.0  ;;  %vm1998_vm3 = vcmp.ge.f32.partialorder %v3932_v8, 0.0  ;;  %v2126_v11 = vmul.f32 0.2, %v3932_v8  ;;  %v1124_v12 = vpop.f32.mrb[11].mxu0  ;;  %v1380_v13 = vpop.f32.mrb[11].mxu1  ;;  %v2317_v18 = vsel %vm2061_vm1, %v3995_v63, %v2189_v5 }
 0x10f   : > { %vm2059_vm4 = vcmp.ge.f32.partialorder %v1377_v4, 0.0  ;;  %vm2062_vm5 = vcmp.ge.f32.partialorder %v3996_v9, 0.0  ;;  %v2190_v14 = vmul.f32 0.2, %v3996_v9  ;;  %vm1996_vm6 = vcmp.ge.f32.partialorder %v1124_v12, 0.0 }
 0x110   : > { %v2254_v15 = vsel %vm1998_vm3, %v3932_v8, %v2126_v11  ;;  %v2124_v16 = vmul.f32 0.2, %v1124_v12  ;;  %vm2060_vm7 = vcmp.ge.f32.partialorder %v1380_v13, 0.0  ;;  %v2188_v17 = vmul.f32 0.2, %v1380_v13 }
 0x111   : > { %v2251_v19 = vsel %vm1995_vm2, %v1121_v3, %v2123_v6  ;;  %v3478_v20 = vpack.c.bf16 %v2254_v15, %v2253_v10  ;;  %v2318_v21 = vsel %vm2062_vm5, %v3996_v9, %v2190_v14  ;;  %v2315_v22 = vsel %vm2059_vm4, %v1377_v4, %v2187_v7 }
 0x112   : > { %v3638_v23 = vpack.c.bf16 %v2318_v21, %v2317_v18  ;;  %v2252_v24 = vsel %vm1996_vm6, %v1124_v12, %v2124_v16  ;;  %v2316_v25 = vsel %vm2060_vm7, %v1380_v13, %v2188_v17  ;;  %v3935_v26 = vpop.f32.mrb[12].mxu0  ;;  %v3999_v27 = vpop.f32.mrb[12].mxu1 }
 0x113   : > { %3774 = vst [vmem:[%s4321_s8 + $0x28] sm:$0xff] %v3478_v20   ;;  %v3473_v28 = vpack.c.bf16 %v2252_v24, %v2251_v19  ;;  %v3633_v29 = vpack.c.bf16 %v2316_v25, %v2315_v22  ;;  %vm2001_vm8 = vcmp.ge.f32.partialorder %v3935_v26, 0.0  ;;  %v2129_v30 = vmul.f32 0.2, %v3935_v26  ;;  %v1137_v31 = vpop.f32.mrb[13].mxu0  ;;  %v1393_v32 = vpop.f32.mrb[13].mxu1 }
 0x114   : > { %3806 = vst [vmem:[%s4321_s8 + $0x128] sm:$0xff] %v3638_v23   ;;  %vm2065_vm9 = vcmp.ge.f32.partialorder %v3999_v27, 0.0  ;;  %v2193_v33 = vmul.f32 0.2, %v3999_v27  ;;  %v2127_v34 = vmul.f32 0.2, %v1137_v31 }
 0x115   : > { %3773 = vst [vmem:[%s4321_s8 + $0x20] sm:$0xff] %v3473_v28   ;;  %3805 = vst [vmem:[%s4321_s8 + $0x120] sm:$0xff] %v3633_v29   ;;  %v2191_v35 = vmul.f32 0.2, %v1393_v32  ;;  %v3936_v36 = vpop.f32.mrb[14].mxu0  ;;  %v4000_v37 = vpop.f32.mrb[14].mxu1  ;;  %v2257_v38 = vsel %vm2001_vm8, %v3935_v26, %v2129_v30 }
 0x116   : > { %vm1999_vm10 = vcmp.ge.f32.partialorder %v1137_v31, 0.0  ;;  %vm2002_vm11 = vcmp.ge.f32.partialorder %v3936_v36, 0.0  ;;  %v2130_v39 = vmul.f32 0.2, %v3936_v36  ;;  %v1140_v40 = vpop.f32.mrb[15].mxu0  ;;  %v1396_v41 = vpop.f32.mrb[15].mxu1  ;;  %v2321_v46 = vsel %vm2065_vm9, %v3999_v27, %v2193_v33 }
 0x117   : > { %vm2063_vm12 = vcmp.ge.f32.partialorder %v1393_v32, 0.0  ;;  %vm2066_vm13 = vcmp.ge.f32.partialorder %v4000_v37, 0.0  ;;  %v2194_v42 = vmul.f32 0.2, %v4000_v37  ;;  %vm2000_vm14 = vcmp.ge.f32.partialorder %v1140_v40, 0.0 }
 0x118   : > { %v2258_v43 = vsel %vm2002_vm11, %v3936_v36, %v2130_v39  ;;  %v2128_v44 = vmul.f32 0.2, %v1140_v40  ;;  %vm2064_vm15 = vcmp.ge.f32.partialorder %v1396_v41, 0.0  ;;  %v2192_v45 = vmul.f32 0.2, %v1396_v41 }
 0x119   : > { %v2255_v47 = vsel %vm1999_vm10, %v1137_v31, %v2127_v34  ;;  %v3488_v48 = vpack.c.bf16 %v2258_v43, %v2257_v38  ;;  %v2322_v49 = vsel %vm2066_vm13, %v4000_v37, %v2194_v42  ;;  %v2319_v50 = vsel %vm2063_vm12, %v1393_v32, %v2191_v35 }
 0x11a   : > { %v3648_v51 = vpack.c.bf16 %v2322_v49, %v2321_v46  ;;  %v2256_v52 = vsel %vm2000_vm14, %v1140_v40, %v2128_v44  ;;  %v2320_v53 = vsel %vm2064_vm15, %v1396_v41, %v2192_v45  ;;  %v3939_v54 = vpop.f32.mrb[16].mxu0  ;;  %v4003_v55 = vpop.f32.mrb[16].mxu1 }
 0x11b   : > { %3776 = vst [vmem:[%s4321_s8 + $0x38] sm:$0xff] %v3488_v48   ;;  %v3483_v56 = vpack.c.bf16 %v2256_v52, %v2255_v47  ;;  %v3643_v57 = vpack.c.bf16 %v2320_v53, %v2319_v50  ;;  %vm2005_vm0 = vcmp.ge.f32.partialorder %v3939_v54, 0.0  ;;  %v2133_v58 = vmul.f32 0.2, %v3939_v54  ;;  %v1153_v59 = vpop.f32.mrb[17].mxu0  ;;  %v1409_v60 = vpop.f32.mrb[17].mxu1 }
 0x11c   : > { %3808 = vst [vmem:[%s4321_s8 + $0x138] sm:$0xff] %v3648_v51   ;;  %vm2069_vm1 = vcmp.ge.f32.partialorder %v4003_v55, 0.0  ;;  %v2197_v61 = vmul.f32 0.2, %v4003_v55  ;;  %v2131_v62 = vmul.f32 0.2, %v1153_v59 }
 0x11d   : > { %3775 = vst [vmem:[%s4321_s8 + $0x30] sm:$0xff] %v3483_v56   ;;  %3807 = vst [vmem:[%s4321_s8 + $0x130] sm:$0xff] %v3643_v57   ;;  %v2195_v63 = vmul.f32 0.2, %v1409_v60  ;;  %v3940_v0 = vpop.f32.mrb[18].mxu0  ;;  %v4004_v1 = vpop.f32.mrb[18].mxu1  ;;  %v2261_v2 = vsel %vm2005_vm0, %v3939_v54, %v2133_v58 }
 0x11e   : > { %vm2003_vm2 = vcmp.ge.f32.partialorder %v1153_v59, 0.0  ;;  %vm2006_vm3 = vcmp.ge.f32.partialorder %v3940_v0, 0.0  ;;  %v2134_v3 = vmul.f32 0.2, %v3940_v0  ;;  %v1156_v4 = vpop.f32.mrb[19].mxu0  ;;  %v1412_v5 = vpop.f32.mrb[19].mxu1  ;;  %v2325_v10 = vsel %vm2069_vm1, %v4003_v55, %v2197_v61 }
 0x11f   : > { %vm2067_vm4 = vcmp.ge.f32.partialorder %v1409_v60, 0.0  ;;  %vm2070_vm5 = vcmp.ge.f32.partialorder %v4004_v1, 0.0  ;;  %v2198_v6 = vmul.f32 0.2, %v4004_v1  ;;  %vm2004_vm6 = vcmp.ge.f32.partialorder %v1156_v4, 0.0 }
 0x120   : > { %v2262_v7 = vsel %vm2006_vm3, %v3940_v0, %v2134_v3  ;;  %v2132_v8 = vmul.f32 0.2, %v1156_v4  ;;  %vm2068_vm7 = vcmp.ge.f32.partialorder %v1412_v5, 0.0  ;;  %v2196_v9 = vmul.f32 0.2, %v1412_v5 }
 0x121   : > { %v2259_v11 = vsel %vm2003_vm2, %v1153_v59, %v2131_v62  ;;  %v3498_v12 = vpack.c.bf16 %v2262_v7, %v2261_v2  ;;  %v2326_v13 = vsel %vm2070_vm5, %v4004_v1, %v2198_v6  ;;  %v2323_v14 = vsel %vm2067_vm4, %v1409_v60, %v2195_v63 }
 0x122   : > { %v3658_v15 = vpack.c.bf16 %v2326_v13, %v2325_v10  ;;  %v2260_v16 = vsel %vm2004_vm6, %v1156_v4, %v2132_v8  ;;  %v2324_v17 = vsel %vm2068_vm7, %v1412_v5, %v2196_v9  ;;  %v3943_v18 = vpop.f32.mrb[20].mxu0  ;;  %v4007_v19 = vpop.f32.mrb[20].mxu1 }
 0x123   : > { %3778 = vst [vmem:[%s4321_s8 + $0x48] sm:$0xff] %v3498_v12   ;;  %v3493_v20 = vpack.c.bf16 %v2260_v16, %v2259_v11  ;;  %v3653_v21 = vpack.c.bf16 %v2324_v17, %v2323_v14  ;;  %vm2009_vm8 = vcmp.ge.f32.partialorder %v3943_v18, 0.0  ;;  %v2137_v22 = vmul.f32 0.2, %v3943_v18  ;;  %v1169_v23 = vpop.f32.mrb[21].mxu0  ;;  %v1425_v24 = vpop.f32.mrb[21].mxu1 }
 0x124   : > { %3810 = vst [vmem:[%s4321_s8 + $0x148] sm:$0xff] %v3658_v15   ;;  %vm2073_vm9 = vcmp.ge.f32.partialorder %v4007_v19, 0.0  ;;  %v2201_v25 = vmul.f32 0.2, %v4007_v19  ;;  %v2135_v26 = vmul.f32 0.2, %v1169_v23 }
 0x125   : > { %3777 = vst [vmem:[%s4321_s8 + $0x40] sm:$0xff] %v3493_v20   ;;  %3809 = vst [vmem:[%s4321_s8 + $0x140] sm:$0xff] %v3653_v21   ;;  %v2199_v27 = vmul.f32 0.2, %v1425_v24  ;;  %v3944_v28 = vpop.f32.mrb[22].mxu0  ;;  %v4008_v29 = vpop.f32.mrb[22].mxu1  ;;  %v2265_v30 = vsel %vm2009_vm8, %v3943_v18, %v2137_v22 }
 0x126   : > { %vm2007_vm10 = vcmp.ge.f32.partialorder %v1169_v23, 0.0  ;;  %vm2010_vm11 = vcmp.ge.f32.partialorder %v3944_v28, 0.0  ;;  %v2138_v31 = vmul.f32 0.2, %v3944_v28  ;;  %v1172_v32 = vpop.f32.mrb[23].mxu0  ;;  %v1428_v33 = vpop.f32.mrb[23].mxu1  ;;  %v2329_v38 = vsel %vm2073_vm9, %v4007_v19, %v2201_v25 }
 0x127   : > { %vm2071_vm12 = vcmp.ge.f32.partialorder %v1425_v24, 0.0  ;;  %vm2074_vm13 = vcmp.ge.f32.partialorder %v4008_v29, 0.0  ;;  %v2202_v34 = vmul.f32 0.2, %v4008_v29  ;;  %vm2008_vm14 = vcmp.ge.f32.partialorder %v1172_v32, 0.0 }
 0x128   : > { %v2266_v35 = vsel %vm2010_vm11, %v3944_v28, %v2138_v31  ;;  %v2136_v36 = vmul.f32 0.2, %v1172_v32  ;;  %vm2072_vm15 = vcmp.ge.f32.partialorder %v1428_v33, 0.0  ;;  %v2200_v37 = vmul.f32 0.2, %v1428_v33 }
 0x129   : > { %v2263_v39 = vsel %vm2007_vm10, %v1169_v23, %v2135_v26  ;;  %v3508_v40 = vpack.c.bf16 %v2266_v35, %v2265_v30  ;;  %v2330_v41 = vsel %vm2074_vm13, %v4008_v29, %v2202_v34  ;;  %v2327_v42 = vsel %vm2071_vm12, %v1425_v24, %v2199_v27 }
 0x12a   : > { %v3668_v43 = vpack.c.bf16 %v2330_v41, %v2329_v38  ;;  %v2264_v44 = vsel %vm2008_vm14, %v1172_v32, %v2136_v36  ;;  %v2328_v45 = vsel %vm2072_vm15, %v1428_v33, %v2200_v37  ;;  %v3947_v46 = vpop.f32.mrb[24].mxu0  ;;  %v4011_v47 = vpop.f32.mrb[24].mxu1 }
 0x12b   : > { %3780 = vst [vmem:[%s4321_s8 + $0x58] sm:$0xff] %v3508_v40   ;;  %v3503_v48 = vpack.c.bf16 %v2264_v44, %v2263_v39  ;;  %v3663_v49 = vpack.c.bf16 %v2328_v45, %v2327_v42  ;;  %vm2013_vm0 = vcmp.ge.f32.partialorder %v3947_v46, 0.0  ;;  %v2141_v50 = vmul.f32 0.2, %v3947_v46  ;;  %v1185_v51 = vpop.f32.mrb[25].mxu0  ;;  %v1441_v52 = vpop.f32.mrb[25].mxu1 }
 0x12c   : > { %3812 = vst [vmem:[%s4321_s8 + $0x158] sm:$0xff] %v3668_v43   ;;  %vm2077_vm1 = vcmp.ge.f32.partialorder %v4011_v47, 0.0  ;;  %v2205_v53 = vmul.f32 0.2, %v4011_v47  ;;  %v2139_v54 = vmul.f32 0.2, %v1185_v51 }
 0x12d   : > { %3779 = vst [vmem:[%s4321_s8 + $0x50] sm:$0xff] %v3503_v48   ;;  %3811 = vst [vmem:[%s4321_s8 + $0x150] sm:$0xff] %v3663_v49   ;;  %v2203_v55 = vmul.f32 0.2, %v1441_v52  ;;  %v3948_v56 = vpop.f32.mrb[26].mxu0  ;;  %v4012_v57 = vpop.f32.mrb[26].mxu1  ;;  %v2269_v58 = vsel %vm2013_vm0, %v3947_v46, %v2141_v50 }
 0x12e   : > { %vm2011_vm2 = vcmp.ge.f32.partialorder %v1185_v51, 0.0  ;;  %vm2014_vm3 = vcmp.ge.f32.partialorder %v3948_v56, 0.0  ;;  %v2142_v59 = vmul.f32 0.2, %v3948_v56  ;;  %v1188_v60 = vpop.f32.mrb[27].mxu0  ;;  %v1444_v61 = vpop.f32.mrb[27].mxu1  ;;  %v2333_v2 = vsel %vm2077_vm1, %v4011_v47, %v2205_v53 }
 0x12f   : > { %vm2075_vm4 = vcmp.ge.f32.partialorder %v1441_v52, 0.0  ;;  %vm2078_vm5 = vcmp.ge.f32.partialorder %v4012_v57, 0.0  ;;  %v2206_v62 = vmul.f32 0.2, %v4012_v57  ;;  %vm2012_vm6 = vcmp.ge.f32.partialorder %v1188_v60, 0.0 }
 0x130   : > { %v2270_v63 = vsel %vm2014_vm3, %v3948_v56, %v2142_v59  ;;  %v2140_v0 = vmul.f32 0.2, %v1188_v60  ;;  %vm2076_vm7 = vcmp.ge.f32.partialorder %v1444_v61, 0.0  ;;  %v2204_v1 = vmul.f32 0.2, %v1444_v61 }
 0x131   : > { %v2267_v3 = vsel %vm2011_vm2, %v1185_v51, %v2139_v54  ;;  %v3518_v4 = vpack.c.bf16 %v2270_v63, %v2269_v58  ;;  %v2334_v5 = vsel %vm2078_vm5, %v4012_v57, %v2206_v62  ;;  %v2331_v6 = vsel %vm2075_vm4, %v1441_v52, %v2203_v55 }
 0x132   : > { %v3678_v7 = vpack.c.bf16 %v2334_v5, %v2333_v2  ;;  %v2268_v8 = vsel %vm2012_vm6, %v1188_v60, %v2140_v0  ;;  %v2332_v9 = vsel %vm2076_vm7, %v1444_v61, %v2204_v1  ;;  %v3951_v10 = vpop.f32.mrb[28].mxu0  ;;  %v4015_v11 = vpop.f32.mrb[28].mxu1 }
 0x133   : > { %3782 = vst [vmem:[%s4321_s8 + $0x68] sm:$0xff] %v3518_v4   ;;  %v3513_v12 = vpack.c.bf16 %v2268_v8, %v2267_v3  ;;  %v3673_v13 = vpack.c.bf16 %v2332_v9, %v2331_v6  ;;  %vm2017_vm8 = vcmp.ge.f32.partialorder %v3951_v10, 0.0  ;;  %v2145_v14 = vmul.f32 0.2, %v3951_v10  ;;  %v1201_v15 = vpop.f32.mrb[29].mxu0  ;;  %v1457_v16 = vpop.f32.mrb[29].mxu1 }
 0x134   : > { %3814 = vst [vmem:[%s4321_s8 + $0x168] sm:$0xff] %v3678_v7   ;;  %vm2081_vm9 = vcmp.ge.f32.partialorder %v4015_v11, 0.0  ;;  %v2209_v17 = vmul.f32 0.2, %v4015_v11  ;;  %v2143_v18 = vmul.f32 0.2, %v1201_v15 }
 0x135   : > { %3781 = vst [vmem:[%s4321_s8 + $0x60] sm:$0xff] %v3513_v12   ;;  %3813 = vst [vmem:[%s4321_s8 + $0x160] sm:$0xff] %v3673_v13   ;;  %v2207_v19 = vmul.f32 0.2, %v1457_v16  ;;  %v3952_v20 = vpop.f32.mrb[30].mxu0  ;;  %v4016_v21 = vpop.f32.mrb[30].mxu1  ;;  %v2273_v22 = vsel %vm2017_vm8, %v3951_v10, %v2145_v14 }
 0x136   : > { %vm2015_vm10 = vcmp.ge.f32.partialorder %v1201_v15, 0.0  ;;  %vm2018_vm11 = vcmp.ge.f32.partialorder %v3952_v20, 0.0  ;;  %v2146_v23 = vmul.f32 0.2, %v3952_v20  ;;  %v1204_v24 = vpop.f32.mrb[31].mxu0  ;;  %v1460_v25 = vpop.f32.mrb[31].mxu1  ;;  %v2337_v30 = vsel %vm2081_vm9, %v4015_v11, %v2209_v17 }
 0x137   : > { %vm2079_vm12 = vcmp.ge.f32.partialorder %v1457_v16, 0.0  ;;  %vm2082_vm13 = vcmp.ge.f32.partialorder %v4016_v21, 0.0  ;;  %v2210_v26 = vmul.f32 0.2, %v4016_v21  ;;  %vm2016_vm14 = vcmp.ge.f32.partialorder %v1204_v24, 0.0 }
 0x138   : > { %v2274_v27 = vsel %vm2018_vm11, %v3952_v20, %v2146_v23  ;;  %v2144_v28 = vmul.f32 0.2, %v1204_v24  ;;  %vm2080_vm15 = vcmp.ge.f32.partialorder %v1460_v25, 0.0  ;;  %v2208_v29 = vmul.f32 0.2, %v1460_v25 }
 0x139   : > { %v2271_v31 = vsel %vm2015_vm10, %v1201_v15, %v2143_v18  ;;  %v3528_v32 = vpack.c.bf16 %v2274_v27, %v2273_v22  ;;  %v2338_v33 = vsel %vm2082_vm13, %v4016_v21, %v2210_v26  ;;  %v2335_v34 = vsel %vm2079_vm12, %v1457_v16, %v2207_v19 }
 0x13a   : > { %v3688_v35 = vpack.c.bf16 %v2338_v33, %v2337_v30  ;;  %v2272_v36 = vsel %vm2016_vm14, %v1204_v24, %v2144_v28  ;;  %v2336_v37 = vsel %vm2080_vm15, %v1460_v25, %v2208_v29  ;;  %v3955_v38 = vpop.f32.mrb[32].mxu0  ;;  %v4019_v39 = vpop.f32.mrb[32].mxu1 }
 0x13b   : > { %3784 = vst [vmem:[%s4321_s8 + $0x78] sm:$0xff] %v3528_v32   ;;  %v3523_v40 = vpack.c.bf16 %v2272_v36, %v2271_v31  ;;  %v3683_v41 = vpack.c.bf16 %v2336_v37, %v2335_v34  ;;  %vm2021_vm0 = vcmp.ge.f32.partialorder %v3955_v38, 0.0  ;;  %v2149_v42 = vmul.f32 0.2, %v3955_v38  ;;  %v1217_v43 = vpop.f32.mrb[33].mxu0  ;;  %v1473_v44 = vpop.f32.mrb[33].mxu1 }
 0x13c   : > { %3816 = vst [vmem:[%s4321_s8 + $0x178] sm:$0xff] %v3688_v35   ;;  %vm2085_vm1 = vcmp.ge.f32.partialorder %v4019_v39, 0.0  ;;  %v2213_v45 = vmul.f32 0.2, %v4019_v39  ;;  %v2147_v46 = vmul.f32 0.2, %v1217_v43 }
 0x13d   : > { %3783 = vst [vmem:[%s4321_s8 + $0x70] sm:$0xff] %v3523_v40   ;;  %3815 = vst [vmem:[%s4321_s8 + $0x170] sm:$0xff] %v3683_v41   ;;  %v2211_v47 = vmul.f32 0.2, %v1473_v44  ;;  %v3956_v48 = vpop.f32.mrb[34].mxu0  ;;  %v4020_v49 = vpop.f32.mrb[34].mxu1  ;;  %v2277_v50 = vsel %vm2021_vm0, %v3955_v38, %v2149_v42 }
 0x13e   : > { %vm2019_vm2 = vcmp.ge.f32.partialorder %v1217_v43, 0.0  ;;  %vm2022_vm3 = vcmp.ge.f32.partialorder %v3956_v48, 0.0  ;;  %v2150_v51 = vmul.f32 0.2, %v3956_v48  ;;  %v1220_v52 = vpop.f32.mrb[35].mxu0  ;;  %v1476_v53 = vpop.f32.mrb[35].mxu1  ;;  %v2341_v58 = vsel %vm2085_vm1, %v4019_v39, %v2213_v45 }
 0x13f   : > { %vm2083_vm4 = vcmp.ge.f32.partialorder %v1473_v44, 0.0  ;;  %vm2086_vm5 = vcmp.ge.f32.partialorder %v4020_v49, 0.0  ;;  %v2214_v54 = vmul.f32 0.2, %v4020_v49  ;;  %vm2020_vm6 = vcmp.ge.f32.partialorder %v1220_v52, 0.0 }
 0x140   : > { %v2278_v55 = vsel %vm2022_vm3, %v3956_v48, %v2150_v51  ;;  %v2148_v56 = vmul.f32 0.2, %v1220_v52  ;;  %vm2084_vm7 = vcmp.ge.f32.partialorder %v1476_v53, 0.0  ;;  %v2212_v57 = vmul.f32 0.2, %v1476_v53 }
 0x141   : > { %v2275_v59 = vsel %vm2019_vm2, %v1217_v43, %v2147_v46  ;;  %v3538_v60 = vpack.c.bf16 %v2278_v55, %v2277_v50  ;;  %v2342_v61 = vsel %vm2086_vm5, %v4020_v49, %v2214_v54  ;;  %v2339_v62 = vsel %vm2083_vm4, %v1473_v44, %v2211_v47 }
 0x142   : > { %v3698_v63 = vpack.c.bf16 %v2342_v61, %v2341_v58  ;;  %v2276_v0 = vsel %vm2020_vm6, %v1220_v52, %v2148_v56  ;;  %v2340_v1 = vsel %vm2084_vm7, %v1476_v53, %v2212_v57  ;;  %v3959_v2 = vpop.f32.mrb[36].mxu0  ;;  %v4023_v3 = vpop.f32.mrb[36].mxu1 }
 0x143   : > { %3786 = vst [vmem:[%s4321_s8 + $0x88] sm:$0xff] %v3538_v60   ;;  %v3533_v4 = vpack.c.bf16 %v2276_v0, %v2275_v59  ;;  %v3693_v5 = vpack.c.bf16 %v2340_v1, %v2339_v62  ;;  %vm2025_vm8 = vcmp.ge.f32.partialorder %v3959_v2, 0.0  ;;  %v2153_v6 = vmul.f32 0.2, %v3959_v2  ;;  %v1233_v7 = vpop.f32.mrb[37].mxu0  ;;  %v1489_v8 = vpop.f32.mrb[37].mxu1 }
 0x144   : > { %3818 = vst [vmem:[%s4321_s8 + $0x188] sm:$0xff] %v3698_v63   ;;  %vm2089_vm9 = vcmp.ge.f32.partialorder %v4023_v3, 0.0  ;;  %v2217_v9 = vmul.f32 0.2, %v4023_v3  ;;  %v2151_v10 = vmul.f32 0.2, %v1233_v7 }
 0x145   : > { %3785 = vst [vmem:[%s4321_s8 + $0x80] sm:$0xff] %v3533_v4   ;;  %3817 = vst [vmem:[%s4321_s8 + $0x180] sm:$0xff] %v3693_v5   ;;  %v2215_v11 = vmul.f32 0.2, %v1489_v8  ;;  %v3960_v12 = vpop.f32.mrb[38].mxu0  ;;  %v4024_v13 = vpop.f32.mrb[38].mxu1  ;;  %v2281_v14 = vsel %vm2025_vm8, %v3959_v2, %v2153_v6 }
 0x146   : > { %vm2023_vm10 = vcmp.ge.f32.partialorder %v1233_v7, 0.0  ;;  %vm2026_vm11 = vcmp.ge.f32.partialorder %v3960_v12, 0.0  ;;  %v2154_v15 = vmul.f32 0.2, %v3960_v12  ;;  %v1236_v16 = vpop.f32.mrb[39].mxu0  ;;  %v1492_v17 = vpop.f32.mrb[39].mxu1  ;;  %v2345_v22 = vsel %vm2089_vm9, %v4023_v3, %v2217_v9 }
 0x147   : > { %vm2087_vm12 = vcmp.ge.f32.partialorder %v1489_v8, 0.0  ;;  %vm2090_vm13 = vcmp.ge.f32.partialorder %v4024_v13, 0.0  ;;  %v2218_v18 = vmul.f32 0.2, %v4024_v13  ;;  %vm2024_vm14 = vcmp.ge.f32.partialorder %v1236_v16, 0.0 }
 0x148   : > { %v2282_v19 = vsel %vm2026_vm11, %v3960_v12, %v2154_v15  ;;  %v2152_v20 = vmul.f32 0.2, %v1236_v16  ;;  %vm2088_vm15 = vcmp.ge.f32.partialorder %v1492_v17, 0.0  ;;  %v2216_v21 = vmul.f32 0.2, %v1492_v17 }
 0x149   : > { %v2279_v23 = vsel %vm2023_vm10, %v1233_v7, %v2151_v10  ;;  %v3548_v24 = vpack.c.bf16 %v2282_v19, %v2281_v14  ;;  %v2346_v25 = vsel %vm2090_vm13, %v4024_v13, %v2218_v18  ;;  %v2343_v26 = vsel %vm2087_vm12, %v1489_v8, %v2215_v11 }
 0x14a   : > { %v3708_v27 = vpack.c.bf16 %v2346_v25, %v2345_v22  ;;  %v2280_v28 = vsel %vm2024_vm14, %v1236_v16, %v2152_v20  ;;  %v2344_v29 = vsel %vm2088_vm15, %v1492_v17, %v2216_v21  ;;  %v3963_v30 = vpop.f32.mrb[40].mxu0  ;;  %v4027_v31 = vpop.f32.mrb[40].mxu1 }
 0x14b   : > { %3788 = vst [vmem:[%s4321_s8 + $0x98] sm:$0xff] %v3548_v24   ;;  %v3543_v32 = vpack.c.bf16 %v2280_v28, %v2279_v23  ;;  %v3703_v33 = vpack.c.bf16 %v2344_v29, %v2343_v26  ;;  %vm2029_vm0 = vcmp.ge.f32.partialorder %v3963_v30, 0.0  ;;  %v2157_v34 = vmul.f32 0.2, %v3963_v30  ;;  %v1249_v35 = vpop.f32.mrb[41].mxu0  ;;  %v1505_v36 = vpop.f32.mrb[41].mxu1 }
 0x14c   : > { %3820 = vst [vmem:[%s4321_s8 + $0x198] sm:$0xff] %v3708_v27   ;;  %vm2093_vm1 = vcmp.ge.f32.partialorder %v4027_v31, 0.0  ;;  %v2221_v37 = vmul.f32 0.2, %v4027_v31  ;;  %v2155_v38 = vmul.f32 0.2, %v1249_v35 }
 0x14d   : > { %3787 = vst [vmem:[%s4321_s8 + $0x90] sm:$0xff] %v3543_v32   ;;  %3819 = vst [vmem:[%s4321_s8 + $0x190] sm:$0xff] %v3703_v33   ;;  %v2219_v39 = vmul.f32 0.2, %v1505_v36  ;;  %v3964_v40 = vpop.f32.mrb[42].mxu0  ;;  %v4028_v41 = vpop.f32.mrb[42].mxu1  ;;  %v2285_v42 = vsel %vm2029_vm0, %v3963_v30, %v2157_v34 }
 0x14e   : > { %vm2027_vm2 = vcmp.ge.f32.partialorder %v1249_v35, 0.0  ;;  %vm2030_vm3 = vcmp.ge.f32.partialorder %v3964_v40, 0.0  ;;  %v2158_v43 = vmul.f32 0.2, %v3964_v40  ;;  %v1252_v44 = vpop.f32.mrb[43].mxu0  ;;  %v1508_v45 = vpop.f32.mrb[43].mxu1  ;;  %v2349_v50 = vsel %vm2093_vm1, %v4027_v31, %v2221_v37 }
 0x14f   : > { %vm2091_vm4 = vcmp.ge.f32.partialorder %v1505_v36, 0.0  ;;  %vm2094_vm5 = vcmp.ge.f32.partialorder %v4028_v41, 0.0  ;;  %v2222_v46 = vmul.f32 0.2, %v4028_v41  ;;  %vm2028_vm6 = vcmp.ge.f32.partialorder %v1252_v44, 0.0 }
 0x150   : > { %v2286_v47 = vsel %vm2030_vm3, %v3964_v40, %v2158_v43  ;;  %v2156_v48 = vmul.f32 0.2, %v1252_v44  ;;  %vm2092_vm7 = vcmp.ge.f32.partialorder %v1508_v45, 0.0  ;;  %v2220_v49 = vmul.f32 0.2, %v1508_v45 }
 0x151   : > { %v2283_v51 = vsel %vm2027_vm2, %v1249_v35, %v2155_v38  ;;  %v3558_v52 = vpack.c.bf16 %v2286_v47, %v2285_v42  ;;  %v2350_v53 = vsel %vm2094_vm5, %v4028_v41, %v2222_v46  ;;  %v2347_v54 = vsel %vm2091_vm4, %v1505_v36, %v2219_v39 }
 0x152   : > { %v3718_v55 = vpack.c.bf16 %v2350_v53, %v2349_v50  ;;  %v2284_v56 = vsel %vm2028_vm6, %v1252_v44, %v2156_v48  ;;  %v2348_v57 = vsel %vm2092_vm7, %v1508_v45, %v2220_v49  ;;  %v3967_v58 = vpop.f32.mrb[44].mxu0  ;;  %v4031_v59 = vpop.f32.mrb[44].mxu1 }
 0x153   : > { %3790 = vst [vmem:[%s4321_s8 + $0xa8] sm:$0xff] %v3558_v52   ;;  %v3553_v60 = vpack.c.bf16 %v2284_v56, %v2283_v51  ;;  %v3713_v61 = vpack.c.bf16 %v2348_v57, %v2347_v54  ;;  %vm2033_vm8 = vcmp.ge.f32.partialorder %v3967_v58, 0.0  ;;  %v2161_v62 = vmul.f32 0.2, %v3967_v58  ;;  %v1265_v63 = vpop.f32.mrb[45].mxu0  ;;  %v1521_v0 = vpop.f32.mrb[45].mxu1 }
 0x154   : > { %3822 = vst [vmem:[%s4321_s8 + $0x1a8] sm:$0xff] %v3718_v55   ;;  %vm2097_vm9 = vcmp.ge.f32.partialorder %v4031_v59, 0.0  ;;  %v2225_v1 = vmul.f32 0.2, %v4031_v59  ;;  %v2159_v2 = vmul.f32 0.2, %v1265_v63 }
 0x155   : > { %3789 = vst [vmem:[%s4321_s8 + $0xa0] sm:$0xff] %v3553_v60   ;;  %3821 = vst [vmem:[%s4321_s8 + $0x1a0] sm:$0xff] %v3713_v61   ;;  %v2223_v3 = vmul.f32 0.2, %v1521_v0  ;;  %v3968_v4 = vpop.f32.mrb[46].mxu0  ;;  %v4032_v5 = vpop.f32.mrb[46].mxu1  ;;  %v2289_v6 = vsel %vm2033_vm8, %v3967_v58, %v2161_v62 }
 0x156   : > { %vm2031_vm10 = vcmp.ge.f32.partialorder %v1265_v63, 0.0  ;;  %vm2034_vm11 = vcmp.ge.f32.partialorder %v3968_v4, 0.0  ;;  %v2162_v7 = vmul.f32 0.2, %v3968_v4  ;;  %v1268_v8 = vpop.f32.mrb[47].mxu0  ;;  %v1524_v9 = vpop.f32.mrb[47].mxu1  ;;  %v2353_v14 = vsel %vm2097_vm9, %v4031_v59, %v2225_v1 }
 0x157   : > { %vm2095_vm12 = vcmp.ge.f32.partialorder %v1521_v0, 0.0  ;;  %vm2098_vm13 = vcmp.ge.f32.partialorder %v4032_v5, 0.0  ;;  %v2226_v10 = vmul.f32 0.2, %v4032_v5  ;;  %vm2032_vm14 = vcmp.ge.f32.partialorder %v1268_v8, 0.0 }
 0x158   : > { %v2290_v11 = vsel %vm2034_vm11, %v3968_v4, %v2162_v7  ;;  %v2160_v12 = vmul.f32 0.2, %v1268_v8  ;;  %vm2096_vm15 = vcmp.ge.f32.partialorder %v1524_v9, 0.0  ;;  %v2224_v13 = vmul.f32 0.2, %v1524_v9 }
 0x159   : > { %v2287_v15 = vsel %vm2031_vm10, %v1265_v63, %v2159_v2  ;;  %v3568_v16 = vpack.c.bf16 %v2290_v11, %v2289_v6  ;;  %v2354_v17 = vsel %vm2098_vm13, %v4032_v5, %v2226_v10  ;;  %v2351_v18 = vsel %vm2095_vm12, %v1521_v0, %v2223_v3 }
 0x15a   : > { %v3728_v19 = vpack.c.bf16 %v2354_v17, %v2353_v14  ;;  %v2288_v20 = vsel %vm2032_vm14, %v1268_v8, %v2160_v12  ;;  %v2352_v21 = vsel %vm2096_vm15, %v1524_v9, %v2224_v13  ;;  %v3971_v22 = vpop.f32.mrb[48].mxu0  ;;  %v4035_v23 = vpop.f32.mrb[48].mxu1 }
 0x15b   : > { %3792 = vst [vmem:[%s4321_s8 + $0xb8] sm:$0xff] %v3568_v16   ;;  %v3563_v24 = vpack.c.bf16 %v2288_v20, %v2287_v15  ;;  %v3723_v25 = vpack.c.bf16 %v2352_v21, %v2351_v18  ;;  %vm2037_vm0 = vcmp.ge.f32.partialorder %v3971_v22, 0.0  ;;  %v2165_v26 = vmul.f32 0.2, %v3971_v22  ;;  %v1281_v27 = vpop.f32.mrb[49].mxu0  ;;  %v1537_v28 = vpop.f32.mrb[49].mxu1 }
 0x15c   : > { %3824 = vst [vmem:[%s4321_s8 + $0x1b8] sm:$0xff] %v3728_v19   ;;  %vm2101_vm1 = vcmp.ge.f32.partialorder %v4035_v23, 0.0  ;;  %v2229_v29 = vmul.f32 0.2, %v4035_v23  ;;  %v2163_v30 = vmul.f32 0.2, %v1281_v27 }
 0x15d   : > { %3791 = vst [vmem:[%s4321_s8 + $0xb0] sm:$0xff] %v3563_v24   ;;  %3823 = vst [vmem:[%s4321_s8 + $0x1b0] sm:$0xff] %v3723_v25   ;;  %v2227_v31 = vmul.f32 0.2, %v1537_v28  ;;  %v3972_v32 = vpop.f32.mrb[50].mxu0  ;;  %v4036_v33 = vpop.f32.mrb[50].mxu1  ;;  %v2293_v34 = vsel %vm2037_vm0, %v3971_v22, %v2165_v26 }
 0x15e   : > { %vm2035_vm2 = vcmp.ge.f32.partialorder %v1281_v27, 0.0  ;;  %vm2038_vm3 = vcmp.ge.f32.partialorder %v3972_v32, 0.0  ;;  %v2166_v35 = vmul.f32 0.2, %v3972_v32  ;;  %v1284_v36 = vpop.f32.mrb[51].mxu0  ;;  %v1540_v37 = vpop.f32.mrb[51].mxu1  ;;  %v2357_v42 = vsel %vm2101_vm1, %v4035_v23, %v2229_v29 }
 0x15f   : > { %vm2099_vm4 = vcmp.ge.f32.partialorder %v1537_v28, 0.0  ;;  %vm2102_vm5 = vcmp.ge.f32.partialorder %v4036_v33, 0.0  ;;  %v2230_v38 = vmul.f32 0.2, %v4036_v33  ;;  %vm2036_vm6 = vcmp.ge.f32.partialorder %v1284_v36, 0.0 }
 0x160   : > { %v2294_v39 = vsel %vm2038_vm3, %v3972_v32, %v2166_v35  ;;  %v2164_v40 = vmul.f32 0.2, %v1284_v36  ;;  %vm2100_vm7 = vcmp.ge.f32.partialorder %v1540_v37, 0.0  ;;  %v2228_v41 = vmul.f32 0.2, %v1540_v37 }
 0x161   : > { %v2291_v43 = vsel %vm2035_vm2, %v1281_v27, %v2163_v30  ;;  %v3578_v44 = vpack.c.bf16 %v2294_v39, %v2293_v34  ;;  %v2358_v45 = vsel %vm2102_vm5, %v4036_v33, %v2230_v38  ;;  %v2355_v46 = vsel %vm2099_vm4, %v1537_v28, %v2227_v31 }
 0x162   : > { %v3738_v47 = vpack.c.bf16 %v2358_v45, %v2357_v42  ;;  %v2292_v48 = vsel %vm2036_vm6, %v1284_v36, %v2164_v40  ;;  %v2356_v49 = vsel %vm2100_vm7, %v1540_v37, %v2228_v41  ;;  %v3975_v50 = vpop.f32.mrb[52].mxu0  ;;  %v4039_v51 = vpop.f32.mrb[52].mxu1 }
 0x163   : > { %3794 = vst [vmem:[%s4321_s8 + $0xc8] sm:$0xff] %v3578_v44   ;;  %v3573_v52 = vpack.c.bf16 %v2292_v48, %v2291_v43  ;;  %v3733_v53 = vpack.c.bf16 %v2356_v49, %v2355_v46  ;;  %vm2041_vm8 = vcmp.ge.f32.partialorder %v3975_v50, 0.0  ;;  %v2169_v54 = vmul.f32 0.2, %v3975_v50  ;;  %v1297_v55 = vpop.f32.mrb[53].mxu0  ;;  %v1553_v56 = vpop.f32.mrb[53].mxu1 }
 0x164   : > { %3826 = vst [vmem:[%s4321_s8 + $0x1c8] sm:$0xff] %v3738_v47   ;;  %vm2105_vm9 = vcmp.ge.f32.partialorder %v4039_v51, 0.0  ;;  %v2233_v57 = vmul.f32 0.2, %v4039_v51  ;;  %v2167_v58 = vmul.f32 0.2, %v1297_v55 }
 0x165   : > { %3793 = vst [vmem:[%s4321_s8 + $0xc0] sm:$0xff] %v3573_v52   ;;  %3825 = vst [vmem:[%s4321_s8 + $0x1c0] sm:$0xff] %v3733_v53   ;;  %v2231_v59 = vmul.f32 0.2, %v1553_v56  ;;  %v3976_v60 = vpop.f32.mrb[54].mxu0  ;;  %v4040_v61 = vpop.f32.mrb[54].mxu1  ;;  %v2297_v62 = vsel %vm2041_vm8, %v3975_v50, %v2169_v54 }
 0x166   : > { %vm2039_vm10 = vcmp.ge.f32.partialorder %v1297_v55, 0.0  ;;  %vm2042_vm11 = vcmp.ge.f32.partialorder %v3976_v60, 0.0  ;;  %v2170_v63 = vmul.f32 0.2, %v3976_v60  ;;  %v1300_v0 = vpop.f32.mrb[55].mxu0  ;;  %v1556_v1 = vpop.f32.mrb[55].mxu1  ;;  %v2361_v6 = vsel %vm2105_vm9, %v4039_v51, %v2233_v57 }
 0x167   : > { %vm2103_vm12 = vcmp.ge.f32.partialorder %v1553_v56, 0.0  ;;  %vm2106_vm13 = vcmp.ge.f32.partialorder %v4040_v61, 0.0  ;;  %v2234_v2 = vmul.f32 0.2, %v4040_v61  ;;  %vm2040_vm14 = vcmp.ge.f32.partialorder %v1300_v0, 0.0 }
 0x168   : > { %v2298_v3 = vsel %vm2042_vm11, %v3976_v60, %v2170_v63  ;;  %v2168_v4 = vmul.f32 0.2, %v1300_v0  ;;  %vm2104_vm15 = vcmp.ge.f32.partialorder %v1556_v1, 0.0  ;;  %v2232_v5 = vmul.f32 0.2, %v1556_v1 }
 0x169   : > { %v2295_v7 = vsel %vm2039_vm10, %v1297_v55, %v2167_v58  ;;  %v3588_v8 = vpack.c.bf16 %v2298_v3, %v2297_v62  ;;  %v2362_v9 = vsel %vm2106_vm13, %v4040_v61, %v2234_v2  ;;  %v2359_v10 = vsel %vm2103_vm12, %v1553_v56, %v2231_v59 }
 0x16a   : > { %v3748_v11 = vpack.c.bf16 %v2362_v9, %v2361_v6  ;;  %v2296_v12 = vsel %vm2040_vm14, %v1300_v0, %v2168_v4  ;;  %v2360_v13 = vsel %vm2104_vm15, %v1556_v1, %v2232_v5  ;;  %v3979_v14 = vpop.f32.mrb[56].mxu0  ;;  %v4043_v15 = vpop.f32.mrb[56].mxu1 }
 0x16b   : > { %3796 = vst [vmem:[%s4321_s8 + $0xd8] sm:$0xff] %v3588_v8   ;;  %v3583_v16 = vpack.c.bf16 %v2296_v12, %v2295_v7  ;;  %v3743_v17 = vpack.c.bf16 %v2360_v13, %v2359_v10  ;;  %vm2045_vm0 = vcmp.ge.f32.partialorder %v3979_v14, 0.0  ;;  %v2173_v18 = vmul.f32 0.2, %v3979_v14  ;;  %v1313_v19 = vpop.f32.mrb[57].mxu0  ;;  %v1569_v20 = vpop.f32.mrb[57].mxu1 }
 0x16c   : > { %3828 = vst [vmem:[%s4321_s8 + $0x1d8] sm:$0xff] %v3748_v11   ;;  %vm2109_vm1 = vcmp.ge.f32.partialorder %v4043_v15, 0.0  ;;  %v2237_v21 = vmul.f32 0.2, %v4043_v15  ;;  %v2171_v22 = vmul.f32 0.2, %v1313_v19 }
 0x16d   : > { %3795 = vst [vmem:[%s4321_s8 + $0xd0] sm:$0xff] %v3583_v16   ;;  %3827 = vst [vmem:[%s4321_s8 + $0x1d0] sm:$0xff] %v3743_v17   ;;  %v2235_v23 = vmul.f32 0.2, %v1569_v20  ;;  %v3980_v24 = vpop.f32.mrb[58].mxu0  ;;  %v4044_v25 = vpop.f32.mrb[58].mxu1  ;;  %v2301_v26 = vsel %vm2045_vm0, %v3979_v14, %v2173_v18 }
 0x16e   : > { %vm2043_vm2 = vcmp.ge.f32.partialorder %v1313_v19, 0.0  ;;  %vm2046_vm3 = vcmp.ge.f32.partialorder %v3980_v24, 0.0  ;;  %v2174_v27 = vmul.f32 0.2, %v3980_v24  ;;  %v1316_v28 = vpop.f32.mrb[59].mxu0  ;;  %v1572_v29 = vpop.f32.mrb[59].mxu1  ;;  %v2365_v34 = vsel %vm2109_vm1, %v4043_v15, %v2237_v21 }
 0x16f   : > { %vm2107_vm4 = vcmp.ge.f32.partialorder %v1569_v20, 0.0  ;;  %vm2110_vm5 = vcmp.ge.f32.partialorder %v4044_v25, 0.0  ;;  %v2238_v30 = vmul.f32 0.2, %v4044_v25  ;;  %vm2044_vm6 = vcmp.ge.f32.partialorder %v1316_v28, 0.0 }
 0x170   : > { %v2302_v31 = vsel %vm2046_vm3, %v3980_v24, %v2174_v27  ;;  %v2172_v32 = vmul.f32 0.2, %v1316_v28  ;;  %vm2108_vm7 = vcmp.ge.f32.partialorder %v1572_v29, 0.0  ;;  %v2236_v33 = vmul.f32 0.2, %v1572_v29 }
 0x171   : > { %v2299_v35 = vsel %vm2043_vm2, %v1313_v19, %v2171_v22  ;;  %v3598_v36 = vpack.c.bf16 %v2302_v31, %v2301_v26  ;;  %v2366_v37 = vsel %vm2110_vm5, %v4044_v25, %v2238_v30  ;;  %v2363_v38 = vsel %vm2107_vm4, %v1569_v20, %v2235_v23 }
 0x172   : > { %v3758_v39 = vpack.c.bf16 %v2366_v37, %v2365_v34  ;;  %v2300_v40 = vsel %vm2044_vm6, %v1316_v28, %v2172_v32  ;;  %v2364_v41 = vsel %vm2108_vm7, %v1572_v29, %v2236_v33  ;;  %v3983_v42 = vpop.f32.mrb[60].mxu0  ;;  %v4047_v43 = vpop.f32.mrb[60].mxu1 }
 0x173   : > { %3798 = vst [vmem:[%s4321_s8 + $0xe8] sm:$0xff] %v3598_v36   ;;  %v3593_v44 = vpack.c.bf16 %v2300_v40, %v2299_v35  ;;  %v3753_v45 = vpack.c.bf16 %v2364_v41, %v2363_v38  ;;  %vm2049_vm8 = vcmp.ge.f32.partialorder %v3983_v42, 0.0  ;;  %v2177_v46 = vmul.f32 0.2, %v3983_v42  ;;  %v1329_v47 = vpop.f32.mrb[61].mxu0  ;;  %v1585_v48 = vpop.f32.mrb[61].mxu1 }
 0x174   : > { %3830 = vst [vmem:[%s4321_s8 + $0x1e8] sm:$0xff] %v3758_v39   ;;  %vm2113_vm9 = vcmp.ge.f32.partialorder %v4047_v43, 0.0  ;;  %v2241_v49 = vmul.f32 0.2, %v4047_v43  ;;  %v2175_v50 = vmul.f32 0.2, %v1329_v47 }
 0x175   : > { %3797 = vst [vmem:[%s4321_s8 + $0xe0] sm:$0xff] %v3593_v44   ;;  %3829 = vst [vmem:[%s4321_s8 + $0x1e0] sm:$0xff] %v3753_v45   ;;  %v2239_v51 = vmul.f32 0.2, %v1585_v48  ;;  %v3984_v52 = vpop.f32.mrb[62].mxu0  ;;  %v4048_v53 = vpop.f32.mrb[62].mxu1  ;;  %v2305_v54 = vsel %vm2049_vm8, %v3983_v42, %v2177_v46 }
 0x176   : > { %vm2047_vm10 = vcmp.ge.f32.partialorder %v1329_v47, 0.0  ;;  %vm2050_vm11 = vcmp.ge.f32.partialorder %v3984_v52, 0.0  ;;  %v2178_v55 = vmul.f32 0.2, %v3984_v52  ;;  %v1332_v56 = vpop.f32.mrb[63].mxu0  ;;  %v1588_v57 = vpop.f32.mrb[63].mxu1  ;;  %v2369_v62 = vsel %vm2113_vm9, %v4047_v43, %v2241_v49 }
 0x177   : > { %vm2111_vm12 = vcmp.ge.f32.partialorder %v1585_v48, 0.0  ;;  %vm2114_vm13 = vcmp.ge.f32.partialorder %v4048_v53, 0.0  ;;  %v2242_v58 = vmul.f32 0.2, %v4048_v53  ;;  %vm2048_vm14 = vcmp.ge.f32.partialorder %v1332_v56, 0.0 }
 0x178   : > { %v2306_v59 = vsel %vm2050_vm11, %v3984_v52, %v2178_v55  ;;  %v2176_v60 = vmul.f32 0.2, %v1332_v56  ;;  %vm2112_vm15 = vcmp.ge.f32.partialorder %v1588_v57, 0.0  ;;  %v2240_v61 = vmul.f32 0.2, %v1588_v57 }
 0x179   : > { %v2303_v63 = vsel %vm2047_vm10, %v1329_v47, %v2175_v50  ;;  %v3608_v0 = vpack.c.bf16 %v2306_v59, %v2305_v54  ;;  %v2370_v1 = vsel %vm2114_vm13, %v4048_v53, %v2242_v58  ;;  %v2367_v2 = vsel %vm2111_vm12, %v1585_v48, %v2239_v51 }
 0x17a   : > { %v3768_v3 = vpack.c.bf16 %v2370_v1, %v2369_v62  ;;  %v2304_v4 = vsel %vm2048_vm14, %v1332_v56, %v2176_v60  ;;  %v2368_v5 = vsel %vm2112_vm15, %v1588_v57, %v2240_v61 }
 0x17b   : > { %3800 = vst [vmem:[%s4321_s8 + $0xf8] sm:$0xff] %v3608_v0   ;;  %v3603_v6 = vpack.c.bf16 %v2304_v4, %v2303_v63  ;;  %v3763_v7 = vpack.c.bf16 %v2368_v5, %v2367_v2 }
 0x17c   : > { %3832 = vst [vmem:[%s4321_s8 + $0x1f8] sm:$0xff] %v3768_v3  }
 0x17d   : > { %3799 = vst [vmem:[%s4321_s8 + $0xf0] sm:$0xff] %v3603_v6   ;;  %3831 = vst [vmem:[%s4321_s8 + $0x1f0] sm:$0xff] %v3763_v7  }
 0x17e PF: > { %s12_s11 = sadd.s32 1, %s4183_s11   ;;  %s4414_s9 = smov %s4179_s10 }
 0x17f   : > { %p9_p5 = scmp.ge.s32.totalorder %s12_s11, 10   ;;  %s4415_s10 = smov %s4417_s12 }
 0x181   :  { %11 = sbr.rel (!%p9_p5) target bundleno = 2 (0x2), region = 69 }

// kernel: forward.7
= control target key start
LH: loop header
LB: loop body
LE: loop exit
PB: predicated region body
PF: predicated region fallthrough
CT: control target
= control target key end

     0   :  { %s4543_s9 = smov 0   ;;  %s4545_s10 = smov 0   ;;  %s4856_s0 = inlined_call_operand.vmem [shape: bf16[2048,256], index: 0, kind: input, shape index: {}]   ;;  %s4857_s1 = inlined_call_operand.vmem [shape: bf16[256,128], index: 1, kind: input, shape index: {}]   ;;  %s4858_s2 = inlined_call_operand.vmem [shape: bf16[2048,128], index: 2, kind: output, shape index: {}]  }
   0x1   :  { %s4547_s11 = smov 0  }
   0x2 LB: > { %s31_s12 = sadd.s32 1, %s4521_s10  ;;  %p3446_p0 = scmp.ge.s32.totalorder %s4525_s11, 1  ;;  %s4525_s11 = sphi %s4547_s11, %s12_s11   ;;  %s4521_s10 = sphi %s4545_s10, %s4860_s10   ;;  %s4517_s9 = sphi %s4543_s9, %s4859_s9  }
   0x3   : > { %p33_p1 = scmp.ge.s32.totalorder %s31_s12, 2  ;;  %p158_p2 = scmp.lt.s32.totalorder %s4525_s11, 3 }
   0x5   : > { %s4862_s12 = smov (%p33_p1, %s31_s12), 0  ;;  %p159_p3 = pnand %p3446_p0, %p158_p2 }
   0x6   : > { %v4295_v0 = vld [vmem:[%s4857_s1] sm:$0xff] (!%p159_p3)   ;;  %v4527_v1 = vmov (!%p159_p3), 0   ;;  %s3447_s15 = sshll.u32 (!%p159_p3), %s4517_s9, 7  ;;  %v4296_v2 = vld [vmem:[%s4857_s1 + $0x8] sm:$0xff] (!%p159_p3)   ;;  %v4297_v3 = vld [vmem:[%s4857_s1 + $0x10] sm:$0xff] (!%p159_p3)  }
   0x7   : > { %162 = sbr.rel (%p159_p3) target bundleno = 540 (0x21c), region = 28  ;;  %1383 = vmatprep.subr.bf16.mxu0 (!%p159_p3), %v4527_v1  ;;  %4238 = vmatprep.subr.bf16.mxu1 (!%p159_p3), %v4527_v1  ;;  %p198_p4 = scmp.lt.s32.totalorder (!%p159_p3), %s3447_s15, 255  ;;  %v4298_v4 = vld [vmem:[%s4857_s1 + $0x18] sm:$0xff] (!%p159_p3)   ;;  %v4299_v5 = vld [vmem:[%s4857_s1 + $0x20] sm:$0xff] (!%p159_p3)   ;;  %v4300_v7 = vld [vmem:[%s4857_s1 + $0x28] sm:$0xff] (!%p159_p3)  }
   0x8   : > { %1384 = vmatpush1.bf16.msra.mxu0 (!%p159_p3), %v4295_v0  ;;  %4254 = vmatpush1.bf16.msra.mxu1 (!%p159_p3), %v4295_v0  ;;  %v4301_v9 = vld [vmem:[%s4857_s1 + $0x30] sm:$0xff] (!%p159_p3)   ;;  %v4302_v10 = vld [vmem:[%s4857_s1 + $0x38] sm:$0xff] (!%p159_p3)   ;;  %v4303_v11 = vld [vmem:[%s4857_s1 + $0x40] sm:$0xff] (!%p159_p3)  }
   0x9   : > { %1385 = vmatprep.subr.bf16.mxu0 (!%p159_p3), %v4527_v1  ;;  %4239 = vmatprep.subr.bf16.mxu1 (!%p159_p3), %v4527_v1  ;;  %v4304_v12 = vld [vmem:[%s4857_s1 + $0x48] sm:$0xff] (!%p159_p3)   ;;  %v4305_v13 = vld [vmem:[%s4857_s1 + $0x50] sm:$0xff] (!%p159_p3)   ;;  %v4306_v14 = vld [vmem:[%s4857_s1 + $0x58] sm:$0xff] (!%p159_p3)  }
   0xa   : > { %v4307_v15 = vld [vmem:[%s4857_s1 + $0x60] sm:$0xff] (!%p159_p3)   ;;  %v4308_v16 = vld [vmem:[%s4857_s1 + $0x68] sm:$0xff] (!%p159_p3)   ;;  %v4309_v17 = vld [vmem:[%s4857_s1 + $0x70] sm:$0xff] (!%p159_p3)  }
   0xb   : > { %v4310_v18 = vld [vmem:[%s4857_s1 + $0x78] sm:$0xff] (!%p159_p3)  }
   0xc   : > { %1386 = vmatpush1.bf16.msra.mxu0 (!%p159_p3), %v4296_v2  ;;  %4255 = vmatpush1.bf16.msra.mxu1 (!%p159_p3), %v4296_v2 }
   0xd   : > { %1387 = vmatprep.subr.bf16.mxu0 (!%p159_p3), %v4527_v1  ;;  %4240 = vmatprep.subr.bf16.mxu1 (!%p159_p3), %v4527_v1 }
   0xe   : > { %s4864_s15 = smov (!%p198_p4, %s3447_s15), 255 }
   0xf   : > { %s3726_s22 = sshll.u32 %s4864_s15, 3  ;;  %s3451_s26 = sshll.u32 %s4864_s15, 2 }
  0x10   : > { %1388 = vmatpush1.bf16.msra.mxu0 %v4297_v3  ;;  %4256 = vmatpush1.bf16.msra.mxu1 %v4297_v3  ;;  %s4590_s27 = scalar_lea.vmem %s4856_s0, %s3726_s22  ;;  %s4767_s15 = scalar_lea.vmem %s4858_s2, %s3451_s26 }
  0x11   : > { %1389 = vmatprep.subr.bf16.mxu0 %v4527_v1  ;;  %4241 = vmatprep.subr.bf16.mxu1 %v4527_v1  ;;  %v4313_v6 = vld [vmem:[%s4590_s27 + $0x4] ss:$8 sps:$4 sm:$0xff]   ;;  %v4311_v19 = vld [vmem:[%s4590_s27] ss:$8 sps:$4 sm:$0xff]   ;;  %v4317_v21 = vld [vmem:[%s4590_s27 + $0x14] ss:$8 sps:$4 sm:$0xff]  }
  0x12   : > { %v4316_v8 = vld [vmem:[%s4590_s27 + $0x204] ss:$8 sps:$4 sm:$0xff]   ;;  %1415 = vmatprep.mubr.bf16.mxu0 %v4313_v6  ;;  %v4314_v20 = vld [vmem:[%s4590_s27 + $0x200] ss:$8 sps:$4 sm:$0xff]   ;;  %v4319_v22 = vld [vmem:[%s4590_s27 + $0x214] ss:$8 sps:$4 sm:$0xff]  }
  0x13   : > { %1671 = vmatprep.mubr.bf16.mxu1 %v4316_v8  ;;  %v4321_v23 = vld [vmem:[%s4590_s27 + $0x10] ss:$8 sps:$4 sm:$0xff]   ;;  %v4323_v25 = vld [vmem:[%s4590_s27 + $0x24] ss:$8 sps:$4 sm:$0xff]   ;;  %v4327_v27 = vld [vmem:[%s4590_s27 + $0x20] ss:$8 sps:$4 sm:$0xff]  }
  0x14   : > { %1390 = vmatpush1.bf16.msra.mxu0 %v4298_v4  ;;  %4257 = vmatpush1.bf16.msra.mxu1 %v4298_v4  ;;  %v4322_v24 = vld [vmem:[%s4590_s27 + $0x210] ss:$8 sps:$4 sm:$0xff]   ;;  %v4325_v26 = vld [vmem:[%s4590_s27 + $0x224] ss:$8 sps:$4 sm:$0xff]   ;;  %v4328_v28 = vld [vmem:[%s4590_s27 + $0x220] ss:$8 sps:$4 sm:$0xff]  }
  0x15   : > { %1391 = vmatprep.subr.bf16.mxu0 %v4527_v1  ;;  %4242 = vmatprep.subr.bf16.mxu1 %v4527_v1  ;;  %v4329_v29 = vld [vmem:[%s4590_s27 + $0x34] ss:$8 sps:$4 sm:$0xff]   ;;  %v4333_v31 = vld [vmem:[%s4590_s27 + $0x30] ss:$8 sps:$4 sm:$0xff]   ;;  %v4335_v33 = vld [vmem:[%s4590_s27 + $0x44] ss:$8 sps:$4 sm:$0xff]  }
  0x16   : > { %v4331_v30 = vld [vmem:[%s4590_s27 + $0x234] ss:$8 sps:$4 sm:$0xff]   ;;  %v4334_v32 = vld [vmem:[%s4590_s27 + $0x230] ss:$8 sps:$4 sm:$0xff]   ;;  %v4337_v34 = vld [vmem:[%s4590_s27 + $0x244] ss:$8 sps:$4 sm:$0xff]  }
  0x17   : > { %v4339_v35 = vld [vmem:[%s4590_s27 + $0x40] ss:$8 sps:$4 sm:$0xff]   ;;  %v4341_v37 = vld [vmem:[%s4590_s27 + $0x54] ss:$8 sps:$4 sm:$0xff]   ;;  %v4345_v39 = vld [vmem:[%s4590_s27 + $0x50] ss:$8 sps:$4 sm:$0xff]  }
  0x18   : > { %1392 = vmatpush1.bf16.msra.mxu0 %v4299_v5  ;;  %4258 = vmatpush1.bf16.msra.mxu1 %v4299_v5  ;;  %v4340_v36 = vld [vmem:[%s4590_s27 + $0x240] ss:$8 sps:$4 sm:$0xff]   ;;  %v4343_v38 = vld [vmem:[%s4590_s27 + $0x254] ss:$8 sps:$4 sm:$0xff]   ;;  %v4346_v40 = vld [vmem:[%s4590_s27 + $0x250] ss:$8 sps:$4 sm:$0xff]  }
  0x19   : > { %1393 = vmatprep.subr.bf16.mxu0 %v4527_v1  ;;  %4243 = vmatprep.subr.bf16.mxu1 %v4527_v1  ;;  %v4347_v41 = vld [vmem:[%s4590_s27 + $0x64] ss:$8 sps:$4 sm:$0xff]   ;;  %v4351_v43 = vld [vmem:[%s4590_s27 + $0x60] ss:$8 sps:$4 sm:$0xff]   ;;  %v4353_v45 = vld [vmem:[%s4590_s27 + $0x74] ss:$8 sps:$4 sm:$0xff]  }
  0x1a   : > { %v4349_v42 = vld [vmem:[%s4590_s27 + $0x264] ss:$8 sps:$4 sm:$0xff]   ;;  %v4352_v44 = vld [vmem:[%s4590_s27 + $0x260] ss:$8 sps:$4 sm:$0xff]   ;;  %v4355_v46 = vld [vmem:[%s4590_s27 + $0x274] ss:$8 sps:$4 sm:$0xff]  }
  0x1b   : > { %v4357_v47 = vld [vmem:[%s4590_s27 + $0x70] ss:$8 sps:$4 sm:$0xff]   ;;  %v4359_v49 = vld [vmem:[%s4590_s27 + $0x84] ss:$8 sps:$4 sm:$0xff]   ;;  %v4363_v51 = vld [vmem:[%s4590_s27 + $0x80] ss:$8 sps:$4 sm:$0xff]  }
  0x1c   : > { %1394 = vmatpush1.bf16.msra.mxu0 %v4300_v7  ;;  %4259 = vmatpush1.bf16.msra.mxu1 %v4300_v7  ;;  %v4358_v48 = vld [vmem:[%s4590_s27 + $0x270] ss:$8 sps:$4 sm:$0xff]   ;;  %v4361_v50 = vld [vmem:[%s4590_s27 + $0x284] ss:$8 sps:$4 sm:$0xff]   ;;  %v4364_v52 = vld [vmem:[%s4590_s27 + $0x280] ss:$8 sps:$4 sm:$0xff]  }
  0x1d   : > { %1395 = vmatprep.subr.bf16.mxu0 %v4527_v1  ;;  %4244 = vmatprep.subr.bf16.mxu1 %v4527_v1  ;;  %v4365_v53 = vld [vmem:[%s4590_s27 + $0x94] ss:$8 sps:$4 sm:$0xff]   ;;  %v4369_v55 = vld [vmem:[%s4590_s27 + $0x90] ss:$8 sps:$4 sm:$0xff]   ;;  %v4371_v57 = vld [vmem:[%s4590_s27 + $0xa4] ss:$8 sps:$4 sm:$0xff]  }
  0x1e   : > { %v4367_v54 = vld [vmem:[%s4590_s27 + $0x294] ss:$8 sps:$4 sm:$0xff]   ;;  %v4370_v56 = vld [vmem:[%s4590_s27 + $0x290] ss:$8 sps:$4 sm:$0xff]   ;;  %v4373_v58 = vld [vmem:[%s4590_s27 + $0x2a4] ss:$8 sps:$4 sm:$0xff]  }
  0x1f   : > { %v4375_v59 = vld [vmem:[%s4590_s27 + $0xa0] ss:$8 sps:$4 sm:$0xff]   ;;  %v4377_v61 = vld [vmem:[%s4590_s27 + $0xb4] ss:$8 sps:$4 sm:$0xff]   ;;  %v4381_v63 = vld [vmem:[%s4590_s27 + $0xb0] ss:$8 sps:$4 sm:$0xff]  }
  0x20   : > { %1396 = vmatpush1.bf16.msra.mxu0 %v4301_v9  ;;  %4260 = vmatpush1.bf16.msra.mxu1 %v4301_v9  ;;  %v4376_v60 = vld [vmem:[%s4590_s27 + $0x2a0] ss:$8 sps:$4 sm:$0xff]   ;;  %v4379_v62 = vld [vmem:[%s4590_s27 + $0x2b4] ss:$8 sps:$4 sm:$0xff]   ;;  %v4382_v0 = vld [vmem:[%s4590_s27 + $0x2b0] ss:$8 sps:$4 sm:$0xff]  }
  0x21   : > { %1397 = vmatprep.subr.bf16.mxu0 %v4527_v1  ;;  %4245 = vmatprep.subr.bf16.mxu1 %v4527_v1  ;;  %v4385_v2 = vld [vmem:[%s4590_s27 + $0x2c4] ss:$8 sps:$4 sm:$0xff]   ;;  %v4387_v3 = vld [vmem:[%s4590_s27 + $0xc0] ss:$8 sps:$4 sm:$0xff]   ;;  %v4389_v5 = vld [vmem:[%s4590_s27 + $0xd4] ss:$8 sps:$4 sm:$0xff]  }
  0x22   : > { %v4388_v4 = vld [vmem:[%s4590_s27 + $0x2c0] ss:$8 sps:$4 sm:$0xff]   ;;  %v4391_v6 = vld [vmem:[%s4590_s27 + $0x2d4] ss:$8 sps:$4 sm:$0xff]   ;;  %v4393_v7 = vld [vmem:[%s4590_s27 + $0xd0] ss:$8 sps:$4 sm:$0xff]  }
  0x23   : > { %v4394_v8 = vld [vmem:[%s4590_s27 + $0x2d0] ss:$8 sps:$4 sm:$0xff]   ;;  %v4395_v9 = vld [vmem:[%s4590_s27 + $0xe4] ss:$8 sps:$4 sm:$0xff]  }
  0x24   : > { %1398 = vmatpush1.bf16.msra.mxu0 %v4302_v10  ;;  %4261 = vmatpush1.bf16.msra.mxu1 %v4302_v10  ;;  %v4397_v10 = vld [vmem:[%s4590_s27 + $0x2e4] ss:$8 sps:$4 sm:$0xff]  }
  0x25   : > { %1399 = vmatprep.subr.bf16.mxu0 %v4527_v1  ;;  %4246 = vmatprep.subr.bf16.mxu1 %v4527_v1 }
  0x28   : > { %1400 = vmatpush1.bf16.msra.mxu0 %v4303_v11  ;;  %4262 = vmatpush1.bf16.msra.mxu1 %v4303_v11  ;;  %v4399_v11 = vld [vmem:[%s4590_s27 + $0xe0] ss:$8 sps:$4 sm:$0xff]  }
  0x29   : > { %1401 = vmatprep.subr.bf16.mxu0 %v4527_v1  ;;  %4247 = vmatprep.subr.bf16.mxu1 %v4527_v1 }
  0x2c   : > { %1402 = vmatpush1.bf16.msra.mxu0 %v4304_v12  ;;  %4263 = vmatpush1.bf16.msra.mxu1 %v4304_v12  ;;  %v4400_v12 = vld [vmem:[%s4590_s27 + $0x2e0] ss:$8 sps:$4 sm:$0xff]  }
  0x2d   : > { %1403 = vmatprep.subr.bf16.mxu0 %v4527_v1  ;;  %4248 = vmatprep.subr.bf16.mxu1 %v4527_v1 }
  0x30   : > { %1404 = vmatpush1.bf16.msra.mxu0 %v4305_v13  ;;  %4264 = vmatpush1.bf16.msra.mxu1 %v4305_v13  ;;  %v4401_v13 = vld [vmem:[%s4590_s27 + $0xf4] ss:$8 sps:$4 sm:$0xff]  }
  0x31   : > { %1405 = vmatprep.subr.bf16.mxu0 %v4527_v1  ;;  %4249 = vmatprep.subr.bf16.mxu1 %v4527_v1 }
  0x34   : > { %1406 = vmatpush1.bf16.msra.mxu0 %v4306_v14  ;;  %4265 = vmatpush1.bf16.msra.mxu1 %v4306_v14  ;;  %v4403_v14 = vld [vmem:[%s4590_s27 + $0x2f4] ss:$8 sps:$4 sm:$0xff]  }
  0x35   : > { %1407 = vmatprep.subr.bf16.mxu0 %v4527_v1  ;;  %4250 = vmatprep.subr.bf16.mxu1 %v4527_v1 }
  0x38   : > { %1408 = vmatpush1.bf16.msra.mxu0 %v4307_v15  ;;  %4266 = vmatpush1.bf16.msra.mxu1 %v4307_v15  ;;  %v4405_v15 = vld [vmem:[%s4590_s27 + $0xf0] ss:$8 sps:$4 sm:$0xff]  }
  0x39   : > { %1409 = vmatprep.subr.bf16.mxu0 %v4527_v1  ;;  %4251 = vmatprep.subr.bf16.mxu1 %v4527_v1 }
  0x3c   : > { %1410 = vmatpush1.bf16.msra.mxu0 %v4308_v16  ;;  %4267 = vmatpush1.bf16.msra.mxu1 %v4308_v16  ;;  %v4406_v16 = vld [vmem:[%s4590_s27 + $0x2f0] ss:$8 sps:$4 sm:$0xff]  }
  0x3d   : > { %1411 = vmatprep.subr.bf16.mxu0 %v4527_v1  ;;  %4252 = vmatprep.subr.bf16.mxu1 %v4527_v1 }
  0x40   : > { %1412 = vmatpush1.bf16.msra.mxu0 %v4309_v17  ;;  %4268 = vmatpush1.bf16.msra.mxu1 %v4309_v17  ;;  %v4407_v17 = vld [vmem:[%s4590_s27 + $0x104] ss:$8 sps:$4 sm:$0xff]  }
  0x41   : > { %1413 = vmatprep.subr.bf16.mxu0 %v4527_v1  ;;  %4253 = vmatprep.subr.bf16.mxu1 %v4527_v1  ;;  %v4383_v1 = vld [vmem:[%s4590_s27 + $0xc4] ss:$8 sps:$4 sm:$0xff]  }
  0x44   : > { %1414 = vmatpush1.bf16.msra.mxu0 %v4310_v18  ;;  %4269 = vmatpush1.bf16.msra.mxu1 %v4310_v18  ;;  %v4409_v18 = vld [vmem:[%s4590_s27 + $0x304] ss:$8 sps:$4 sm:$0xff]  }
  0x47   : > { %1416 = vmatmul.mubr.bf16.vlgmr.msra.gmra.mrb[0].mxu0 %v4311_v19  ;;  %1672 = vmatmul.mubr.bf16.vlgmr.msra.gmra.mrb[0].mxu1 %v4314_v20  ;;  %v4411_v19 = vld [vmem:[%s4590_s27 + $0x100] ss:$8 sps:$4 sm:$0xff]  }
  0x48   : > { %1423 = vmatprep.mubr.bf16.mxu0 %v4317_v21  ;;  %1679 = vmatprep.mubr.bf16.mxu1 %v4319_v22  ;;  %v4412_v20 = vld [vmem:[%s4590_s27 + $0x300] ss:$8 sps:$4 sm:$0xff]   ;;  %v4413_v21 = vld [vmem:[%s4590_s27 + $0x114] ss:$8 sps:$4 sm:$0xff]  }
  0x49   : > { %v4415_v22 = vld [vmem:[%s4590_s27 + $0x314] ss:$8 sps:$4 sm:$0xff]  }
  0x4f   : > { %1424 = vmatmul.mubr.bf16.gmra.mrb[4].mxu0 %v4321_v23  ;;  %1680 = vmatmul.mubr.bf16.gmra.mrb[4].mxu1 %v4322_v24  ;;  %v4417_v23 = vld [vmem:[%s4590_s27 + $0x110] ss:$8 sps:$4 sm:$0xff]  }
  0x50   : > { %1431 = vmatprep.mubr.bf16.mxu0 %v4323_v25  ;;  %1687 = vmatprep.mubr.bf16.mxu1 %v4325_v26  ;;  %v4418_v24 = vld [vmem:[%s4590_s27 + $0x310] ss:$8 sps:$4 sm:$0xff]   ;;  %v4419_v25 = vld [vmem:[%s4590_s27 + $0x124] ss:$8 sps:$4 sm:$0xff]  }
  0x51   : > { %v4421_v26 = vld [vmem:[%s4590_s27 + $0x324] ss:$8 sps:$4 sm:$0xff]  }
  0x57   : > { %1432 = vmatmul.mubr.bf16.gmra.mrb[8].mxu0 %v4327_v27  ;;  %1688 = vmatmul.mubr.bf16.gmra.mrb[8].mxu1 %v4328_v28  ;;  %v4423_v27 = vld [vmem:[%s4590_s27 + $0x120] ss:$8 sps:$4 sm:$0xff]  }
  0x58   : > { %1439 = vmatprep.mubr.bf16.mxu0 %v4329_v29  ;;  %1695 = vmatprep.mubr.bf16.mxu1 %v4331_v30  ;;  %v4424_v28 = vld [vmem:[%s4590_s27 + $0x320] ss:$8 sps:$4 sm:$0xff]   ;;  %v4425_v29 = vld [vmem:[%s4590_s27 + $0x134] ss:$8 sps:$4 sm:$0xff]  }
  0x59   : > { %v4427_v30 = vld [vmem:[%s4590_s27 + $0x334] ss:$8 sps:$4 sm:$0xff]  }
  0x5f   : > { %1440 = vmatmul.mubr.bf16.gmra.mrb[12].mxu0 %v4333_v31  ;;  %1696 = vmatmul.mubr.bf16.gmra.mrb[12].mxu1 %v4334_v32  ;;  %v4429_v31 = vld [vmem:[%s4590_s27 + $0x130] ss:$8 sps:$4 sm:$0xff]  }
  0x60   : > { %1447 = vmatprep.mubr.bf16.mxu0 %v4335_v33  ;;  %1703 = vmatprep.mubr.bf16.mxu1 %v4337_v34  ;;  %v4430_v32 = vld [vmem:[%s4590_s27 + $0x330] ss:$8 sps:$4 sm:$0xff]   ;;  %v4431_v33 = vld [vmem:[%s4590_s27 + $0x144] ss:$8 sps:$4 sm:$0xff]  }
  0x61   : > { %v4433_v34 = vld [vmem:[%s4590_s27 + $0x344] ss:$8 sps:$4 sm:$0xff]  }
  0x67   : > { %1448 = vmatmul.mubr.bf16.gmra.mrb[16].mxu0 %v4339_v35  ;;  %1704 = vmatmul.mubr.bf16.gmra.mrb[16].mxu1 %v4340_v36  ;;  %v4435_v35 = vld [vmem:[%s4590_s27 + $0x140] ss:$8 sps:$4 sm:$0xff]  }
  0x68   : > { %1455 = vmatprep.mubr.bf16.mxu0 %v4341_v37  ;;  %1711 = vmatprep.mubr.bf16.mxu1 %v4343_v38  ;;  %v4436_v36 = vld [vmem:[%s4590_s27 + $0x340] ss:$8 sps:$4 sm:$0xff]   ;;  %v4437_v37 = vld [vmem:[%s4590_s27 + $0x154] ss:$8 sps:$4 sm:$0xff]  }
  0x69   : > { %v4439_v38 = vld [vmem:[%s4590_s27 + $0x354] ss:$8 sps:$4 sm:$0xff]  }
  0x6f   : > { %1456 = vmatmul.mubr.bf16.gmra.mrb[20].mxu0 %v4345_v39  ;;  %1712 = vmatmul.mubr.bf16.gmra.mrb[20].mxu1 %v4346_v40  ;;  %v4441_v39 = vld [vmem:[%s4590_s27 + $0x150] ss:$8 sps:$4 sm:$0xff]  }
  0x70   : > { %1463 = vmatprep.mubr.bf16.mxu0 %v4347_v41  ;;  %1719 = vmatprep.mubr.bf16.mxu1 %v4349_v42  ;;  %v4442_v40 = vld [vmem:[%s4590_s27 + $0x350] ss:$8 sps:$4 sm:$0xff]   ;;  %v4443_v41 = vld [vmem:[%s4590_s27 + $0x164] ss:$8 sps:$4 sm:$0xff]  }
  0x71   : > { %v4445_v42 = vld [vmem:[%s4590_s27 + $0x364] ss:$8 sps:$4 sm:$0xff]  }
  0x77   : > { %1464 = vmatmul.mubr.bf16.gmra.mrb[24].mxu0 %v4351_v43  ;;  %1720 = vmatmul.mubr.bf16.gmra.mrb[24].mxu1 %v4352_v44  ;;  %v4447_v43 = vld [vmem:[%s4590_s27 + $0x160] ss:$8 sps:$4 sm:$0xff]  }
  0x78   : > { %1471 = vmatprep.mubr.bf16.mxu0 %v4353_v45  ;;  %1727 = vmatprep.mubr.bf16.mxu1 %v4355_v46  ;;  %v4448_v44 = vld [vmem:[%s4590_s27 + $0x360] ss:$8 sps:$4 sm:$0xff]   ;;  %v4449_v45 = vld [vmem:[%s4590_s27 + $0x174] ss:$8 sps:$4 sm:$0xff]  }
  0x79   : > { %v4451_v46 = vld [vmem:[%s4590_s27 + $0x374] ss:$8 sps:$4 sm:$0xff]  }
  0x7f   : > { %1472 = vmatmul.mubr.bf16.gmra.mrb[28].mxu0 %v4357_v47  ;;  %1728 = vmatmul.mubr.bf16.gmra.mrb[28].mxu1 %v4358_v48  ;;  %v4453_v47 = vld [vmem:[%s4590_s27 + $0x170] ss:$8 sps:$4 sm:$0xff]  }
  0x80   : > { %1479 = vmatprep.mubr.bf16.mxu0 %v4359_v49  ;;  %1735 = vmatprep.mubr.bf16.mxu1 %v4361_v50  ;;  %v4454_v48 = vld [vmem:[%s4590_s27 + $0x370] ss:$8 sps:$4 sm:$0xff]   ;;  %v4455_v49 = vld [vmem:[%s4590_s27 + $0x184] ss:$8 sps:$4 sm:$0xff]  }
  0x81   : > { %v4457_v50 = vld [vmem:[%s4590_s27 + $0x384] ss:$8 sps:$4 sm:$0xff]  }
  0x87   : > { %1480 = vmatmul.mubr.bf16.gmra.mrb[32].mxu0 %v4363_v51  ;;  %1736 = vmatmul.mubr.bf16.gmra.mrb[32].mxu1 %v4364_v52  ;;  %v4459_v51 = vld [vmem:[%s4590_s27 + $0x180] ss:$8 sps:$4 sm:$0xff]  }
  0x88   : > { %1487 = vmatprep.mubr.bf16.mxu0 %v4365_v53  ;;  %1743 = vmatprep.mubr.bf16.mxu1 %v4367_v54  ;;  %v4460_v52 = vld [vmem:[%s4590_s27 + $0x380] ss:$8 sps:$4 sm:$0xff]   ;;  %v4461_v53 = vld [vmem:[%s4590_s27 + $0x194] ss:$8 sps:$4 sm:$0xff]  }
  0x89   : > { %v4463_v54 = vld [vmem:[%s4590_s27 + $0x394] ss:$8 sps:$4 sm:$0xff]  }
  0x8f   : > { %1488 = vmatmul.mubr.bf16.gmra.mrb[36].mxu0 %v4369_v55  ;;  %1744 = vmatmul.mubr.bf16.gmra.mrb[36].mxu1 %v4370_v56  ;;  %v4465_v55 = vld [vmem:[%s4590_s27 + $0x190] ss:$8 sps:$4 sm:$0xff]  }
  0x90   : > { %1495 = vmatprep.mubr.bf16.mxu0 %v4371_v57  ;;  %1751 = vmatprep.mubr.bf16.mxu1 %v4373_v58  ;;  %v4466_v56 = vld [vmem:[%s4590_s27 + $0x390] ss:$8 sps:$4 sm:$0xff]   ;;  %v4467_v57 = vld [vmem:[%s4590_s27 + $0x1a4] ss:$8 sps:$4 sm:$0xff]  }
  0x91   : > { %v4469_v58 = vld [vmem:[%s4590_s27 + $0x3a4] ss:$8 sps:$4 sm:$0xff]  }
  0x97   : > { %1496 = vmatmul.mubr.bf16.gmra.mrb[40].mxu0 %v4375_v59  ;;  %1752 = vmatmul.mubr.bf16.gmra.mrb[40].mxu1 %v4376_v60  ;;  %v4471_v59 = vld [vmem:[%s4590_s27 + $0x1a0] ss:$8 sps:$4 sm:$0xff]  }
  0x98   : > { %1503 = vmatprep.mubr.bf16.mxu0 %v4377_v61  ;;  %1759 = vmatprep.mubr.bf16.mxu1 %v4379_v62  ;;  %v4472_v60 = vld [vmem:[%s4590_s27 + $0x3a0] ss:$8 sps:$4 sm:$0xff]   ;;  %v4473_v61 = vld [vmem:[%s4590_s27 + $0x1b4] ss:$8 sps:$4 sm:$0xff]  }
  0x99   : > { %v4475_v62 = vld [vmem:[%s4590_s27 + $0x3b4] ss:$8 sps:$4 sm:$0xff]  }
  0x9f   : > { %1504 = vmatmul.mubr.bf16.gmra.mrb[44].mxu0 %v4381_v63  ;;  %1760 = vmatmul.mubr.bf16.gmra.mrb[44].mxu1 %v4382_v0 }
  0xa0   : > { %1511 = vmatprep.mubr.bf16.mxu0 %v4383_v1  ;;  %1767 = vmatprep.mubr.bf16.mxu1 %v4385_v2  ;;  %v4477_v1 = vld [vmem:[%s4590_s27 + $0x1b0] ss:$8 sps:$4 sm:$0xff]  }
  0xa1   : > { %v4478_v2 = vld [vmem:[%s4590_s27 + $0x3b0] ss:$8 sps:$4 sm:$0xff]  }
  0xa7   : > { %1512 = vmatmul.mubr.bf16.gmra.mrb[48].mxu0 %v4387_v3  ;;  %1768 = vmatmul.mubr.bf16.gmra.mrb[48].mxu1 %v4388_v4  ;;  %v4479_v4 = vld [vmem:[%s4590_s27 + $0x1c4] ss:$8 sps:$4 sm:$0xff]  }
  0xa8   : > { %1519 = vmatprep.mubr.bf16.mxu0 %v4389_v5  ;;  %1775 = vmatprep.mubr.bf16.mxu1 %v4391_v6  ;;  %v4481_v5 = vld [vmem:[%s4590_s27 + $0x3c4] ss:$8 sps:$4 sm:$0xff]  }
  0xaf   : > { %1520 = vmatmul.mubr.bf16.gmra.mrb[52].mxu0 %v4393_v7  ;;  %1776 = vmatmul.mubr.bf16.gmra.mrb[52].mxu1 %v4394_v8 }
  0xb0   : > { %1527 = vmatprep.mubr.bf16.mxu0 %v4395_v9  ;;  %1783 = vmatprep.mubr.bf16.mxu1 %v4397_v10 }
  0xb7   : > { %1528 = vmatmul.mubr.bf16.gmra.mrb[56].mxu0 %v4399_v11  ;;  %1784 = vmatmul.mubr.bf16.gmra.mrb[56].mxu1 %v4400_v12 }
  0xb8   : > { %1535 = vmatprep.mubr.bf16.mxu0 %v4401_v13  ;;  %1791 = vmatprep.mubr.bf16.mxu1 %v4403_v14 }
  0xbf   : > { %1536 = vmatmul.mubr.bf16.gmra.mrb[60].mxu0 %v4405_v15  ;;  %1792 = vmatmul.mubr.bf16.gmra.mrb[60].mxu1 %v4406_v16 }
  0xc0   : > { %1543 = vmatprep.mubr.bf16.mxu0 %v4407_v17  ;;  %1799 = vmatprep.mubr.bf16.mxu1 %v4409_v18 }
  0xc7   : > { %1544 = vmatmul.mubr.bf16.gmra.mrb[64].mxu0 %v4411_v19  ;;  %1800 = vmatmul.mubr.bf16.gmra.mrb[64].mxu1 %v4412_v20 }
  0xc8   : > { %1551 = vmatprep.mubr.bf16.mxu0 %v4413_v21  ;;  %1807 = vmatprep.mubr.bf16.mxu1 %v4415_v22 }
  0xcf   : > { %1552 = vmatmul.mubr.bf16.gmra.mrb[68].mxu0 %v4417_v23  ;;  %1808 = vmatmul.mubr.bf16.gmra.mrb[68].mxu1 %v4418_v24  ;;  %v4483_v23 = vld [vmem:[%s4590_s27 + $0x1c0] ss:$8 sps:$4 sm:$0xff]  }
  0xd0   : > { %1559 = vmatprep.mubr.bf16.mxu0 %v4419_v25  ;;  %1815 = vmatprep.mubr.bf16.mxu1 %v4421_v26  ;;  %v4484_v24 = vld [vmem:[%s4590_s27 + $0x3c0] ss:$8 sps:$4 sm:$0xff]   ;;  %v4485_v26 = vld [vmem:[%s4590_s27 + $0x1d4] ss:$8 sps:$4 sm:$0xff]  }
  0xd7   : > { %1560 = vmatmul.mubr.bf16.gmra.mrb[72].mxu0 %v4423_v27  ;;  %1816 = vmatmul.mubr.bf16.gmra.mrb[72].mxu1 %v4424_v28  ;;  %v4487_v27 = vld [vmem:[%s4590_s27 + $0x3d4] ss:$8 sps:$4 sm:$0xff]  }
  0xd8   : > { %1567 = vmatprep.mubr.bf16.mxu0 %v4425_v29  ;;  %1823 = vmatprep.mubr.bf16.mxu1 %v4427_v30 }
  0xdf   : > { %1568 = vmatmul.mubr.bf16.gmra.mrb[76].mxu0 %v4429_v31  ;;  %1824 = vmatmul.mubr.bf16.gmra.mrb[76].mxu1 %v4430_v32 }
  0xe0   : > { %1575 = vmatprep.mubr.bf16.mxu0 %v4431_v33  ;;  %1831 = vmatprep.mubr.bf16.mxu1 %v4433_v34 }
  0xe7   : > { %1576 = vmatmul.mubr.bf16.gmra.mrb[80].mxu0 %v4435_v35  ;;  %1832 = vmatmul.mubr.bf16.gmra.mrb[80].mxu1 %v4436_v36 }
  0xe8   : > { %1583 = vmatprep.mubr.bf16.mxu0 %v4437_v37  ;;  %1839 = vmatprep.mubr.bf16.mxu1 %v4439_v38 }
  0xef   : > { %1584 = vmatmul.mubr.bf16.gmra.mrb[84].mxu0 %v4441_v39  ;;  %1840 = vmatmul.mubr.bf16.gmra.mrb[84].mxu1 %v4442_v40 }
  0xf0   : > { %1591 = vmatprep.mubr.bf16.mxu0 %v4443_v41  ;;  %1847 = vmatprep.mubr.bf16.mxu1 %v4445_v42 }
  0xf7   : > { %1592 = vmatmul.mubr.bf16.gmra.mrb[88].mxu0 %v4447_v43  ;;  %1848 = vmatmul.mubr.bf16.gmra.mrb[88].mxu1 %v4448_v44 }
  0xf8   : > { %1599 = vmatprep.mubr.bf16.mxu0 %v4449_v45  ;;  %1855 = vmatprep.mubr.bf16.mxu1 %v4451_v46  ;;  %v4489_v45 = vld [vmem:[%s4590_s27 + $0x1d0] ss:$8 sps:$4 sm:$0xff]  }
  0xf9   : > { %v4490_v46 = vld [vmem:[%s4590_s27 + $0x3d0] ss:$8 sps:$4 sm:$0xff]  }
  0xff   : > { %1600 = vmatmul.mubr.bf16.gmra.mrb[92].mxu0 %v4453_v47  ;;  %1856 = vmatmul.mubr.bf16.gmra.mrb[92].mxu1 %v4454_v48  ;;  %v4491_v48 = vld [vmem:[%s4590_s27 + $0x1e4] ss:$8 sps:$4 sm:$0xff]  }
 0x100   : > { %1607 = vmatprep.mubr.bf16.mxu0 %v4455_v49  ;;  %1863 = vmatprep.mubr.bf16.mxu1 %v4457_v50  ;;  %v4493_v49 = vld [vmem:[%s4590_s27 + $0x3e4] ss:$8 sps:$4 sm:$0xff]  }
 0x107   : > { %1608 = vmatmul.mubr.bf16.gmra.mrb[96].mxu0 %v4459_v51  ;;  %1864 = vmatmul.mubr.bf16.gmra.mrb[96].mxu1 %v4460_v52 }
 0x108   : > { %1615 = vmatprep.mubr.bf16.mxu0 %v4461_v53  ;;  %1871 = vmatprep.mubr.bf16.mxu1 %v4463_v54 }
 0x10f   : > { %1616 = vmatmul.mubr.bf16.gmra.mrb[100].mxu0 %v4465_v55  ;;  %1872 = vmatmul.mubr.bf16.gmra.mrb[100].mxu1 %v4466_v56 }
 0x110   : > { %1623 = vmatprep.mubr.bf16.mxu0 %v4467_v57  ;;  %1879 = vmatprep.mubr.bf16.mxu1 %v4469_v58 }
 0x117   : > { %1624 = vmatmul.mubr.bf16.gmra.mrb[104].mxu0 %v4471_v59  ;;  %1880 = vmatmul.mubr.bf16.gmra.mrb[104].mxu1 %v4472_v60 }
 0x118   : > { %1631 = vmatprep.mubr.bf16.mxu0 %v4473_v61  ;;  %1887 = vmatprep.mubr.bf16.mxu1 %v4475_v62 }
 0x11a   : > { %v1417_v63 = vpop.f32.mrb[0].mxu0  ;;  %v1673_v0 = vpop.f32.mrb[0].mxu1 }
 0x11b   : > { %v2443_v3 = vmul.f32 0.2, %v1417_v63  ;;  %vm2315_vm0 = vcmp.ge.f32.partialorder %v1417_v63, 0.0  ;;  %v2507_v6 = vmul.f32 0.2, %v1673_v0  ;;  %v1419_v7 = vpop.f32.mrb[1].mxu0 }
 0x11c   : > { %v1675_v8 = vpop.f32.mrb[1].mxu1  ;;  %vm2379_vm1 = vcmp.ge.f32.partialorder %v1673_v0, 0.0  ;;  %v1420_v9 = vpop.f32.mrb[2].mxu0  ;;  %v4499_v7 = vld [vmem:[%s4590_s27 + $0x3f4] ss:$8 sps:$4 sm:$0xff]  }
 0x11d   : > { %v1676_v10 = vpop.f32.mrb[2].mxu1  ;;  %vm2316_vm2 = vcmp.ge.f32.partialorder %v1420_v9, 0.0  ;;  %v2444_v11 = vmul.f32 0.2, %v1420_v9  ;;  %v2571_v13 = vsel %vm2315_vm0, %v1417_v63, %v2443_v3  ;;  %v1422_v14 = vpop.f32.mrb[3].mxu0  ;;  %v2635_v16 = vsel %vm2379_vm1, %v1673_v0, %v2507_v6 }
 0x11e   : > { %vm2380_vm3 = vcmp.ge.f32.partialorder %v1676_v10, 0.0  ;;  %v2508_v12 = vmul.f32 0.2, %v1676_v10  ;;  %v1678_v15 = vpop.f32.mrb[3].mxu1  ;;  %v4495_v3 = vld [vmem:[%s4590_s27 + $0x1e0] ss:$8 sps:$4 sm:$0xff]  }
 0x11f   : > { %1632 = vmatmul.mubr.bf16.gmra.mrb[108].mxu0 %v4477_v1  ;;  %1888 = vmatmul.mubr.bf16.gmra.mrb[108].mxu1 %v4478_v2  ;;  %v2572_v17 = vsel %vm2316_vm2, %v1420_v9, %v2444_v11  ;;  %v4497_v6 = vld [vmem:[%s4590_s27 + $0x1f4] ss:$8 sps:$4 sm:$0xff]  }
 0x120   : > { %v2636_v18 = vsel %vm2380_vm3, %v1676_v10, %v2508_v12  ;;  %1639 = vmatprep.mubr.bf16.mxu0 %v4479_v4  ;;  %1895 = vmatprep.mubr.bf16.mxu1 %v4481_v5  ;;  %v3858_v19 = vpack.c.bf16 %v2572_v17, %v2571_v13  ;;  %v4496_v4 = vld [vmem:[%s4590_s27 + $0x3e0] ss:$8 sps:$4 sm:$0xff]  }
 0x121   : > { %v4018_v20 = vpack.c.bf16 %v2636_v18, %v2635_v16 }
 0x122   : > { %v1425_v21 = vpop.f32.mrb[4].mxu0  ;;  %v1681_v22 = vpop.f32.mrb[4].mxu1  ;;  %3859 = vst [vmem:[%s4767_s15] sm:$0xff] %v3858_v19  }
 0x123   : > { %4206 = vst [vmem:[%s4767_s15 + $0x100] sm:$0xff] %v4018_v20   ;;  %v2445_v25 = vmul.f32 0.2, %v1425_v21  ;;  %vm2317_vm4 = vcmp.ge.f32.partialorder %v1425_v21, 0.0  ;;  %v2509_v28 = vmul.f32 0.2, %v1681_v22 }
 0x124   : > { %v1427_v29 = vpop.f32.mrb[5].mxu0  ;;  %v1683_v30 = vpop.f32.mrb[5].mxu1  ;;  %vm2381_vm5 = vcmp.ge.f32.partialorder %v1681_v22, 0.0 }
 0x125   : > { %v1428_v31 = vpop.f32.mrb[6].mxu0  ;;  %v1684_v32 = vpop.f32.mrb[6].mxu1  ;;  %v2573_v35 = vsel %vm2317_vm4, %v1425_v21, %v2445_v25  ;;  %v2637_v38 = vsel %vm2381_vm5, %v1681_v22, %v2509_v28  ;;  %v4501_v25 = vld [vmem:[%s4590_s27 + $0x1f0] ss:$8 sps:$4 sm:$0xff]  }
 0x126   : > { %vm2318_vm6 = vcmp.ge.f32.partialorder %v1428_v31, 0.0  ;;  %v2446_v33 = vmul.f32 0.2, %v1428_v31  ;;  %vm2382_vm7 = vcmp.ge.f32.partialorder %v1684_v32, 0.0  ;;  %v2510_v34 = vmul.f32 0.2, %v1684_v32 }
 0x127   : > { %v1430_v36 = vpop.f32.mrb[7].mxu0  ;;  %v1686_v37 = vpop.f32.mrb[7].mxu1  ;;  %1640 = vmatmul.mubr.bf16.gmra.mrb[112].mxu0 %v4483_v23  ;;  %1896 = vmatmul.mubr.bf16.gmra.mrb[112].mxu1 %v4484_v24 }
 0x128   : > { %v2574_v39 = vsel %vm2318_vm6, %v1428_v31, %v2446_v33  ;;  %v2638_v40 = vsel %vm2382_vm7, %v1684_v32, %v2510_v34  ;;  %1647 = vmatprep.mubr.bf16.mxu0 %v4485_v26  ;;  %1903 = vmatprep.mubr.bf16.mxu1 %v4487_v27  ;;  %v4502_v26 = vld [vmem:[%s4590_s27 + $0x3f0] ss:$8 sps:$4 sm:$0xff]  }
 0x129   : > { %v3863_v41 = vpack.c.bf16 %v2574_v39, %v2573_v35  ;;  %v4023_v42 = vpack.c.bf16 %v2638_v40, %v2637_v38 }
 0x12a   : > { %v1433_v43 = vpop.f32.mrb[8].mxu0  ;;  %v1689_v44 = vpop.f32.mrb[8].mxu1 }
 0x12b   : > { %4175 = vst [vmem:[%s4767_s15 + $0x8] sm:$0xff] %v3863_v41   ;;  %4207 = vst [vmem:[%s4767_s15 + $0x108] sm:$0xff] %v4023_v42   ;;  %v2447_v47 = vmul.f32 0.2, %v1433_v43  ;;  %vm2319_vm8 = vcmp.ge.f32.partialorder %v1433_v43, 0.0  ;;  %v1435_v51 = vpop.f32.mrb[9].mxu0 }
 0x12c   : > { %v2511_v50 = vmul.f32 0.2, %v1689_v44  ;;  %v1691_v52 = vpop.f32.mrb[9].mxu1  ;;  %vm2383_vm9 = vcmp.ge.f32.partialorder %v1689_v44, 0.0  ;;  %v1436_v53 = vpop.f32.mrb[10].mxu0 }
 0x12d   : > { %v1692_v54 = vpop.f32.mrb[10].mxu1  ;;  %vm2320_vm10 = vcmp.ge.f32.partialorder %v1436_v53, 0.0  ;;  %v2448_v55 = vmul.f32 0.2, %v1436_v53  ;;  %v2575_v57 = vsel %vm2319_vm8, %v1433_v43, %v2447_v47  ;;  %v1438_v58 = vpop.f32.mrb[11].mxu0 }
 0x12e   : > { %vm2384_vm11 = vcmp.ge.f32.partialorder %v1692_v54, 0.0  ;;  %v2512_v56 = vmul.f32 0.2, %v1692_v54  ;;  %v1694_v59 = vpop.f32.mrb[11].mxu1  ;;  %v2639_v60 = vsel %vm2383_vm9, %v1689_v44, %v2511_v50 }
 0x12f   : > { %1648 = vmatmul.mubr.bf16.gmra.mrb[116].mxu0 %v4489_v45  ;;  %1904 = vmatmul.mubr.bf16.gmra.mrb[116].mxu1 %v4490_v46  ;;  %v2576_v61 = vsel %vm2320_vm10, %v1436_v53, %v2448_v55 }
 0x130   : > { %v2640_v62 = vsel %vm2384_vm11, %v1692_v54, %v2512_v56  ;;  %1655 = vmatprep.mubr.bf16.mxu0 %v4491_v48  ;;  %1911 = vmatprep.mubr.bf16.mxu1 %v4493_v49  ;;  %v3868_v63 = vpack.c.bf16 %v2576_v61, %v2575_v57 }
 0x131   : > { %v4028_v0 = vpack.c.bf16 %v2640_v62, %v2639_v60 }
 0x132   : > { %v1441_v1 = vpop.f32.mrb[12].mxu0  ;;  %v1697_v2 = vpop.f32.mrb[12].mxu1  ;;  %4176 = vst [vmem:[%s4767_s15 + $0x10] sm:$0xff] %v3868_v63  }
 0x133   : > { %4208 = vst [vmem:[%s4767_s15 + $0x110] sm:$0xff] %v4028_v0   ;;  %v2449_v5 = vmul.f32 0.2, %v1441_v1  ;;  %vm2321_vm12 = vcmp.ge.f32.partialorder %v1441_v1, 0.0  ;;  %v2513_v8 = vmul.f32 0.2, %v1697_v2 }
 0x134   : > { %v1443_v9 = vpop.f32.mrb[13].mxu0  ;;  %v1699_v10 = vpop.f32.mrb[13].mxu1  ;;  %vm2385_vm13 = vcmp.ge.f32.partialorder %v1697_v2, 0.0 }
 0x135   : > { %v1444_v11 = vpop.f32.mrb[14].mxu0  ;;  %v1700_v12 = vpop.f32.mrb[14].mxu1  ;;  %v2577_v15 = vsel %vm2321_vm12, %v1441_v1, %v2449_v5  ;;  %v2641_v18 = vsel %vm2385_vm13, %v1697_v2, %v2513_v8 }
 0x136   : > { %vm2322_vm14 = vcmp.ge.f32.partialorder %v1444_v11, 0.0  ;;  %v2450_v13 = vmul.f32 0.2, %v1444_v11  ;;  %vm2386_vm15 = vcmp.ge.f32.partialorder %v1700_v12, 0.0  ;;  %v2514_v14 = vmul.f32 0.2, %v1700_v12 }
 0x137   : > { %v1446_v16 = vpop.f32.mrb[15].mxu0  ;;  %v1702_v17 = vpop.f32.mrb[15].mxu1  ;;  %1656 = vmatmul.mubr.bf16.gmra.mrb[120].mxu0 %v4495_v3  ;;  %1912 = vmatmul.mubr.bf16.gmra.mrb[120].mxu1 %v4496_v4 }
 0x138   : > { %v2578_v19 = vsel %vm2322_vm14, %v1444_v11, %v2450_v13  ;;  %v2642_v20 = vsel %vm2386_vm15, %v1700_v12, %v2514_v14  ;;  %1663 = vmatprep.mubr.bf16.mxu0 %v4497_v6  ;;  %1919 = vmatprep.mubr.bf16.mxu1 %v4499_v7 }
 0x139   : > { %v3873_v21 = vpack.c.bf16 %v2578_v19, %v2577_v15  ;;  %v4033_v22 = vpack.c.bf16 %v2642_v20, %v2641_v18 }
 0x13a   : > { %v1449_v23 = vpop.f32.mrb[16].mxu0  ;;  %v1705_v24 = vpop.f32.mrb[16].mxu1 }
 0x13b   : > { %4177 = vst [vmem:[%s4767_s15 + $0x18] sm:$0xff] %v3873_v21   ;;  %4209 = vst [vmem:[%s4767_s15 + $0x118] sm:$0xff] %v4033_v22   ;;  %v2451_v27 = vmul.f32 0.2, %v1449_v23  ;;  %v2515_v28 = vmul.f32 0.2, %v1705_v24 }
 0x13c   : > { %v1451_v29 = vpop.f32.mrb[17].mxu0  ;;  %v1707_v30 = vpop.f32.mrb[17].mxu1  ;;  %vm2323_vm0 = vcmp.ge.f32.partialorder %v1449_v23, 0.0  ;;  %vm2387_vm1 = vcmp.ge.f32.partialorder %v1705_v24, 0.0 }
 0x13d   : > { %v1452_v31 = vpop.f32.mrb[18].mxu0  ;;  %v1708_v32 = vpop.f32.mrb[18].mxu1  ;;  %v2579_v37 = vsel %vm2323_vm0, %v1449_v23, %v2451_v27  ;;  %v2643_v38 = vsel %vm2387_vm1, %v1705_v24, %v2515_v28 }
 0x13e   : > { %vm2324_vm2 = vcmp.ge.f32.partialorder %v1452_v31, 0.0  ;;  %v2452_v33 = vmul.f32 0.2, %v1452_v31  ;;  %vm2388_vm3 = vcmp.ge.f32.partialorder %v1708_v32, 0.0  ;;  %v2516_v34 = vmul.f32 0.2, %v1708_v32 }
 0x13f   : > { %v1454_v35 = vpop.f32.mrb[19].mxu0  ;;  %v1710_v36 = vpop.f32.mrb[19].mxu1  ;;  %1664 = vmatmul.mubr.bf16.gmra.mrb[124].mxu0 %v4501_v25  ;;  %1920 = vmatmul.mubr.bf16.gmra.mrb[124].mxu1 %v4502_v26 }
 0x140   : > { %v2580_v39 = vsel %vm2324_vm2, %v1452_v31, %v2452_v33  ;;  %v2644_v40 = vsel %vm2388_vm3, %v1708_v32, %v2516_v34 }
 0x141   : > { %v3878_v41 = vpack.c.bf16 %v2580_v39, %v2579_v37  ;;  %v4038_v42 = vpack.c.bf16 %v2644_v40, %v2643_v38 }
 0x142   : > { %v1457_v43 = vpop.f32.mrb[20].mxu0  ;;  %v1713_v44 = vpop.f32.mrb[20].mxu1 }
 0x143   : > { %4178 = vst [vmem:[%s4767_s15 + $0x20] sm:$0xff] %v3878_v41   ;;  %4210 = vst [vmem:[%s4767_s15 + $0x120] sm:$0xff] %v4038_v42   ;;  %v2453_v45 = vmul.f32 0.2, %v1457_v43  ;;  %v2517_v46 = vmul.f32 0.2, %v1713_v44 }
 0x144   : > { %v1459_v47 = vpop.f32.mrb[21].mxu0  ;;  %v1715_v48 = vpop.f32.mrb[21].mxu1  ;;  %vm2325_vm4 = vcmp.ge.f32.partialorder %v1457_v43, 0.0  ;;  %vm2389_vm5 = vcmp.ge.f32.partialorder %v1713_v44, 0.0 }
 0x145   : > { %v1460_v49 = vpop.f32.mrb[22].mxu0  ;;  %v1716_v50 = vpop.f32.mrb[22].mxu1  ;;  %v2581_v55 = vsel %vm2325_vm4, %v1457_v43, %v2453_v45  ;;  %v2645_v56 = vsel %vm2389_vm5, %v1713_v44, %v2517_v46 }
 0x146   : > { %vm2326_vm6 = vcmp.ge.f32.partialorder %v1460_v49, 0.0  ;;  %v2454_v51 = vmul.f32 0.2, %v1460_v49  ;;  %vm2390_vm7 = vcmp.ge.f32.partialorder %v1716_v50, 0.0  ;;  %v2518_v52 = vmul.f32 0.2, %v1716_v50 }
 0x147   : > { %v1462_v53 = vpop.f32.mrb[23].mxu0  ;;  %v1718_v54 = vpop.f32.mrb[23].mxu1 }
 0x148   : > { %v2582_v57 = vsel %vm2326_vm6, %v1460_v49, %v2454_v51  ;;  %v2646_v58 = vsel %vm2390_vm7, %v1716_v50, %v2518_v52 }
 0x149   : > { %v3883_v59 = vpack.c.bf16 %v2582_v57, %v2581_v55  ;;  %v4043_v60 = vpack.c.bf16 %v2646_v58, %v2645_v56 }
 0x14a   : > { %v1465_v61 = vpop.f32.mrb[24].mxu0  ;;  %v1721_v62 = vpop.f32.mrb[24].mxu1 }
 0x14b   : > { %4179 = vst [vmem:[%s4767_s15 + $0x28] sm:$0xff] %v3883_v59   ;;  %4211 = vst [vmem:[%s4767_s15 + $0x128] sm:$0xff] %v4043_v60   ;;  %v2455_v63 = vmul.f32 0.2, %v1465_v61  ;;  %v2519_v0 = vmul.f32 0.2, %v1721_v62 }
 0x14c   : > { %v1467_v1 = vpop.f32.mrb[25].mxu0  ;;  %v1723_v2 = vpop.f32.mrb[25].mxu1  ;;  %vm2327_vm8 = vcmp.ge.f32.partialorder %v1465_v61, 0.0  ;;  %vm2391_vm9 = vcmp.ge.f32.partialorder %v1721_v62, 0.0 }
 0x14d   : > { %v1468_v3 = vpop.f32.mrb[26].mxu0  ;;  %v1724_v4 = vpop.f32.mrb[26].mxu1  ;;  %v2583_v9 = vsel %vm2327_vm8, %v1465_v61, %v2455_v63  ;;  %v2647_v10 = vsel %vm2391_vm9, %v1721_v62, %v2519_v0 }
 0x14e   : > { %vm2328_vm10 = vcmp.ge.f32.partialorder %v1468_v3, 0.0  ;;  %v2456_v5 = vmul.f32 0.2, %v1468_v3  ;;  %vm2392_vm11 = vcmp.ge.f32.partialorder %v1724_v4, 0.0  ;;  %v2520_v6 = vmul.f32 0.2, %v1724_v4 }
 0x14f   : > { %v1470_v7 = vpop.f32.mrb[27].mxu0  ;;  %v1726_v8 = vpop.f32.mrb[27].mxu1 }
 0x150   : > { %v2584_v11 = vsel %vm2328_vm10, %v1468_v3, %v2456_v5  ;;  %v2648_v12 = vsel %vm2392_vm11, %v1724_v4, %v2520_v6 }
 0x151   : > { %v3888_v13 = vpack.c.bf16 %v2584_v11, %v2583_v9  ;;  %v4048_v14 = vpack.c.bf16 %v2648_v12, %v2647_v10 }
 0x152   : > { %v1473_v15 = vpop.f32.mrb[28].mxu0  ;;  %v1729_v16 = vpop.f32.mrb[28].mxu1 }
 0x153   : > { %4180 = vst [vmem:[%s4767_s15 + $0x30] sm:$0xff] %v3888_v13   ;;  %4212 = vst [vmem:[%s4767_s15 + $0x130] sm:$0xff] %v4048_v14   ;;  %v2457_v17 = vmul.f32 0.2, %v1473_v15  ;;  %v2521_v18 = vmul.f32 0.2, %v1729_v16 }
 0x154   : > { %v1475_v19 = vpop.f32.mrb[29].mxu0  ;;  %v1731_v20 = vpop.f32.mrb[29].mxu1  ;;  %vm2329_vm12 = vcmp.ge.f32.partialorder %v1473_v15, 0.0  ;;  %vm2393_vm13 = vcmp.ge.f32.partialorder %v1729_v16, 0.0 }
 0x155   : > { %v1476_v21 = vpop.f32.mrb[30].mxu0  ;;  %v1732_v22 = vpop.f32.mrb[30].mxu1  ;;  %v2585_v27 = vsel %vm2329_vm12, %v1473_v15, %v2457_v17  ;;  %v2649_v28 = vsel %vm2393_vm13, %v1729_v16, %v2521_v18 }
 0x156   : > { %vm2330_vm14 = vcmp.ge.f32.partialorder %v1476_v21, 0.0  ;;  %v2458_v23 = vmul.f32 0.2, %v1476_v21  ;;  %vm2394_vm15 = vcmp.ge.f32.partialorder %v1732_v22, 0.0  ;;  %v2522_v24 = vmul.f32 0.2, %v1732_v22 }
 0x157   : > { %v1478_v25 = vpop.f32.mrb[31].mxu0  ;;  %v1734_v26 = vpop.f32.mrb[31].mxu1 }
 0x158   : > { %v2586_v29 = vsel %vm2330_vm14, %v1476_v21, %v2458_v23  ;;  %v2650_v30 = vsel %vm2394_vm15, %v1732_v22, %v2522_v24 }
 0x159   : > { %v3893_v31 = vpack.c.bf16 %v2586_v29, %v2585_v27  ;;  %v4053_v32 = vpack.c.bf16 %v2650_v30, %v2649_v28 }
 0x15a   : > { %v1481_v33 = vpop.f32.mrb[32].mxu0  ;;  %v1737_v34 = vpop.f32.mrb[32].mxu1 }
 0x15b   : > { %4181 = vst [vmem:[%s4767_s15 + $0x38] sm:$0xff] %v3893_v31   ;;  %4213 = vst [vmem:[%s4767_s15 + $0x138] sm:$0xff] %v4053_v32   ;;  %v2459_v35 = vmul.f32 0.2, %v1481_v33  ;;  %v2523_v36 = vmul.f32 0.2, %v1737_v34 }
 0x15c   : > { %v1483_v37 = vpop.f32.mrb[33].mxu0  ;;  %v1739_v38 = vpop.f32.mrb[33].mxu1  ;;  %vm2331_vm0 = vcmp.ge.f32.partialorder %v1481_v33, 0.0  ;;  %vm2395_vm1 = vcmp.ge.f32.partialorder %v1737_v34, 0.0 }
 0x15d   : > { %v1484_v39 = vpop.f32.mrb[34].mxu0  ;;  %v1740_v40 = vpop.f32.mrb[34].mxu1  ;;  %v2587_v45 = vsel %vm2331_vm0, %v1481_v33, %v2459_v35  ;;  %v2651_v46 = vsel %vm2395_vm1, %v1737_v34, %v2523_v36 }
 0x15e   : > { %vm2332_vm2 = vcmp.ge.f32.partialorder %v1484_v39, 0.0  ;;  %v2460_v41 = vmul.f32 0.2, %v1484_v39  ;;  %vm2396_vm3 = vcmp.ge.f32.partialorder %v1740_v40, 0.0  ;;  %v2524_v42 = vmul.f32 0.2, %v1740_v40 }
 0x15f   : > { %v1486_v43 = vpop.f32.mrb[35].mxu0  ;;  %v1742_v44 = vpop.f32.mrb[35].mxu1 }
 0x160   : > { %v2588_v47 = vsel %vm2332_vm2, %v1484_v39, %v2460_v41  ;;  %v2652_v48 = vsel %vm2396_vm3, %v1740_v40, %v2524_v42 }
 0x161   : > { %v3898_v49 = vpack.c.bf16 %v2588_v47, %v2587_v45  ;;  %v4058_v50 = vpack.c.bf16 %v2652_v48, %v2651_v46 }
 0x162   : > { %v1489_v51 = vpop.f32.mrb[36].mxu0  ;;  %v1745_v52 = vpop.f32.mrb[36].mxu1 }
 0x163   : > { %4182 = vst [vmem:[%s4767_s15 + $0x40] sm:$0xff] %v3898_v49   ;;  %4214 = vst [vmem:[%s4767_s15 + $0x140] sm:$0xff] %v4058_v50   ;;  %v2461_v53 = vmul.f32 0.2, %v1489_v51  ;;  %v2525_v54 = vmul.f32 0.2, %v1745_v52 }
 0x164   : > { %v1491_v55 = vpop.f32.mrb[37].mxu0  ;;  %v1747_v56 = vpop.f32.mrb[37].mxu1  ;;  %vm2333_vm4 = vcmp.ge.f32.partialorder %v1489_v51, 0.0  ;;  %vm2397_vm5 = vcmp.ge.f32.partialorder %v1745_v52, 0.0 }
 0x165   : > { %v1492_v57 = vpop.f32.mrb[38].mxu0  ;;  %v1748_v58 = vpop.f32.mrb[38].mxu1  ;;  %v2589_v63 = vsel %vm2333_vm4, %v1489_v51, %v2461_v53  ;;  %v2653_v0 = vsel %vm2397_vm5, %v1745_v52, %v2525_v54 }
 0x166   : > { %vm2334_vm6 = vcmp.ge.f32.partialorder %v1492_v57, 0.0  ;;  %v2462_v59 = vmul.f32 0.2, %v1492_v57  ;;  %vm2398_vm7 = vcmp.ge.f32.partialorder %v1748_v58, 0.0  ;;  %v2526_v60 = vmul.f32 0.2, %v1748_v58 }
 0x167   : > { %v1494_v61 = vpop.f32.mrb[39].mxu0  ;;  %v1750_v62 = vpop.f32.mrb[39].mxu1 }
 0x168   : > { %v2590_v1 = vsel %vm2334_vm6, %v1492_v57, %v2462_v59  ;;  %v2654_v2 = vsel %vm2398_vm7, %v1748_v58, %v2526_v60 }
 0x169   : > { %v3903_v3 = vpack.c.bf16 %v2590_v1, %v2589_v63  ;;  %v4063_v4 = vpack.c.bf16 %v2654_v2, %v2653_v0 }
 0x16a   : > { %v1497_v5 = vpop.f32.mrb[40].mxu0  ;;  %v1753_v6 = vpop.f32.mrb[40].mxu1 }
 0x16b   : > { %4183 = vst [vmem:[%s4767_s15 + $0x48] sm:$0xff] %v3903_v3   ;;  %4215 = vst [vmem:[%s4767_s15 + $0x148] sm:$0xff] %v4063_v4   ;;  %v2463_v7 = vmul.f32 0.2, %v1497_v5  ;;  %v2527_v8 = vmul.f32 0.2, %v1753_v6 }
 0x16c   : > { %v1499_v9 = vpop.f32.mrb[41].mxu0  ;;  %v1755_v10 = vpop.f32.mrb[41].mxu1  ;;  %vm2335_vm8 = vcmp.ge.f32.partialorder %v1497_v5, 0.0  ;;  %vm2399_vm9 = vcmp.ge.f32.partialorder %v1753_v6, 0.0 }
 0x16d   : > { %v1500_v11 = vpop.f32.mrb[42].mxu0  ;;  %v1756_v12 = vpop.f32.mrb[42].mxu1  ;;  %v2591_v17 = vsel %vm2335_vm8, %v1497_v5, %v2463_v7  ;;  %v2655_v18 = vsel %vm2399_vm9, %v1753_v6, %v2527_v8 }
 0x16e   : > { %vm2336_vm10 = vcmp.ge.f32.partialorder %v1500_v11, 0.0  ;;  %v2464_v13 = vmul.f32 0.2, %v1500_v11  ;;  %vm2400_vm11 = vcmp.ge.f32.partialorder %v1756_v12, 0.0  ;;  %v2528_v14 = vmul.f32 0.2, %v1756_v12 }
 0x16f   : > { %v1502_v15 = vpop.f32.mrb[43].mxu0  ;;  %v1758_v16 = vpop.f32.mrb[43].mxu1 }
 0x170   : > { %v2592_v19 = vsel %vm2336_vm10, %v1500_v11, %v2464_v13  ;;  %v2656_v20 = vsel %vm2400_vm11, %v1756_v12, %v2528_v14 }
 0x171   : > { %v3908_v21 = vpack.c.bf16 %v2592_v19, %v2591_v17  ;;  %v4068_v22 = vpack.c.bf16 %v2656_v20, %v2655_v18 }
 0x172   : > { %v1505_v23 = vpop.f32.mrb[44].mxu0  ;;  %v1761_v24 = vpop.f32.mrb[44].mxu1 }
 0x173   : > { %4184 = vst [vmem:[%s4767_s15 + $0x50] sm:$0xff] %v3908_v21   ;;  %4216 = vst [vmem:[%s4767_s15 + $0x150] sm:$0xff] %v4068_v22   ;;  %v2465_v25 = vmul.f32 0.2, %v1505_v23  ;;  %v2529_v26 = vmul.f32 0.2, %v1761_v24 }
 0x174   : > { %v1507_v27 = vpop.f32.mrb[45].mxu0  ;;  %v1763_v28 = vpop.f32.mrb[45].mxu1  ;;  %vm2337_vm12 = vcmp.ge.f32.partialorder %v1505_v23, 0.0  ;;  %vm2401_vm13 = vcmp.ge.f32.partialorder %v1761_v24, 0.0 }
 0x175   : > { %v1508_v29 = vpop.f32.mrb[46].mxu0  ;;  %v1764_v30 = vpop.f32.mrb[46].mxu1  ;;  %v2593_v35 = vsel %vm2337_vm12, %v1505_v23, %v2465_v25  ;;  %v2657_v36 = vsel %vm2401_vm13, %v1761_v24, %v2529_v26 }
 0x176   : > { %vm2338_vm14 = vcmp.ge.f32.partialorder %v1508_v29, 0.0  ;;  %v2466_v31 = vmul.f32 0.2, %v1508_v29  ;;  %vm2402_vm15 = vcmp.ge.f32.partialorder %v1764_v30, 0.0  ;;  %v2530_v32 = vmul.f32 0.2, %v1764_v30 }
 0x177   : > { %v1510_v33 = vpop.f32.mrb[47].mxu0  ;;  %v1766_v34 = vpop.f32.mrb[47].mxu1 }
 0x178   : > { %v2594_v37 = vsel %vm2338_vm14, %v1508_v29, %v2466_v31  ;;  %v2658_v38 = vsel %vm2402_vm15, %v1764_v30, %v2530_v32 }
 0x179   : > { %v3913_v39 = vpack.c.bf16 %v2594_v37, %v2593_v35  ;;  %v4073_v40 = vpack.c.bf16 %v2658_v38, %v2657_v36 }
 0x17a   : > { %v1513_v41 = vpop.f32.mrb[48].mxu0  ;;  %v1769_v42 = vpop.f32.mrb[48].mxu1 }
 0x17b   : > { %4185 = vst [vmem:[%s4767_s15 + $0x58] sm:$0xff] %v3913_v39   ;;  %4217 = vst [vmem:[%s4767_s15 + $0x158] sm:$0xff] %v4073_v40   ;;  %v2467_v43 = vmul.f32 0.2, %v1513_v41  ;;  %v2531_v44 = vmul.f32 0.2, %v1769_v42 }
 0x17c   : > { %v1515_v45 = vpop.f32.mrb[49].mxu0  ;;  %v1771_v46 = vpop.f32.mrb[49].mxu1  ;;  %vm2339_vm0 = vcmp.ge.f32.partialorder %v1513_v41, 0.0  ;;  %vm2403_vm1 = vcmp.ge.f32.partialorder %v1769_v42, 0.0 }
 0x17d   : > { %v1516_v47 = vpop.f32.mrb[50].mxu0  ;;  %v1772_v48 = vpop.f32.mrb[50].mxu1  ;;  %v2595_v53 = vsel %vm2339_vm0, %v1513_v41, %v2467_v43  ;;  %v2659_v54 = vsel %vm2403_vm1, %v1769_v42, %v2531_v44 }
 0x17e   : > { %vm2340_vm2 = vcmp.ge.f32.partialorder %v1516_v47, 0.0  ;;  %v2468_v49 = vmul.f32 0.2, %v1516_v47  ;;  %vm2404_vm3 = vcmp.ge.f32.partialorder %v1772_v48, 0.0  ;;  %v2532_v50 = vmul.f32 0.2, %v1772_v48 }
 0x17f   : > { %v1518_v51 = vpop.f32.mrb[51].mxu0  ;;  %v1774_v52 = vpop.f32.mrb[51].mxu1 }
 0x180   : > { %v2596_v55 = vsel %vm2340_vm2, %v1516_v47, %v2468_v49  ;;  %v2660_v56 = vsel %vm2404_vm3, %v1772_v48, %v2532_v50 }
 0x181   : > { %v3918_v57 = vpack.c.bf16 %v2596_v55, %v2595_v53  ;;  %v4078_v58 = vpack.c.bf16 %v2660_v56, %v2659_v54 }
 0x182   : > { %v1521_v59 = vpop.f32.mrb[52].mxu0  ;;  %v1777_v60 = vpop.f32.mrb[52].mxu1 }
 0x183   : > { %4186 = vst [vmem:[%s4767_s15 + $0x60] sm:$0xff] %v3918_v57   ;;  %4218 = vst [vmem:[%s4767_s15 + $0x160] sm:$0xff] %v4078_v58   ;;  %v2469_v61 = vmul.f32 0.2, %v1521_v59  ;;  %v2533_v62 = vmul.f32 0.2, %v1777_v60 }
 0x184   : > { %v1523_v63 = vpop.f32.mrb[53].mxu0  ;;  %v1779_v0 = vpop.f32.mrb[53].mxu1  ;;  %vm2341_vm4 = vcmp.ge.f32.partialorder %v1521_v59, 0.0  ;;  %vm2405_vm5 = vcmp.ge.f32.partialorder %v1777_v60, 0.0 }
 0x185   : > { %v1524_v1 = vpop.f32.mrb[54].mxu0  ;;  %v1780_v2 = vpop.f32.mrb[54].mxu1  ;;  %v2597_v7 = vsel %vm2341_vm4, %v1521_v59, %v2469_v61  ;;  %v2661_v8 = vsel %vm2405_vm5, %v1777_v60, %v2533_v62 }
 0x186   : > { %vm2342_vm6 = vcmp.ge.f32.partialorder %v1524_v1, 0.0  ;;  %v2470_v3 = vmul.f32 0.2, %v1524_v1  ;;  %vm2406_vm7 = vcmp.ge.f32.partialorder %v1780_v2, 0.0  ;;  %v2534_v4 = vmul.f32 0.2, %v1780_v2 }
 0x187   : > { %v1526_v5 = vpop.f32.mrb[55].mxu0  ;;  %v1782_v6 = vpop.f32.mrb[55].mxu1 }
 0x188   : > { %v2598_v9 = vsel %vm2342_vm6, %v1524_v1, %v2470_v3  ;;  %v2662_v10 = vsel %vm2406_vm7, %v1780_v2, %v2534_v4 }
 0x189   : > { %v3923_v11 = vpack.c.bf16 %v2598_v9, %v2597_v7  ;;  %v4083_v12 = vpack.c.bf16 %v2662_v10, %v2661_v8 }
 0x18a   : > { %v1529_v13 = vpop.f32.mrb[56].mxu0  ;;  %v1785_v14 = vpop.f32.mrb[56].mxu1 }
 0x18b   : > { %4187 = vst [vmem:[%s4767_s15 + $0x68] sm:$0xff] %v3923_v11   ;;  %4219 = vst [vmem:[%s4767_s15 + $0x168] sm:$0xff] %v4083_v12   ;;  %v2471_v15 = vmul.f32 0.2, %v1529_v13  ;;  %v2535_v16 = vmul.f32 0.2, %v1785_v14 }
 0x18c   : > { %v1531_v17 = vpop.f32.mrb[57].mxu0  ;;  %v1787_v18 = vpop.f32.mrb[57].mxu1  ;;  %vm2343_vm8 = vcmp.ge.f32.partialorder %v1529_v13, 0.0  ;;  %vm2407_vm9 = vcmp.ge.f32.partialorder %v1785_v14, 0.0 }
 0x18d   : > { %v1532_v19 = vpop.f32.mrb[58].mxu0  ;;  %v1788_v20 = vpop.f32.mrb[58].mxu1  ;;  %v2599_v25 = vsel %vm2343_vm8, %v1529_v13, %v2471_v15  ;;  %v2663_v26 = vsel %vm2407_vm9, %v1785_v14, %v2535_v16 }
 0x18e   : > { %vm2344_vm10 = vcmp.ge.f32.partialorder %v1532_v19, 0.0  ;;  %v2472_v21 = vmul.f32 0.2, %v1532_v19  ;;  %vm2408_vm11 = vcmp.ge.f32.partialorder %v1788_v20, 0.0  ;;  %v2536_v22 = vmul.f32 0.2, %v1788_v20 }
 0x18f   : > { %v1534_v23 = vpop.f32.mrb[59].mxu0  ;;  %v1790_v24 = vpop.f32.mrb[59].mxu1 }
 0x190   : > { %v2600_v27 = vsel %vm2344_vm10, %v1532_v19, %v2472_v21  ;;  %v2664_v28 = vsel %vm2408_vm11, %v1788_v20, %v2536_v22 }
 0x191   : > { %v3928_v29 = vpack.c.bf16 %v2600_v27, %v2599_v25  ;;  %v4088_v30 = vpack.c.bf16 %v2664_v28, %v2663_v26 }
 0x192   : > { %v1537_v31 = vpop.f32.mrb[60].mxu0  ;;  %v1793_v32 = vpop.f32.mrb[60].mxu1 }
 0x193   : > { %4188 = vst [vmem:[%s4767_s15 + $0x70] sm:$0xff] %v3928_v29   ;;  %4220 = vst [vmem:[%s4767_s15 + $0x170] sm:$0xff] %v4088_v30   ;;  %v2473_v33 = vmul.f32 0.2, %v1537_v31  ;;  %v2537_v34 = vmul.f32 0.2, %v1793_v32 }
 0x194   : > { %v1539_v35 = vpop.f32.mrb[61].mxu0  ;;  %v1795_v36 = vpop.f32.mrb[61].mxu1  ;;  %vm2345_vm12 = vcmp.ge.f32.partialorder %v1537_v31, 0.0  ;;  %vm2409_vm13 = vcmp.ge.f32.partialorder %v1793_v32, 0.0 }
 0x195   : > { %v1540_v37 = vpop.f32.mrb[62].mxu0  ;;  %v1796_v38 = vpop.f32.mrb[62].mxu1  ;;  %v2601_v43 = vsel %vm2345_vm12, %v1537_v31, %v2473_v33  ;;  %v2665_v44 = vsel %vm2409_vm13, %v1793_v32, %v2537_v34 }
 0x196   : > { %vm2346_vm14 = vcmp.ge.f32.partialorder %v1540_v37, 0.0  ;;  %v2474_v39 = vmul.f32 0.2, %v1540_v37  ;;  %vm2410_vm15 = vcmp.ge.f32.partialorder %v1796_v38, 0.0  ;;  %v2538_v40 = vmul.f32 0.2, %v1796_v38 }
 0x197   : > { %v1542_v41 = vpop.f32.mrb[63].mxu0  ;;  %v1798_v42 = vpop.f32.mrb[63].mxu1 }
 0x198   : > { %v2602_v45 = vsel %vm2346_vm14, %v1540_v37, %v2474_v39  ;;  %v2666_v46 = vsel %vm2410_vm15, %v1796_v38, %v2538_v40 }
 0x199   : > { %v3933_v47 = vpack.c.bf16 %v2602_v45, %v2601_v43  ;;  %v4093_v48 = vpack.c.bf16 %v2666_v46, %v2665_v44 }
 0x19a   : > { %v1545_v49 = vpop.f32.mrb[64].mxu0  ;;  %v1801_v50 = vpop.f32.mrb[64].mxu1 }
 0x19b   : > { %4189 = vst [vmem:[%s4767_s15 + $0x78] sm:$0xff] %v3933_v47   ;;  %4221 = vst [vmem:[%s4767_s15 + $0x178] sm:$0xff] %v4093_v48   ;;  %v2475_v51 = vmul.f32 0.2, %v1545_v49  ;;  %v2539_v52 = vmul.f32 0.2, %v1801_v50 }
 0x19c   : > { %v1547_v53 = vpop.f32.mrb[65].mxu0  ;;  %v1803_v54 = vpop.f32.mrb[65].mxu1  ;;  %vm2347_vm0 = vcmp.ge.f32.partialorder %v1545_v49, 0.0  ;;  %vm2411_vm1 = vcmp.ge.f32.partialorder %v1801_v50, 0.0 }
 0x19d   : > { %v1548_v55 = vpop.f32.mrb[66].mxu0  ;;  %v1804_v56 = vpop.f32.mrb[66].mxu1  ;;  %v2603_v61 = vsel %vm2347_vm0, %v1545_v49, %v2475_v51  ;;  %v2667_v62 = vsel %vm2411_vm1, %v1801_v50, %v2539_v52 }
 0x19e   : > { %vm2348_vm2 = vcmp.ge.f32.partialorder %v1548_v55, 0.0  ;;  %v2476_v57 = vmul.f32 0.2, %v1548_v55  ;;  %vm2412_vm3 = vcmp.ge.f32.partialorder %v1804_v56, 0.0  ;;  %v2540_v58 = vmul.f32 0.2, %v1804_v56 }
 0x19f   : > { %v1550_v59 = vpop.f32.mrb[67].mxu0  ;;  %v1806_v60 = vpop.f32.mrb[67].mxu1 }
 0x1a0   : > { %v2604_v63 = vsel %vm2348_vm2, %v1548_v55, %v2476_v57  ;;  %v2668_v0 = vsel %vm2412_vm3, %v1804_v56, %v2540_v58 }
 0x1a1   : > { %v3938_v1 = vpack.c.bf16 %v2604_v63, %v2603_v61  ;;  %v4098_v2 = vpack.c.bf16 %v2668_v0, %v2667_v62 }
 0x1a2   : > { %v1553_v3 = vpop.f32.mrb[68].mxu0  ;;  %v1809_v4 = vpop.f32.mrb[68].mxu1 }
 0x1a3   : > { %4190 = vst [vmem:[%s4767_s15 + $0x80] sm:$0xff] %v3938_v1   ;;  %4222 = vst [vmem:[%s4767_s15 + $0x180] sm:$0xff] %v4098_v2   ;;  %v2477_v5 = vmul.f32 0.2, %v1553_v3  ;;  %v2541_v6 = vmul.f32 0.2, %v1809_v4 }
 0x1a4   : > { %v1555_v7 = vpop.f32.mrb[69].mxu0  ;;  %v1811_v8 = vpop.f32.mrb[69].mxu1  ;;  %vm2349_vm4 = vcmp.ge.f32.partialorder %v1553_v3, 0.0  ;;  %vm2413_vm5 = vcmp.ge.f32.partialorder %v1809_v4, 0.0 }
 0x1a5   : > { %v1556_v9 = vpop.f32.mrb[70].mxu0  ;;  %v1812_v10 = vpop.f32.mrb[70].mxu1  ;;  %v2605_v15 = vsel %vm2349_vm4, %v1553_v3, %v2477_v5  ;;  %v2669_v16 = vsel %vm2413_vm5, %v1809_v4, %v2541_v6 }
 0x1a6   : > { %vm2350_vm6 = vcmp.ge.f32.partialorder %v1556_v9, 0.0  ;;  %v2478_v11 = vmul.f32 0.2, %v1556_v9  ;;  %vm2414_vm7 = vcmp.ge.f32.partialorder %v1812_v10, 0.0  ;;  %v2542_v12 = vmul.f32 0.2, %v1812_v10 }
 0x1a7   : > { %v1558_v13 = vpop.f32.mrb[71].mxu0  ;;  %v1814_v14 = vpop.f32.mrb[71].mxu1 }
 0x1a8   : > { %v2606_v17 = vsel %vm2350_vm6, %v1556_v9, %v2478_v11  ;;  %v2670_v18 = vsel %vm2414_vm7, %v1812_v10, %v2542_v12 }
 0x1a9   : > { %v3943_v19 = vpack.c.bf16 %v2606_v17, %v2605_v15  ;;  %v4103_v20 = vpack.c.bf16 %v2670_v18, %v2669_v16 }
 0x1aa   : > { %v1561_v21 = vpop.f32.mrb[72].mxu0  ;;  %v1817_v22 = vpop.f32.mrb[72].mxu1 }
 0x1ab   : > { %4191 = vst [vmem:[%s4767_s15 + $0x88] sm:$0xff] %v3943_v19   ;;  %4223 = vst [vmem:[%s4767_s15 + $0x188] sm:$0xff] %v4103_v20   ;;  %v2479_v23 = vmul.f32 0.2, %v1561_v21  ;;  %v2543_v24 = vmul.f32 0.2, %v1817_v22 }
 0x1ac   : > { %v1563_v25 = vpop.f32.mrb[73].mxu0  ;;  %v1819_v26 = vpop.f32.mrb[73].mxu1  ;;  %vm2351_vm8 = vcmp.ge.f32.partialorder %v1561_v21, 0.0  ;;  %vm2415_vm9 = vcmp.ge.f32.partialorder %v1817_v22, 0.0 }
 0x1ad   : > { %v1564_v27 = vpop.f32.mrb[74].mxu0  ;;  %v1820_v28 = vpop.f32.mrb[74].mxu1  ;;  %v2607_v33 = vsel %vm2351_vm8, %v1561_v21, %v2479_v23  ;;  %v2671_v34 = vsel %vm2415_vm9, %v1817_v22, %v2543_v24 }
 0x1ae   : > { %vm2352_vm10 = vcmp.ge.f32.partialorder %v1564_v27, 0.0  ;;  %v2480_v29 = vmul.f32 0.2, %v1564_v27  ;;  %vm2416_vm11 = vcmp.ge.f32.partialorder %v1820_v28, 0.0  ;;  %v2544_v30 = vmul.f32 0.2, %v1820_v28 }
 0x1af   : > { %v1566_v31 = vpop.f32.mrb[75].mxu0  ;;  %v1822_v32 = vpop.f32.mrb[75].mxu1 }
 0x1b0   : > { %v2608_v35 = vsel %vm2352_vm10, %v1564_v27, %v2480_v29  ;;  %v2672_v36 = vsel %vm2416_vm11, %v1820_v28, %v2544_v30 }
 0x1b1   : > { %v3948_v37 = vpack.c.bf16 %v2608_v35, %v2607_v33  ;;  %v4108_v38 = vpack.c.bf16 %v2672_v36, %v2671_v34 }
 0x1b2   : > { %v1569_v39 = vpop.f32.mrb[76].mxu0  ;;  %v1825_v40 = vpop.f32.mrb[76].mxu1 }
 0x1b3   : > { %4192 = vst [vmem:[%s4767_s15 + $0x90] sm:$0xff] %v3948_v37   ;;  %4224 = vst [vmem:[%s4767_s15 + $0x190] sm:$0xff] %v4108_v38   ;;  %v2481_v41 = vmul.f32 0.2, %v1569_v39  ;;  %v2545_v42 = vmul.f32 0.2, %v1825_v40 }
 0x1b4   : > { %v1571_v43 = vpop.f32.mrb[77].mxu0  ;;  %v1827_v44 = vpop.f32.mrb[77].mxu1  ;;  %vm2353_vm12 = vcmp.ge.f32.partialorder %v1569_v39, 0.0  ;;  %vm2417_vm13 = vcmp.ge.f32.partialorder %v1825_v40, 0.0 }
 0x1b5   : > { %v1572_v45 = vpop.f32.mrb[78].mxu0  ;;  %v1828_v46 = vpop.f32.mrb[78].mxu1  ;;  %v2609_v51 = vsel %vm2353_vm12, %v1569_v39, %v2481_v41  ;;  %v2673_v52 = vsel %vm2417_vm13, %v1825_v40, %v2545_v42 }
 0x1b6   : > { %vm2354_vm14 = vcmp.ge.f32.partialorder %v1572_v45, 0.0  ;;  %v2482_v47 = vmul.f32 0.2, %v1572_v45  ;;  %vm2418_vm15 = vcmp.ge.f32.partialorder %v1828_v46, 0.0  ;;  %v2546_v48 = vmul.f32 0.2, %v1828_v46 }
 0x1b7   : > { %v1574_v49 = vpop.f32.mrb[79].mxu0  ;;  %v1830_v50 = vpop.f32.mrb[79].mxu1 }
 0x1b8   : > { %v2610_v53 = vsel %vm2354_vm14, %v1572_v45, %v2482_v47  ;;  %v2674_v54 = vsel %vm2418_vm15, %v1828_v46, %v2546_v48 }
 0x1b9   : > { %v3953_v55 = vpack.c.bf16 %v2610_v53, %v2609_v51  ;;  %v4113_v56 = vpack.c.bf16 %v2674_v54, %v2673_v52 }
 0x1ba   : > { %v1577_v57 = vpop.f32.mrb[80].mxu0  ;;  %v1833_v58 = vpop.f32.mrb[80].mxu1 }
 0x1bb   : > { %4193 = vst [vmem:[%s4767_s15 + $0x98] sm:$0xff] %v3953_v55   ;;  %4225 = vst [vmem:[%s4767_s15 + $0x198] sm:$0xff] %v4113_v56   ;;  %v2483_v59 = vmul.f32 0.2, %v1577_v57  ;;  %v2547_v60 = vmul.f32 0.2, %v1833_v58 }
 0x1bc   : > { %v1579_v61 = vpop.f32.mrb[81].mxu0  ;;  %v1835_v62 = vpop.f32.mrb[81].mxu1  ;;  %vm2355_vm0 = vcmp.ge.f32.partialorder %v1577_v57, 0.0  ;;  %vm2419_vm1 = vcmp.ge.f32.partialorder %v1833_v58, 0.0 }
 0x1bd   : > { %v1580_v63 = vpop.f32.mrb[82].mxu0  ;;  %v1836_v0 = vpop.f32.mrb[82].mxu1  ;;  %v2611_v5 = vsel %vm2355_vm0, %v1577_v57, %v2483_v59  ;;  %v2675_v6 = vsel %vm2419_vm1, %v1833_v58, %v2547_v60 }
 0x1be   : > { %vm2356_vm2 = vcmp.ge.f32.partialorder %v1580_v63, 0.0  ;;  %v2484_v1 = vmul.f32 0.2, %v1580_v63  ;;  %vm2420_vm3 = vcmp.ge.f32.partialorder %v1836_v0, 0.0  ;;  %v2548_v2 = vmul.f32 0.2, %v1836_v0 }
 0x1bf   : > { %v1582_v3 = vpop.f32.mrb[83].mxu0  ;;  %v1838_v4 = vpop.f32.mrb[83].mxu1 }
 0x1c0   : > { %v2612_v7 = vsel %vm2356_vm2, %v1580_v63, %v2484_v1  ;;  %v2676_v8 = vsel %vm2420_vm3, %v1836_v0, %v2548_v2 }
 0x1c1   : > { %v3958_v9 = vpack.c.bf16 %v2612_v7, %v2611_v5  ;;  %v4118_v10 = vpack.c.bf16 %v2676_v8, %v2675_v6 }
 0x1c2   : > { %v1585_v11 = vpop.f32.mrb[84].mxu0  ;;  %v1841_v12 = vpop.f32.mrb[84].mxu1 }
 0x1c3   : > { %4194 = vst [vmem:[%s4767_s15 + $0xa0] sm:$0xff] %v3958_v9   ;;  %4226 = vst [vmem:[%s4767_s15 + $0x1a0] sm:$0xff] %v4118_v10   ;;  %v2485_v13 = vmul.f32 0.2, %v1585_v11  ;;  %v2549_v14 = vmul.f32 0.2, %v1841_v12 }
 0x1c4   : > { %v1587_v15 = vpop.f32.mrb[85].mxu0  ;;  %v1843_v16 = vpop.f32.mrb[85].mxu1  ;;  %vm2357_vm4 = vcmp.ge.f32.partialorder %v1585_v11, 0.0  ;;  %vm2421_vm5 = vcmp.ge.f32.partialorder %v1841_v12, 0.0 }
 0x1c5   : > { %v1588_v17 = vpop.f32.mrb[86].mxu0  ;;  %v1844_v18 = vpop.f32.mrb[86].mxu1  ;;  %v2613_v23 = vsel %vm2357_vm4, %v1585_v11, %v2485_v13  ;;  %v2677_v24 = vsel %vm2421_vm5, %v1841_v12, %v2549_v14 }
 0x1c6   : > { %vm2358_vm6 = vcmp.ge.f32.partialorder %v1588_v17, 0.0  ;;  %v2486_v19 = vmul.f32 0.2, %v1588_v17  ;;  %vm2422_vm7 = vcmp.ge.f32.partialorder %v1844_v18, 0.0  ;;  %v2550_v20 = vmul.f32 0.2, %v1844_v18 }
 0x1c7   : > { %v1590_v21 = vpop.f32.mrb[87].mxu0  ;;  %v1846_v22 = vpop.f32.mrb[87].mxu1 }
 0x1c8   : > { %v2614_v25 = vsel %vm2358_vm6, %v1588_v17, %v2486_v19  ;;  %v2678_v26 = vsel %vm2422_vm7, %v1844_v18, %v2550_v20 }
 0x1c9   : > { %v3963_v27 = vpack.c.bf16 %v2614_v25, %v2613_v23  ;;  %v4123_v28 = vpack.c.bf16 %v2678_v26, %v2677_v24 }
 0x1ca   : > { %v1593_v29 = vpop.f32.mrb[88].mxu0  ;;  %v1849_v30 = vpop.f32.mrb[88].mxu1 }
 0x1cb   : > { %4195 = vst [vmem:[%s4767_s15 + $0xa8] sm:$0xff] %v3963_v27   ;;  %4227 = vst [vmem:[%s4767_s15 + $0x1a8] sm:$0xff] %v4123_v28   ;;  %v2487_v31 = vmul.f32 0.2, %v1593_v29  ;;  %v2551_v32 = vmul.f32 0.2, %v1849_v30 }
 0x1cc   : > { %v1595_v33 = vpop.f32.mrb[89].mxu0  ;;  %v1851_v34 = vpop.f32.mrb[89].mxu1  ;;  %vm2359_vm8 = vcmp.ge.f32.partialorder %v1593_v29, 0.0  ;;  %vm2423_vm9 = vcmp.ge.f32.partialorder %v1849_v30, 0.0 }
 0x1cd   : > { %v1596_v35 = vpop.f32.mrb[90].mxu0  ;;  %v1852_v36 = vpop.f32.mrb[90].mxu1  ;;  %v2615_v41 = vsel %vm2359_vm8, %v1593_v29, %v2487_v31  ;;  %v2679_v42 = vsel %vm2423_vm9, %v1849_v30, %v2551_v32 }
 0x1ce   : > { %vm2360_vm10 = vcmp.ge.f32.partialorder %v1596_v35, 0.0  ;;  %v2488_v37 = vmul.f32 0.2, %v1596_v35  ;;  %vm2424_vm11 = vcmp.ge.f32.partialorder %v1852_v36, 0.0  ;;  %v2552_v38 = vmul.f32 0.2, %v1852_v36 }
 0x1cf   : > { %v1598_v39 = vpop.f32.mrb[91].mxu0  ;;  %v1854_v40 = vpop.f32.mrb[91].mxu1 }
 0x1d0   : > { %v2616_v43 = vsel %vm2360_vm10, %v1596_v35, %v2488_v37  ;;  %v2680_v44 = vsel %vm2424_vm11, %v1852_v36, %v2552_v38 }
 0x1d1   : > { %v3968_v45 = vpack.c.bf16 %v2616_v43, %v2615_v41  ;;  %v4128_v46 = vpack.c.bf16 %v2680_v44, %v2679_v42 }
 0x1d2   : > { %v1601_v47 = vpop.f32.mrb[92].mxu0  ;;  %v1857_v48 = vpop.f32.mrb[92].mxu1 }
 0x1d3   : > { %4196 = vst [vmem:[%s4767_s15 + $0xb0] sm:$0xff] %v3968_v45   ;;  %4228 = vst [vmem:[%s4767_s15 + $0x1b0] sm:$0xff] %v4128_v46   ;;  %v2489_v49 = vmul.f32 0.2, %v1601_v47  ;;  %v2553_v50 = vmul.f32 0.2, %v1857_v48 }
 0x1d4   : > { %v1603_v51 = vpop.f32.mrb[93].mxu0  ;;  %v1859_v52 = vpop.f32.mrb[93].mxu1  ;;  %vm2361_vm12 = vcmp.ge.f32.partialorder %v1601_v47, 0.0  ;;  %vm2425_vm13 = vcmp.ge.f32.partialorder %v1857_v48, 0.0 }
 0x1d5   : > { %v1604_v53 = vpop.f32.mrb[94].mxu0  ;;  %v1860_v54 = vpop.f32.mrb[94].mxu1  ;;  %v2617_v59 = vsel %vm2361_vm12, %v1601_v47, %v2489_v49  ;;  %v2681_v60 = vsel %vm2425_vm13, %v1857_v48, %v2553_v50 }
 0x1d6   : > { %vm2362_vm14 = vcmp.ge.f32.partialorder %v1604_v53, 0.0  ;;  %v2490_v55 = vmul.f32 0.2, %v1604_v53  ;;  %vm2426_vm15 = vcmp.ge.f32.partialorder %v1860_v54, 0.0  ;;  %v2554_v56 = vmul.f32 0.2, %v1860_v54 }
 0x1d7   : > { %v1606_v57 = vpop.f32.mrb[95].mxu0  ;;  %v1862_v58 = vpop.f32.mrb[95].mxu1 }
 0x1d8   : > { %v2618_v61 = vsel %vm2362_vm14, %v1604_v53, %v2490_v55  ;;  %v2682_v62 = vsel %vm2426_vm15, %v1860_v54, %v2554_v56 }
 0x1d9   : > { %v3973_v63 = vpack.c.bf16 %v2618_v61, %v2617_v59  ;;  %v4133_v0 = vpack.c.bf16 %v2682_v62, %v2681_v60 }
 0x1da   : > { %v1609_v1 = vpop.f32.mrb[96].mxu0  ;;  %v1865_v2 = vpop.f32.mrb[96].mxu1 }
 0x1db   : > { %4197 = vst [vmem:[%s4767_s15 + $0xb8] sm:$0xff] %v3973_v63   ;;  %4229 = vst [vmem:[%s4767_s15 + $0x1b8] sm:$0xff] %v4133_v0   ;;  %v2491_v3 = vmul.f32 0.2, %v1609_v1  ;;  %v2555_v4 = vmul.f32 0.2, %v1865_v2 }
 0x1dc   : > { %v1611_v5 = vpop.f32.mrb[97].mxu0  ;;  %v1867_v6 = vpop.f32.mrb[97].mxu1  ;;  %vm2363_vm0 = vcmp.ge.f32.partialorder %v1609_v1, 0.0  ;;  %vm2427_vm1 = vcmp.ge.f32.partialorder %v1865_v2, 0.0 }
 0x1dd   : > { %v1612_v7 = vpop.f32.mrb[98].mxu0  ;;  %v1868_v8 = vpop.f32.mrb[98].mxu1  ;;  %v2619_v13 = vsel %vm2363_vm0, %v1609_v1, %v2491_v3  ;;  %v2683_v14 = vsel %vm2427_vm1, %v1865_v2, %v2555_v4 }
 0x1de   : > { %vm2364_vm2 = vcmp.ge.f32.partialorder %v1612_v7, 0.0  ;;  %v2492_v9 = vmul.f32 0.2, %v1612_v7  ;;  %vm2428_vm3 = vcmp.ge.f32.partialorder %v1868_v8, 0.0  ;;  %v2556_v10 = vmul.f32 0.2, %v1868_v8 }
 0x1df   : > { %v1614_v11 = vpop.f32.mrb[99].mxu0  ;;  %v1870_v12 = vpop.f32.mrb[99].mxu1 }
 0x1e0   : > { %v2620_v15 = vsel %vm2364_vm2, %v1612_v7, %v2492_v9  ;;  %v2684_v16 = vsel %vm2428_vm3, %v1868_v8, %v2556_v10 }
 0x1e1   : > { %v3978_v17 = vpack.c.bf16 %v2620_v15, %v2619_v13  ;;  %v4138_v18 = vpack.c.bf16 %v2684_v16, %v2683_v14 }
 0x1e2   : > { %v1617_v19 = vpop.f32.mrb[100].mxu0  ;;  %v1873_v20 = vpop.f32.mrb[100].mxu1 }
 0x1e3   : > { %4198 = vst [vmem:[%s4767_s15 + $0xc0] sm:$0xff] %v3978_v17   ;;  %4230 = vst [vmem:[%s4767_s15 + $0x1c0] sm:$0xff] %v4138_v18   ;;  %v2493_v21 = vmul.f32 0.2, %v1617_v19  ;;  %v2557_v22 = vmul.f32 0.2, %v1873_v20 }
 0x1e4   : > { %v1619_v23 = vpop.f32.mrb[101].mxu0  ;;  %v1875_v24 = vpop.f32.mrb[101].mxu1  ;;  %vm2365_vm4 = vcmp.ge.f32.partialorder %v1617_v19, 0.0  ;;  %vm2429_vm5 = vcmp.ge.f32.partialorder %v1873_v20, 0.0 }
 0x1e5   : > { %v1620_v25 = vpop.f32.mrb[102].mxu0  ;;  %v1876_v26 = vpop.f32.mrb[102].mxu1  ;;  %v2621_v31 = vsel %vm2365_vm4, %v1617_v19, %v2493_v21  ;;  %v2685_v32 = vsel %vm2429_vm5, %v1873_v20, %v2557_v22 }
 0x1e6   : > { %vm2366_vm6 = vcmp.ge.f32.partialorder %v1620_v25, 0.0  ;;  %v2494_v27 = vmul.f32 0.2, %v1620_v25  ;;  %vm2430_vm7 = vcmp.ge.f32.partialorder %v1876_v26, 0.0  ;;  %v2558_v28 = vmul.f32 0.2, %v1876_v26 }
 0x1e7   : > { %v1622_v29 = vpop.f32.mrb[103].mxu0  ;;  %v1878_v30 = vpop.f32.mrb[103].mxu1 }
 0x1e8   : > { %v2622_v33 = vsel %vm2366_vm6, %v1620_v25, %v2494_v27  ;;  %v2686_v34 = vsel %vm2430_vm7, %v1876_v26, %v2558_v28 }
 0x1e9   : > { %v3983_v35 = vpack.c.bf16 %v2622_v33, %v2621_v31  ;;  %v4143_v36 = vpack.c.bf16 %v2686_v34, %v2685_v32 }
 0x1ea   : > { %v1625_v37 = vpop.f32.mrb[104].mxu0  ;;  %v1881_v38 = vpop.f32.mrb[104].mxu1 }
 0x1eb   : > { %4199 = vst [vmem:[%s4767_s15 + $0xc8] sm:$0xff] %v3983_v35   ;;  %4231 = vst [vmem:[%s4767_s15 + $0x1c8] sm:$0xff] %v4143_v36   ;;  %v2495_v39 = vmul.f32 0.2, %v1625_v37  ;;  %v2559_v40 = vmul.f32 0.2, %v1881_v38 }
 0x1ec   : > { %v1627_v41 = vpop.f32.mrb[105].mxu0  ;;  %v1883_v42 = vpop.f32.mrb[105].mxu1  ;;  %vm2367_vm8 = vcmp.ge.f32.partialorder %v1625_v37, 0.0  ;;  %vm2431_vm9 = vcmp.ge.f32.partialorder %v1881_v38, 0.0 }
 0x1ed   : > { %v1628_v43 = vpop.f32.mrb[106].mxu0  ;;  %v1884_v44 = vpop.f32.mrb[106].mxu1  ;;  %v2623_v49 = vsel %vm2367_vm8, %v1625_v37, %v2495_v39  ;;  %v2687_v50 = vsel %vm2431_vm9, %v1881_v38, %v2559_v40 }
 0x1ee   : > { %vm2368_vm10 = vcmp.ge.f32.partialorder %v1628_v43, 0.0  ;;  %v2496_v45 = vmul.f32 0.2, %v1628_v43  ;;  %vm2432_vm11 = vcmp.ge.f32.partialorder %v1884_v44, 0.0  ;;  %v2560_v46 = vmul.f32 0.2, %v1884_v44 }
 0x1ef   : > { %v1630_v47 = vpop.f32.mrb[107].mxu0  ;;  %v1886_v48 = vpop.f32.mrb[107].mxu1 }
 0x1f0   : > { %v2624_v51 = vsel %vm2368_vm10, %v1628_v43, %v2496_v45  ;;  %v2688_v52 = vsel %vm2432_vm11, %v1884_v44, %v2560_v46 }
 0x1f1   : > { %v3988_v53 = vpack.c.bf16 %v2624_v51, %v2623_v49  ;;  %v4148_v54 = vpack.c.bf16 %v2688_v52, %v2687_v50 }
 0x1f2   : > { %v1633_v55 = vpop.f32.mrb[108].mxu0  ;;  %v1889_v56 = vpop.f32.mrb[108].mxu1 }
 0x1f3   : > { %4200 = vst [vmem:[%s4767_s15 + $0xd0] sm:$0xff] %v3988_v53   ;;  %4232 = vst [vmem:[%s4767_s15 + $0x1d0] sm:$0xff] %v4148_v54   ;;  %v2497_v57 = vmul.f32 0.2, %v1633_v55  ;;  %v2561_v58 = vmul.f32 0.2, %v1889_v56 }
 0x1f4   : > { %v1635_v59 = vpop.f32.mrb[109].mxu0  ;;  %v1891_v60 = vpop.f32.mrb[109].mxu1  ;;  %vm2369_vm12 = vcmp.ge.f32.partialorder %v1633_v55, 0.0  ;;  %vm2433_vm13 = vcmp.ge.f32.partialorder %v1889_v56, 0.0 }
 0x1f5   : > { %v1636_v61 = vpop.f32.mrb[110].mxu0  ;;  %v1892_v62 = vpop.f32.mrb[110].mxu1  ;;  %v2625_v3 = vsel %vm2369_vm12, %v1633_v55, %v2497_v57  ;;  %v2689_v4 = vsel %vm2433_vm13, %v1889_v56, %v2561_v58 }
 0x1f6   : > { %vm2370_vm14 = vcmp.ge.f32.partialorder %v1636_v61, 0.0  ;;  %v2498_v63 = vmul.f32 0.2, %v1636_v61  ;;  %vm2434_vm15 = vcmp.ge.f32.partialorder %v1892_v62, 0.0  ;;  %v2562_v0 = vmul.f32 0.2, %v1892_v62 }
 0x1f7   : > { %v1638_v1 = vpop.f32.mrb[111].mxu0  ;;  %v1894_v2 = vpop.f32.mrb[111].mxu1 }
 0x1f8   : > { %v2626_v5 = vsel %vm2370_vm14, %v1636_v61, %v2498_v63  ;;  %v2690_v6 = vsel %vm2434_vm15, %v1892_v62, %v2562_v0 }
 0x1f9   : > { %v3993_v7 = vpack.c.bf16 %v2626_v5, %v2625_v3  ;;  %v4153_v8 = vpack.c.bf16 %v2690_v6, %v2689_v4 }
 0x1fa   : > { %v1641_v9 = vpop.f32.mrb[112].mxu0  ;;  %v1897_v10 = vpop.f32.mrb[112].mxu1 }
 0x1fb   : > { %4201 = vst [vmem:[%s4767_s15 + $0xd8] sm:$0xff] %v3993_v7   ;;  %4233 = vst [vmem:[%s4767_s15 + $0x1d8] sm:$0xff] %v4153_v8   ;;  %v2499_v11 = vmul.f32 0.2, %v1641_v9  ;;  %v2563_v12 = vmul.f32 0.2, %v1897_v10 }
 0x1fc   : > { %v1643_v13 = vpop.f32.mrb[113].mxu0  ;;  %v1899_v14 = vpop.f32.mrb[113].mxu1  ;;  %vm2371_vm0 = vcmp.ge.f32.partialorder %v1641_v9, 0.0  ;;  %vm2435_vm1 = vcmp.ge.f32.partialorder %v1897_v10, 0.0 }
 0x1fd   : > { %v1644_v15 = vpop.f32.mrb[114].mxu0  ;;  %v1900_v16 = vpop.f32.mrb[114].mxu1  ;;  %v2627_v21 = vsel %vm2371_vm0, %v1641_v9, %v2499_v11  ;;  %v2691_v22 = vsel %vm2435_vm1, %v1897_v10, %v2563_v12 }
 0x1fe   : > { %vm2372_vm2 = vcmp.ge.f32.partialorder %v1644_v15, 0.0  ;;  %v2500_v17 = vmul.f32 0.2, %v1644_v15  ;;  %vm2436_vm3 = vcmp.ge.f32.partialorder %v1900_v16, 0.0  ;;  %v2564_v18 = vmul.f32 0.2, %v1900_v16 }
 0x1ff   : > { %v1646_v19 = vpop.f32.mrb[115].mxu0  ;;  %v1902_v20 = vpop.f32.mrb[115].mxu1 }
 0x200   : > { %v2628_v23 = vsel %vm2372_vm2, %v1644_v15, %v2500_v17  ;;  %v2692_v24 = vsel %vm2436_vm3, %v1900_v16, %v2564_v18 }
 0x201   : > { %v3998_v25 = vpack.c.bf16 %v2628_v23, %v2627_v21  ;;  %v4158_v26 = vpack.c.bf16 %v2692_v24, %v2691_v22 }
 0x202   : > { %v1649_v27 = vpop.f32.mrb[116].mxu0  ;;  %v1905_v28 = vpop.f32.mrb[116].mxu1 }
 0x203   : > { %4202 = vst [vmem:[%s4767_s15 + $0xe0] sm:$0xff] %v3998_v25   ;;  %4234 = vst [vmem:[%s4767_s15 + $0x1e0] sm:$0xff] %v4158_v26   ;;  %v2501_v29 = vmul.f32 0.2, %v1649_v27  ;;  %v2565_v30 = vmul.f32 0.2, %v1905_v28 }
 0x204   : > { %v1651_v31 = vpop.f32.mrb[117].mxu0  ;;  %v1907_v32 = vpop.f32.mrb[117].mxu1  ;;  %vm2373_vm4 = vcmp.ge.f32.partialorder %v1649_v27, 0.0  ;;  %vm2437_vm5 = vcmp.ge.f32.partialorder %v1905_v28, 0.0 }
 0x205   : > { %v1652_v33 = vpop.f32.mrb[118].mxu0  ;;  %v1908_v34 = vpop.f32.mrb[118].mxu1  ;;  %v2629_v39 = vsel %vm2373_vm4, %v1649_v27, %v2501_v29  ;;  %v2693_v40 = vsel %vm2437_vm5, %v1905_v28, %v2565_v30 }
 0x206   : > { %vm2374_vm6 = vcmp.ge.f32.partialorder %v1652_v33, 0.0  ;;  %v2502_v35 = vmul.f32 0.2, %v1652_v33  ;;  %vm2438_vm7 = vcmp.ge.f32.partialorder %v1908_v34, 0.0  ;;  %v2566_v36 = vmul.f32 0.2, %v1908_v34 }
 0x207   : > { %v1654_v37 = vpop.f32.mrb[119].mxu0  ;;  %v1910_v38 = vpop.f32.mrb[119].mxu1 }
 0x208   : > { %v2630_v41 = vsel %vm2374_vm6, %v1652_v33, %v2502_v35  ;;  %v2694_v42 = vsel %vm2438_vm7, %v1908_v34, %v2566_v36 }
 0x209   : > { %v4003_v43 = vpack.c.bf16 %v2630_v41, %v2629_v39  ;;  %v4163_v44 = vpack.c.bf16 %v2694_v42, %v2693_v40 }
 0x20a   : > { %v1657_v45 = vpop.f32.mrb[120].mxu0  ;;  %v1913_v46 = vpop.f32.mrb[120].mxu1 }
 0x20b   : > { %4203 = vst [vmem:[%s4767_s15 + $0xe8] sm:$0xff] %v4003_v43   ;;  %4235 = vst [vmem:[%s4767_s15 + $0x1e8] sm:$0xff] %v4163_v44   ;;  %v2503_v47 = vmul.f32 0.2, %v1657_v45  ;;  %v2567_v48 = vmul.f32 0.2, %v1913_v46 }
 0x20c   : > { %v1659_v49 = vpop.f32.mrb[121].mxu0  ;;  %v1915_v50 = vpop.f32.mrb[121].mxu1  ;;  %vm2375_vm8 = vcmp.ge.f32.partialorder %v1657_v45, 0.0  ;;  %vm2439_vm9 = vcmp.ge.f32.partialorder %v1913_v46, 0.0 }
 0x20d   : > { %v1660_v51 = vpop.f32.mrb[122].mxu0  ;;  %v1916_v52 = vpop.f32.mrb[122].mxu1  ;;  %v2631_v57 = vsel %vm2375_vm8, %v1657_v45, %v2503_v47  ;;  %v2695_v58 = vsel %vm2439_vm9, %v1913_v46, %v2567_v48 }
 0x20e   : > { %vm2376_vm10 = vcmp.ge.f32.partialorder %v1660_v51, 0.0  ;;  %v2504_v53 = vmul.f32 0.2, %v1660_v51  ;;  %vm2440_vm11 = vcmp.ge.f32.partialorder %v1916_v52, 0.0  ;;  %v2568_v54 = vmul.f32 0.2, %v1916_v52 }
 0x20f   : > { %v1662_v55 = vpop.f32.mrb[123].mxu0  ;;  %v1918_v56 = vpop.f32.mrb[123].mxu1 }
 0x210   : > { %v2632_v59 = vsel %vm2376_vm10, %v1660_v51, %v2504_v53  ;;  %v2696_v60 = vsel %vm2440_vm11, %v1916_v52, %v2568_v54 }
 0x211   : > { %v4008_v61 = vpack.c.bf16 %v2632_v59, %v2631_v57  ;;  %v4168_v62 = vpack.c.bf16 %v2696_v60, %v2695_v58 }
 0x212   : > { %v1665_v63 = vpop.f32.mrb[124].mxu0  ;;  %v1921_v0 = vpop.f32.mrb[124].mxu1 }
 0x213   : > { %4204 = vst [vmem:[%s4767_s15 + $0xf0] sm:$0xff] %v4008_v61   ;;  %4236 = vst [vmem:[%s4767_s15 + $0x1f0] sm:$0xff] %v4168_v62   ;;  %v2505_v1 = vmul.f32 0.2, %v1665_v63  ;;  %v2569_v2 = vmul.f32 0.2, %v1921_v0 }
 0x214   : > { %v1667_v3 = vpop.f32.mrb[125].mxu0  ;;  %v1923_v4 = vpop.f32.mrb[125].mxu1  ;;  %vm2377_vm12 = vcmp.ge.f32.partialorder %v1665_v63, 0.0  ;;  %vm2441_vm13 = vcmp.ge.f32.partialorder %v1921_v0, 0.0 }
 0x215   : > { %v1668_v5 = vpop.f32.mrb[126].mxu0  ;;  %v1924_v6 = vpop.f32.mrb[126].mxu1  ;;  %v2633_v11 = vsel %vm2377_vm12, %v1665_v63, %v2505_v1  ;;  %v2697_v12 = vsel %vm2441_vm13, %v1921_v0, %v2569_v2 }
 0x216   : > { %vm2378_vm14 = vcmp.ge.f32.partialorder %v1668_v5, 0.0  ;;  %v2506_v7 = vmul.f32 0.2, %v1668_v5  ;;  %vm2442_vm15 = vcmp.ge.f32.partialorder %v1924_v6, 0.0  ;;  %v2570_v8 = vmul.f32 0.2, %v1924_v6 }
 0x217   : > { %v1670_v9 = vpop.f32.mrb[127].mxu0  ;;  %v1926_v10 = vpop.f32.mrb[127].mxu1 }
 0x218   : > { %v2634_v13 = vsel %vm2378_vm14, %v1668_v5, %v2506_v7  ;;  %v2698_v14 = vsel %vm2442_vm15, %v1924_v6, %v2570_v8 }
 0x219   : > { %v4013_v15 = vpack.c.bf16 %v2634_v13, %v2633_v11  ;;  %v4173_v16 = vpack.c.bf16 %v2698_v14, %v2697_v12 }
 0x21b   : > { %4205 = vst [vmem:[%s4767_s15 + $0xf8] sm:$0xff] %v4013_v15   ;;  %4237 = vst [vmem:[%s4767_s15 + $0x1f8] sm:$0xff] %v4173_v16  }
 0x21c PF: > { %s12_s11 = sadd.s32 1, %s4525_s11   ;;  %s4859_s9 = smov %s4521_s10 }
 0x21d   : > { %p9_p5 = scmp.ge.s32.totalorder %s12_s11, 4   ;;  %s4860_s10 = smov %s4862_s12 }
 0x21f   :  { %11 = sbr.rel (!%p9_p5) target bundleno = 2 (0x2), region = 69 }

// kernel: forward.8
= control target key start
LH: loop header
LB: loop body
LE: loop exit
PB: predicated region body
PF: predicated region fallthrough
CT: control target
= control target key end

     0   :  { %s2398_s9 = smov 0   ;;  %s2400_s10 = smov 0   ;;  %s2618_s0 = inlined_call_operand.vmem [shape: bf16[512,512], index: 0, kind: input, shape index: {}]   ;;  %s2619_s1 = inlined_call_operand.vmem [shape: bf16[512,128], index: 1, kind: input, shape index: {}]   ;;  %s2620_s2 = inlined_call_operand.vmem [shape: bf16[512,128], index: 2, kind: output, shape index: {}]  }
   0x1   :  { %s2402_s11 = smov 0  }
   0x2 LB: > { %s31_s12 = sadd.s32 1, %s2377_s10  ;;  %p1719_p0 = scmp.ge.s32.totalorder %s2381_s11, 1  ;;  %s2381_s11 = sphi %s2402_s11, %s12_s11   ;;  %s2377_s10 = sphi %s2400_s10, %s2622_s10   ;;  %s2373_s9 = sphi %s2398_s9, %s2621_s9  }
   0x3   : > { %p33_p1 = scmp.ge.s32.totalorder %s31_s12, 2  ;;  %p158_p2 = scmp.lt.s32.totalorder %s2381_s11, 3 }
   0x5   : > { %s2624_s12 = smov (%p33_p1, %s31_s12), 0  ;;  %p159_p3 = pnand %p1719_p0, %p158_p2 }
   0x6   : > { %v2231_v0 = vld [vmem:[%s2619_s1 + $0x40] sm:$0xff] (!%p159_p3)   ;;  %v2235_v4 = vld [vmem:[%s2619_s1 + $0x48] sm:$0xff] (!%p159_p3)   ;;  %v2239_v8 = vld [vmem:[%s2619_s1 + $0x50] sm:$0xff] (!%p159_p3)   ;;  %s1720_s21 = sshll.u32 (!%p159_p3), %s2373_s9, 5 }
   0x7   : > { %162 = sbr.rel (%p159_p3) target bundleno = 386 (0x182), region = 28  ;;  %v2232_v1 = vld [vmem:[%s2619_s1 + $0xc0] sm:$0xff] (!%p159_p3)   ;;  %1983 = vmatprep.subr.bf16.mxu0 (!%p159_p3), %v2231_v0  ;;  %v2236_v5 = vld [vmem:[%s2619_s1 + $0xc8] sm:$0xff] (!%p159_p3)   ;;  %v2240_v9 = vld [vmem:[%s2619_s1 + $0xd0] sm:$0xff] (!%p159_p3)   ;;  %p198_p4 = scmp.lt.s32.totalorder (!%p159_p3), %s1720_s21, 63 }
   0x8   : > { %v2233_v2 = vld [vmem:[%s2619_s1] sm:$0xff] (!%p159_p3)   ;;  %2095 = vmatprep.subr.bf16.mxu1 (!%p159_p3), %v2232_v1  ;;  %v2237_v6 = vld [vmem:[%s2619_s1 + $0x8] sm:$0xff] (!%p159_p3)   ;;  %v2241_v10 = vld [vmem:[%s2619_s1 + $0x10] sm:$0xff] (!%p159_p3)  }
   0x9   : > { %v2234_v3 = vld [vmem:[%s2619_s1 + $0x80] sm:$0xff] (!%p159_p3)   ;;  %1984 = vmatpush3.bf16.msra.mxu0 (!%p159_p3), %v2233_v2  ;;  %v2238_v7 = vld [vmem:[%s2619_s1 + $0x88] sm:$0xff] (!%p159_p3)   ;;  %v2242_v11 = vld [vmem:[%s2619_s1 + $0x90] sm:$0xff] (!%p159_p3)  }
   0xa   : > { %2096 = vmatpush3.bf16.msra.mxu1 (!%p159_p3), %v2234_v3  ;;  %1985 = vmatprep.subr.bf16.mxu0 (!%p159_p3), %v2235_v4  ;;  %v2243_v12 = vld [vmem:[%s2619_s1 + $0x58] sm:$0xff] (!%p159_p3)   ;;  %v2247_v16 = vld [vmem:[%s2619_s1 + $0x60] sm:$0xff] (!%p159_p3)   ;;  %v2251_v20 = vld [vmem:[%s2619_s1 + $0x68] sm:$0xff] (!%p159_p3)  }
   0xb   : > { %2097 = vmatprep.subr.bf16.mxu1 (!%p159_p3), %v2236_v5  ;;  %v2244_v13 = vld [vmem:[%s2619_s1 + $0xd8] sm:$0xff] (!%p159_p3)   ;;  %v2248_v17 = vld [vmem:[%s2619_s1 + $0xe0] sm:$0xff] (!%p159_p3)   ;;  %v2252_v21 = vld [vmem:[%s2619_s1 + $0xe8] sm:$0xff] (!%p159_p3)  }
   0xc   : > { %v2245_v14 = vld [vmem:[%s2619_s1 + $0x18] sm:$0xff] (!%p159_p3)   ;;  %v2249_v18 = vld [vmem:[%s2619_s1 + $0x20] sm:$0xff] (!%p159_p3)   ;;  %v2253_v22 = vld [vmem:[%s2619_s1 + $0x28] sm:$0xff] (!%p159_p3)  }
   0xd   : > { %1986 = vmatpush3.bf16.msra.mxu0 (!%p159_p3), %v2237_v6  ;;  %v2246_v15 = vld [vmem:[%s2619_s1 + $0x98] sm:$0xff] (!%p159_p3)   ;;  %v2250_v19 = vld [vmem:[%s2619_s1 + $0xa0] sm:$0xff] (!%p159_p3)   ;;  %v2254_v23 = vld [vmem:[%s2619_s1 + $0xa8] sm:$0xff] (!%p159_p3)  }
   0xe   : > { %2098 = vmatpush3.bf16.msra.mxu1 %v2238_v7  ;;  %1987 = vmatprep.subr.bf16.mxu0 %v2239_v8  ;;  %s2626_s21 = smov (!%p198_p4, %s1720_s21), 63  ;;  %v2255_v24 = vld [vmem:[%s2619_s1 + $0x70] sm:$0xff]   ;;  %v2259_v28 = vld [vmem:[%s2619_s1 + $0x78] sm:$0xff]  }
   0xf   : > { %2099 = vmatprep.subr.bf16.mxu1 %v2240_v9  ;;  %v2256_v25 = vld [vmem:[%s2619_s1 + $0xf0] sm:$0xff]   ;;  %s1855_s19 = sshll.u32 %s2626_s21, 4  ;;  %v2260_v29 = vld [vmem:[%s2619_s1 + $0xf8] sm:$0xff]   ;;  %s1724_s5 = sshll.u32 %s2626_s21, 2 }
  0x10   : > { %v2257_v26 = vld [vmem:[%s2619_s1 + $0x30] sm:$0xff]   ;;  %s2515_s29 = scalar_lea.vmem %s2618_s0, %s1855_s19  ;;  %v2261_v30 = vld [vmem:[%s2619_s1 + $0x38] sm:$0xff]   ;;  %s2591_s8 = scalar_lea.vmem %s2620_s2, %s1724_s5 }
  0x11   : > { %1988 = vmatpush3.bf16.msra.mxu0 %v2241_v10  ;;  %v2258_v27 = vld [vmem:[%s2619_s1 + $0xb0] sm:$0xff]   ;;  %v2262_v31 = vld [vmem:[%s2619_s1 + $0xb8] sm:$0xff]  }
  0x12   : > { %2100 = vmatpush3.bf16.msra.mxu1 %v2242_v11  ;;  %1989 = vmatprep.subr.bf16.mxu0 %v2243_v12  ;;  %v2263_v32 = vld [vmem:[%s2515_s29] ss:$16 sps:$4 sm:$0xff]   ;;  %v2265_v33 = vld [vmem:[%s2515_s29 + $0x4] ss:$16 sps:$4 sm:$0xff]   ;;  %v2266_v34 = vld [vmem:[%s2515_s29 + $0x8] ss:$16 sps:$4 sm:$0xff]  }
  0x13   : > { %2101 = vmatprep.subr.bf16.mxu1 %v2244_v13  ;;  %v2268_v35 = vld [vmem:[%s2515_s29 + $0xc] ss:$16 sps:$4 sm:$0xff]   ;;  %967 = vmatprep.mubr.bf16.mxu0 %v2265_v33  ;;  %v2269_v36 = vld [vmem:[%s2515_s29 + $0x24] ss:$16 sps:$4 sm:$0xff]   ;;  %v2273_v38 = vld [vmem:[%s2515_s29 + $0x20] ss:$16 sps:$4 sm:$0xff]  }
  0x14   : > { %1128 = vmatprep.mubr.bf16.mxu1 %v2268_v35  ;;  %v2271_v37 = vld [vmem:[%s2515_s29 + $0x2c] ss:$16 sps:$4 sm:$0xff]   ;;  %v2274_v39 = vld [vmem:[%s2515_s29 + $0x28] ss:$16 sps:$4 sm:$0xff]   ;;  %v2275_v40 = vld [vmem:[%s2515_s29 + $0x44] ss:$16 sps:$4 sm:$0xff]  }
  0x15   : > { %1990 = vmatpush3.bf16.msra.mxu0 %v2245_v14  ;;  %v2277_v41 = vld [vmem:[%s2515_s29 + $0x4c] ss:$16 sps:$4 sm:$0xff]   ;;  %v2279_v42 = vld [vmem:[%s2515_s29 + $0x40] ss:$16 sps:$4 sm:$0xff]   ;;  %v2280_v43 = vld [vmem:[%s2515_s29 + $0x48] ss:$16 sps:$4 sm:$0xff]  }
  0x16   : > { %2102 = vmatpush3.bf16.msra.mxu1 %v2246_v15  ;;  %1991 = vmatprep.subr.bf16.mxu0 %v2247_v16  ;;  %v2281_v44 = vld [vmem:[%s2515_s29 + $0x64] ss:$16 sps:$4 sm:$0xff]   ;;  %v2283_v45 = vld [vmem:[%s2515_s29 + $0x6c] ss:$16 sps:$4 sm:$0xff]   ;;  %v2285_v46 = vld [vmem:[%s2515_s29 + $0x60] ss:$16 sps:$4 sm:$0xff]  }
  0x17   : > { %2103 = vmatprep.subr.bf16.mxu1 %v2248_v17  ;;  %v2286_v47 = vld [vmem:[%s2515_s29 + $0x68] ss:$16 sps:$4 sm:$0xff]   ;;  %v2287_v48 = vld [vmem:[%s2515_s29 + $0x84] ss:$16 sps:$4 sm:$0xff]   ;;  %v2289_v49 = vld [vmem:[%s2515_s29 + $0x8c] ss:$16 sps:$4 sm:$0xff]  }
  0x18   : > { %v2291_v50 = vld [vmem:[%s2515_s29 + $0x80] ss:$16 sps:$4 sm:$0xff]   ;;  %v2292_v51 = vld [vmem:[%s2515_s29 + $0x88] ss:$16 sps:$4 sm:$0xff]   ;;  %v2293_v52 = vld [vmem:[%s2515_s29 + $0xa4] ss:$16 sps:$4 sm:$0xff]  }
  0x19   : > { %1992 = vmatpush3.bf16.msra.mxu0 %v2249_v18  ;;  %v2295_v53 = vld [vmem:[%s2515_s29 + $0xac] ss:$16 sps:$4 sm:$0xff]   ;;  %v2297_v54 = vld [vmem:[%s2515_s29 + $0xa0] ss:$16 sps:$4 sm:$0xff]   ;;  %v2298_v55 = vld [vmem:[%s2515_s29 + $0xa8] ss:$16 sps:$4 sm:$0xff]  }
  0x1a   : > { %2104 = vmatpush3.bf16.msra.mxu1 %v2250_v19  ;;  %1993 = vmatprep.subr.bf16.mxu0 %v2251_v20  ;;  %v2299_v56 = vld [vmem:[%s2515_s29 + $0xc4] ss:$16 sps:$4 sm:$0xff]   ;;  %v2301_v57 = vld [vmem:[%s2515_s29 + $0xcc] ss:$16 sps:$4 sm:$0xff]   ;;  %v2303_v58 = vld [vmem:[%s2515_s29 + $0xc0] ss:$16 sps:$4 sm:$0xff]  }
  0x1b   : > { %2105 = vmatprep.subr.bf16.mxu1 %v2252_v21  ;;  %v2304_v59 = vld [vmem:[%s2515_s29 + $0xc8] ss:$16 sps:$4 sm:$0xff]   ;;  %v2305_v60 = vld [vmem:[%s2515_s29 + $0xe4] ss:$16 sps:$4 sm:$0xff]   ;;  %v2307_v61 = vld [vmem:[%s2515_s29 + $0xec] ss:$16 sps:$4 sm:$0xff]  }
  0x1c   : > { %v2309_v62 = vld [vmem:[%s2515_s29 + $0xe0] ss:$16 sps:$4 sm:$0xff]   ;;  %v2310_v63 = vld [vmem:[%s2515_s29 + $0xe8] ss:$16 sps:$4 sm:$0xff]   ;;  %v2311_v0 = vld [vmem:[%s2515_s29 + $0x104] ss:$16 sps:$4 sm:$0xff]  }
  0x1d   : > { %1994 = vmatpush3.bf16.msra.mxu0 %v2253_v22  ;;  %v2313_v1 = vld [vmem:[%s2515_s29 + $0x10c] ss:$16 sps:$4 sm:$0xff]   ;;  %v2315_v2 = vld [vmem:[%s2515_s29 + $0x100] ss:$16 sps:$4 sm:$0xff]   ;;  %v2316_v3 = vld [vmem:[%s2515_s29 + $0x108] ss:$16 sps:$4 sm:$0xff]  }
  0x1e   : > { %2106 = vmatpush3.bf16.msra.mxu1 %v2254_v23  ;;  %1995 = vmatprep.subr.bf16.mxu0 %v2255_v24  ;;  %v2317_v4 = vld [vmem:[%s2515_s29 + $0x124] ss:$16 sps:$4 sm:$0xff]   ;;  %v2319_v5 = vld [vmem:[%s2515_s29 + $0x12c] ss:$16 sps:$4 sm:$0xff]   ;;  %v2321_v6 = vld [vmem:[%s2515_s29 + $0x120] ss:$16 sps:$4 sm:$0xff]  }
  0x1f   : > { %2107 = vmatprep.subr.bf16.mxu1 %v2256_v25  ;;  %v2322_v7 = vld [vmem:[%s2515_s29 + $0x128] ss:$16 sps:$4 sm:$0xff]   ;;  %v2323_v8 = vld [vmem:[%s2515_s29 + $0x144] ss:$16 sps:$4 sm:$0xff]   ;;  %v2325_v9 = vld [vmem:[%s2515_s29 + $0x14c] ss:$16 sps:$4 sm:$0xff]  }
  0x20   : > { %v2327_v10 = vld [vmem:[%s2515_s29 + $0x140] ss:$16 sps:$4 sm:$0xff]   ;;  %v2328_v11 = vld [vmem:[%s2515_s29 + $0x148] ss:$16 sps:$4 sm:$0xff]   ;;  %v2329_v12 = vld [vmem:[%s2515_s29 + $0x164] ss:$16 sps:$4 sm:$0xff]  }
  0x21   : > { %1996 = vmatpush3.bf16.msra.mxu0 %v2257_v26  ;;  %v2331_v13 = vld [vmem:[%s2515_s29 + $0x16c] ss:$16 sps:$4 sm:$0xff]   ;;  %v2333_v14 = vld [vmem:[%s2515_s29 + $0x160] ss:$16 sps:$4 sm:$0xff]   ;;  %v2334_v15 = vld [vmem:[%s2515_s29 + $0x168] ss:$16 sps:$4 sm:$0xff]  }
  0x22   : > { %2108 = vmatpush3.bf16.msra.mxu1 %v2258_v27  ;;  %1997 = vmatprep.subr.bf16.mxu0 %v2259_v28  ;;  %v2335_v16 = vld [vmem:[%s2515_s29 + $0x184] ss:$16 sps:$4 sm:$0xff]   ;;  %v2337_v17 = vld [vmem:[%s2515_s29 + $0x18c] ss:$16 sps:$4 sm:$0xff]   ;;  %v2339_v18 = vld [vmem:[%s2515_s29 + $0x180] ss:$16 sps:$4 sm:$0xff]  }
  0x23   : > { %2109 = vmatprep.subr.bf16.mxu1 %v2260_v29  ;;  %v2340_v19 = vld [vmem:[%s2515_s29 + $0x188] ss:$16 sps:$4 sm:$0xff]   ;;  %v2341_v20 = vld [vmem:[%s2515_s29 + $0x1a4] ss:$16 sps:$4 sm:$0xff]   ;;  %v2343_v21 = vld [vmem:[%s2515_s29 + $0x1ac] ss:$16 sps:$4 sm:$0xff]  }
  0x24   : > { %v2345_v22 = vld [vmem:[%s2515_s29 + $0x1a0] ss:$16 sps:$4 sm:$0xff]   ;;  %v2346_v23 = vld [vmem:[%s2515_s29 + $0x1a8] ss:$16 sps:$4 sm:$0xff]   ;;  %v2347_v24 = vld [vmem:[%s2515_s29 + $0x1c4] ss:$16 sps:$4 sm:$0xff]  }
  0x25   : > { %1998 = vmatpush3.bf16.msra.mxu0 %v2261_v30  ;;  %v2349_v25 = vld [vmem:[%s2515_s29 + $0x1cc] ss:$16 sps:$4 sm:$0xff]   ;;  %v2351_v26 = vld [vmem:[%s2515_s29 + $0x1c0] ss:$16 sps:$4 sm:$0xff]   ;;  %v2352_v27 = vld [vmem:[%s2515_s29 + $0x1c8] ss:$16 sps:$4 sm:$0xff]  }
  0x26   : > { %2110 = vmatpush3.bf16.msra.mxu1 %v2262_v31  ;;  %v2353_v28 = vld [vmem:[%s2515_s29 + $0x1e4] ss:$16 sps:$4 sm:$0xff]   ;;  %v2355_v29 = vld [vmem:[%s2515_s29 + $0x1ec] ss:$16 sps:$4 sm:$0xff]   ;;  %v2357_v30 = vld [vmem:[%s2515_s29 + $0x1e0] ss:$16 sps:$4 sm:$0xff]  }
  0x27   : > { %v2358_v31 = vld [vmem:[%s2515_s29 + $0x1e8] ss:$16 sps:$4 sm:$0xff]  }
  0x28   : > { %968 = vmatmul.mubr.bf16.vlgmr.msra.gmra.mrb[0].mxu0 %v2263_v32 }
  0x29   : > { %1129 = vmatmul.mubr.bf16.vlgmr.msra.gmra.mrb[0].mxu1 %v2266_v34  ;;  %975 = vmatprep.mubr.bf16.mxu0 %v2269_v36 }
  0x2a   : > { %1136 = vmatprep.mubr.bf16.mxu1 %v2271_v37 }
  0x30   : > { %976 = vmatmul.mubr.bf16.gmra.mrb[4].mxu0 %v2273_v38 }
  0x31   : > { %1137 = vmatmul.mubr.bf16.gmra.mrb[4].mxu1 %v2274_v39  ;;  %983 = vmatprep.mubr.bf16.mxu0 %v2275_v40 }
  0x32   : > { %1144 = vmatprep.mubr.bf16.mxu1 %v2277_v41 }
  0x38   : > { %984 = vmatmul.mubr.bf16.gmra.mrb[8].mxu0 %v2279_v42 }
  0x39   : > { %1145 = vmatmul.mubr.bf16.gmra.mrb[8].mxu1 %v2280_v43  ;;  %991 = vmatprep.mubr.bf16.mxu0 %v2281_v44 }
  0x3a   : > { %1152 = vmatprep.mubr.bf16.mxu1 %v2283_v45 }
  0x40   : > { %992 = vmatmul.mubr.bf16.gmra.mrb[12].mxu0 %v2285_v46 }
  0x41   : > { %1153 = vmatmul.mubr.bf16.gmra.mrb[12].mxu1 %v2286_v47  ;;  %999 = vmatprep.mubr.bf16.mxu0 %v2287_v48 }
  0x42   : > { %1160 = vmatprep.mubr.bf16.mxu1 %v2289_v49 }
  0x48   : > { %1000 = vmatmul.mubr.bf16.gmra.mrb[16].mxu0 %v2291_v50 }
  0x49   : > { %1161 = vmatmul.mubr.bf16.gmra.mrb[16].mxu1 %v2292_v51  ;;  %1007 = vmatprep.mubr.bf16.mxu0 %v2293_v52 }
  0x4a   : > { %1168 = vmatprep.mubr.bf16.mxu1 %v2295_v53 }
  0x50   : > { %1008 = vmatmul.mubr.bf16.gmra.mrb[20].mxu0 %v2297_v54 }
  0x51   : > { %1169 = vmatmul.mubr.bf16.gmra.mrb[20].mxu1 %v2298_v55  ;;  %1015 = vmatprep.mubr.bf16.mxu0 %v2299_v56 }
  0x52   : > { %1176 = vmatprep.mubr.bf16.mxu1 %v2301_v57 }
  0x58   : > { %1016 = vmatmul.mubr.bf16.gmra.mrb[24].mxu0 %v2303_v58 }
  0x59   : > { %1177 = vmatmul.mubr.bf16.gmra.mrb[24].mxu1 %v2304_v59  ;;  %1023 = vmatprep.mubr.bf16.mxu0 %v2305_v60 }
  0x5a   : > { %1184 = vmatprep.mubr.bf16.mxu1 %v2307_v61 }
  0x60   : > { %1024 = vmatmul.mubr.bf16.gmra.mrb[28].mxu0 %v2309_v62 }
  0x61   : > { %1185 = vmatmul.mubr.bf16.gmra.mrb[28].mxu1 %v2310_v63  ;;  %1031 = vmatprep.mubr.bf16.mxu0 %v2311_v0 }
  0x62   : > { %1192 = vmatprep.mubr.bf16.mxu1 %v2313_v1 }
  0x68   : > { %1032 = vmatmul.mubr.bf16.gmra.mrb[32].mxu0 %v2315_v2 }
  0x69   : > { %1193 = vmatmul.mubr.bf16.gmra.mrb[32].mxu1 %v2316_v3  ;;  %1039 = vmatprep.mubr.bf16.mxu0 %v2317_v4 }
  0x6a   : > { %1200 = vmatprep.mubr.bf16.mxu1 %v2319_v5 }
  0x70   : > { %1040 = vmatmul.mubr.bf16.gmra.mrb[36].mxu0 %v2321_v6 }
  0x71   : > { %1201 = vmatmul.mubr.bf16.gmra.mrb[36].mxu1 %v2322_v7  ;;  %1047 = vmatprep.mubr.bf16.mxu0 %v2323_v8 }
  0x72   : > { %1208 = vmatprep.mubr.bf16.mxu1 %v2325_v9 }
  0x78   : > { %1048 = vmatmul.mubr.bf16.gmra.mrb[40].mxu0 %v2327_v10 }
  0x79   : > { %1209 = vmatmul.mubr.bf16.gmra.mrb[40].mxu1 %v2328_v11  ;;  %1055 = vmatprep.mubr.bf16.mxu0 %v2329_v12 }
  0x7a   : > { %1216 = vmatprep.mubr.bf16.mxu1 %v2331_v13 }
  0x80   : > { %1056 = vmatmul.mubr.bf16.gmra.mrb[44].mxu0 %v2333_v14 }
  0x81   : > { %1217 = vmatmul.mubr.bf16.gmra.mrb[44].mxu1 %v2334_v15  ;;  %1063 = vmatprep.mubr.bf16.mxu0 %v2335_v16 }
  0x82   : > { %1224 = vmatprep.mubr.bf16.mxu1 %v2337_v17 }
  0x88   : > { %1064 = vmatmul.mubr.bf16.gmra.mrb[48].mxu0 %v2339_v18 }
  0x89   : > { %1225 = vmatmul.mubr.bf16.gmra.mrb[48].mxu1 %v2340_v19  ;;  %1071 = vmatprep.mubr.bf16.mxu0 %v2341_v20 }
  0x8a   : > { %1232 = vmatprep.mubr.bf16.mxu1 %v2343_v21 }
  0x90   : > { %1072 = vmatmul.mubr.bf16.gmra.mrb[52].mxu0 %v2345_v22 }
  0x91   : > { %1233 = vmatmul.mubr.bf16.gmra.mrb[52].mxu1 %v2346_v23  ;;  %1079 = vmatprep.mubr.bf16.mxu0 %v2347_v24 }
  0x92   : > { %1240 = vmatprep.mubr.bf16.mxu1 %v2349_v25 }
  0x98   : > { %1080 = vmatmul.mubr.bf16.gmra.mrb[56].mxu0 %v2351_v26 }
  0x99   : > { %1241 = vmatmul.mubr.bf16.gmra.mrb[56].mxu1 %v2352_v27  ;;  %1087 = vmatprep.mubr.bf16.mxu0 %v2353_v28 }
  0x9a   : > { %1248 = vmatprep.mubr.bf16.mxu1 %v2355_v29 }
  0xa0   : > { %1088 = vmatmul.mubr.bf16.gmra.mrb[60].mxu0 %v2357_v30 }
  0xa1   : > { %1249 = vmatmul.mubr.bf16.gmra.mrb[60].mxu1 %v2358_v31 }
  0xfb   : > { %v1999_v32 = vpop.f32.mrb[0].mxu0 }
  0xfc   : > { %v2111_v33 = vpop.f32.mrb[0].mxu1  ;;  %v2000_v34 = vpop.f32.mrb[1].mxu0 }
  0xfd   : > { %v2001_v35 = vadd.f32 %v2000_v34, %v1999_v32  ;;  %v2112_v36 = vpop.f32.mrb[1].mxu1  ;;  %v2002_v37 = vpop.f32.mrb[2].mxu0 }
  0xfe   : > { %v2113_v38 = vadd.f32 %v2112_v36, %v2111_v33  ;;  %v2114_v39 = vpop.f32.mrb[2].mxu1  ;;  %v2003_v40 = vpop.f32.mrb[3].mxu0 }
  0xff   : > { %v2004_v41 = vadd.f32 %v2003_v40, %v2002_v37  ;;  %v2115_v42 = vpop.f32.mrb[3].mxu1 }
 0x100   : > { %v1131_v43 = vadd.f32 %v2113_v38, %v2001_v35  ;;  %v2116_v44 = vadd.f32 %v2115_v42, %v2114_v39 }
 0x102   : > { %v1388_v45 = vmul.f32 0.2, %v1131_v43  ;;  %v1134_v46 = vadd.f32 %v2116_v44, %v2004_v41  ;;  %vm1356_vm0 = vcmp.ge.f32.partialorder %v1131_v43, 0.0 }
 0x103   : > { %v2005_v47 = vpop.f32.mrb[4].mxu0 }
 0x104   : > { %vm1357_vm1 = vcmp.ge.f32.partialorder %v1134_v46, 0.0  ;;  %v1389_v48 = vmul.f32 0.2, %v1134_v46  ;;  %v2117_v49 = vpop.f32.mrb[4].mxu1  ;;  %v2006_v50 = vpop.f32.mrb[5].mxu0  ;;  %v1420_v54 = vsel %vm1356_vm0, %v1131_v43, %v1388_v45 }
 0x105   : > { %v2007_v51 = vadd.f32 %v2006_v50, %v2005_v47  ;;  %v2118_v52 = vpop.f32.mrb[5].mxu1  ;;  %v2008_v53 = vpop.f32.mrb[6].mxu0 }
 0x106   : > { %v1421_v55 = vsel %vm1357_vm1, %v1134_v46, %v1389_v48  ;;  %v2119_v56 = vadd.f32 %v2118_v52, %v2117_v49  ;;  %v2120_v57 = vpop.f32.mrb[6].mxu1  ;;  %v2009_v58 = vpop.f32.mrb[7].mxu0 }
 0x107   : > { %v1891_v59 = vpack.c.bf16 %v1421_v55, %v1420_v54  ;;  %v2010_v60 = vadd.f32 %v2009_v58, %v2008_v53  ;;  %v2121_v61 = vpop.f32.mrb[7].mxu1 }
 0x108   : > { %v1139_v62 = vadd.f32 %v2119_v56, %v2007_v51  ;;  %v2122_v63 = vadd.f32 %v2121_v61, %v2120_v57 }
 0x109   : > { %1892 = vst [vmem:[%s2591_s8] sm:$0xff] %v1891_v59  }
 0x10a   : > { %v1390_v0 = vmul.f32 0.2, %v1139_v62  ;;  %v1142_v1 = vadd.f32 %v2122_v63, %v2010_v60  ;;  %vm1358_vm2 = vcmp.ge.f32.partialorder %v1139_v62, 0.0 }
 0x10b   : > { %v2011_v2 = vpop.f32.mrb[8].mxu0 }
 0x10c   : > { %vm1359_vm3 = vcmp.ge.f32.partialorder %v1142_v1, 0.0  ;;  %v1391_v3 = vmul.f32 0.2, %v1142_v1  ;;  %v2123_v4 = vpop.f32.mrb[8].mxu1  ;;  %v2012_v5 = vpop.f32.mrb[9].mxu0  ;;  %v1422_v9 = vsel %vm1358_vm2, %v1139_v62, %v1390_v0 }
 0x10d   : > { %v2013_v6 = vadd.f32 %v2012_v5, %v2011_v2  ;;  %v2124_v7 = vpop.f32.mrb[9].mxu1  ;;  %v2014_v8 = vpop.f32.mrb[10].mxu0 }
 0x10e   : > { %v1423_v10 = vsel %vm1359_vm3, %v1142_v1, %v1391_v3  ;;  %v2125_v11 = vadd.f32 %v2124_v7, %v2123_v4  ;;  %v2126_v12 = vpop.f32.mrb[10].mxu1  ;;  %v2015_v13 = vpop.f32.mrb[11].mxu0 }
 0x10f   : > { %v1896_v14 = vpack.c.bf16 %v1423_v10, %v1422_v9  ;;  %v2016_v15 = vadd.f32 %v2015_v13, %v2014_v8  ;;  %v2127_v16 = vpop.f32.mrb[11].mxu1 }
 0x110   : > { %v1147_v17 = vadd.f32 %v2125_v11, %v2013_v6  ;;  %v2128_v18 = vadd.f32 %v2127_v16, %v2126_v12 }
 0x111   : > { %1968 = vst [vmem:[%s2591_s8 + $0x8] sm:$0xff] %v1896_v14  }
 0x112   : > { %v1392_v19 = vmul.f32 0.2, %v1147_v17  ;;  %v1150_v20 = vadd.f32 %v2128_v18, %v2016_v15  ;;  %vm1360_vm4 = vcmp.ge.f32.partialorder %v1147_v17, 0.0 }
 0x113   : > { %v2017_v21 = vpop.f32.mrb[12].mxu0 }
 0x114   : > { %vm1361_vm5 = vcmp.ge.f32.partialorder %v1150_v20, 0.0  ;;  %v1393_v22 = vmul.f32 0.2, %v1150_v20  ;;  %v2129_v23 = vpop.f32.mrb[12].mxu1  ;;  %v2018_v24 = vpop.f32.mrb[13].mxu0  ;;  %v1424_v28 = vsel %vm1360_vm4, %v1147_v17, %v1392_v19 }
 0x115   : > { %v2019_v25 = vadd.f32 %v2018_v24, %v2017_v21  ;;  %v2130_v26 = vpop.f32.mrb[13].mxu1  ;;  %v2020_v27 = vpop.f32.mrb[14].mxu0 }
 0x116   : > { %v1425_v29 = vsel %vm1361_vm5, %v1150_v20, %v1393_v22  ;;  %v2131_v30 = vadd.f32 %v2130_v26, %v2129_v23  ;;  %v2132_v31 = vpop.f32.mrb[14].mxu1  ;;  %v2021_v32 = vpop.f32.mrb[15].mxu0 }
 0x117   : > { %v1901_v33 = vpack.c.bf16 %v1425_v29, %v1424_v28  ;;  %v2022_v34 = vadd.f32 %v2021_v32, %v2020_v27  ;;  %v2133_v35 = vpop.f32.mrb[15].mxu1 }
 0x118   : > { %v1155_v36 = vadd.f32 %v2131_v30, %v2019_v25  ;;  %v2134_v37 = vadd.f32 %v2133_v35, %v2132_v31 }
 0x119   : > { %1969 = vst [vmem:[%s2591_s8 + $0x10] sm:$0xff] %v1901_v33  }
 0x11a   : > { %v1394_v38 = vmul.f32 0.2, %v1155_v36  ;;  %v1158_v39 = vadd.f32 %v2134_v37, %v2022_v34  ;;  %vm1362_vm6 = vcmp.ge.f32.partialorder %v1155_v36, 0.0 }
 0x11b   : > { %v2023_v40 = vpop.f32.mrb[16].mxu0 }
 0x11c   : > { %vm1363_vm7 = vcmp.ge.f32.partialorder %v1158_v39, 0.0  ;;  %v1395_v41 = vmul.f32 0.2, %v1158_v39  ;;  %v2135_v42 = vpop.f32.mrb[16].mxu1  ;;  %v2024_v43 = vpop.f32.mrb[17].mxu0  ;;  %v1426_v47 = vsel %vm1362_vm6, %v1155_v36, %v1394_v38 }
 0x11d   : > { %v2025_v44 = vadd.f32 %v2024_v43, %v2023_v40  ;;  %v2136_v45 = vpop.f32.mrb[17].mxu1  ;;  %v2026_v46 = vpop.f32.mrb[18].mxu0 }
 0x11e   : > { %v1427_v48 = vsel %vm1363_vm7, %v1158_v39, %v1395_v41  ;;  %v2137_v49 = vadd.f32 %v2136_v45, %v2135_v42  ;;  %v2138_v50 = vpop.f32.mrb[18].mxu1  ;;  %v2027_v51 = vpop.f32.mrb[19].mxu0 }
 0x11f   : > { %v1906_v52 = vpack.c.bf16 %v1427_v48, %v1426_v47  ;;  %v2028_v53 = vadd.f32 %v2027_v51, %v2026_v46  ;;  %v2139_v54 = vpop.f32.mrb[19].mxu1 }
 0x120   : > { %v1163_v55 = vadd.f32 %v2137_v49, %v2025_v44  ;;  %v2140_v56 = vadd.f32 %v2139_v54, %v2138_v50 }
 0x121   : > { %1970 = vst [vmem:[%s2591_s8 + $0x18] sm:$0xff] %v1906_v52  }
 0x122   : > { %v1396_v57 = vmul.f32 0.2, %v1163_v55  ;;  %v1166_v58 = vadd.f32 %v2140_v56, %v2028_v53  ;;  %vm1364_vm8 = vcmp.ge.f32.partialorder %v1163_v55, 0.0 }
 0x123   : > { %v2029_v59 = vpop.f32.mrb[20].mxu0 }
 0x124   : > { %vm1365_vm9 = vcmp.ge.f32.partialorder %v1166_v58, 0.0  ;;  %v1397_v60 = vmul.f32 0.2, %v1166_v58  ;;  %v2141_v61 = vpop.f32.mrb[20].mxu1  ;;  %v2030_v62 = vpop.f32.mrb[21].mxu0  ;;  %v1428_v2 = vsel %vm1364_vm8, %v1163_v55, %v1396_v57 }
 0x125   : > { %v2031_v63 = vadd.f32 %v2030_v62, %v2029_v59  ;;  %v2142_v0 = vpop.f32.mrb[21].mxu1  ;;  %v2032_v1 = vpop.f32.mrb[22].mxu0 }
 0x126   : > { %v1429_v3 = vsel %vm1365_vm9, %v1166_v58, %v1397_v60  ;;  %v2143_v4 = vadd.f32 %v2142_v0, %v2141_v61  ;;  %v2144_v5 = vpop.f32.mrb[22].mxu1  ;;  %v2033_v6 = vpop.f32.mrb[23].mxu0 }
 0x127   : > { %v1911_v7 = vpack.c.bf16 %v1429_v3, %v1428_v2  ;;  %v2034_v8 = vadd.f32 %v2033_v6, %v2032_v1  ;;  %v2145_v9 = vpop.f32.mrb[23].mxu1 }
 0x128   : > { %v1171_v10 = vadd.f32 %v2143_v4, %v2031_v63  ;;  %v2146_v11 = vadd.f32 %v2145_v9, %v2144_v5 }
 0x129   : > { %1971 = vst [vmem:[%s2591_s8 + $0x20] sm:$0xff] %v1911_v7  }
 0x12a   : > { %v1398_v12 = vmul.f32 0.2, %v1171_v10  ;;  %v1174_v13 = vadd.f32 %v2146_v11, %v2034_v8  ;;  %vm1366_vm10 = vcmp.ge.f32.partialorder %v1171_v10, 0.0 }
 0x12b   : > { %v2035_v14 = vpop.f32.mrb[24].mxu0 }
 0x12c   : > { %vm1367_vm11 = vcmp.ge.f32.partialorder %v1174_v13, 0.0  ;;  %v1399_v15 = vmul.f32 0.2, %v1174_v13  ;;  %v2147_v16 = vpop.f32.mrb[24].mxu1  ;;  %v2036_v17 = vpop.f32.mrb[25].mxu0  ;;  %v1430_v21 = vsel %vm1366_vm10, %v1171_v10, %v1398_v12 }
 0x12d   : > { %v2037_v18 = vadd.f32 %v2036_v17, %v2035_v14  ;;  %v2148_v19 = vpop.f32.mrb[25].mxu1  ;;  %v2038_v20 = vpop.f32.mrb[26].mxu0 }
 0x12e   : > { %v1431_v22 = vsel %vm1367_vm11, %v1174_v13, %v1399_v15  ;;  %v2149_v23 = vadd.f32 %v2148_v19, %v2147_v16  ;;  %v2150_v24 = vpop.f32.mrb[26].mxu1  ;;  %v2039_v25 = vpop.f32.mrb[27].mxu0 }
 0x12f   : > { %v1916_v26 = vpack.c.bf16 %v1431_v22, %v1430_v21  ;;  %v2040_v27 = vadd.f32 %v2039_v25, %v2038_v20  ;;  %v2151_v28 = vpop.f32.mrb[27].mxu1 }
 0x130   : > { %v1179_v29 = vadd.f32 %v2149_v23, %v2037_v18  ;;  %v2152_v30 = vadd.f32 %v2151_v28, %v2150_v24 }
 0x131   : > { %1972 = vst [vmem:[%s2591_s8 + $0x28] sm:$0xff] %v1916_v26  }
 0x132   : > { %v1400_v31 = vmul.f32 0.2, %v1179_v29  ;;  %v1182_v32 = vadd.f32 %v2152_v30, %v2040_v27  ;;  %vm1368_vm12 = vcmp.ge.f32.partialorder %v1179_v29, 0.0 }
 0x133   : > { %v2041_v33 = vpop.f32.mrb[28].mxu0 }
 0x134   : > { %vm1369_vm13 = vcmp.ge.f32.partialorder %v1182_v32, 0.0  ;;  %v1401_v34 = vmul.f32 0.2, %v1182_v32  ;;  %v2153_v35 = vpop.f32.mrb[28].mxu1  ;;  %v2042_v36 = vpop.f32.mrb[29].mxu0  ;;  %v1432_v40 = vsel %vm1368_vm12, %v1179_v29, %v1400_v31 }
 0x135   : > { %v2043_v37 = vadd.f32 %v2042_v36, %v2041_v33  ;;  %v2154_v38 = vpop.f32.mrb[29].mxu1  ;;  %v2044_v39 = vpop.f32.mrb[30].mxu0 }
 0x136   : > { %v1433_v41 = vsel %vm1369_vm13, %v1182_v32, %v1401_v34  ;;  %v2155_v42 = vadd.f32 %v2154_v38, %v2153_v35  ;;  %v2156_v43 = vpop.f32.mrb[30].mxu1  ;;  %v2045_v44 = vpop.f32.mrb[31].mxu0 }
 0x137   : > { %v1921_v45 = vpack.c.bf16 %v1433_v41, %v1432_v40  ;;  %v2046_v46 = vadd.f32 %v2045_v44, %v2044_v39  ;;  %v2157_v47 = vpop.f32.mrb[31].mxu1 }
 0x138   : > { %v1187_v48 = vadd.f32 %v2155_v42, %v2043_v37  ;;  %v2158_v49 = vadd.f32 %v2157_v47, %v2156_v43 }
 0x139   : > { %1973 = vst [vmem:[%s2591_s8 + $0x30] sm:$0xff] %v1921_v45  }
 0x13a   : > { %v1402_v50 = vmul.f32 0.2, %v1187_v48  ;;  %v1190_v51 = vadd.f32 %v2158_v49, %v2046_v46  ;;  %vm1370_vm14 = vcmp.ge.f32.partialorder %v1187_v48, 0.0 }
 0x13b   : > { %v2047_v52 = vpop.f32.mrb[32].mxu0 }
 0x13c   : > { %vm1371_vm15 = vcmp.ge.f32.partialorder %v1190_v51, 0.0  ;;  %v1403_v53 = vmul.f32 0.2, %v1190_v51  ;;  %v2159_v54 = vpop.f32.mrb[32].mxu1  ;;  %v2048_v55 = vpop.f32.mrb[33].mxu0  ;;  %v1434_v59 = vsel %vm1370_vm14, %v1187_v48, %v1402_v50 }
 0x13d   : > { %v2049_v56 = vadd.f32 %v2048_v55, %v2047_v52  ;;  %v2160_v57 = vpop.f32.mrb[33].mxu1  ;;  %v2050_v58 = vpop.f32.mrb[34].mxu0 }
 0x13e   : > { %v1435_v60 = vsel %vm1371_vm15, %v1190_v51, %v1403_v53  ;;  %v2161_v61 = vadd.f32 %v2160_v57, %v2159_v54  ;;  %v2162_v62 = vpop.f32.mrb[34].mxu1  ;;  %v2051_v63 = vpop.f32.mrb[35].mxu0 }
 0x13f   : > { %v1926_v0 = vpack.c.bf16 %v1435_v60, %v1434_v59  ;;  %v2052_v1 = vadd.f32 %v2051_v63, %v2050_v58  ;;  %v2163_v2 = vpop.f32.mrb[35].mxu1 }
 0x140   : > { %v1195_v3 = vadd.f32 %v2161_v61, %v2049_v56  ;;  %v2164_v4 = vadd.f32 %v2163_v2, %v2162_v62 }
 0x141   : > { %1974 = vst [vmem:[%s2591_s8 + $0x38] sm:$0xff] %v1926_v0  }
 0x142   : > { %v1404_v5 = vmul.f32 0.2, %v1195_v3  ;;  %v1198_v6 = vadd.f32 %v2164_v4, %v2052_v1  ;;  %vm1372_vm0 = vcmp.ge.f32.partialorder %v1195_v3, 0.0 }
 0x143   : > { %v2053_v7 = vpop.f32.mrb[36].mxu0 }
 0x144   : > { %vm1373_vm1 = vcmp.ge.f32.partialorder %v1198_v6, 0.0  ;;  %v1405_v8 = vmul.f32 0.2, %v1198_v6  ;;  %v2165_v9 = vpop.f32.mrb[36].mxu1  ;;  %v2054_v10 = vpop.f32.mrb[37].mxu0  ;;  %v1436_v14 = vsel %vm1372_vm0, %v1195_v3, %v1404_v5 }
 0x145   : > { %v2055_v11 = vadd.f32 %v2054_v10, %v2053_v7  ;;  %v2166_v12 = vpop.f32.mrb[37].mxu1  ;;  %v2056_v13 = vpop.f32.mrb[38].mxu0 }
 0x146   : > { %v1437_v15 = vsel %vm1373_vm1, %v1198_v6, %v1405_v8  ;;  %v2167_v16 = vadd.f32 %v2166_v12, %v2165_v9  ;;  %v2168_v17 = vpop.f32.mrb[38].mxu1  ;;  %v2057_v18 = vpop.f32.mrb[39].mxu0 }
 0x147   : > { %v1931_v19 = vpack.c.bf16 %v1437_v15, %v1436_v14  ;;  %v2058_v20 = vadd.f32 %v2057_v18, %v2056_v13  ;;  %v2169_v21 = vpop.f32.mrb[39].mxu1 }
 0x148   : > { %v1203_v22 = vadd.f32 %v2167_v16, %v2055_v11  ;;  %v2170_v23 = vadd.f32 %v2169_v21, %v2168_v17 }
 0x149   : > { %1975 = vst [vmem:[%s2591_s8 + $0x40] sm:$0xff] %v1931_v19  }
 0x14a   : > { %v1406_v24 = vmul.f32 0.2, %v1203_v22  ;;  %v1206_v25 = vadd.f32 %v2170_v23, %v2058_v20  ;;  %vm1374_vm2 = vcmp.ge.f32.partialorder %v1203_v22, 0.0 }
 0x14b   : > { %v2059_v26 = vpop.f32.mrb[40].mxu0 }
 0x14c   : > { %vm1375_vm3 = vcmp.ge.f32.partialorder %v1206_v25, 0.0  ;;  %v1407_v27 = vmul.f32 0.2, %v1206_v25  ;;  %v2171_v28 = vpop.f32.mrb[40].mxu1  ;;  %v2060_v29 = vpop.f32.mrb[41].mxu0  ;;  %v1438_v33 = vsel %vm1374_vm2, %v1203_v22, %v1406_v24 }
 0x14d   : > { %v2061_v30 = vadd.f32 %v2060_v29, %v2059_v26  ;;  %v2172_v31 = vpop.f32.mrb[41].mxu1  ;;  %v2062_v32 = vpop.f32.mrb[42].mxu0 }
 0x14e   : > { %v1439_v34 = vsel %vm1375_vm3, %v1206_v25, %v1407_v27  ;;  %v2173_v35 = vadd.f32 %v2172_v31, %v2171_v28  ;;  %v2174_v36 = vpop.f32.mrb[42].mxu1  ;;  %v2063_v37 = vpop.f32.mrb[43].mxu0 }
 0x14f   : > { %v1936_v38 = vpack.c.bf16 %v1439_v34, %v1438_v33  ;;  %v2064_v39 = vadd.f32 %v2063_v37, %v2062_v32  ;;  %v2175_v40 = vpop.f32.mrb[43].mxu1 }
 0x150   : > { %v1211_v41 = vadd.f32 %v2173_v35, %v2061_v30  ;;  %v2176_v42 = vadd.f32 %v2175_v40, %v2174_v36 }
 0x151   : > { %1976 = vst [vmem:[%s2591_s8 + $0x48] sm:$0xff] %v1936_v38  }
 0x152   : > { %v1408_v43 = vmul.f32 0.2, %v1211_v41  ;;  %v1214_v44 = vadd.f32 %v2176_v42, %v2064_v39  ;;  %vm1376_vm4 = vcmp.ge.f32.partialorder %v1211_v41, 0.0 }
 0x153   : > { %v2065_v45 = vpop.f32.mrb[44].mxu0 }
 0x154   : > { %vm1377_vm5 = vcmp.ge.f32.partialorder %v1214_v44, 0.0  ;;  %v1409_v46 = vmul.f32 0.2, %v1214_v44  ;;  %v2177_v47 = vpop.f32.mrb[44].mxu1  ;;  %v2066_v48 = vpop.f32.mrb[45].mxu0  ;;  %v1440_v52 = vsel %vm1376_vm4, %v1211_v41, %v1408_v43 }
 0x155   : > { %v2067_v49 = vadd.f32 %v2066_v48, %v2065_v45  ;;  %v2178_v50 = vpop.f32.mrb[45].mxu1  ;;  %v2068_v51 = vpop.f32.mrb[46].mxu0 }
 0x156   : > { %v1441_v53 = vsel %vm1377_vm5, %v1214_v44, %v1409_v46  ;;  %v2179_v54 = vadd.f32 %v2178_v50, %v2177_v47  ;;  %v2180_v55 = vpop.f32.mrb[46].mxu1  ;;  %v2069_v56 = vpop.f32.mrb[47].mxu0 }
 0x157   : > { %v1941_v57 = vpack.c.bf16 %v1441_v53, %v1440_v52  ;;  %v2070_v58 = vadd.f32 %v2069_v56, %v2068_v51  ;;  %v2181_v59 = vpop.f32.mrb[47].mxu1 }
 0x158   : > { %v1219_v60 = vadd.f32 %v2179_v54, %v2067_v49  ;;  %v2182_v61 = vadd.f32 %v2181_v59, %v2180_v55 }
 0x159   : > { %1977 = vst [vmem:[%s2591_s8 + $0x50] sm:$0xff] %v1941_v57  }
 0x15a   : > { %v1410_v62 = vmul.f32 0.2, %v1219_v60  ;;  %v1222_v63 = vadd.f32 %v2182_v61, %v2070_v58  ;;  %vm1378_vm6 = vcmp.ge.f32.partialorder %v1219_v60, 0.0 }
 0x15b   : > { %v2071_v0 = vpop.f32.mrb[48].mxu0 }
 0x15c   : > { %vm1379_vm7 = vcmp.ge.f32.partialorder %v1222_v63, 0.0  ;;  %v1411_v1 = vmul.f32 0.2, %v1222_v63  ;;  %v2183_v2 = vpop.f32.mrb[48].mxu1  ;;  %v2072_v3 = vpop.f32.mrb[49].mxu0  ;;  %v1442_v7 = vsel %vm1378_vm6, %v1219_v60, %v1410_v62 }
 0x15d   : > { %v2073_v4 = vadd.f32 %v2072_v3, %v2071_v0  ;;  %v2184_v5 = vpop.f32.mrb[49].mxu1  ;;  %v2074_v6 = vpop.f32.mrb[50].mxu0 }
 0x15e   : > { %v1443_v8 = vsel %vm1379_vm7, %v1222_v63, %v1411_v1  ;;  %v2185_v9 = vadd.f32 %v2184_v5, %v2183_v2  ;;  %v2186_v10 = vpop.f32.mrb[50].mxu1  ;;  %v2075_v11 = vpop.f32.mrb[51].mxu0 }
 0x15f   : > { %v1946_v12 = vpack.c.bf16 %v1443_v8, %v1442_v7  ;;  %v2076_v13 = vadd.f32 %v2075_v11, %v2074_v6  ;;  %v2187_v14 = vpop.f32.mrb[51].mxu1 }
 0x160   : > { %v1227_v15 = vadd.f32 %v2185_v9, %v2073_v4  ;;  %v2188_v16 = vadd.f32 %v2187_v14, %v2186_v10 }
 0x161   : > { %1978 = vst [vmem:[%s2591_s8 + $0x58] sm:$0xff] %v1946_v12  }
 0x162   : > { %v1412_v17 = vmul.f32 0.2, %v1227_v15  ;;  %v1230_v18 = vadd.f32 %v2188_v16, %v2076_v13  ;;  %vm1380_vm8 = vcmp.ge.f32.partialorder %v1227_v15, 0.0 }
 0x163   : > { %v2077_v19 = vpop.f32.mrb[52].mxu0 }
 0x164   : > { %vm1381_vm9 = vcmp.ge.f32.partialorder %v1230_v18, 0.0  ;;  %v1413_v20 = vmul.f32 0.2, %v1230_v18  ;;  %v2189_v21 = vpop.f32.mrb[52].mxu1  ;;  %v2078_v22 = vpop.f32.mrb[53].mxu0  ;;  %v1444_v26 = vsel %vm1380_vm8, %v1227_v15, %v1412_v17 }
 0x165   : > { %v2079_v23 = vadd.f32 %v2078_v22, %v2077_v19  ;;  %v2190_v24 = vpop.f32.mrb[53].mxu1  ;;  %v2080_v25 = vpop.f32.mrb[54].mxu0 }
 0x166   : > { %v1445_v27 = vsel %vm1381_vm9, %v1230_v18, %v1413_v20  ;;  %v2191_v28 = vadd.f32 %v2190_v24, %v2189_v21  ;;  %v2192_v29 = vpop.f32.mrb[54].mxu1  ;;  %v2081_v30 = vpop.f32.mrb[55].mxu0 }
 0x167   : > { %v1951_v31 = vpack.c.bf16 %v1445_v27, %v1444_v26  ;;  %v2082_v32 = vadd.f32 %v2081_v30, %v2080_v25  ;;  %v2193_v33 = vpop.f32.mrb[55].mxu1 }
 0x168   : > { %v1235_v34 = vadd.f32 %v2191_v28, %v2079_v23  ;;  %v2194_v35 = vadd.f32 %v2193_v33, %v2192_v29 }
 0x169   : > { %1979 = vst [vmem:[%s2591_s8 + $0x60] sm:$0xff] %v1951_v31  }
 0x16a   : > { %v1414_v36 = vmul.f32 0.2, %v1235_v34  ;;  %v1238_v37 = vadd.f32 %v2194_v35, %v2082_v32  ;;  %vm1382_vm10 = vcmp.ge.f32.partialorder %v1235_v34, 0.0 }
 0x16b   : > { %v2083_v38 = vpop.f32.mrb[56].mxu0 }
 0x16c   : > { %vm1383_vm11 = vcmp.ge.f32.partialorder %v1238_v37, 0.0  ;;  %v1415_v39 = vmul.f32 0.2, %v1238_v37  ;;  %v2195_v40 = vpop.f32.mrb[56].mxu1  ;;  %v2084_v41 = vpop.f32.mrb[57].mxu0  ;;  %v1446_v45 = vsel %vm1382_vm10, %v1235_v34, %v1414_v36 }
 0x16d   : > { %v2085_v42 = vadd.f32 %v2084_v41, %v2083_v38  ;;  %v2196_v43 = vpop.f32.mrb[57].mxu1  ;;  %v2086_v44 = vpop.f32.mrb[58].mxu0 }
 0x16e   : > { %v1447_v46 = vsel %vm1383_vm11, %v1238_v37, %v1415_v39  ;;  %v2197_v47 = vadd.f32 %v2196_v43, %v2195_v40  ;;  %v2198_v48 = vpop.f32.mrb[58].mxu1  ;;  %v2087_v49 = vpop.f32.mrb[59].mxu0 }
 0x16f   : > { %v1956_v50 = vpack.c.bf16 %v1447_v46, %v1446_v45  ;;  %v2088_v51 = vadd.f32 %v2087_v49, %v2086_v44  ;;  %v2199_v52 = vpop.f32.mrb[59].mxu1 }
 0x170   : > { %v1243_v53 = vadd.f32 %v2197_v47, %v2085_v42  ;;  %v2200_v54 = vadd.f32 %v2199_v52, %v2198_v48 }
 0x171   : > { %1980 = vst [vmem:[%s2591_s8 + $0x68] sm:$0xff] %v1956_v50  }
 0x172   : > { %v1416_v55 = vmul.f32 0.2, %v1243_v53  ;;  %v1246_v56 = vadd.f32 %v2200_v54, %v2088_v51  ;;  %vm1384_vm12 = vcmp.ge.f32.partialorder %v1243_v53, 0.0 }
 0x173   : > { %v2089_v57 = vpop.f32.mrb[60].mxu0 }
 0x174   : > { %vm1385_vm13 = vcmp.ge.f32.partialorder %v1246_v56, 0.0  ;;  %v1417_v58 = vmul.f32 0.2, %v1246_v56  ;;  %v2201_v59 = vpop.f32.mrb[60].mxu1  ;;  %v2090_v60 = vpop.f32.mrb[61].mxu0  ;;  %v1448_v0 = vsel %vm1384_vm12, %v1243_v53, %v1416_v55 }
 0x175   : > { %v2091_v61 = vadd.f32 %v2090_v60, %v2089_v57  ;;  %v2202_v62 = vpop.f32.mrb[61].mxu1  ;;  %v2092_v63 = vpop.f32.mrb[62].mxu0 }
 0x176   : > { %v1449_v1 = vsel %vm1385_vm13, %v1246_v56, %v1417_v58  ;;  %v2203_v2 = vadd.f32 %v2202_v62, %v2201_v59  ;;  %v2204_v3 = vpop.f32.mrb[62].mxu1  ;;  %v2093_v4 = vpop.f32.mrb[63].mxu0 }
 0x177   : > { %v1961_v5 = vpack.c.bf16 %v1449_v1, %v1448_v0  ;;  %v2094_v6 = vadd.f32 %v2093_v4, %v2092_v63  ;;  %v2205_v7 = vpop.f32.mrb[63].mxu1 }
 0x178   : > { %v1251_v8 = vadd.f32 %v2203_v2, %v2091_v61  ;;  %v2206_v9 = vadd.f32 %v2205_v7, %v2204_v3 }
 0x179   : > { %1981 = vst [vmem:[%s2591_s8 + $0x70] sm:$0xff] %v1961_v5  }
 0x17a   : > { %v1418_v10 = vmul.f32 0.2, %v1251_v8  ;;  %v1254_v11 = vadd.f32 %v2206_v9, %v2094_v6  ;;  %vm1386_vm14 = vcmp.ge.f32.partialorder %v1251_v8, 0.0 }
 0x17c   : > { %vm1387_vm15 = vcmp.ge.f32.partialorder %v1254_v11, 0.0  ;;  %v1419_v12 = vmul.f32 0.2, %v1254_v11  ;;  %v1450_v13 = vsel %vm1386_vm14, %v1251_v8, %v1418_v10 }
 0x17e   : > { %v1451_v14 = vsel %vm1387_vm15, %v1254_v11, %v1419_v12 }
 0x17f   : > { %v1966_v15 = vpack.c.bf16 %v1451_v14, %v1450_v13 }
 0x181   : > { %1982 = vst [vmem:[%s2591_s8 + $0x78] sm:$0xff] %v1966_v15  }
 0x182 PF: > { %s12_s11 = sadd.s32 1, %s2381_s11   ;;  %s2621_s9 = smov %s2377_s10 }
 0x183   : > { %p9_p5 = scmp.ge.s32.totalorder %s12_s11, 4   ;;  %s2622_s10 = smov %s2624_s12 }
 0x185   :  { %11 = sbr.rel (!%p9_p5) target bundleno = 2 (0x2), region = 69 }

// kernel: forward.9
= control target key start
LH: loop header
LB: loop body
LE: loop exit
PB: predicated region body
PF: predicated region fallthrough
CT: control target
= control target key end

     0   :  { %s1840_s9 = smov 0   ;;  %s1842_s10 = smov 0   ;;  %s2130_s0 = inlined_call_operand.vmem [shape: bf16[128,1024], index: 0, kind: input, shape index: {}]   ;;  %s2131_s1 = inlined_call_operand.vmem [shape: bf16[1024,128], index: 1, kind: input, shape index: {}]   ;;  %s2132_s2 = inlined_call_operand.vmem [shape: bf16[128,128], index: 2, kind: output, shape index: {}]  }
   0x1   :  { %s1844_s11 = smov 0  }
   0x2 LB: > { %s31_s12 = sadd.s32 1, %s1819_s10  ;;  %p1409_p0 = scmp.ge.s32.totalorder %s1823_s11, 1  ;;  %s1823_s11 = sphi %s1844_s11, %s12_s11   ;;  %s1819_s10 = sphi %s1842_s10, %s2134_s10   ;;  %s1815_s9 = sphi %s1840_s9, %s2133_s9  }
   0x3   : > { %p33_p1 = scmp.ge.s32.totalorder %s31_s12, 2  ;;  %p158_p2 = scmp.lt.s32.totalorder %s1823_s11, 3 }
   0x5   : > { %s2136_s12 = smov (%p33_p1, %s31_s12), 0  ;;  %p159_p3 = pnand %p1409_p0, %p158_p2 }
   0x6   : > { %v1737_v0 = vld [vmem:[%s2131_s1 + $0x40] sm:$0xff] (!%p159_p3)   ;;  %v1741_v4 = vld [vmem:[%s2131_s1 + $0x48] sm:$0xff] (!%p159_p3)   ;;  %v1745_v8 = vld [vmem:[%s2131_s1 + $0x50] sm:$0xff] (!%p159_p3)   ;;  %s1410_s21 = sshll.u32 (!%p159_p3), %s1815_s9, 3 }
   0x7   : > { %162 = sbr.rel (%p159_p3) target bundleno = 323 (0x143), region = 28  ;;  %v1738_v1 = vld [vmem:[%s2131_s1 + $0xc0] sm:$0xff] (!%p159_p3)   ;;  %1553 = vmatprep.subr.bf16.mxu0 (!%p159_p3), %v1737_v0  ;;  %v1742_v5 = vld [vmem:[%s2131_s1 + $0xc8] sm:$0xff] (!%p159_p3)   ;;  %v1746_v9 = vld [vmem:[%s2131_s1 + $0xd0] sm:$0xff] (!%p159_p3)   ;;  %p198_p4 = scmp.lt.s32.totalorder (!%p159_p3), %s1410_s21, 15 }
   0x8   : > { %v1739_v2 = vld [vmem:[%s2131_s1] sm:$0xff] (!%p159_p3)   ;;  %1593 = vmatprep.subr.bf16.mxu1 (!%p159_p3), %v1738_v1  ;;  %v1743_v6 = vld [vmem:[%s2131_s1 + $0x8] sm:$0xff] (!%p159_p3)   ;;  %v1747_v10 = vld [vmem:[%s2131_s1 + $0x10] sm:$0xff] (!%p159_p3)  }
   0x9   : > { %v1740_v3 = vld [vmem:[%s2131_s1 + $0x80] sm:$0xff] (!%p159_p3)   ;;  %1554 = vmatpush3.bf16.msra.mxu0 (!%p159_p3), %v1739_v2  ;;  %v1744_v7 = vld [vmem:[%s2131_s1 + $0x88] sm:$0xff] (!%p159_p3)   ;;  %v1748_v11 = vld [vmem:[%s2131_s1 + $0x90] sm:$0xff] (!%p159_p3)  }
   0xa   : > { %1594 = vmatpush3.bf16.msra.mxu1 (!%p159_p3), %v1740_v3  ;;  %1555 = vmatprep.subr.bf16.mxu0 (!%p159_p3), %v1741_v4  ;;  %v1749_v12 = vld [vmem:[%s2131_s1 + $0x58] sm:$0xff] (!%p159_p3)   ;;  %v1753_v16 = vld [vmem:[%s2131_s1 + $0x60] sm:$0xff] (!%p159_p3)   ;;  %v1757_v20 = vld [vmem:[%s2131_s1 + $0x68] sm:$0xff] (!%p159_p3)  }
   0xb   : > { %1595 = vmatprep.subr.bf16.mxu1 (!%p159_p3), %v1742_v5  ;;  %v1750_v13 = vld [vmem:[%s2131_s1 + $0xd8] sm:$0xff] (!%p159_p3)   ;;  %v1754_v17 = vld [vmem:[%s2131_s1 + $0xe0] sm:$0xff] (!%p159_p3)   ;;  %v1758_v21 = vld [vmem:[%s2131_s1 + $0xe8] sm:$0xff] (!%p159_p3)  }
   0xc   : > { %v1751_v14 = vld [vmem:[%s2131_s1 + $0x18] sm:$0xff] (!%p159_p3)   ;;  %v1755_v18 = vld [vmem:[%s2131_s1 + $0x20] sm:$0xff] (!%p159_p3)   ;;  %v1759_v22 = vld [vmem:[%s2131_s1 + $0x28] sm:$0xff] (!%p159_p3)  }
   0xd   : > { %1556 = vmatpush3.bf16.msra.mxu0 (!%p159_p3), %v1743_v6  ;;  %v1752_v15 = vld [vmem:[%s2131_s1 + $0x98] sm:$0xff] (!%p159_p3)   ;;  %v1756_v19 = vld [vmem:[%s2131_s1 + $0xa0] sm:$0xff] (!%p159_p3)   ;;  %v1760_v23 = vld [vmem:[%s2131_s1 + $0xa8] sm:$0xff] (!%p159_p3)  }
   0xe   : > { %1596 = vmatpush3.bf16.msra.mxu1 %v1744_v7  ;;  %1557 = vmatprep.subr.bf16.mxu0 %v1745_v8  ;;  %s2138_s21 = smov (!%p198_p4, %s1410_s21), 15  ;;  %v1761_v24 = vld [vmem:[%s2131_s1 + $0x70] sm:$0xff]   ;;  %v1765_v28 = vld [vmem:[%s2131_s1 + $0x78] sm:$0xff]   ;;  %v1769_v40 = vld [vmem:[%s2131_s1 + $0x140] sm:$0xff]  }
   0xf   : > { %1597 = vmatprep.subr.bf16.mxu1 %v1746_v9  ;;  %v1762_v25 = vld [vmem:[%s2131_s1 + $0xf0] sm:$0xff]   ;;  %s1521_s19 = sshll.u32 %s2138_s21, 5  ;;  %v1766_v29 = vld [vmem:[%s2131_s1 + $0xf8] sm:$0xff]   ;;  %v1770_v41 = vld [vmem:[%s2131_s1 + $0x1c0] sm:$0xff]  }
  0x10   : > { %v1763_v26 = vld [vmem:[%s2131_s1 + $0x30] sm:$0xff]   ;;  %s1957_s29 = scalar_lea.vmem %s2130_s0, %s1521_s19  ;;  %v1767_v30 = vld [vmem:[%s2131_s1 + $0x38] sm:$0xff]   ;;  %v1771_v42 = vld [vmem:[%s2131_s1 + $0x100] sm:$0xff]  }
  0x11   : > { %1558 = vmatpush3.bf16.msra.mxu0 %v1747_v10  ;;  %v1764_v27 = vld [vmem:[%s2131_s1 + $0xb0] sm:$0xff]   ;;  %v1768_v31 = vld [vmem:[%s2131_s1 + $0xb8] sm:$0xff]   ;;  %v247_v32 = vld [vmem:[%s1957_s29] sm:$0xff] }
  0x12   : > { %1598 = vmatpush3.bf16.msra.mxu1 %v1748_v11  ;;  %1559 = vmatprep.subr.bf16.mxu0 %v1749_v12  ;;  %v251_v33 = vld [vmem:[%s1957_s29 + $0x20] sm:$0xff]  ;;  %v248_v34 = vld [vmem:[%s1957_s29 + $0x8] sm:$0xff]  ;;  %v1777_v56 = vld [vmem:[%s2131_s1 + $0x150] sm:$0xff]  }
  0x13   : > { %1599 = vmatprep.subr.bf16.mxu1 %v1750_v13  ;;  %v1415_v35 = vcombine.low %v247_v32, %v251_v33  ;;  %v1416_v36 = vcombine.high %v247_v32, %v251_v33  ;;  %v252_v37 = vld [vmem:[%s1957_s29 + $0x28] sm:$0xff]  ;;  %v1772_v43 = vld [vmem:[%s2131_s1 + $0x180] sm:$0xff]   ;;  %v1778_v57 = vld [vmem:[%s2131_s1 + $0x1d0] sm:$0xff]  }
  0x14   : > { %v1417_v38 = vcombine.low %v248_v34, %v252_v37  ;;  %v1418_v39 = vcombine.high %v248_v34, %v252_v37  ;;  %v1773_v44 = vld [vmem:[%s2131_s1 + $0x148] sm:$0xff]   ;;  %v255_v48 = vld [vmem:[%s1957_s29 + $0x40] sm:$0xff]  ;;  %v1779_v58 = vld [vmem:[%s2131_s1 + $0x110] sm:$0xff]  }
  0x15   : > { %1560 = vmatpush3.bf16.msra.mxu0 %v1751_v14  ;;  %983 = vmatprep.mubr.bf16.mxu0 %v1416_v36  ;;  %v1774_v45 = vld [vmem:[%s2131_s1 + $0x1c8] sm:$0xff]   ;;  %v259_v49 = vld [vmem:[%s1957_s29 + $0x60] sm:$0xff]  ;;  %v1780_v59 = vld [vmem:[%s2131_s1 + $0x190] sm:$0xff]  }
  0x16   : > { %1600 = vmatpush3.bf16.msra.mxu1 %v1752_v15  ;;  %1561 = vmatprep.subr.bf16.mxu0 %v1753_v16  ;;  %v1775_v46 = vld [vmem:[%s2131_s1 + $0x108] sm:$0xff]   ;;  %v1424_v50 = vcombine.high %v255_v48, %v259_v49  ;;  %v1423_v53 = vcombine.low %v255_v48, %v259_v49  ;;  %v1781_v60 = vld [vmem:[%s2131_s1 + $0x158] sm:$0xff]   ;;  %v263_v0 = vld [vmem:[%s1957_s29 + $0x80] sm:$0xff] }
  0x17   : > { %1601 = vmatprep.subr.bf16.mxu1 %v1754_v17  ;;  %1048 = vmatprep.mubr.bf16.mxu1 %v1418_v39  ;;  %v1776_v47 = vld [vmem:[%s2131_s1 + $0x188] sm:$0xff]   ;;  %v1782_v61 = vld [vmem:[%s2131_s1 + $0x1d8] sm:$0xff]   ;;  %v267_v1 = vld [vmem:[%s1957_s29 + $0xa0] sm:$0xff] }
  0x18   : > { %v256_v51 = vld [vmem:[%s1957_s29 + $0x48] sm:$0xff]  ;;  %v1783_v62 = vld [vmem:[%s2131_s1 + $0x118] sm:$0xff]   ;;  %v1432_v4 = vcombine.high %v263_v0, %v267_v1  ;;  %v1431_v6 = vcombine.low %v263_v0, %v267_v1  ;;  %v1785_v8 = vld [vmem:[%s2131_s1 + $0x160] sm:$0xff]  }
  0x19   : > { %1562 = vmatpush3.bf16.msra.mxu0 %v1755_v18  ;;  %v260_v52 = vld [vmem:[%s1957_s29 + $0x68] sm:$0xff]  ;;  %v1784_v63 = vld [vmem:[%s2131_s1 + $0x198] sm:$0xff]   ;;  %v1786_v9 = vld [vmem:[%s2131_s1 + $0x1e0] sm:$0xff]  }
  0x1a   : > { %1602 = vmatpush3.bf16.msra.mxu1 %v1756_v19  ;;  %1563 = vmatprep.subr.bf16.mxu0 %v1757_v20  ;;  %v1426_v54 = vcombine.high %v256_v51, %v260_v52  ;;  %v1425_v55 = vcombine.low %v256_v51, %v260_v52  ;;  %v264_v2 = vld [vmem:[%s1957_s29 + $0x88] sm:$0xff]  ;;  %v1787_v10 = vld [vmem:[%s2131_s1 + $0x120] sm:$0xff]   ;;  %v249_v32 = vld [vmem:[%s1957_s29 + $0x10] sm:$0xff] }
  0x1b   : > { %1603 = vmatprep.subr.bf16.mxu1 %v1758_v21  ;;  %v268_v3 = vld [vmem:[%s1957_s29 + $0xa8] sm:$0xff]  ;;  %v1788_v11 = vld [vmem:[%s2131_s1 + $0x1a0] sm:$0xff]   ;;  %v253_v33 = vld [vmem:[%s1957_s29 + $0x30] sm:$0xff] }
  0x1c   : > { %v1434_v5 = vcombine.high %v264_v2, %v268_v3  ;;  %v1433_v7 = vcombine.low %v264_v2, %v268_v3  ;;  %v1789_v12 = vld [vmem:[%s2131_s1 + $0x168] sm:$0xff]   ;;  %v271_v16 = vld [vmem:[%s1957_s29 + $0xc0] sm:$0xff]  ;;  %v1419_v34 = vcombine.low %v249_v32, %v253_v33  ;;  %v250_v36 = vld [vmem:[%s1957_s29 + $0x18] sm:$0xff] }
  0x1d   : > { %1564 = vmatpush3.bf16.msra.mxu0 %v1759_v22  ;;  %v1790_v13 = vld [vmem:[%s2131_s1 + $0x1e8] sm:$0xff]   ;;  %v275_v17 = vld [vmem:[%s1957_s29 + $0xe0] sm:$0xff]  ;;  %v254_v37 = vld [vmem:[%s1957_s29 + $0x38] sm:$0xff] }
  0x1e   : > { %1604 = vmatpush3.bf16.msra.mxu1 %v1760_v23  ;;  %1565 = vmatprep.subr.bf16.mxu0 %v1761_v24  ;;  %v1791_v14 = vld [vmem:[%s2131_s1 + $0x128] sm:$0xff]   ;;  %v1440_v19 = vcombine.high %v271_v16, %v275_v17  ;;  %v1439_v21 = vcombine.low %v271_v16, %v275_v17  ;;  %v1793_v24 = vld [vmem:[%s2131_s1 + $0x170] sm:$0xff]   ;;  %v1421_v39 = vcombine.low %v250_v36, %v254_v37  ;;  %v266_v48 = vld [vmem:[%s1957_s29 + $0x98] sm:$0xff] }
  0x1f   : > { %1605 = vmatprep.subr.bf16.mxu1 %v1762_v25  ;;  %v1792_v15 = vld [vmem:[%s2131_s1 + $0x1a8] sm:$0xff]   ;;  %v1794_v25 = vld [vmem:[%s2131_s1 + $0x1f0] sm:$0xff]   ;;  %v270_v49 = vld [vmem:[%s1957_s29 + $0xb8] sm:$0xff] }
  0x20   : > { %v272_v18 = vld [vmem:[%s1957_s29 + $0xc8] sm:$0xff] }
  0x21   : > { %1566 = vmatpush3.bf16.msra.mxu0 %v1763_v26  ;;  %v276_v20 = vld [vmem:[%s1957_s29 + $0xe8] sm:$0xff]  ;;  %v1795_v26 = vld [vmem:[%s2131_s1 + $0x130] sm:$0xff]  }
  0x22   : > { %1606 = vmatpush3.bf16.msra.mxu1 %v1764_v27  ;;  %1567 = vmatprep.subr.bf16.mxu0 %v1765_v28  ;;  %v1442_v22 = vcombine.high %v272_v18, %v276_v20  ;;  %v1441_v23 = vcombine.low %v272_v18, %v276_v20  ;;  %v1796_v27 = vld [vmem:[%s2131_s1 + $0x1b0] sm:$0xff]   ;;  %v1797_v28 = vld [vmem:[%s2131_s1 + $0x178] sm:$0xff]  }
  0x23   : > { %1607 = vmatprep.subr.bf16.mxu1 %v1766_v29  ;;  %v1798_v29 = vld [vmem:[%s2131_s1 + $0x1f8] sm:$0xff]  }
  0x25   : > { %1568 = vmatpush3.bf16.msra.mxu0 %v1767_v30  ;;  %v1799_v30 = vld [vmem:[%s2131_s1 + $0x138] sm:$0xff]  }
  0x26   : > { %1608 = vmatpush3.bf16.msra.mxu1 %v1768_v31  ;;  %1633 = vmatprep.subr.bf16.mxu0 %v1769_v40  ;;  %v1800_v31 = vld [vmem:[%s2131_s1 + $0x1b8] sm:$0xff]   ;;  %v1422_v40 = vcombine.high %v250_v36, %v254_v37 }
  0x27   : > { %1673 = vmatprep.subr.bf16.mxu1 %v1770_v41  ;;  %v261_v41 = vld [vmem:[%s1957_s29 + $0x70] sm:$0xff] }
  0x28   : > { %984 = vmatmul.mubr.bf16.vlgmr.msra.gmra.mrb[0].mxu0 %v1415_v35  ;;  %v1420_v35 = vcombine.high %v249_v32, %v253_v33 }
  0x29   : > { %1049 = vmatmul.mubr.bf16.vlgmr.msra.gmra.mrb[0].mxu1 %v1417_v38  ;;  %1634 = vmatpush3.bf16.msra.mxu0 %v1771_v42  ;;  %v257_v38 = vld [vmem:[%s1957_s29 + $0x50] sm:$0xff]  ;;  %v258_v42 = vld [vmem:[%s1957_s29 + $0x58] sm:$0xff] }
  0x2a   : > { %1674 = vmatpush3.bf16.msra.mxu1 %v1772_v43  ;;  %1635 = vmatprep.subr.bf16.mxu0 %v1773_v44  ;;  %v262_v43 = vld [vmem:[%s1957_s29 + $0x78] sm:$0xff]  ;;  %v1428_v44 = vcombine.high %v257_v38, %v261_v41 }
  0x2b   : > { %1675 = vmatprep.subr.bf16.mxu1 %v1774_v45  ;;  %991 = vmatprep.mubr.bf16.mxu0 %v1424_v50  ;;  %v1430_v45 = vcombine.high %v258_v42, %v262_v43  ;;  %v1427_v50 = vcombine.low %v257_v38, %v261_v41  ;;  %v1429_v51 = vcombine.low %v258_v42, %v262_v43 }
  0x2c   : > { %1056 = vmatprep.mubr.bf16.mxu1 %v1426_v54  ;;  %v273_v54 = vld [vmem:[%s1957_s29 + $0xd0] sm:$0xff] }
  0x2d   : > { %1636 = vmatpush3.bf16.msra.mxu0 %v1775_v46  ;;  %v265_v46 = vld [vmem:[%s1957_s29 + $0x90] sm:$0xff] }
  0x2e   : > { %1676 = vmatpush3.bf16.msra.mxu1 %v1776_v47  ;;  %1637 = vmatprep.subr.bf16.mxu0 %v1777_v56  ;;  %v269_v47 = vld [vmem:[%s1957_s29 + $0xb0] sm:$0xff]  ;;  %v274_v56 = vld [vmem:[%s1957_s29 + $0xd8] sm:$0xff] }
  0x2f   : > { %1677 = vmatprep.subr.bf16.mxu1 %v1778_v57  ;;  %v1436_v52 = vcombine.high %v265_v46, %v269_v47  ;;  %v278_v57 = vld [vmem:[%s1957_s29 + $0xf8] sm:$0xff] }
  0x30   : > { %992 = vmatmul.mubr.bf16.gmra.mrb[4].mxu0 %v1423_v53  ;;  %v1438_v53 = vcombine.high %v266_v48, %v270_v49 }
  0x31   : > { %1057 = vmatmul.mubr.bf16.gmra.mrb[4].mxu1 %v1425_v55  ;;  %1638 = vmatpush3.bf16.msra.mxu0 %v1779_v58  ;;  %v277_v55 = vld [vmem:[%s1957_s29 + $0xf0] sm:$0xff]  ;;  %v1435_v58 = vcombine.low %v265_v46, %v269_v47  ;;  %s1414_s29 = sshll.u32 %s2138_s21, 2 }
  0x32   : > { %1678 = vmatpush3.bf16.msra.mxu1 %v1780_v59  ;;  %1639 = vmatprep.subr.bf16.mxu0 %v1781_v60  ;;  %v1437_v59 = vcombine.low %v266_v48, %v270_v49  ;;  %v1444_v60 = vcombine.high %v273_v54, %v277_v55  ;;  %s2109_s30 = scalar_lea.vmem %s2132_s2, %s1414_s29 }
  0x33   : > { %1679 = vmatprep.subr.bf16.mxu1 %v1782_v61  ;;  %999 = vmatprep.mubr.bf16.mxu0 %v1432_v4  ;;  %v1446_v61 = vcombine.high %v274_v56, %v278_v57 }
  0x34   : > { %1064 = vmatprep.mubr.bf16.mxu1 %v1434_v5 }
  0x35   : > { %1640 = vmatpush3.bf16.msra.mxu0 %v1783_v62  ;;  %v1443_v62 = vcombine.low %v273_v54, %v277_v55 }
  0x36   : > { %1680 = vmatpush3.bf16.msra.mxu1 %v1784_v63  ;;  %1641 = vmatprep.subr.bf16.mxu0 %v1785_v8  ;;  %v1445_v63 = vcombine.low %v274_v56, %v278_v57 }
  0x37   : > { %1681 = vmatprep.subr.bf16.mxu1 %v1786_v9 }
  0x38   : > { %1000 = vmatmul.mubr.bf16.gmra.mrb[8].mxu0 %v1431_v6 }
  0x39   : > { %1065 = vmatmul.mubr.bf16.gmra.mrb[8].mxu1 %v1433_v7  ;;  %1642 = vmatpush3.bf16.msra.mxu0 %v1787_v10 }
  0x3a   : > { %1682 = vmatpush3.bf16.msra.mxu1 %v1788_v11  ;;  %1643 = vmatprep.subr.bf16.mxu0 %v1789_v12 }
  0x3b   : > { %1683 = vmatprep.subr.bf16.mxu1 %v1790_v13  ;;  %1007 = vmatprep.mubr.bf16.mxu0 %v1440_v19 }
  0x3c   : > { %1072 = vmatprep.mubr.bf16.mxu1 %v1442_v22 }
  0x3d   : > { %1644 = vmatpush3.bf16.msra.mxu0 %v1791_v14 }
  0x3e   : > { %1684 = vmatpush3.bf16.msra.mxu1 %v1792_v15  ;;  %1645 = vmatprep.subr.bf16.mxu0 %v1793_v24 }
  0x3f   : > { %1685 = vmatprep.subr.bf16.mxu1 %v1794_v25 }
  0x40   : > { %1008 = vmatmul.mubr.bf16.gmra.mrb[12].mxu0 %v1439_v21 }
  0x41   : > { %1073 = vmatmul.mubr.bf16.gmra.mrb[12].mxu1 %v1441_v23  ;;  %1646 = vmatpush3.bf16.msra.mxu0 %v1795_v26 }
  0x42   : > { %1686 = vmatpush3.bf16.msra.mxu1 %v1796_v27  ;;  %1647 = vmatprep.subr.bf16.mxu0 %v1797_v28 }
  0x43   : > { %1687 = vmatprep.subr.bf16.mxu1 %v1798_v29  ;;  %1113 = vmatprep.mubr.bf16.mxu0 %v1420_v35 }
  0x44   : > { %1178 = vmatprep.mubr.bf16.mxu1 %v1422_v40 }
  0x45   : > { %1648 = vmatpush3.bf16.msra.mxu0 %v1799_v30 }
  0x46   : > { %1688 = vmatpush3.bf16.msra.mxu1 %v1800_v31 }
  0x48   : > { %1114 = vmatmul.mubr.bf16.vlgmr.msra.gmra.mrb[16].mxu0 %v1419_v34 }
  0x49   : > { %1179 = vmatmul.mubr.bf16.vlgmr.msra.gmra.mrb[16].mxu1 %v1421_v39  ;;  %1121 = vmatprep.mubr.bf16.mxu0 %v1428_v44 }
  0x4a   : > { %1186 = vmatprep.mubr.bf16.mxu1 %v1430_v45 }
  0x50   : > { %1122 = vmatmul.mubr.bf16.gmra.mrb[20].mxu0 %v1427_v50 }
  0x51   : > { %1187 = vmatmul.mubr.bf16.gmra.mrb[20].mxu1 %v1429_v51  ;;  %1129 = vmatprep.mubr.bf16.mxu0 %v1436_v52 }
  0x52   : > { %1194 = vmatprep.mubr.bf16.mxu1 %v1438_v53 }
  0x58   : > { %1130 = vmatmul.mubr.bf16.gmra.mrb[24].mxu0 %v1435_v58 }
  0x59   : > { %1195 = vmatmul.mubr.bf16.gmra.mrb[24].mxu1 %v1437_v59  ;;  %1137 = vmatprep.mubr.bf16.mxu0 %v1444_v60 }
  0x5a   : > { %1202 = vmatprep.mubr.bf16.mxu1 %v1446_v61 }
  0x60   : > { %1138 = vmatmul.mubr.bf16.gmra.mrb[28].mxu0 %v1443_v62 }
  0x61   : > { %1203 = vmatmul.mubr.bf16.gmra.mrb[28].mxu1 %v1445_v63 }
  0xfb   : > { %v1569_v0 = vpop.f32.mrb[0].mxu0 }
  0xfc   : > { %v1609_v1 = vpop.f32.mrb[0].mxu1  ;;  %v1570_v2 = vpop.f32.mrb[1].mxu0 }
  0xfd   : > { %v1571_v3 = vadd.f32 %v1570_v2, %v1569_v0  ;;  %v1610_v4 = vpop.f32.mrb[1].mxu1  ;;  %v1572_v5 = vpop.f32.mrb[2].mxu0 }
  0xfe   : > { %v1611_v6 = vadd.f32 %v1610_v4, %v1609_v1  ;;  %v1612_v7 = vpop.f32.mrb[2].mxu1  ;;  %v1573_v8 = vpop.f32.mrb[3].mxu0 }
  0xff   : > { %v1574_v9 = vadd.f32 %v1573_v8, %v1572_v5  ;;  %v1613_v10 = vpop.f32.mrb[3].mxu1 }
 0x100   : > { %v1051_v11 = vadd.f32 %v1611_v6, %v1571_v3  ;;  %v1614_v12 = vadd.f32 %v1613_v10, %v1612_v7 }
 0x102   : > { %v1054_v13 = vadd.f32 %v1614_v12, %v1574_v9 }
 0x103   : > { %v1575_v14 = vpop.f32.mrb[4].mxu0 }
 0x104   : > { %v1615_v15 = vpop.f32.mrb[4].mxu1  ;;  %v1576_v16 = vpop.f32.mrb[5].mxu0 }
 0x105   : > { %v1577_v17 = vadd.f32 %v1576_v16, %v1575_v14  ;;  %v1616_v18 = vpop.f32.mrb[5].mxu1  ;;  %v1578_v19 = vpop.f32.mrb[6].mxu0 }
 0x106   : > { %v1617_v20 = vadd.f32 %v1616_v18, %v1615_v15  ;;  %v1618_v21 = vpop.f32.mrb[6].mxu1  ;;  %v1579_v22 = vpop.f32.mrb[7].mxu0 }
 0x107   : > { %v1580_v23 = vadd.f32 %v1579_v22, %v1578_v19  ;;  %v1619_v24 = vpop.f32.mrb[7].mxu1 }
 0x108   : > { %v2093_v25 = vadd.f32 %v1617_v20, %v1577_v17  ;;  %v1620_v26 = vadd.f32 %v1619_v24, %v1618_v21 }
 0x10a   : > { %v2095_v27 = vadd.f32 %v1620_v26, %v1580_v23 }
 0x10b   : > { %v1581_v28 = vpop.f32.mrb[8].mxu0 }
 0x10c   : > { %v1621_v29 = vpop.f32.mrb[8].mxu1  ;;  %v1582_v30 = vpop.f32.mrb[9].mxu0 }
 0x10d   : > { %v1622_v31 = vpop.f32.mrb[9].mxu1  ;;  %v1583_v32 = vadd.f32 %v1582_v30, %v1581_v28  ;;  %v1584_v34 = vpop.f32.mrb[10].mxu0 }
 0x10e   : > { %v1623_v33 = vadd.f32 %v1622_v31, %v1621_v29  ;;  %v1624_v35 = vpop.f32.mrb[10].mxu1  ;;  %v1585_v36 = vpop.f32.mrb[11].mxu0 }
 0x10f   : > { %v1625_v37 = vpop.f32.mrb[11].mxu1  ;;  %v1586_v39 = vadd.f32 %v1585_v36, %v1584_v34 }
 0x110   : > { %v2097_v38 = vadd.f32 %v1623_v33, %v1583_v32  ;;  %v1626_v40 = vadd.f32 %v1625_v37, %v1624_v35 }
 0x112   : > { %v2099_v41 = vadd.f32 %v1626_v40, %v1586_v39 }
 0x113   : > { %v1587_v42 = vpop.f32.mrb[12].mxu0 }
 0x114   : > { %v1627_v43 = vpop.f32.mrb[12].mxu1  ;;  %v1588_v44 = vpop.f32.mrb[13].mxu0 }
 0x115   : > { %v1589_v45 = vadd.f32 %v1588_v44, %v1587_v42  ;;  %v1628_v46 = vpop.f32.mrb[13].mxu1  ;;  %v1590_v47 = vpop.f32.mrb[14].mxu0 }
 0x116   : > { %v1629_v48 = vadd.f32 %v1628_v46, %v1627_v43  ;;  %v1630_v49 = vpop.f32.mrb[14].mxu1  ;;  %v1591_v50 = vpop.f32.mrb[15].mxu0 }
 0x117   : > { %v1592_v51 = vadd.f32 %v1591_v50, %v1590_v47  ;;  %v1631_v52 = vpop.f32.mrb[15].mxu1 }
 0x118   : > { %v2101_v53 = vadd.f32 %v1629_v48, %v1589_v45  ;;  %v1632_v54 = vadd.f32 %v1631_v52, %v1630_v49 }
 0x11a   : > { %v2103_v55 = vadd.f32 %v1632_v54, %v1592_v51 }
 0x11b   : > { %v1649_v56 = vpop.f32.mrb[16].mxu0 }
 0x11c   : > { %v1689_v57 = vpop.f32.mrb[16].mxu1  ;;  %v1650_v58 = vpop.f32.mrb[17].mxu0 }
 0x11d   : > { %v1651_v59 = vadd.f32 %v1650_v58, %v1649_v56  ;;  %v1690_v60 = vpop.f32.mrb[17].mxu1  ;;  %v1652_v61 = vpop.f32.mrb[18].mxu0 }
 0x11e   : > { %v1691_v62 = vadd.f32 %v1690_v60, %v1689_v57  ;;  %v1692_v63 = vpop.f32.mrb[18].mxu1  ;;  %v1653_v0 = vpop.f32.mrb[19].mxu0 }
 0x11f   : > { %v1116_v1 = vadd.f32 %v1651_v59, %v1051_v11  ;;  %v1654_v2 = vadd.f32 %v1653_v0, %v1652_v61  ;;  %v1693_v3 = vpop.f32.mrb[19].mxu1 }
 0x120   : > { %v1694_v4 = vadd.f32 %v1693_v3, %v1692_v63 }
 0x121   : > { %v1181_v5 = vadd.f32 %v1691_v62, %v1116_v1  ;;  %v1119_v6 = vadd.f32 %v1654_v2, %v1054_v13 }
 0x123   : > { %v1246_v7 = vmul.f32 0.2, %v1181_v5  ;;  %v1184_v8 = vadd.f32 %v1694_v4, %v1119_v6  ;;  %v1655_v9 = vpop.f32.mrb[20].mxu0  ;;  %vm1238_vm0 = vcmp.ge.f32.partialorder %v1181_v5, 0.0 }
 0x124   : > { %v1695_v10 = vpop.f32.mrb[20].mxu1  ;;  %v1656_v12 = vpop.f32.mrb[21].mxu0 }
 0x125   : > { %vm1239_vm1 = vcmp.ge.f32.partialorder %v1184_v8, 0.0  ;;  %v1247_v14 = vmul.f32 0.2, %v1184_v8  ;;  %v1657_v15 = vadd.f32 %v1656_v12, %v1655_v9  ;;  %v1696_v16 = vpop.f32.mrb[21].mxu1  ;;  %v1658_v17 = vpop.f32.mrb[22].mxu0  ;;  %v1254_v20 = vsel %vm1238_vm0, %v1181_v5, %v1246_v7 }
 0x126   : > { %v1697_v18 = vadd.f32 %v1696_v16, %v1695_v10  ;;  %v1698_v19 = vpop.f32.mrb[22].mxu1  ;;  %v1659_v11 = vpop.f32.mrb[23].mxu0 }
 0x127   : > { %v1255_v13 = vsel %vm1239_vm1, %v1184_v8, %v1247_v14  ;;  %v1124_v21 = vadd.f32 %v1657_v15, %v2093_v25  ;;  %v1660_v22 = vadd.f32 %v1659_v11, %v1658_v17  ;;  %v1699_v23 = vpop.f32.mrb[23].mxu1 }
 0x128   : > { %v1533_v24 = vpack.c.bf16 %v1255_v13, %v1254_v20  ;;  %v1700_v26 = vadd.f32 %v1699_v23, %v1698_v19 }
 0x129   : > { %v1189_v28 = vadd.f32 %v1697_v18, %v1124_v21  ;;  %v1127_v29 = vadd.f32 %v1660_v22, %v2095_v27 }
 0x12a   : > { %1534 = vst [vmem:[%s2109_s30] sm:$0xff] %v1533_v24  }
 0x12b   : > { %v1248_v30 = vmul.f32 0.2, %v1189_v28  ;;  %v1192_v31 = vadd.f32 %v1700_v26, %v1127_v29  ;;  %v1661_v32 = vpop.f32.mrb[24].mxu0  ;;  %vm1240_vm2 = vcmp.ge.f32.partialorder %v1189_v28, 0.0 }
 0x12c   : > { %v1701_v33 = vpop.f32.mrb[24].mxu1  ;;  %v1662_v34 = vpop.f32.mrb[25].mxu0 }
 0x12d   : > { %vm1241_vm3 = vcmp.ge.f32.partialorder %v1192_v31, 0.0  ;;  %v1249_v35 = vmul.f32 0.2, %v1192_v31  ;;  %v1663_v36 = vadd.f32 %v1662_v34, %v1661_v32  ;;  %v1702_v37 = vpop.f32.mrb[25].mxu1  ;;  %v1664_v25 = vpop.f32.mrb[26].mxu0  ;;  %v1256_v43 = vsel %vm1240_vm2, %v1189_v28, %v1248_v30 }
 0x12e   : > { %v1703_v39 = vadd.f32 %v1702_v37, %v1701_v33  ;;  %v1704_v40 = vpop.f32.mrb[26].mxu1  ;;  %v1665_v42 = vpop.f32.mrb[27].mxu0 }
 0x12f   : > { %v1257_v44 = vsel %vm1241_vm3, %v1192_v31, %v1249_v35  ;;  %v1132_v27 = vadd.f32 %v1663_v36, %v2097_v38  ;;  %v1666_v45 = vadd.f32 %v1665_v42, %v1664_v25  ;;  %v1705_v46 = vpop.f32.mrb[27].mxu1 }
 0x130   : > { %v1538_v47 = vpack.c.bf16 %v1257_v44, %v1256_v43  ;;  %v1706_v48 = vadd.f32 %v1705_v46, %v1704_v40 }
 0x131   : > { %v1197_v49 = vadd.f32 %v1703_v39, %v1132_v27  ;;  %v1135_v50 = vadd.f32 %v1666_v45, %v2099_v41 }
 0x132   : > { %1550 = vst [vmem:[%s2109_s30 + $0x8] sm:$0xff] %v1538_v47  }
 0x133   : > { %v1250_v51 = vmul.f32 0.2, %v1197_v49  ;;  %v1200_v52 = vadd.f32 %v1706_v48, %v1135_v50  ;;  %v1667_v54 = vpop.f32.mrb[28].mxu0  ;;  %vm1242_vm4 = vcmp.ge.f32.partialorder %v1197_v49, 0.0 }
 0x134   : > { %v1707_v56 = vpop.f32.mrb[28].mxu1  ;;  %v1668_v57 = vpop.f32.mrb[29].mxu0 }
 0x135   : > { %vm1243_vm5 = vcmp.ge.f32.partialorder %v1200_v52, 0.0  ;;  %v1251_v58 = vmul.f32 0.2, %v1200_v52  ;;  %v1669_v59 = vadd.f32 %v1668_v57, %v1667_v54  ;;  %v1708_v60 = vpop.f32.mrb[29].mxu1  ;;  %v1670_v38 = vpop.f32.mrb[30].mxu0  ;;  %v1258_v0 = vsel %vm1242_vm4, %v1197_v49, %v1250_v51 }
 0x136   : > { %v1709_v61 = vadd.f32 %v1708_v60, %v1707_v56  ;;  %v1710_v62 = vpop.f32.mrb[30].mxu1  ;;  %v1671_v63 = vpop.f32.mrb[31].mxu0 }
 0x137   : > { %v1259_v1 = vsel %vm1243_vm5, %v1200_v52, %v1251_v58  ;;  %v1140_v41 = vadd.f32 %v1669_v59, %v2101_v53  ;;  %v1672_v2 = vadd.f32 %v1671_v63, %v1670_v38  ;;  %v1711_v3 = vpop.f32.mrb[31].mxu1 }
 0x138   : > { %v1543_v4 = vpack.c.bf16 %v1259_v1, %v1258_v0  ;;  %v1712_v5 = vadd.f32 %v1711_v3, %v1710_v62 }
 0x139   : > { %v1205_v6 = vadd.f32 %v1709_v61, %v1140_v41  ;;  %v1143_v7 = vadd.f32 %v1672_v2, %v2103_v55 }
 0x13a   : > { %1551 = vst [vmem:[%s2109_s30 + $0x10] sm:$0xff] %v1543_v4  }
 0x13b   : > { %v1252_v8 = vmul.f32 0.2, %v1205_v6  ;;  %v1208_v9 = vadd.f32 %v1712_v5, %v1143_v7  ;;  %vm1244_vm6 = vcmp.ge.f32.partialorder %v1205_v6, 0.0 }
 0x13d   : > { %vm1245_vm7 = vcmp.ge.f32.partialorder %v1208_v9, 0.0  ;;  %v1253_v10 = vmul.f32 0.2, %v1208_v9  ;;  %v1260_v12 = vsel %vm1244_vm6, %v1205_v6, %v1252_v8 }
 0x13f   : > { %v1261_v14 = vsel %vm1245_vm7, %v1208_v9, %v1253_v10 }
 0x140   : > { %v1548_v15 = vpack.c.bf16 %v1261_v14, %v1260_v12 }
 0x142   : > { %1552 = vst [vmem:[%s2109_s30 + $0x18] sm:$0xff] %v1548_v15  }
 0x143 PF: > { %s12_s11 = sadd.s32 1, %s1823_s11   ;;  %s2133_s9 = smov %s1819_s10 }
 0x144   : > { %p9_p5 = scmp.ge.s32.totalorder %s12_s11, 4   ;;  %s2134_s10 = smov %s2136_s12 }
 0x146   :  { %11 = sbr.rel (!%p9_p5) target bundleno = 2 (0x2), region = 69 }

// kernel: forward.10
= control target key start
LH: loop header
LB: loop body
LE: loop exit
PB: predicated region body
PF: predicated region fallthrough
CT: control target
= control target key end

     0   :  { %s3149_s9 = smov 0   ;;  %s3151_s10 = smov 0   ;;  %s4023_s0 = inlined_call_operand.vmem [shape: bf16[32,2048], index: 0, kind: input, shape index: {}]   ;;  %s4024_s1 = inlined_call_operand.vmem [shape: bf16[2048,256], index: 1, kind: input, shape index: {}]   ;;  %s4025_s2 = inlined_call_operand.vmem [shape: bf16[32,256], index: 2, kind: output, shape index: {}]  }
   0x1   :  { %s3153_s11 = smov 0  }
   0x2 LB: > { %s31_s12 = sadd.s32 1, %s3128_s10  ;;  %p2387_p0 = scmp.ge.s32.totalorder %s3132_s11, 1  ;;  %s3132_s11 = sphi %s3153_s11, %s12_s11   ;;  %s3128_s10 = sphi %s3151_s10, %s4027_s10   ;;  %s3124_s9 = sphi %s3149_s9, %s4026_s9  }
   0x3   : > { %p33_p1 = scmp.ge.s32.totalorder %s31_s12, 2  ;;  %p161_p2 = scmp.lt.s32.totalorder %s3132_s11, 3 }
   0x5   : > { %s4029_s12 = smov (%p33_p1, %s31_s12), 0  ;;  %p162_p3 = pnand %p2387_p0, %p161_p2 }
   0x6   : > { %v2726_v0 = vld [vmem:[%s4024_s1 + $0x4] ss:$8 sps:$4 sm:$0xff] (!%p162_p3)   ;;  %v2730_v2 = vld [vmem:[%s4024_s1] ss:$8 sps:$4 sm:$0xff] (!%p162_p3)   ;;  %v2732_v4 = vld [vmem:[%s4024_s1 + $0x14] ss:$8 sps:$4 sm:$0xff] (!%p162_p3)  }
   0x7   : > { %165 = sbr.rel (%p162_p3) target bundleno = 487 (0x1e7), region = 28  ;;  %v2728_v1 = vld [vmem:[%s4024_s1 + $0x404] ss:$8 sps:$4 sm:$0xff] (!%p162_p3)   ;;  %1883 = vmatprep.subr.bf16.mxu1 (!%p162_p3), %v2726_v0  ;;  %v2731_v3 = vld [vmem:[%s4024_s1 + $0x400] ss:$8 sps:$4 sm:$0xff] (!%p162_p3)   ;;  %s2388_s25 = sshll.u32 (!%p162_p3), %s3124_s9, 1 }
   0x8   : > { %2055 = vmatprep.subr.bf16.mxu0 (!%p162_p3), %v2728_v1  ;;  %1884 = vmatpush1.bf16.msra.mxu1 (!%p162_p3), %v2730_v2  ;;  %v2734_v5 = vld [vmem:[%s4024_s1 + $0x414] ss:$8 sps:$4 sm:$0xff] (!%p162_p3)   ;;  %v2736_v6 = vld [vmem:[%s4024_s1 + $0x10] ss:$8 sps:$4 sm:$0xff] (!%p162_p3)   ;;  %v2738_v8 = vld [vmem:[%s4024_s1 + $0x24] ss:$8 sps:$4 sm:$0xff] (!%p162_p3)  }
   0x9   : > { %2056 = vmatpush1.bf16.msra.mxu0 (!%p162_p3), %v2731_v3  ;;  %1885 = vmatprep.subr.bf16.mxu1 (!%p162_p3), %v2732_v4  ;;  %v2737_v7 = vld [vmem:[%s4024_s1 + $0x410] ss:$8 sps:$4 sm:$0xff] (!%p162_p3)   ;;  %v2740_v9 = vld [vmem:[%s4024_s1 + $0x424] ss:$8 sps:$4 sm:$0xff] (!%p162_p3)   ;;  %v2742_v10 = vld [vmem:[%s4024_s1 + $0x20] ss:$8 sps:$4 sm:$0xff] (!%p162_p3)  }
   0xa   : > { %2057 = vmatprep.subr.bf16.mxu0 (!%p162_p3), %v2734_v5  ;;  %v2743_v11 = vld [vmem:[%s4024_s1 + $0x420] ss:$8 sps:$4 sm:$0xff] (!%p162_p3)   ;;  %v2744_v12 = vld [vmem:[%s4024_s1 + $0x34] ss:$8 sps:$4 sm:$0xff] (!%p162_p3)   ;;  %v2748_v14 = vld [vmem:[%s4024_s1 + $0x30] ss:$8 sps:$4 sm:$0xff] (!%p162_p3)  }
   0xb   : > { %v2746_v13 = vld [vmem:[%s4024_s1 + $0x434] ss:$8 sps:$4 sm:$0xff] (!%p162_p3)   ;;  %v2749_v15 = vld [vmem:[%s4024_s1 + $0x430] ss:$8 sps:$4 sm:$0xff] (!%p162_p3)   ;;  %v2750_v16 = vld [vmem:[%s4024_s1 + $0x44] ss:$8 sps:$4 sm:$0xff] (!%p162_p3)  }
   0xc   : > { %1886 = vmatpush1.bf16.msra.mxu1 (!%p162_p3), %v2736_v6  ;;  %v2752_v17 = vld [vmem:[%s4024_s1 + $0x444] ss:$8 sps:$4 sm:$0xff] (!%p162_p3)   ;;  %v2754_v18 = vld [vmem:[%s4024_s1 + $0x40] ss:$8 sps:$4 sm:$0xff] (!%p162_p3)   ;;  %v2756_v20 = vld [vmem:[%s4024_s1 + $0x54] ss:$8 sps:$4 sm:$0xff] (!%p162_p3)  }
   0xd   : > { %2058 = vmatpush1.bf16.msra.mxu0 (!%p162_p3), %v2737_v7  ;;  %1887 = vmatprep.subr.bf16.mxu1 (!%p162_p3), %v2738_v8  ;;  %v2755_v19 = vld [vmem:[%s4024_s1 + $0x440] ss:$8 sps:$4 sm:$0xff] (!%p162_p3)   ;;  %v2758_v21 = vld [vmem:[%s4024_s1 + $0x454] ss:$8 sps:$4 sm:$0xff] (!%p162_p3)   ;;  %v2760_v22 = vld [vmem:[%s4024_s1 + $0x50] ss:$8 sps:$4 sm:$0xff] (!%p162_p3)  }
   0xe   : > { %2059 = vmatprep.subr.bf16.mxu0 %v2740_v9  ;;  %v2761_v23 = vld [vmem:[%s4024_s1 + $0x450] ss:$8 sps:$4 sm:$0xff]   ;;  %v2762_v24 = vld [vmem:[%s4024_s1 + $0x64] ss:$8 sps:$4 sm:$0xff]   ;;  %v2766_v26 = vld [vmem:[%s4024_s1 + $0x60] ss:$8 sps:$4 sm:$0xff]  }
   0xf   : > { %v2764_v25 = vld [vmem:[%s4024_s1 + $0x464] ss:$8 sps:$4 sm:$0xff]   ;;  %v2767_v27 = vld [vmem:[%s4024_s1 + $0x460] ss:$8 sps:$4 sm:$0xff]   ;;  %v2768_v28 = vld [vmem:[%s4024_s1 + $0x74] ss:$8 sps:$4 sm:$0xff]  }
  0x10   : > { %1888 = vmatpush1.bf16.msra.mxu1 %v2742_v10  ;;  %v2770_v29 = vld [vmem:[%s4024_s1 + $0x474] ss:$8 sps:$4 sm:$0xff]   ;;  %v2772_v30 = vld [vmem:[%s4024_s1 + $0x70] ss:$8 sps:$4 sm:$0xff]   ;;  %v2774_v32 = vld [vmem:[%s4024_s1 + $0x84] ss:$8 sps:$4 sm:$0xff]  }
  0x11   : > { %2060 = vmatpush1.bf16.msra.mxu0 %v2743_v11  ;;  %1889 = vmatprep.subr.bf16.mxu1 %v2744_v12  ;;  %v2773_v31 = vld [vmem:[%s4024_s1 + $0x470] ss:$8 sps:$4 sm:$0xff]   ;;  %p205_p4 = scmp.lt.s32.totalorder %s2388_s25, 3  ;;  %v2776_v33 = vld [vmem:[%s4024_s1 + $0x484] ss:$8 sps:$4 sm:$0xff]  }
  0x12   : > { %2061 = vmatprep.subr.bf16.mxu0 %v2746_v13  ;;  %v2778_v34 = vld [vmem:[%s4024_s1 + $0x80] ss:$8 sps:$4 sm:$0xff]   ;;  %v2780_v36 = vld [vmem:[%s4024_s1 + $0x94] ss:$8 sps:$4 sm:$0xff]   ;;  %v2784_v38 = vld [vmem:[%s4024_s1 + $0x90] ss:$8 sps:$4 sm:$0xff]  }
  0x13   : > { %v2779_v35 = vld [vmem:[%s4024_s1 + $0x480] ss:$8 sps:$4 sm:$0xff]   ;;  %s4031_s25 = smov (!%p205_p4, %s2388_s25), 3  ;;  %v2782_v37 = vld [vmem:[%s4024_s1 + $0x494] ss:$8 sps:$4 sm:$0xff]  }
  0x14   : > { %1890 = vmatpush1.bf16.msra.mxu1 %v2748_v14  ;;  %v2785_v39 = vld [vmem:[%s4024_s1 + $0x490] ss:$8 sps:$4 sm:$0xff]   ;;  %v2786_v40 = vld [vmem:[%s4024_s1 + $0xa4] ss:$8 sps:$4 sm:$0xff]   ;;  %s2670_s23 = sshll.u32 %s4031_s25, 6  ;;  %s2671_s14 = sshll.u32 %s4031_s25, 3 }
  0x15   : > { %2062 = vmatpush1.bf16.msra.mxu0 %v2749_v15  ;;  %1891 = vmatprep.subr.bf16.mxu1 %v2750_v16  ;;  %v2788_v41 = vld [vmem:[%s4024_s1 + $0x4a4] ss:$8 sps:$4 sm:$0xff]   ;;  %v2790_v42 = vld [vmem:[%s4024_s1 + $0xa0] ss:$8 sps:$4 sm:$0xff]   ;;  %s3308_s5 = scalar_lea.vmem %s4023_s0, %s2670_s23  ;;  %v2792_v44 = vld [vmem:[%s4024_s1 + $0xb4] ss:$8 sps:$4 sm:$0xff]   ;;  %s236_s17 = scalar_lea.vmem %s4025_s2, %s2671_s14 }
  0x16   : > { %2063 = vmatprep.subr.bf16.mxu0 %v2752_v17  ;;  %v2791_v43 = vld [vmem:[%s4024_s1 + $0x4a0] ss:$8 sps:$4 sm:$0xff]   ;;  %v2794_v45 = vld [vmem:[%s4024_s1 + $0x4b4] ss:$8 sps:$4 sm:$0xff]   ;;  %v2796_v46 = vld [vmem:[%s4024_s1 + $0xb0] ss:$8 sps:$4 sm:$0xff]  }
  0x17   : > { %v2797_v47 = vld [vmem:[%s4024_s1 + $0x4b0] ss:$8 sps:$4 sm:$0xff]   ;;  %v251_v48 = vld [vmem:[%s3308_s5] sm:$0xff]  ;;  %v2804_v58 = vld [vmem:[%s4024_s1 + $0xd4] ss:$8 sps:$4 sm:$0xff]  }
  0x18   : > { %1892 = vmatpush1.bf16.msra.mxu1 %v2754_v18  ;;  %v259_v49 = vld [vmem:[%s3308_s5 + $0x40] sm:$0xff]  ;;  %v2806_v59 = vld [vmem:[%s4024_s1 + $0x4d4] ss:$8 sps:$4 sm:$0xff]   ;;  %v2808_v60 = vld [vmem:[%s4024_s1 + $0xd0] ss:$8 sps:$4 sm:$0xff]  }
  0x19   : > { %2064 = vmatpush1.bf16.msra.mxu0 %v2755_v19  ;;  %1893 = vmatprep.subr.bf16.mxu1 %v2756_v20  ;;  %v2798_v50 = vld [vmem:[%s4024_s1 + $0xc4] ss:$8 sps:$4 sm:$0xff]   ;;  %v2395_v52 = vcombine.high %v251_v48, %v259_v49  ;;  %v2802_v56 = vld [vmem:[%s4024_s1 + $0xc0] ss:$8 sps:$4 sm:$0xff]   ;;  %v2809_v61 = vld [vmem:[%s4024_s1 + $0x4d0] ss:$8 sps:$4 sm:$0xff]   ;;  %v2394_v8 = vcombine.low %v251_v48, %v259_v49 }
  0x1a   : > { %2065 = vmatprep.subr.bf16.mxu0 %v2758_v21  ;;  %v2800_v51 = vld [vmem:[%s4024_s1 + $0x4c4] ss:$8 sps:$4 sm:$0xff]   ;;  %v2803_v57 = vld [vmem:[%s4024_s1 + $0x4c0] ss:$8 sps:$4 sm:$0xff]   ;;  %v2816_v2 = vld [vmem:[%s4024_s1 + $0xf4] ss:$8 sps:$4 sm:$0xff]  }
  0x1b   : > { %v255_v53 = vld [vmem:[%s3308_s5 + $0x20] sm:$0xff]  ;;  %1915 = vmatprep.mubr.bf16.mxu1 %v2395_v52  ;;  %v2818_v3 = vld [vmem:[%s4024_s1 + $0x4f4] ss:$8 sps:$4 sm:$0xff]   ;;  %v2820_v4 = vld [vmem:[%s4024_s1 + $0xf0] ss:$8 sps:$4 sm:$0xff]  }
  0x1c   : > { %1894 = vmatpush1.bf16.msra.mxu1 %v2760_v22  ;;  %v263_v54 = vld [vmem:[%s3308_s5 + $0x60] sm:$0xff]  ;;  %v2821_v5 = vld [vmem:[%s4024_s1 + $0x4f0] ss:$8 sps:$4 sm:$0xff]   ;;  %v2830_v12 = vld [vmem:[%s4024_s1 + $0x114] ss:$8 sps:$4 sm:$0xff]  }
  0x1d   : > { %2066 = vmatpush1.bf16.msra.mxu0 %v2761_v23  ;;  %1895 = vmatprep.subr.bf16.mxu1 %v2762_v24  ;;  %v2403_v55 = vcombine.high %v255_v53, %v263_v54  ;;  %v2810_v62 = vld [vmem:[%s4024_s1 + $0xe4] ss:$8 sps:$4 sm:$0xff]   ;;  %v2814_v0 = vld [vmem:[%s4024_s1 + $0xe0] ss:$8 sps:$4 sm:$0xff]   ;;  %v2402_v10 = vcombine.low %v255_v53, %v263_v54  ;;  %v2833_v13 = vld [vmem:[%s4024_s1 + $0x514] ss:$8 sps:$4 sm:$0xff]  }
  0x1e   : > { %2067 = vmatprep.subr.bf16.mxu0 %v2764_v25  ;;  %v2812_v63 = vld [vmem:[%s4024_s1 + $0x4e4] ss:$8 sps:$4 sm:$0xff]   ;;  %v2815_v1 = vld [vmem:[%s4024_s1 + $0x4e0] ss:$8 sps:$4 sm:$0xff]   ;;  %v2828_v14 = vld [vmem:[%s4024_s1 + $0x110] ss:$8 sps:$4 sm:$0xff]  }
  0x1f   : > { %2087 = vmatprep.mubr.bf16.mxu0 %v2403_v55  ;;  %v2824_v6 = vld [vmem:[%s4024_s1 + $0x104] ss:$8 sps:$4 sm:$0xff]   ;;  %v2822_v9 = vld [vmem:[%s4024_s1 + $0x100] ss:$8 sps:$4 sm:$0xff]   ;;  %v2831_v15 = vld [vmem:[%s4024_s1 + $0x510] ss:$8 sps:$4 sm:$0xff]  }
  0x20   : > { %1896 = vmatpush1.bf16.msra.mxu1 %v2766_v26  ;;  %v2827_v7 = vld [vmem:[%s4024_s1 + $0x504] ss:$8 sps:$4 sm:$0xff]   ;;  %v2825_v11 = vld [vmem:[%s4024_s1 + $0x500] ss:$8 sps:$4 sm:$0xff]   ;;  %v2842_v20 = vld [vmem:[%s4024_s1 + $0x134] ss:$8 sps:$4 sm:$0xff]  }
  0x21   : > { %2068 = vmatpush1.bf16.msra.mxu0 %v2767_v27  ;;  %1897 = vmatprep.subr.bf16.mxu1 %v2768_v28  ;;  %v2836_v16 = vld [vmem:[%s4024_s1 + $0x124] ss:$8 sps:$4 sm:$0xff]   ;;  %v2834_v18 = vld [vmem:[%s4024_s1 + $0x120] ss:$8 sps:$4 sm:$0xff]   ;;  %v2845_v21 = vld [vmem:[%s4024_s1 + $0x534] ss:$8 sps:$4 sm:$0xff]  }
  0x22   : > { %2069 = vmatprep.subr.bf16.mxu0 %v2770_v29  ;;  %v2839_v17 = vld [vmem:[%s4024_s1 + $0x524] ss:$8 sps:$4 sm:$0xff]   ;;  %v2837_v19 = vld [vmem:[%s4024_s1 + $0x520] ss:$8 sps:$4 sm:$0xff]   ;;  %v2840_v22 = vld [vmem:[%s4024_s1 + $0x130] ss:$8 sps:$4 sm:$0xff]  }
  0x23   : > { %v2843_v23 = vld [vmem:[%s4024_s1 + $0x530] ss:$8 sps:$4 sm:$0xff]   ;;  %v2848_v24 = vld [vmem:[%s4024_s1 + $0x144] ss:$8 sps:$4 sm:$0xff]   ;;  %v2846_v26 = vld [vmem:[%s4024_s1 + $0x140] ss:$8 sps:$4 sm:$0xff]  }
  0x24   : > { %1898 = vmatpush1.bf16.msra.mxu1 %v2772_v30  ;;  %v2851_v25 = vld [vmem:[%s4024_s1 + $0x544] ss:$8 sps:$4 sm:$0xff]   ;;  %v2849_v27 = vld [vmem:[%s4024_s1 + $0x540] ss:$8 sps:$4 sm:$0xff]   ;;  %v2854_v28 = vld [vmem:[%s4024_s1 + $0x154] ss:$8 sps:$4 sm:$0xff]  }
  0x25   : > { %2070 = vmatpush1.bf16.msra.mxu0 %v2773_v31  ;;  %1899 = vmatprep.subr.bf16.mxu1 %v2774_v32  ;;  %v2857_v29 = vld [vmem:[%s4024_s1 + $0x554] ss:$8 sps:$4 sm:$0xff]   ;;  %v2852_v30 = vld [vmem:[%s4024_s1 + $0x150] ss:$8 sps:$4 sm:$0xff]   ;;  %v2860_v32 = vld [vmem:[%s4024_s1 + $0x164] ss:$8 sps:$4 sm:$0xff]  }
  0x26   : > { %2071 = vmatprep.subr.bf16.mxu0 %v2776_v33  ;;  %v2855_v31 = vld [vmem:[%s4024_s1 + $0x550] ss:$8 sps:$4 sm:$0xff]   ;;  %v2863_v33 = vld [vmem:[%s4024_s1 + $0x564] ss:$8 sps:$4 sm:$0xff]   ;;  %v2870_v48 = vld [vmem:[%s4024_s1 + $0x180] ss:$8 sps:$4 sm:$0xff]  }
  0x27   : > { %v2873_v49 = vld [vmem:[%s4024_s1 + $0x580] ss:$8 sps:$4 sm:$0xff]   ;;  %v2876_v52 = vld [vmem:[%s4024_s1 + $0x190] ss:$8 sps:$4 sm:$0xff]   ;;  %v2884_v54 = vld [vmem:[%s4024_s1 + $0x1a4] ss:$8 sps:$4 sm:$0xff]  }
  0x28   : > { %1900 = vmatpush1.bf16.msra.mxu1 %v2778_v34  ;;  %v2858_v34 = vld [vmem:[%s4024_s1 + $0x160] ss:$8 sps:$4 sm:$0xff]   ;;  %v2879_v53 = vld [vmem:[%s4024_s1 + $0x590] ss:$8 sps:$4 sm:$0xff]   ;;  %v2887_v55 = vld [vmem:[%s4024_s1 + $0x5a4] ss:$8 sps:$4 sm:$0xff]  }
  0x29   : > { %2072 = vmatpush1.bf16.msra.mxu0 %v2779_v35  ;;  %1901 = vmatprep.subr.bf16.mxu1 %v2780_v36  ;;  %v2861_v35 = vld [vmem:[%s4024_s1 + $0x560] ss:$8 sps:$4 sm:$0xff]  }
  0x2a   : > { %2073 = vmatprep.subr.bf16.mxu0 %v2782_v37  ;;  %v3459_v36 = vld [vmem:[%s3308_s5 + $0x8] sm:$0xff] }
  0x2b   : > { %v3462_v37 = vld [vmem:[%s3308_s5 + $0x48] sm:$0xff] }
  0x2c   : > { %1902 = vmatpush1.bf16.msra.mxu1 %v2784_v38  ;;  %v2866_v38 = vld [vmem:[%s4024_s1 + $0x174] ss:$8 sps:$4 sm:$0xff]  }
  0x2d   : > { %2074 = vmatpush1.bf16.msra.mxu0 %v2785_v39  ;;  %1903 = vmatprep.subr.bf16.mxu1 %v2786_v40  ;;  %v2869_v39 = vld [vmem:[%s4024_s1 + $0x574] ss:$8 sps:$4 sm:$0xff]   ;;  %v2397_v40 = vcombine.high %v3459_v36, %v3462_v37 }
  0x2e   : > { %2075 = vmatprep.subr.bf16.mxu0 %v2788_v41  ;;  %v3473_v41 = vld [vmem:[%s3308_s5 + $0x28] sm:$0xff] }
  0x30   : > { %1904 = vmatpush1.bf16.msra.mxu1 %v2790_v42  ;;  %v3476_v42 = vld [vmem:[%s3308_s5 + $0x68] sm:$0xff] }
  0x31   : > { %2076 = vmatpush1.bf16.msra.mxu0 %v2791_v43  ;;  %1905 = vmatprep.subr.bf16.mxu1 %v2792_v44  ;;  %v2405_v43 = vcombine.high %v3473_v41, %v3476_v42  ;;  %v2864_v44 = vld [vmem:[%s4024_s1 + $0x170] ss:$8 sps:$4 sm:$0xff]  }
  0x32   : > { %2077 = vmatprep.subr.bf16.mxu0 %v2794_v45  ;;  %v2867_v45 = vld [vmem:[%s4024_s1 + $0x570] ss:$8 sps:$4 sm:$0xff]  }
  0x34   : > { %1906 = vmatpush1.bf16.msra.mxu1 %v2796_v46  ;;  %v2872_v46 = vld [vmem:[%s4024_s1 + $0x184] ss:$8 sps:$4 sm:$0xff]  }
  0x35   : > { %2078 = vmatpush1.bf16.msra.mxu0 %v2797_v47  ;;  %1907 = vmatprep.subr.bf16.mxu1 %v2798_v50  ;;  %v2875_v47 = vld [vmem:[%s4024_s1 + $0x584] ss:$8 sps:$4 sm:$0xff]   ;;  %v2878_v50 = vld [vmem:[%s4024_s1 + $0x194] ss:$8 sps:$4 sm:$0xff]  }
  0x36   : > { %2079 = vmatprep.subr.bf16.mxu0 %v2800_v51  ;;  %v2881_v51 = vld [vmem:[%s4024_s1 + $0x594] ss:$8 sps:$4 sm:$0xff]  }
  0x38   : > { %1908 = vmatpush1.bf16.msra.mxu1 %v2802_v56  ;;  %v2882_v56 = vld [vmem:[%s4024_s1 + $0x1a0] ss:$8 sps:$4 sm:$0xff]  }
  0x39   : > { %2080 = vmatpush1.bf16.msra.mxu0 %v2803_v57  ;;  %1909 = vmatprep.subr.bf16.mxu1 %v2804_v58  ;;  %v2885_v57 = vld [vmem:[%s4024_s1 + $0x5a0] ss:$8 sps:$4 sm:$0xff]   ;;  %v2890_v58 = vld [vmem:[%s4024_s1 + $0x1b4] ss:$8 sps:$4 sm:$0xff]  }
  0x3a   : > { %2081 = vmatprep.subr.bf16.mxu0 %v2806_v59  ;;  %v2893_v59 = vld [vmem:[%s4024_s1 + $0x5b4] ss:$8 sps:$4 sm:$0xff]  }
  0x3c   : > { %1910 = vmatpush1.bf16.msra.mxu1 %v2808_v60  ;;  %v2888_v60 = vld [vmem:[%s4024_s1 + $0x1b0] ss:$8 sps:$4 sm:$0xff]  }
  0x3d   : > { %2082 = vmatpush1.bf16.msra.mxu0 %v2809_v61  ;;  %1911 = vmatprep.subr.bf16.mxu1 %v2810_v62  ;;  %v2891_v61 = vld [vmem:[%s4024_s1 + $0x5b0] ss:$8 sps:$4 sm:$0xff]   ;;  %v2896_v62 = vld [vmem:[%s4024_s1 + $0x1c4] ss:$8 sps:$4 sm:$0xff]  }
  0x3e   : > { %2083 = vmatprep.subr.bf16.mxu0 %v2812_v63  ;;  %v2899_v63 = vld [vmem:[%s4024_s1 + $0x5c4] ss:$8 sps:$4 sm:$0xff]  }
  0x40   : > { %1912 = vmatpush1.bf16.msra.mxu1 %v2814_v0  ;;  %v2894_v0 = vld [vmem:[%s4024_s1 + $0x1c0] ss:$8 sps:$4 sm:$0xff]  }
  0x41   : > { %2084 = vmatpush1.bf16.msra.mxu0 %v2815_v1  ;;  %1913 = vmatprep.subr.bf16.mxu1 %v2816_v2  ;;  %v2897_v1 = vld [vmem:[%s4024_s1 + $0x5c0] ss:$8 sps:$4 sm:$0xff]   ;;  %v2902_v2 = vld [vmem:[%s4024_s1 + $0x1d4] ss:$8 sps:$4 sm:$0xff]  }
  0x42   : > { %2085 = vmatprep.subr.bf16.mxu0 %v2818_v3  ;;  %v2905_v3 = vld [vmem:[%s4024_s1 + $0x5d4] ss:$8 sps:$4 sm:$0xff]  }
  0x44   : > { %1914 = vmatpush1.bf16.msra.mxu1 %v2820_v4  ;;  %v2900_v4 = vld [vmem:[%s4024_s1 + $0x1d0] ss:$8 sps:$4 sm:$0xff]  }
  0x45   : > { %2086 = vmatpush1.bf16.msra.mxu0 %v2821_v5  ;;  %1926 = vmatprep.subr.bf16.mxu1 %v2824_v6  ;;  %v2903_v5 = vld [vmem:[%s4024_s1 + $0x5d0] ss:$8 sps:$4 sm:$0xff]   ;;  %v2908_v6 = vld [vmem:[%s4024_s1 + $0x1e4] ss:$8 sps:$4 sm:$0xff]  }
  0x46   : > { %2098 = vmatprep.subr.bf16.mxu0 %v2827_v7  ;;  %v2911_v7 = vld [vmem:[%s4024_s1 + $0x5e4] ss:$8 sps:$4 sm:$0xff]  }
  0x47   : > { %1916 = vmatmul.mubr.bf16.vlgmr.msra.gmra.mrb[0].mxu1 %v2394_v8  ;;  %v2906_v8 = vld [vmem:[%s4024_s1 + $0x1e0] ss:$8 sps:$4 sm:$0xff]  }
  0x48   : > { %2088 = vmatmul.mubr.bf16.vlgmr.msra.gmra.mrb[0].mxu0 %v2402_v10  ;;  %1927 = vmatpush1.bf16.msra.mxu1 %v2822_v9  ;;  %v2909_v9 = vld [vmem:[%s4024_s1 + $0x5e0] ss:$8 sps:$4 sm:$0xff]   ;;  %v2914_v10 = vld [vmem:[%s4024_s1 + $0x1f4] ss:$8 sps:$4 sm:$0xff]  }
  0x49   : > { %2099 = vmatpush1.bf16.msra.mxu0 %v2825_v11  ;;  %1928 = vmatprep.subr.bf16.mxu1 %v2830_v12  ;;  %v2917_v11 = vld [vmem:[%s4024_s1 + $0x5f4] ss:$8 sps:$4 sm:$0xff]   ;;  %v2912_v12 = vld [vmem:[%s4024_s1 + $0x1f0] ss:$8 sps:$4 sm:$0xff]  }
  0x4a   : > { %2100 = vmatprep.subr.bf16.mxu0 %v2833_v13  ;;  %1958 = vmatprep.mubr.bf16.mxu1 %v2397_v40  ;;  %v2915_v13 = vld [vmem:[%s4024_s1 + $0x5f0] ss:$8 sps:$4 sm:$0xff]   ;;  %v2942_v40 = vld [vmem:[%s4024_s1 + $0x240] ss:$8 sps:$4 sm:$0xff]  }
  0x4b   : > { %2130 = vmatprep.mubr.bf16.mxu0 %v2405_v43  ;;  %v2953_v43 = vld [vmem:[%s4024_s1 + $0x654] ss:$8 sps:$4 sm:$0xff]  }
  0x4c   : > { %1929 = vmatpush1.bf16.msra.mxu1 %v2828_v14  ;;  %v2920_v14 = vld [vmem:[%s4024_s1 + $0x204] ss:$8 sps:$4 sm:$0xff]  }
  0x4d   : > { %2101 = vmatpush1.bf16.msra.mxu0 %v2831_v15  ;;  %1930 = vmatprep.subr.bf16.mxu1 %v2836_v16  ;;  %v2923_v15 = vld [vmem:[%s4024_s1 + $0x604] ss:$8 sps:$4 sm:$0xff]   ;;  %v2396_v16 = vcombine.low %v3459_v36, %v3462_v37  ;;  %v2936_v36 = vld [vmem:[%s4024_s1 + $0x230] ss:$8 sps:$4 sm:$0xff]  }
  0x4e   : > { %2102 = vmatprep.subr.bf16.mxu0 %v2839_v17  ;;  %v2918_v17 = vld [vmem:[%s4024_s1 + $0x200] ss:$8 sps:$4 sm:$0xff]   ;;  %v2939_v37 = vld [vmem:[%s4024_s1 + $0x630] ss:$8 sps:$4 sm:$0xff]  }
  0x50   : > { %1931 = vmatpush1.bf16.msra.mxu1 %v2834_v18  ;;  %v2404_v18 = vcombine.low %v3473_v41, %v3476_v42  ;;  %v2945_v41 = vld [vmem:[%s4024_s1 + $0x640] ss:$8 sps:$4 sm:$0xff]   ;;  %v2950_v42 = vld [vmem:[%s4024_s1 + $0x254] ss:$8 sps:$4 sm:$0xff]  }
  0x51   : > { %2103 = vmatpush1.bf16.msra.mxu0 %v2837_v19  ;;  %1932 = vmatprep.subr.bf16.mxu1 %v2842_v20  ;;  %v2921_v19 = vld [vmem:[%s4024_s1 + $0x600] ss:$8 sps:$4 sm:$0xff]   ;;  %v2926_v20 = vld [vmem:[%s4024_s1 + $0x214] ss:$8 sps:$4 sm:$0xff]  }
  0x52   : > { %2104 = vmatprep.subr.bf16.mxu0 %v2845_v21  ;;  %v2929_v21 = vld [vmem:[%s4024_s1 + $0x614] ss:$8 sps:$4 sm:$0xff]  }
  0x54   : > { %1933 = vmatpush1.bf16.msra.mxu1 %v2840_v22  ;;  %v2924_v22 = vld [vmem:[%s4024_s1 + $0x210] ss:$8 sps:$4 sm:$0xff]  }
  0x55   : > { %2105 = vmatpush1.bf16.msra.mxu0 %v2843_v23  ;;  %1934 = vmatprep.subr.bf16.mxu1 %v2848_v24  ;;  %v2927_v23 = vld [vmem:[%s4024_s1 + $0x610] ss:$8 sps:$4 sm:$0xff]  }
  0x56   : > { %2106 = vmatprep.subr.bf16.mxu0 %v2851_v25  ;;  %v3611_v24 = vld [vmem:[%s3308_s5 + $0x10] sm:$0xff] }
  0x57   : > { %v3614_v25 = vld [vmem:[%s3308_s5 + $0x50] sm:$0xff] }
  0x58   : > { %1935 = vmatpush1.bf16.msra.mxu1 %v2846_v26  ;;  %v2932_v26 = vld [vmem:[%s4024_s1 + $0x224] ss:$8 sps:$4 sm:$0xff]  }
  0x59   : > { %2107 = vmatpush1.bf16.msra.mxu0 %v2849_v27  ;;  %1936 = vmatprep.subr.bf16.mxu1 %v2854_v28  ;;  %v2935_v27 = vld [vmem:[%s4024_s1 + $0x624] ss:$8 sps:$4 sm:$0xff]   ;;  %v2399_v28 = vcombine.high %v3611_v24, %v3614_v25 }
  0x5a   : > { %2108 = vmatprep.subr.bf16.mxu0 %v2857_v29  ;;  %v3625_v29 = vld [vmem:[%s3308_s5 + $0x30] sm:$0xff] }
  0x5c   : > { %1937 = vmatpush1.bf16.msra.mxu1 %v2852_v30  ;;  %v3628_v30 = vld [vmem:[%s3308_s5 + $0x70] sm:$0xff] }
  0x5d   : > { %2109 = vmatpush1.bf16.msra.mxu0 %v2855_v31  ;;  %1938 = vmatprep.subr.bf16.mxu1 %v2860_v32  ;;  %v2407_v31 = vcombine.high %v3625_v29, %v3628_v30  ;;  %v2930_v32 = vld [vmem:[%s4024_s1 + $0x220] ss:$8 sps:$4 sm:$0xff]  }
  0x5e   : > { %2110 = vmatprep.subr.bf16.mxu0 %v2863_v33  ;;  %v2933_v33 = vld [vmem:[%s4024_s1 + $0x620] ss:$8 sps:$4 sm:$0xff]  }
  0x60   : > { %1939 = vmatpush1.bf16.msra.mxu1 %v2858_v34  ;;  %v2938_v34 = vld [vmem:[%s4024_s1 + $0x234] ss:$8 sps:$4 sm:$0xff]  }
  0x61   : > { %2111 = vmatpush1.bf16.msra.mxu0 %v2861_v35  ;;  %1940 = vmatprep.subr.bf16.mxu1 %v2866_v38  ;;  %v2941_v35 = vld [vmem:[%s4024_s1 + $0x634] ss:$8 sps:$4 sm:$0xff]   ;;  %v2944_v38 = vld [vmem:[%s4024_s1 + $0x244] ss:$8 sps:$4 sm:$0xff]  }
  0x62   : > { %2112 = vmatprep.subr.bf16.mxu0 %v2869_v39  ;;  %v2947_v39 = vld [vmem:[%s4024_s1 + $0x644] ss:$8 sps:$4 sm:$0xff]  }
  0x64   : > { %1941 = vmatpush1.bf16.msra.mxu1 %v2864_v44  ;;  %v2948_v44 = vld [vmem:[%s4024_s1 + $0x250] ss:$8 sps:$4 sm:$0xff]  }
  0x65   : > { %2113 = vmatpush1.bf16.msra.mxu0 %v2867_v45  ;;  %1942 = vmatprep.subr.bf16.mxu1 %v2872_v46  ;;  %v2951_v45 = vld [vmem:[%s4024_s1 + $0x650] ss:$8 sps:$4 sm:$0xff]   ;;  %v2956_v46 = vld [vmem:[%s4024_s1 + $0x264] ss:$8 sps:$4 sm:$0xff]  }
  0x66   : > { %2114 = vmatprep.subr.bf16.mxu0 %v2875_v47  ;;  %v2959_v47 = vld [vmem:[%s4024_s1 + $0x664] ss:$8 sps:$4 sm:$0xff]  }
  0x68   : > { %1943 = vmatpush1.bf16.msra.mxu1 %v2870_v48  ;;  %v2954_v48 = vld [vmem:[%s4024_s1 + $0x260] ss:$8 sps:$4 sm:$0xff]  }
  0x69   : > { %2115 = vmatpush1.bf16.msra.mxu0 %v2873_v49  ;;  %1944 = vmatprep.subr.bf16.mxu1 %v2878_v50  ;;  %v2957_v49 = vld [vmem:[%s4024_s1 + $0x660] ss:$8 sps:$4 sm:$0xff]   ;;  %v2962_v50 = vld [vmem:[%s4024_s1 + $0x274] ss:$8 sps:$4 sm:$0xff]  }
  0x6a   : > { %2116 = vmatprep.subr.bf16.mxu0 %v2881_v51  ;;  %v2965_v51 = vld [vmem:[%s4024_s1 + $0x674] ss:$8 sps:$4 sm:$0xff]  }
  0x6c   : > { %1945 = vmatpush1.bf16.msra.mxu1 %v2876_v52  ;;  %v2960_v52 = vld [vmem:[%s4024_s1 + $0x270] ss:$8 sps:$4 sm:$0xff]  }
  0x6d   : > { %2117 = vmatpush1.bf16.msra.mxu0 %v2879_v53  ;;  %1946 = vmatprep.subr.bf16.mxu1 %v2884_v54  ;;  %v2963_v53 = vld [vmem:[%s4024_s1 + $0x670] ss:$8 sps:$4 sm:$0xff]   ;;  %v2968_v54 = vld [vmem:[%s4024_s1 + $0x284] ss:$8 sps:$4 sm:$0xff]  }
  0x6e   : > { %2118 = vmatprep.subr.bf16.mxu0 %v2887_v55  ;;  %v2971_v55 = vld [vmem:[%s4024_s1 + $0x684] ss:$8 sps:$4 sm:$0xff]  }
  0x70   : > { %1947 = vmatpush1.bf16.msra.mxu1 %v2882_v56  ;;  %v2966_v56 = vld [vmem:[%s4024_s1 + $0x280] ss:$8 sps:$4 sm:$0xff]  }
  0x71   : > { %2119 = vmatpush1.bf16.msra.mxu0 %v2885_v57  ;;  %1948 = vmatprep.subr.bf16.mxu1 %v2890_v58  ;;  %v2969_v57 = vld [vmem:[%s4024_s1 + $0x680] ss:$8 sps:$4 sm:$0xff]   ;;  %v2974_v58 = vld [vmem:[%s4024_s1 + $0x294] ss:$8 sps:$4 sm:$0xff]  }
  0x72   : > { %2120 = vmatprep.subr.bf16.mxu0 %v2893_v59  ;;  %v2977_v59 = vld [vmem:[%s4024_s1 + $0x694] ss:$8 sps:$4 sm:$0xff]  }
  0x74   : > { %1949 = vmatpush1.bf16.msra.mxu1 %v2888_v60  ;;  %v2972_v60 = vld [vmem:[%s4024_s1 + $0x290] ss:$8 sps:$4 sm:$0xff]  }
  0x75   : > { %2121 = vmatpush1.bf16.msra.mxu0 %v2891_v61  ;;  %1950 = vmatprep.subr.bf16.mxu1 %v2896_v62  ;;  %v2975_v61 = vld [vmem:[%s4024_s1 + $0x690] ss:$8 sps:$4 sm:$0xff]   ;;  %v2980_v62 = vld [vmem:[%s4024_s1 + $0x2a4] ss:$8 sps:$4 sm:$0xff]  }
  0x76   : > { %2122 = vmatprep.subr.bf16.mxu0 %v2899_v63  ;;  %v2983_v63 = vld [vmem:[%s4024_s1 + $0x6a4] ss:$8 sps:$4 sm:$0xff]  }
  0x78   : > { %1951 = vmatpush1.bf16.msra.mxu1 %v2894_v0  ;;  %v2978_v0 = vld [vmem:[%s4024_s1 + $0x2a0] ss:$8 sps:$4 sm:$0xff]  }
  0x79   : > { %2123 = vmatpush1.bf16.msra.mxu0 %v2897_v1  ;;  %1952 = vmatprep.subr.bf16.mxu1 %v2902_v2  ;;  %v2981_v1 = vld [vmem:[%s4024_s1 + $0x6a0] ss:$8 sps:$4 sm:$0xff]   ;;  %v2986_v2 = vld [vmem:[%s4024_s1 + $0x2b4] ss:$8 sps:$4 sm:$0xff]  }
  0x7a   : > { %2124 = vmatprep.subr.bf16.mxu0 %v2905_v3  ;;  %v2989_v3 = vld [vmem:[%s4024_s1 + $0x6b4] ss:$8 sps:$4 sm:$0xff]  }
  0x7c   : > { %1953 = vmatpush1.bf16.msra.mxu1 %v2900_v4  ;;  %v2984_v4 = vld [vmem:[%s4024_s1 + $0x2b0] ss:$8 sps:$4 sm:$0xff]  }
  0x7d   : > { %2125 = vmatpush1.bf16.msra.mxu0 %v2903_v5  ;;  %1954 = vmatprep.subr.bf16.mxu1 %v2908_v6  ;;  %v2987_v5 = vld [vmem:[%s4024_s1 + $0x6b0] ss:$8 sps:$4 sm:$0xff]   ;;  %v2992_v6 = vld [vmem:[%s4024_s1 + $0x2c4] ss:$8 sps:$4 sm:$0xff]  }
  0x7e   : > { %2126 = vmatprep.subr.bf16.mxu0 %v2911_v7  ;;  %v2995_v7 = vld [vmem:[%s4024_s1 + $0x6c4] ss:$8 sps:$4 sm:$0xff]  }
  0x80   : > { %1955 = vmatpush1.bf16.msra.mxu1 %v2906_v8  ;;  %v2990_v8 = vld [vmem:[%s4024_s1 + $0x2c0] ss:$8 sps:$4 sm:$0xff]  }
  0x81   : > { %2127 = vmatpush1.bf16.msra.mxu0 %v2909_v9  ;;  %1956 = vmatprep.subr.bf16.mxu1 %v2914_v10  ;;  %v2993_v9 = vld [vmem:[%s4024_s1 + $0x6c0] ss:$8 sps:$4 sm:$0xff]   ;;  %v2998_v10 = vld [vmem:[%s4024_s1 + $0x2d4] ss:$8 sps:$4 sm:$0xff]  }
  0x82   : > { %2128 = vmatprep.subr.bf16.mxu0 %v2917_v11  ;;  %v3001_v11 = vld [vmem:[%s4024_s1 + $0x6d4] ss:$8 sps:$4 sm:$0xff]  }
  0x84   : > { %1957 = vmatpush1.bf16.msra.mxu1 %v2912_v12  ;;  %v2996_v12 = vld [vmem:[%s4024_s1 + $0x2d0] ss:$8 sps:$4 sm:$0xff]  }
  0x85   : > { %2129 = vmatpush1.bf16.msra.mxu0 %v2915_v13  ;;  %1969 = vmatprep.subr.bf16.mxu1 %v2920_v14  ;;  %v2999_v13 = vld [vmem:[%s4024_s1 + $0x6d0] ss:$8 sps:$4 sm:$0xff]   ;;  %v3004_v14 = vld [vmem:[%s4024_s1 + $0x2e4] ss:$8 sps:$4 sm:$0xff]  }
  0x86   : > { %2141 = vmatprep.subr.bf16.mxu0 %v2923_v15  ;;  %v3007_v15 = vld [vmem:[%s4024_s1 + $0x6e4] ss:$8 sps:$4 sm:$0xff]  }
  0x87   : > { %1959 = vmatmul.mubr.bf16.vlgmr.msra.gmra.mrb[0].mxu1 %v2396_v16  ;;  %v3002_v16 = vld [vmem:[%s4024_s1 + $0x2e0] ss:$8 sps:$4 sm:$0xff]  }
  0x88   : > { %2131 = vmatmul.mubr.bf16.vlgmr.msra.gmra.mrb[0].mxu0 %v2404_v18  ;;  %1970 = vmatpush1.bf16.msra.mxu1 %v2918_v17  ;;  %v3005_v17 = vld [vmem:[%s4024_s1 + $0x6e0] ss:$8 sps:$4 sm:$0xff]   ;;  %v3010_v18 = vld [vmem:[%s4024_s1 + $0x2f4] ss:$8 sps:$4 sm:$0xff]  }
  0x89   : > { %2142 = vmatpush1.bf16.msra.mxu0 %v2921_v19  ;;  %1971 = vmatprep.subr.bf16.mxu1 %v2926_v20  ;;  %v3013_v19 = vld [vmem:[%s4024_s1 + $0x6f4] ss:$8 sps:$4 sm:$0xff]   ;;  %v3008_v20 = vld [vmem:[%s4024_s1 + $0x2f0] ss:$8 sps:$4 sm:$0xff]  }
  0x8a   : > { %2143 = vmatprep.subr.bf16.mxu0 %v2929_v21  ;;  %2001 = vmatprep.mubr.bf16.mxu1 %v2399_v28  ;;  %v3011_v21 = vld [vmem:[%s4024_s1 + $0x6f0] ss:$8 sps:$4 sm:$0xff]   ;;  %v2406_v28 = vcombine.low %v3625_v29, %v3628_v30 }
  0x8b   : > { %2173 = vmatprep.mubr.bf16.mxu0 %v2407_v31  ;;  %v3808_v31 = vld [vmem:[%s3308_s5 + $0x58] sm:$0xff] }
  0x8c   : > { %1972 = vmatpush1.bf16.msra.mxu1 %v2924_v22  ;;  %v3016_v22 = vld [vmem:[%s4024_s1 + $0x304] ss:$8 sps:$4 sm:$0xff]  }
  0x8d   : > { %2144 = vmatpush1.bf16.msra.mxu0 %v2927_v23  ;;  %1973 = vmatprep.subr.bf16.mxu1 %v2932_v26  ;;  %v3019_v23 = vld [vmem:[%s4024_s1 + $0x704] ss:$8 sps:$4 sm:$0xff]   ;;  %v3801_v26 = vld [vmem:[%s3308_s5 + $0x18] sm:$0xff] }
  0x8e   : > { %2145 = vmatprep.subr.bf16.mxu0 %v2935_v27  ;;  %v2398_v27 = vcombine.low %v3611_v24, %v3614_v25  ;;  %v3022_v24 = vld [vmem:[%s4024_s1 + $0x314] ss:$8 sps:$4 sm:$0xff]   ;;  %v2401_v29 = vcombine.high %v3801_v26, %v3808_v31 }
  0x8f   : > { %v3025_v25 = vld [vmem:[%s4024_s1 + $0x714] ss:$8 sps:$4 sm:$0xff]  }
  0x90   : > { %1974 = vmatpush1.bf16.msra.mxu1 %v2930_v32  ;;  %v3811_v32 = vld [vmem:[%s3308_s5 + $0x38] sm:$0xff] }
  0x91   : > { %2146 = vmatpush1.bf16.msra.mxu0 %v2933_v33  ;;  %1975 = vmatprep.subr.bf16.mxu1 %v2938_v34  ;;  %v3814_v33 = vld [vmem:[%s3308_s5 + $0x78] sm:$0xff]  ;;  %v3014_v34 = vld [vmem:[%s4024_s1 + $0x300] ss:$8 sps:$4 sm:$0xff]  }
  0x92   : > { %2147 = vmatprep.subr.bf16.mxu0 %v2941_v35  ;;  %v3017_v35 = vld [vmem:[%s4024_s1 + $0x700] ss:$8 sps:$4 sm:$0xff]   ;;  %v2409_v30 = vcombine.high %v3811_v32, %v3814_v33 }
  0x94   : > { %1976 = vmatpush1.bf16.msra.mxu1 %v2936_v36  ;;  %v3020_v36 = vld [vmem:[%s4024_s1 + $0x310] ss:$8 sps:$4 sm:$0xff]  }
  0x95   : > { %2148 = vmatpush1.bf16.msra.mxu0 %v2939_v37  ;;  %1977 = vmatprep.subr.bf16.mxu1 %v2944_v38  ;;  %v3023_v37 = vld [vmem:[%s4024_s1 + $0x710] ss:$8 sps:$4 sm:$0xff]   ;;  %v3028_v38 = vld [vmem:[%s4024_s1 + $0x324] ss:$8 sps:$4 sm:$0xff]  }
  0x96   : > { %2149 = vmatprep.subr.bf16.mxu0 %v2947_v39  ;;  %v3031_v39 = vld [vmem:[%s4024_s1 + $0x724] ss:$8 sps:$4 sm:$0xff]  }
  0x98   : > { %1978 = vmatpush1.bf16.msra.mxu1 %v2942_v40  ;;  %v3026_v40 = vld [vmem:[%s4024_s1 + $0x320] ss:$8 sps:$4 sm:$0xff]  }
  0x99   : > { %2150 = vmatpush1.bf16.msra.mxu0 %v2945_v41  ;;  %1979 = vmatprep.subr.bf16.mxu1 %v2950_v42  ;;  %v3029_v41 = vld [vmem:[%s4024_s1 + $0x720] ss:$8 sps:$4 sm:$0xff]   ;;  %v3034_v42 = vld [vmem:[%s4024_s1 + $0x334] ss:$8 sps:$4 sm:$0xff]  }
  0x9a   : > { %2151 = vmatprep.subr.bf16.mxu0 %v2953_v43  ;;  %v3037_v43 = vld [vmem:[%s4024_s1 + $0x734] ss:$8 sps:$4 sm:$0xff]  }
  0x9c   : > { %1980 = vmatpush1.bf16.msra.mxu1 %v2948_v44  ;;  %v3032_v44 = vld [vmem:[%s4024_s1 + $0x330] ss:$8 sps:$4 sm:$0xff]  }
  0x9d   : > { %2152 = vmatpush1.bf16.msra.mxu0 %v2951_v45  ;;  %1981 = vmatprep.subr.bf16.mxu1 %v2956_v46  ;;  %v3035_v45 = vld [vmem:[%s4024_s1 + $0x730] ss:$8 sps:$4 sm:$0xff]   ;;  %v3040_v46 = vld [vmem:[%s4024_s1 + $0x344] ss:$8 sps:$4 sm:$0xff]  }
  0x9e   : > { %2153 = vmatprep.subr.bf16.mxu0 %v2959_v47  ;;  %v3043_v47 = vld [vmem:[%s4024_s1 + $0x744] ss:$8 sps:$4 sm:$0xff]  }
  0xa0   : > { %1982 = vmatpush1.bf16.msra.mxu1 %v2954_v48  ;;  %v3038_v48 = vld [vmem:[%s4024_s1 + $0x340] ss:$8 sps:$4 sm:$0xff]  }
  0xa1   : > { %2154 = vmatpush1.bf16.msra.mxu0 %v2957_v49  ;;  %1983 = vmatprep.subr.bf16.mxu1 %v2962_v50  ;;  %v3041_v49 = vld [vmem:[%s4024_s1 + $0x740] ss:$8 sps:$4 sm:$0xff]   ;;  %v3046_v50 = vld [vmem:[%s4024_s1 + $0x354] ss:$8 sps:$4 sm:$0xff]  }
  0xa2   : > { %2155 = vmatprep.subr.bf16.mxu0 %v2965_v51  ;;  %v3049_v51 = vld [vmem:[%s4024_s1 + $0x754] ss:$8 sps:$4 sm:$0xff]  }
  0xa4   : > { %1984 = vmatpush1.bf16.msra.mxu1 %v2960_v52  ;;  %v3044_v52 = vld [vmem:[%s4024_s1 + $0x350] ss:$8 sps:$4 sm:$0xff]  }
  0xa5   : > { %2156 = vmatpush1.bf16.msra.mxu0 %v2963_v53  ;;  %1985 = vmatprep.subr.bf16.mxu1 %v2968_v54  ;;  %v3047_v53 = vld [vmem:[%s4024_s1 + $0x750] ss:$8 sps:$4 sm:$0xff]   ;;  %v3052_v54 = vld [vmem:[%s4024_s1 + $0x364] ss:$8 sps:$4 sm:$0xff]  }
  0xa6   : > { %2157 = vmatprep.subr.bf16.mxu0 %v2971_v55  ;;  %v3055_v55 = vld [vmem:[%s4024_s1 + $0x764] ss:$8 sps:$4 sm:$0xff]  }
  0xa8   : > { %1986 = vmatpush1.bf16.msra.mxu1 %v2966_v56  ;;  %v3050_v56 = vld [vmem:[%s4024_s1 + $0x360] ss:$8 sps:$4 sm:$0xff]  }
  0xa9   : > { %2158 = vmatpush1.bf16.msra.mxu0 %v2969_v57  ;;  %1987 = vmatprep.subr.bf16.mxu1 %v2974_v58  ;;  %v3053_v57 = vld [vmem:[%s4024_s1 + $0x760] ss:$8 sps:$4 sm:$0xff]   ;;  %v3058_v58 = vld [vmem:[%s4024_s1 + $0x374] ss:$8 sps:$4 sm:$0xff]  }
  0xaa   : > { %2159 = vmatprep.subr.bf16.mxu0 %v2977_v59  ;;  %v3061_v59 = vld [vmem:[%s4024_s1 + $0x774] ss:$8 sps:$4 sm:$0xff]  }
  0xac   : > { %1988 = vmatpush1.bf16.msra.mxu1 %v2972_v60  ;;  %v3056_v60 = vld [vmem:[%s4024_s1 + $0x370] ss:$8 sps:$4 sm:$0xff]  }
  0xad   : > { %2160 = vmatpush1.bf16.msra.mxu0 %v2975_v61  ;;  %1989 = vmatprep.subr.bf16.mxu1 %v2980_v62  ;;  %v3059_v61 = vld [vmem:[%s4024_s1 + $0x770] ss:$8 sps:$4 sm:$0xff]   ;;  %v3064_v62 = vld [vmem:[%s4024_s1 + $0x384] ss:$8 sps:$4 sm:$0xff]  }
  0xae   : > { %2161 = vmatprep.subr.bf16.mxu0 %v2983_v63  ;;  %v3067_v63 = vld [vmem:[%s4024_s1 + $0x784] ss:$8 sps:$4 sm:$0xff]  }
  0xb0   : > { %1990 = vmatpush1.bf16.msra.mxu1 %v2978_v0  ;;  %v3062_v0 = vld [vmem:[%s4024_s1 + $0x380] ss:$8 sps:$4 sm:$0xff]  }
  0xb1   : > { %2162 = vmatpush1.bf16.msra.mxu0 %v2981_v1  ;;  %1991 = vmatprep.subr.bf16.mxu1 %v2986_v2  ;;  %v3065_v1 = vld [vmem:[%s4024_s1 + $0x780] ss:$8 sps:$4 sm:$0xff]   ;;  %v3070_v2 = vld [vmem:[%s4024_s1 + $0x394] ss:$8 sps:$4 sm:$0xff]  }
  0xb2   : > { %2163 = vmatprep.subr.bf16.mxu0 %v2989_v3  ;;  %v3073_v3 = vld [vmem:[%s4024_s1 + $0x794] ss:$8 sps:$4 sm:$0xff]  }
  0xb4   : > { %1992 = vmatpush1.bf16.msra.mxu1 %v2984_v4  ;;  %v3068_v4 = vld [vmem:[%s4024_s1 + $0x390] ss:$8 sps:$4 sm:$0xff]  }
  0xb5   : > { %2164 = vmatpush1.bf16.msra.mxu0 %v2987_v5  ;;  %1993 = vmatprep.subr.bf16.mxu1 %v2992_v6  ;;  %v3071_v5 = vld [vmem:[%s4024_s1 + $0x790] ss:$8 sps:$4 sm:$0xff]   ;;  %v3076_v6 = vld [vmem:[%s4024_s1 + $0x3a4] ss:$8 sps:$4 sm:$0xff]  }
  0xb6   : > { %2165 = vmatprep.subr.bf16.mxu0 %v2995_v7  ;;  %v3079_v7 = vld [vmem:[%s4024_s1 + $0x7a4] ss:$8 sps:$4 sm:$0xff]  }
  0xb8   : > { %1994 = vmatpush1.bf16.msra.mxu1 %v2990_v8  ;;  %v3074_v8 = vld [vmem:[%s4024_s1 + $0x3a0] ss:$8 sps:$4 sm:$0xff]  }
  0xb9   : > { %2166 = vmatpush1.bf16.msra.mxu0 %v2993_v9  ;;  %1995 = vmatprep.subr.bf16.mxu1 %v2998_v10  ;;  %v3077_v9 = vld [vmem:[%s4024_s1 + $0x7a0] ss:$8 sps:$4 sm:$0xff]   ;;  %v3082_v10 = vld [vmem:[%s4024_s1 + $0x3b4] ss:$8 sps:$4 sm:$0xff]  }
  0xba   : > { %2167 = vmatprep.subr.bf16.mxu0 %v3001_v11  ;;  %v3085_v11 = vld [vmem:[%s4024_s1 + $0x7b4] ss:$8 sps:$4 sm:$0xff]  }
  0xbc   : > { %1996 = vmatpush1.bf16.msra.mxu1 %v2996_v12  ;;  %v3080_v12 = vld [vmem:[%s4024_s1 + $0x3b0] ss:$8 sps:$4 sm:$0xff]  }
  0xbd   : > { %2168 = vmatpush1.bf16.msra.mxu0 %v2999_v13  ;;  %1997 = vmatprep.subr.bf16.mxu1 %v3004_v14  ;;  %v3083_v13 = vld [vmem:[%s4024_s1 + $0x7b0] ss:$8 sps:$4 sm:$0xff]   ;;  %v3088_v14 = vld [vmem:[%s4024_s1 + $0x3c4] ss:$8 sps:$4 sm:$0xff]  }
  0xbe   : > { %2169 = vmatprep.subr.bf16.mxu0 %v3007_v15  ;;  %v3091_v15 = vld [vmem:[%s4024_s1 + $0x7c4] ss:$8 sps:$4 sm:$0xff]  }
  0xc0   : > { %1998 = vmatpush1.bf16.msra.mxu1 %v3002_v16  ;;  %v3086_v16 = vld [vmem:[%s4024_s1 + $0x3c0] ss:$8 sps:$4 sm:$0xff]  }
  0xc1   : > { %2170 = vmatpush1.bf16.msra.mxu0 %v3005_v17  ;;  %1999 = vmatprep.subr.bf16.mxu1 %v3010_v18  ;;  %v3089_v17 = vld [vmem:[%s4024_s1 + $0x7c0] ss:$8 sps:$4 sm:$0xff]   ;;  %v3094_v18 = vld [vmem:[%s4024_s1 + $0x3d4] ss:$8 sps:$4 sm:$0xff]  }
  0xc2   : > { %2171 = vmatprep.subr.bf16.mxu0 %v3013_v19  ;;  %v3097_v19 = vld [vmem:[%s4024_s1 + $0x7d4] ss:$8 sps:$4 sm:$0xff]  }
  0xc4   : > { %2000 = vmatpush1.bf16.msra.mxu1 %v3008_v20  ;;  %v3092_v20 = vld [vmem:[%s4024_s1 + $0x3d0] ss:$8 sps:$4 sm:$0xff]  }
  0xc5   : > { %2172 = vmatpush1.bf16.msra.mxu0 %v3011_v21  ;;  %2012 = vmatprep.subr.bf16.mxu1 %v3016_v22  ;;  %v3095_v21 = vld [vmem:[%s4024_s1 + $0x7d0] ss:$8 sps:$4 sm:$0xff]   ;;  %v3100_v22 = vld [vmem:[%s4024_s1 + $0x3e4] ss:$8 sps:$4 sm:$0xff]  }
  0xc6   : > { %2184 = vmatprep.subr.bf16.mxu0 %v3019_v23  ;;  %v3103_v23 = vld [vmem:[%s4024_s1 + $0x7e4] ss:$8 sps:$4 sm:$0xff]  }
  0xc7   : > { %2002 = vmatmul.mubr.bf16.vlgmr.msra.gmra.mrb[0].mxu1 %v2398_v27  ;;  %v3098_v27 = vld [vmem:[%s4024_s1 + $0x3e0] ss:$8 sps:$4 sm:$0xff]  }
  0xc8   : > { %2174 = vmatmul.mubr.bf16.vlgmr.msra.gmra.mrb[0].mxu0 %v2406_v28  ;;  %2013 = vmatpush1.bf16.msra.mxu1 %v3014_v34  ;;  %v3101_v28 = vld [vmem:[%s4024_s1 + $0x7e0] ss:$8 sps:$4 sm:$0xff]   ;;  %v3106_v34 = vld [vmem:[%s4024_s1 + $0x3f4] ss:$8 sps:$4 sm:$0xff]  }
  0xc9   : > { %2185 = vmatpush1.bf16.msra.mxu0 %v3017_v35  ;;  %2014 = vmatprep.subr.bf16.mxu1 %v3022_v24  ;;  %v3109_v35 = vld [vmem:[%s4024_s1 + $0x7f4] ss:$8 sps:$4 sm:$0xff]   ;;  %v3104_v24 = vld [vmem:[%s4024_s1 + $0x3f0] ss:$8 sps:$4 sm:$0xff]  }
  0xca   : > { %2186 = vmatprep.subr.bf16.mxu0 %v3025_v25  ;;  %2044 = vmatprep.mubr.bf16.mxu1 %v2401_v29  ;;  %v3107_v25 = vld [vmem:[%s4024_s1 + $0x7f0] ss:$8 sps:$4 sm:$0xff]   ;;  %v2400_v29 = vcombine.low %v3801_v26, %v3808_v31 }
  0xcb   : > { %2216 = vmatprep.mubr.bf16.mxu0 %v2409_v30  ;;  %v2408_v30 = vcombine.low %v3811_v32, %v3814_v33 }
  0xcc   : > { %2015 = vmatpush1.bf16.msra.mxu1 %v3020_v36 }
  0xcd   : > { %2187 = vmatpush1.bf16.msra.mxu0 %v3023_v37  ;;  %2016 = vmatprep.subr.bf16.mxu1 %v3028_v38 }
  0xce   : > { %2188 = vmatprep.subr.bf16.mxu0 %v3031_v39 }
  0xd0   : > { %2017 = vmatpush1.bf16.msra.mxu1 %v3026_v40 }
  0xd1   : > { %2189 = vmatpush1.bf16.msra.mxu0 %v3029_v41  ;;  %2018 = vmatprep.subr.bf16.mxu1 %v3034_v42 }
  0xd2   : > { %2190 = vmatprep.subr.bf16.mxu0 %v3037_v43 }
  0xd4   : > { %2019 = vmatpush1.bf16.msra.mxu1 %v3032_v44 }
  0xd5   : > { %2191 = vmatpush1.bf16.msra.mxu0 %v3035_v45  ;;  %2020 = vmatprep.subr.bf16.mxu1 %v3040_v46 }
  0xd6   : > { %2192 = vmatprep.subr.bf16.mxu0 %v3043_v47 }
  0xd8   : > { %2021 = vmatpush1.bf16.msra.mxu1 %v3038_v48 }
  0xd9   : > { %2193 = vmatpush1.bf16.msra.mxu0 %v3041_v49  ;;  %2022 = vmatprep.subr.bf16.mxu1 %v3046_v50 }
  0xda   : > { %2194 = vmatprep.subr.bf16.mxu0 %v3049_v51 }
  0xdc   : > { %2023 = vmatpush1.bf16.msra.mxu1 %v3044_v52 }
  0xdd   : > { %2195 = vmatpush1.bf16.msra.mxu0 %v3047_v53  ;;  %2024 = vmatprep.subr.bf16.mxu1 %v3052_v54 }
  0xde   : > { %2196 = vmatprep.subr.bf16.mxu0 %v3055_v55 }
  0xe0   : > { %2025 = vmatpush1.bf16.msra.mxu1 %v3050_v56 }
  0xe1   : > { %2197 = vmatpush1.bf16.msra.mxu0 %v3053_v57  ;;  %2026 = vmatprep.subr.bf16.mxu1 %v3058_v58 }
  0xe2   : > { %2198 = vmatprep.subr.bf16.mxu0 %v3061_v59 }
  0xe4   : > { %2027 = vmatpush1.bf16.msra.mxu1 %v3056_v60 }
  0xe5   : > { %2199 = vmatpush1.bf16.msra.mxu0 %v3059_v61  ;;  %2028 = vmatprep.subr.bf16.mxu1 %v3064_v62 }
  0xe6   : > { %2200 = vmatprep.subr.bf16.mxu0 %v3067_v63 }
  0xe8   : > { %2029 = vmatpush1.bf16.msra.mxu1 %v3062_v0 }
  0xe9   : > { %2201 = vmatpush1.bf16.msra.mxu0 %v3065_v1  ;;  %2030 = vmatprep.subr.bf16.mxu1 %v3070_v2 }
  0xea   : > { %2202 = vmatprep.subr.bf16.mxu0 %v3073_v3 }
  0xec   : > { %2031 = vmatpush1.bf16.msra.mxu1 %v3068_v4 }
  0xed   : > { %2203 = vmatpush1.bf16.msra.mxu0 %v3071_v5  ;;  %2032 = vmatprep.subr.bf16.mxu1 %v3076_v6 }
  0xee   : > { %2204 = vmatprep.subr.bf16.mxu0 %v3079_v7 }
  0xf0   : > { %2033 = vmatpush1.bf16.msra.mxu1 %v3074_v8 }
  0xf1   : > { %2205 = vmatpush1.bf16.msra.mxu0 %v3077_v9  ;;  %2034 = vmatprep.subr.bf16.mxu1 %v3082_v10 }
  0xf2   : > { %2206 = vmatprep.subr.bf16.mxu0 %v3085_v11 }
  0xf4   : > { %2035 = vmatpush1.bf16.msra.mxu1 %v3080_v12 }
  0xf5   : > { %2207 = vmatpush1.bf16.msra.mxu0 %v3083_v13  ;;  %2036 = vmatprep.subr.bf16.mxu1 %v3088_v14 }
  0xf6   : > { %2208 = vmatprep.subr.bf16.mxu0 %v3091_v15 }
  0xf8   : > { %2037 = vmatpush1.bf16.msra.mxu1 %v3086_v16 }
  0xf9   : > { %2209 = vmatpush1.bf16.msra.mxu0 %v3089_v17  ;;  %2038 = vmatprep.subr.bf16.mxu1 %v3094_v18 }
  0xfa   : > { %2210 = vmatprep.subr.bf16.mxu0 %v3097_v19 }
  0xfc   : > { %2039 = vmatpush1.bf16.msra.mxu1 %v3092_v20 }
  0xfd   : > { %2211 = vmatpush1.bf16.msra.mxu0 %v3095_v21  ;;  %2040 = vmatprep.subr.bf16.mxu1 %v3100_v22 }
  0xfe   : > { %2212 = vmatprep.subr.bf16.mxu0 %v3103_v23 }
 0x100   : > { %2041 = vmatpush1.bf16.msra.mxu1 %v3098_v27 }
 0x101   : > { %2213 = vmatpush1.bf16.msra.mxu0 %v3101_v28  ;;  %2042 = vmatprep.subr.bf16.mxu1 %v3106_v34 }
 0x102   : > { %2214 = vmatprep.subr.bf16.mxu0 %v3109_v35 }
 0x104   : > { %2043 = vmatpush1.bf16.msra.mxu1 %v3104_v24 }
 0x105   : > { %2215 = vmatpush1.bf16.msra.mxu0 %v3107_v25 }
 0x107   : > { %2045 = vmatmul.mubr.bf16.vlgmr.msra.gmra.mrb[0].mxu1 %v2400_v29 }
 0x108   : > { %2217 = vmatmul.mubr.bf16.vlgmr.msra.gmra.mrb[0].mxu0 %v2408_v30 }
 0x1da   : > { %v2046_v36 = vpop.f32.mrb[0].mxu1 }
 0x1db   : > { %v2218_v37 = vpop.f32.mrb[0].mxu0  ;;  %v2048_v39 = vpop.f32.mrb[1].mxu1 }
 0x1dc   : > { %v2674_v38 = vadd.f32 %v2218_v37, %v2046_v36  ;;  %v2220_v40 = vpop.f32.mrb[1].mxu0  ;;  %v2050_v42 = vpop.f32.mrb[2].mxu1 }
 0x1dd   : > { %v2675_v41 = vadd.f32 %v2220_v40, %v2048_v39  ;;  %v2222_v43 = vpop.f32.mrb[2].mxu0  ;;  %v2052_v31 = vpop.f32.mrb[3].mxu1 }
 0x1de   : > { %vm2242_vm0 = vcmp.ge.f32.partialorder %v2674_v38, 0.0  ;;  %v2246_v44 = vmul.f32 0.2, %v2674_v38  ;;  %v2676_v26 = vadd.f32 %v2222_v43, %v2050_v42  ;;  %v2224_v45 = vpop.f32.mrb[3].mxu0 }
 0x1df   : > { %vm2243_vm1 = vcmp.ge.f32.partialorder %v2675_v41, 0.0  ;;  %v2247_v32 = vmul.f32 0.2, %v2675_v41  ;;  %v2677_v33 = vadd.f32 %v2224_v45, %v2052_v31 }
 0x1e0   : > { %v2250_v46 = vsel %vm2242_vm0, %v2674_v38, %v2246_v44  ;;  %vm2244_vm2 = vcmp.ge.f32.partialorder %v2676_v26, 0.0  ;;  %v2248_v47 = vmul.f32 0.2, %v2676_v26 }
 0x1e1   : > { %v2251_v48 = vsel %vm2243_vm1, %v2675_v41, %v2247_v32  ;;  %vm2245_vm3 = vcmp.ge.f32.partialorder %v2677_v33, 0.0  ;;  %v2249_v49 = vmul.f32 0.2, %v2677_v33 }
 0x1e2   : > { %v2672_v50 = vpack.c.bf16 %v2251_v48, %v2250_v46  ;;  %v2252_v51 = vsel %vm2244_vm2, %v2676_v26, %v2248_v47 }
 0x1e3   : > { %v2253_v52 = vsel %vm2245_vm3, %v2677_v33, %v2249_v49 }
 0x1e4   : > { %2266 = vst [vmem:[%s236_s17] sm:$0xff] %v2672_v50  ;;  %v2673_v53 = vpack.c.bf16 %v2253_v52, %v2252_v51 }
 0x1e6   : > { %2267 = vst [vmem:[%s236_s17 + $0x8] sm:$0xff] %v2673_v53 }
 0x1e7 PF: > { %s12_s11 = sadd.s32 1, %s3132_s11   ;;  %s4026_s9 = smov %s3128_s10 }
 0x1e8   : > { %p9_p5 = scmp.ge.s32.totalorder %s12_s11, 4   ;;  %s4027_s10 = smov %s4029_s12 }
 0x1ea   :  { %11 = sbr.rel (!%p9_p5) target bundleno = 2 (0x2), region = 69 }

// kernel: forward.11
= control target key start
LH: loop header
LB: loop body
LE: loop exit
PB: predicated region body
PF: predicated region fallthrough
CT: control target
= control target key end

     0   :  { %s2392_s9 = smov 0   ;;  %s2394_s10 = smov 0   ;;  %s2631_s0 = inlined_call_operand.vmem [shape: bf16[16,4096], index: 0, kind: input, shape index: {}]   ;;  %s2632_s1 = inlined_call_operand.vmem [shape: bf16[4096,128], index: 1, kind: input, shape index: {}]   ;;  %s2633_s2 = inlined_call_operand.vmem [shape: f32[16,128], index: 2, kind: output, shape index: {}]  }
   0x1   :  { %s2396_s11 = smov 0   ;;  %s2398_s12 = smov 0  }
   0x2   :  { %s2400_s13 = smov 0  }
   0x3 LB: > { %s24_s14 = sadd.s32 1, %s2370_s12  ;;  %p47_p1 = scmp.ne.s32.totalorder %s2362_s10, %s2358_s9  ;;  %s2374_s13 = sphi %s2400_s13, %s12_s13   ;;  %s2370_s12 = sphi %s2398_s12, %s2637_s12   ;;  %s2366_s11 = sphi %s2396_s11, %s2636_s11   ;;  %s2362_s10 = sphi %s2394_s10, %s2635_s10   ;;  %s2358_s9 = sphi %s2392_s9, %s2634_s9  }
   0x4   : > { %p25_p0 = scmp.ge.s32.totalorder %s24_s14, 2  ;;  %p48_p2 = scmp.eq.s32.totalorder %s2374_s13, 0 }
   0x5   : > { %s40_s16 = sadd.s32 1, %s2362_s10  ;;  %p1832_p5 = scmp.ge.s32.totalorder %s2374_s13, 2 }
   0x6   : > { %s2639_s14 = smov (%p25_p0, %s24_s14), 0  ;;  %p49_p3 = por %p48_p2, %p47_p1 }
   0x7   : > { %s36_s15 = ssub.s32 %s2370_s12, %s2639_s14  ;;  %129 = sbr.rel (%p1832_p5) target bundleno = 26 (0x1a), region = 16 }
   0x8   : > { %p38_p4 = scmp.eq.s32.totalorder %s36_s15, 0 }
   0xa   : > { %s2427_s17 = scalar_select %p38_p4, %s2362_s10, %s40_s16  }
   0xe   : > { %132 = sbr.rel (!%p49_p3) target bundleno = 26 (0x1a), region = 20  ;;  %s134_s18 = sand.u32 (%p49_p3), 1, %s2362_s10  }
   0xf   : > { %s1990_s19 = sshll.u32 (%p49_p3), %s2370_s12, 6  ;;  %s1833_s20 = sshll.u32 (%p49_p3), %s134_s18, 7 }
  0x10   : > { %s2435_s23 = scalar_lea.vmem (%p49_p3), %s2631_s0, %s1990_s19  ;;  %s136_s24 = scalar_lea.vmem (%p49_p3), [#allocation3], %s1833_s20 }
  0x11   : > { %v155_v0 = vld [vmem:[%s2435_s23] sm:$0xff] (%p49_p3)  ;;  %v157_v1 = vld [vmem:[%s2435_s23 + $0x8] sm:$0xff] (%p49_p3)  ;;  %v159_v2 = vld [vmem:[%s2435_s23 + $0x10] sm:$0xff] (%p49_p3) }
  0x12   : > { %156 = vst [vmem:[%s136_s24] sm:$0xff] (%p49_p3), %v155_v0  ;;  %158 = vst [vmem:[%s136_s24 + $0x8] sm:$0xff] (%p49_p3), %v157_v1  ;;  %v161_v3 = vld [vmem:[%s2435_s23 + $0x18] sm:$0xff] (%p49_p3)  ;;  %v163_v4 = vld [vmem:[%s2435_s23 + $0x20] sm:$0xff] (%p49_p3) }
  0x13   : > { %160 = vst [vmem:[%s136_s24 + $0x10] sm:$0xff] (%p49_p3), %v159_v2  ;;  %v165_v5 = vld [vmem:[%s2435_s23 + $0x28] sm:$0xff] (%p49_p3)  ;;  %162 = vst [vmem:[%s136_s24 + $0x18] sm:$0xff] (%p49_p3), %v161_v3  ;;  %v167_v6 = vld [vmem:[%s2435_s23 + $0x30] sm:$0xff] (%p49_p3) }
  0x14   : > { %164 = vst [vmem:[%s136_s24 + $0x20] sm:$0xff] (%p49_p3), %v163_v4  ;;  %166 = vst [vmem:[%s136_s24 + $0x28] sm:$0xff] (%p49_p3), %v165_v5  ;;  %v169_v7 = vld [vmem:[%s2435_s23 + $0x38] sm:$0xff] (%p49_p3)  ;;  %v171_v8 = vld [vmem:[%s2435_s23 + $0x80] sm:$0xff] (%p49_p3) }
  0x15   : > { %168 = vst [vmem:[%s136_s24 + $0x30] sm:$0xff] %v167_v6  ;;  %170 = vst [vmem:[%s136_s24 + $0x38] sm:$0xff] %v169_v7  ;;  %v173_v9 = vld [vmem:[%s2435_s23 + $0x88] sm:$0xff]  ;;  %v175_v10 = vld [vmem:[%s2435_s23 + $0x90] sm:$0xff] }
  0x16   : > { %172 = vst [vmem:[%s136_s24 + $0x40] sm:$0xff] %v171_v8  ;;  %v177_v11 = vld [vmem:[%s2435_s23 + $0x98] sm:$0xff]  ;;  %174 = vst [vmem:[%s136_s24 + $0x48] sm:$0xff] %v173_v9  ;;  %v179_v12 = vld [vmem:[%s2435_s23 + $0xa0] sm:$0xff] }
  0x17   : > { %176 = vst [vmem:[%s136_s24 + $0x50] sm:$0xff] %v175_v10  ;;  %178 = vst [vmem:[%s136_s24 + $0x58] sm:$0xff] %v177_v11  ;;  %v181_v13 = vld [vmem:[%s2435_s23 + $0xa8] sm:$0xff]  ;;  %v183_v14 = vld [vmem:[%s2435_s23 + $0xb0] sm:$0xff] }
  0x18   : > { %180 = vst [vmem:[%s136_s24 + $0x60] sm:$0xff] %v179_v12  ;;  %182 = vst [vmem:[%s136_s24 + $0x68] sm:$0xff] %v181_v13  ;;  %v185_v15 = vld [vmem:[%s2435_s23 + $0xb8] sm:$0xff] }
  0x19   : > { %184 = vst [vmem:[%s136_s24 + $0x70] sm:$0xff] %v183_v14  ;;  %186 = vst [vmem:[%s136_s24 + $0x78] sm:$0xff] %v185_v15 }
  0x1a PF: > { %p1836_p6 = scmp.ge.s32.totalorder %s2374_s13, 1  ;;  %p203_p7 = scmp.lt.s32.totalorder %s2374_s13, 3 }
  0x1c   : > { %p204_p8 = pnand %p1836_p6, %p203_p7 }
  0x1d   : > { %s210_s25 = sand.u32 (!%p204_p8), 1, %s2358_s9   ;;  %s1838_s26 = sshll.u32 (!%p204_p8), %s2366_s11, 8 }
  0x1e   : > { %207 = sbr.rel (%p204_p8) target bundleno = 406 (0x196), region = 47  ;;  %s1837_s27 = sshll.u32 (!%p204_p8), %s210_s25, 7 }
  0x1f   : > { %p245_p9 = scmp.lt.s32.totalorder (!%p204_p8), %s1838_s26, 511  ;;  %s2462_s4 = scalar_lea.vmem (!%p204_p8), [#allocation3], %s1837_s27 }
  0x20   : > { %p1840_p10 = scmp.ne.s32.totalorder (!%p204_p8), %s2366_s11, 0 }
  0x25   : > { %s2641_s26 = smov (!%p245_p9, %s1838_s26), 511  ;;  %266 = sbr.rel (%p1840_p10) target bundleno = 44 (0x2c), region = 55 }
  0x26   : > { %s1839_s28 = sshll.u32 %s2641_s26, 2  ;;  %v2376_v16 = vmov (!%p1840_p10), 0.0  }
  0x27   : > { %s2460_s3 = scalar_lea.vmem %s2632_s1, %s1839_s28  ;;  %267 = vst [vmem:[#allocation2] sm:$0xff] (!%p1840_p10), %v2376_v16  ;;  %268 = vst [vmem:[#allocation2 + $0x8] sm:$0xff] (!%p1840_p10), %v2376_v16 }
  0x2c PF: > { %v2208_v17 = vld [vmem:[%s2460_s3 + $0x40] sm:$0xff]   ;;  %v2212_v21 = vld [vmem:[%s2460_s3 + $0x48] sm:$0xff]   ;;  %v2216_v25 = vld [vmem:[%s2460_s3 + $0x50] sm:$0xff]   ;;  %p1985_p11 = scmp.ne.s32.totalorder %s2366_s11, 1 }
  0x2d   : > { %v2209_v18 = vld [vmem:[%s2460_s3 + $0xc0] sm:$0xff]   ;;  %1991 = vmatprep.subr.bf16.mxu0 %v2208_v17  ;;  %v2213_v22 = vld [vmem:[%s2460_s3 + $0xc8] sm:$0xff]   ;;  %v2217_v26 = vld [vmem:[%s2460_s3 + $0xd0] sm:$0xff]  }
  0x2e   : > { %v2210_v19 = vld [vmem:[%s2460_s3] sm:$0xff]   ;;  %2013 = vmatprep.subr.bf16.mxu1 %v2209_v18  ;;  %v2214_v23 = vld [vmem:[%s2460_s3 + $0x8] sm:$0xff]   ;;  %v2218_v27 = vld [vmem:[%s2460_s3 + $0x10] sm:$0xff]  }
  0x2f   : > { %v2211_v20 = vld [vmem:[%s2460_s3 + $0x80] sm:$0xff]   ;;  %1992 = vmatpush3.bf16.msra.mxu0 %v2210_v19  ;;  %v2215_v24 = vld [vmem:[%s2460_s3 + $0x88] sm:$0xff]   ;;  %v2219_v28 = vld [vmem:[%s2460_s3 + $0x90] sm:$0xff]  }
  0x30   : > { %2014 = vmatpush3.bf16.msra.mxu1 %v2211_v20  ;;  %1993 = vmatprep.subr.bf16.mxu0 %v2212_v21  ;;  %v2220_v29 = vld [vmem:[%s2460_s3 + $0x58] sm:$0xff]   ;;  %v2224_v33 = vld [vmem:[%s2460_s3 + $0x60] sm:$0xff]   ;;  %v2228_v37 = vld [vmem:[%s2460_s3 + $0x68] sm:$0xff]  }
  0x31   : > { %2015 = vmatprep.subr.bf16.mxu1 %v2213_v22  ;;  %v2221_v30 = vld [vmem:[%s2460_s3 + $0xd8] sm:$0xff]   ;;  %v2225_v34 = vld [vmem:[%s2460_s3 + $0xe0] sm:$0xff]   ;;  %v2229_v38 = vld [vmem:[%s2460_s3 + $0xe8] sm:$0xff]  }
  0x32   : > { %v2222_v31 = vld [vmem:[%s2460_s3 + $0x18] sm:$0xff]   ;;  %v2226_v35 = vld [vmem:[%s2460_s3 + $0x20] sm:$0xff]   ;;  %v2230_v39 = vld [vmem:[%s2460_s3 + $0x28] sm:$0xff]  }
  0x33   : > { %1994 = vmatpush3.bf16.msra.mxu0 %v2214_v23  ;;  %v2223_v32 = vld [vmem:[%s2460_s3 + $0x98] sm:$0xff]   ;;  %v2227_v36 = vld [vmem:[%s2460_s3 + $0xa0] sm:$0xff]   ;;  %v2231_v40 = vld [vmem:[%s2460_s3 + $0xa8] sm:$0xff]  }
  0x34   : > { %2016 = vmatpush3.bf16.msra.mxu1 %v2215_v24  ;;  %1995 = vmatprep.subr.bf16.mxu0 %v2216_v25  ;;  %v2232_v41 = vld [vmem:[%s2460_s3 + $0x70] sm:$0xff]   ;;  %v2236_v45 = vld [vmem:[%s2460_s3 + $0x78] sm:$0xff]   ;;  %v2240_v57 = vld [vmem:[%s2460_s3 + $0x140] sm:$0xff]  }
  0x35   : > { %2017 = vmatprep.subr.bf16.mxu1 %v2217_v26  ;;  %v2233_v42 = vld [vmem:[%s2460_s3 + $0xf0] sm:$0xff]   ;;  %v2237_v46 = vld [vmem:[%s2460_s3 + $0xf8] sm:$0xff]   ;;  %v2241_v58 = vld [vmem:[%s2460_s3 + $0x1c0] sm:$0xff]  }
  0x36   : > { %v2234_v43 = vld [vmem:[%s2460_s3 + $0x30] sm:$0xff]   ;;  %v2238_v47 = vld [vmem:[%s2460_s3 + $0x38] sm:$0xff]   ;;  %v2242_v59 = vld [vmem:[%s2460_s3 + $0x100] sm:$0xff]  }
  0x37   : > { %1996 = vmatpush3.bf16.msra.mxu0 %v2218_v27  ;;  %v2235_v44 = vld [vmem:[%s2460_s3 + $0xb0] sm:$0xff]   ;;  %v2239_v48 = vld [vmem:[%s2460_s3 + $0xb8] sm:$0xff]   ;;  %v2243_v60 = vld [vmem:[%s2460_s3 + $0x180] sm:$0xff]  }
  0x38   : > { %2018 = vmatpush3.bf16.msra.mxu1 %v2219_v28  ;;  %1997 = vmatprep.subr.bf16.mxu0 %v2220_v29  ;;  %v271_v49 = vld [vmem:[%s2462_s4] sm:$0xff]  ;;  %v272_v51 = vld [vmem:[%s2462_s4 + $0x8] sm:$0xff]  ;;  %v2244_v61 = vld [vmem:[%s2460_s3 + $0x148] sm:$0xff]  }
  0x39   : > { %2019 = vmatprep.subr.bf16.mxu1 %v2221_v30  ;;  %v279_v50 = vld [vmem:[%s2462_s4 + $0x40] sm:$0xff]  ;;  %v280_v54 = vld [vmem:[%s2462_s4 + $0x48] sm:$0xff]  ;;  %v2245_v62 = vld [vmem:[%s2460_s3 + $0x1c8] sm:$0xff]  }
  0x3a   : > { %v1841_v52 = vcombine.low %v271_v49, %v279_v50  ;;  %v1842_v53 = vcombine.high %v271_v49, %v279_v50  ;;  %v1843_v55 = vcombine.low %v272_v51, %v280_v54  ;;  %v1844_v56 = vcombine.high %v272_v51, %v280_v54  ;;  %v2246_v63 = vld [vmem:[%s2460_s3 + $0x108] sm:$0xff]   ;;  %v2248_v1 = vld [vmem:[%s2460_s3 + $0x150] sm:$0xff]   ;;  %v2252_v5 = vld [vmem:[%s2460_s3 + $0x158] sm:$0xff]  }
  0x3b   : > { %1998 = vmatpush3.bf16.msra.mxu0 %v2222_v31  ;;  %v2247_v0 = vld [vmem:[%s2460_s3 + $0x188] sm:$0xff]   ;;  %v2249_v2 = vld [vmem:[%s2460_s3 + $0x1d0] sm:$0xff]   ;;  %v2253_v6 = vld [vmem:[%s2460_s3 + $0x1d8] sm:$0xff]  }
  0x3c   : > { %2020 = vmatpush3.bf16.msra.mxu1 %v2223_v32  ;;  %1999 = vmatprep.subr.bf16.mxu0 %v2224_v33  ;;  %v2250_v3 = vld [vmem:[%s2460_s3 + $0x110] sm:$0xff]   ;;  %v2254_v7 = vld [vmem:[%s2460_s3 + $0x118] sm:$0xff]   ;;  %v2256_v9 = vld [vmem:[%s2460_s3 + $0x160] sm:$0xff]  }
  0x3d   : > { %2021 = vmatprep.subr.bf16.mxu1 %v2225_v34  ;;  %1423 = vmatprep.mubr.bf16.mxu0 %v1842_v53  ;;  %v2251_v4 = vld [vmem:[%s2460_s3 + $0x190] sm:$0xff]   ;;  %v2255_v8 = vld [vmem:[%s2460_s3 + $0x198] sm:$0xff]   ;;  %v2257_v10 = vld [vmem:[%s2460_s3 + $0x1e0] sm:$0xff]  }
  0x3e   : > { %1464 = vmatprep.mubr.bf16.mxu1 %v1844_v56  ;;  %v2258_v11 = vld [vmem:[%s2460_s3 + $0x120] sm:$0xff]   ;;  %v2260_v13 = vld [vmem:[%s2460_s3 + $0x168] sm:$0xff]   ;;  %v2264_v17 = vld [vmem:[%s2460_s3 + $0x170] sm:$0xff]  }
  0x3f   : > { %2000 = vmatpush3.bf16.msra.mxu0 %v2226_v35  ;;  %v2259_v12 = vld [vmem:[%s2460_s3 + $0x1a0] sm:$0xff]   ;;  %v2261_v14 = vld [vmem:[%s2460_s3 + $0x1e8] sm:$0xff]   ;;  %v2265_v18 = vld [vmem:[%s2460_s3 + $0x1f0] sm:$0xff]  }
  0x40   : > { %2022 = vmatpush3.bf16.msra.mxu1 %v2227_v36  ;;  %2001 = vmatprep.subr.bf16.mxu0 %v2228_v37  ;;  %v2262_v15 = vld [vmem:[%s2460_s3 + $0x128] sm:$0xff]   ;;  %v2266_v19 = vld [vmem:[%s2460_s3 + $0x130] sm:$0xff]   ;;  %v2268_v21 = vld [vmem:[%s2460_s3 + $0x178] sm:$0xff]  }
  0x41   : > { %2023 = vmatprep.subr.bf16.mxu1 %v2229_v38  ;;  %v2263_v16 = vld [vmem:[%s2460_s3 + $0x1a8] sm:$0xff]   ;;  %v2267_v20 = vld [vmem:[%s2460_s3 + $0x1b0] sm:$0xff]   ;;  %v2269_v22 = vld [vmem:[%s2460_s3 + $0x1f8] sm:$0xff]  }
  0x42   : > { %v2270_v23 = vld [vmem:[%s2460_s3 + $0x138] sm:$0xff]   ;;  %v273_v25 = vld [vmem:[%s2462_s4 + $0x10] sm:$0xff]  ;;  %v274_v29 = vld [vmem:[%s2462_s4 + $0x18] sm:$0xff] }
  0x43   : > { %2002 = vmatpush3.bf16.msra.mxu0 %v2230_v39  ;;  %v2271_v24 = vld [vmem:[%s2460_s3 + $0x1b8] sm:$0xff]   ;;  %v281_v26 = vld [vmem:[%s2462_s4 + $0x50] sm:$0xff]  ;;  %v282_v30 = vld [vmem:[%s2462_s4 + $0x58] sm:$0xff] }
  0x44   : > { %2024 = vmatpush3.bf16.msra.mxu1 %v2231_v40  ;;  %2003 = vmatprep.subr.bf16.mxu0 %v2232_v41  ;;  %v1845_v27 = vcombine.low %v273_v25, %v281_v26  ;;  %v1846_v28 = vcombine.high %v273_v25, %v281_v26  ;;  %v1847_v31 = vcombine.low %v274_v29, %v282_v30  ;;  %v2272_v33 = vld [vmem:[%s2460_s3 + $0x240] sm:$0xff]   ;;  %v2276_v37 = vld [vmem:[%s2460_s3 + $0x248] sm:$0xff]   ;;  %v2280_v41 = vld [vmem:[%s2460_s3 + $0x250] sm:$0xff]  }
  0x45   : > { %2025 = vmatprep.subr.bf16.mxu1 %v2233_v42  ;;  %v1848_v32 = vcombine.high %v274_v29, %v282_v30  ;;  %v2273_v34 = vld [vmem:[%s2460_s3 + $0x2c0] sm:$0xff]   ;;  %v2277_v38 = vld [vmem:[%s2460_s3 + $0x2c8] sm:$0xff]   ;;  %v2281_v42 = vld [vmem:[%s2460_s3 + $0x2d0] sm:$0xff]  }
  0x46   : > { %v2274_v35 = vld [vmem:[%s2460_s3 + $0x200] sm:$0xff]   ;;  %v2278_v39 = vld [vmem:[%s2460_s3 + $0x208] sm:$0xff]  }
  0x47   : > { %2004 = vmatpush3.bf16.msra.mxu0 %v2234_v43  ;;  %v2275_v36 = vld [vmem:[%s2460_s3 + $0x280] sm:$0xff]   ;;  %v2279_v40 = vld [vmem:[%s2460_s3 + $0x288] sm:$0xff]   ;;  %v2282_v43 = vld [vmem:[%s2460_s3 + $0x210] sm:$0xff]  }
  0x48   : > { %2026 = vmatpush3.bf16.msra.mxu1 %v2235_v44  ;;  %2005 = vmatprep.subr.bf16.mxu0 %v2236_v45  ;;  %v2283_v44 = vld [vmem:[%s2460_s3 + $0x290] sm:$0xff]   ;;  %v2284_v45 = vld [vmem:[%s2460_s3 + $0x258] sm:$0xff]   ;;  %v2288_v49 = vld [vmem:[%s2460_s3 + $0x260] sm:$0xff]  }
  0x49   : > { %2027 = vmatprep.subr.bf16.mxu1 %v2237_v46  ;;  %v2285_v46 = vld [vmem:[%s2460_s3 + $0x2d8] sm:$0xff]   ;;  %v2289_v50 = vld [vmem:[%s2460_s3 + $0x2e0] sm:$0xff]   ;;  %v2292_v53 = vld [vmem:[%s2460_s3 + $0x268] sm:$0xff]  }
  0x4a   : > { %v2290_v51 = vld [vmem:[%s2460_s3 + $0x220] sm:$0xff]   ;;  %v2293_v54 = vld [vmem:[%s2460_s3 + $0x2e8] sm:$0xff]  }
  0x4b   : > { %2006 = vmatpush3.bf16.msra.mxu0 %v2238_v47  ;;  %v2286_v47 = vld [vmem:[%s2460_s3 + $0x218] sm:$0xff]   ;;  %v2295_v56 = vld [vmem:[%s2460_s3 + $0x2a8] sm:$0xff]   ;;  %v2320_v25 = vld [vmem:[%s2460_s3 + $0x360] sm:$0xff]  }
  0x4c   : > { %2028 = vmatpush3.bf16.msra.mxu1 %v2239_v48  ;;  %2035 = vmatprep.subr.bf16.mxu0 %v2240_v57  ;;  %v2287_v48 = vld [vmem:[%s2460_s3 + $0x298] sm:$0xff]   ;;  %v2296_v57 = vld [vmem:[%s2460_s3 + $0x270] sm:$0xff]   ;;  %v2321_v26 = vld [vmem:[%s2460_s3 + $0x3e0] sm:$0xff]  }
  0x4d   : > { %2057 = vmatprep.subr.bf16.mxu1 %v2241_v58  ;;  %v2297_v58 = vld [vmem:[%s2460_s3 + $0x2f0] sm:$0xff]   ;;  %v2324_v29 = vld [vmem:[%s2460_s3 + $0x368] sm:$0xff]  }
  0x4e   : > { %1424 = vmatmul.mubr.bf16.vlgmr.msra.gmra.mrb[0].mxu0 %v1841_v52  ;;  %v2291_v52 = vld [vmem:[%s2460_s3 + $0x2a0] sm:$0xff]   ;;  %v2325_v30 = vld [vmem:[%s2460_s3 + $0x3e8] sm:$0xff]  }
  0x4f   : > { %1465 = vmatmul.mubr.bf16.vlgmr.msra.gmra.mrb[0].mxu1 %v1843_v55  ;;  %2036 = vmatpush3.bf16.msra.mxu0 %v2242_v59  ;;  %v2294_v55 = vld [vmem:[%s2460_s3 + $0x228] sm:$0xff]   ;;  %v2298_v59 = vld [vmem:[%s2460_s3 + $0x230] sm:$0xff]  }
  0x50   : > { %2058 = vmatpush3.bf16.msra.mxu1 %v2243_v60  ;;  %2037 = vmatprep.subr.bf16.mxu0 %v2244_v61  ;;  %v2299_v60 = vld [vmem:[%s2460_s3 + $0x2b0] sm:$0xff]   ;;  %v2300_v61 = vld [vmem:[%s2460_s3 + $0x278] sm:$0xff]  }
  0x51   : > { %2059 = vmatprep.subr.bf16.mxu1 %v2245_v62  ;;  %1505 = vmatprep.mubr.bf16.mxu0 %v1846_v28  ;;  %v2301_v62 = vld [vmem:[%s2460_s3 + $0x2f8] sm:$0xff]   ;;  %v2323_v28 = vld [vmem:[%s2460_s3 + $0x3a0] sm:$0xff]  }
  0x52   : > { %1546 = vmatprep.mubr.bf16.mxu1 %v1848_v32  ;;  %v2327_v32 = vld [vmem:[%s2460_s3 + $0x3a8] sm:$0xff]  }
  0x53   : > { %2038 = vmatpush3.bf16.msra.mxu0 %v2246_v63  ;;  %v2302_v63 = vld [vmem:[%s2460_s3 + $0x238] sm:$0xff]  }
  0x54   : > { %2060 = vmatpush3.bf16.msra.mxu1 %v2247_v0  ;;  %2039 = vmatprep.subr.bf16.mxu0 %v2248_v1  ;;  %v2303_v0 = vld [vmem:[%s2460_s3 + $0x2b8] sm:$0xff]   ;;  %v275_v1 = vld [vmem:[%s2462_s4 + $0x20] sm:$0xff] }
  0x55   : > { %2061 = vmatprep.subr.bf16.mxu1 %v2249_v2  ;;  %v283_v2 = vld [vmem:[%s2462_s4 + $0x60] sm:$0xff] }
  0x57   : > { %2040 = vmatpush3.bf16.msra.mxu0 %v2250_v3  ;;  %v276_v3 = vld [vmem:[%s2462_s4 + $0x28] sm:$0xff] }
  0x58   : > { %2062 = vmatpush3.bf16.msra.mxu1 %v2251_v4  ;;  %2041 = vmatprep.subr.bf16.mxu0 %v2252_v5  ;;  %v284_v4 = vld [vmem:[%s2462_s4 + $0x68] sm:$0xff]  ;;  %v1849_v5 = vcombine.low %v275_v1, %v283_v2 }
  0x59   : > { %2063 = vmatprep.subr.bf16.mxu1 %v2253_v6  ;;  %v1850_v6 = vcombine.high %v275_v1, %v283_v2 }
  0x5b   : > { %2042 = vmatpush3.bf16.msra.mxu0 %v2254_v7  ;;  %v1851_v7 = vcombine.low %v276_v3, %v284_v4 }
  0x5c   : > { %2064 = vmatpush3.bf16.msra.mxu1 %v2255_v8  ;;  %2043 = vmatprep.subr.bf16.mxu0 %v2256_v9  ;;  %v1852_v8 = vcombine.high %v276_v3, %v284_v4  ;;  %v2304_v9 = vld [vmem:[%s2460_s3 + $0x340] sm:$0xff]  }
  0x5d   : > { %2065 = vmatprep.subr.bf16.mxu1 %v2257_v10  ;;  %v2305_v10 = vld [vmem:[%s2460_s3 + $0x3c0] sm:$0xff]  }
  0x5f   : > { %2044 = vmatpush3.bf16.msra.mxu0 %v2258_v11  ;;  %v2306_v11 = vld [vmem:[%s2460_s3 + $0x300] sm:$0xff]  }
  0x60   : > { %2066 = vmatpush3.bf16.msra.mxu1 %v2259_v12  ;;  %2045 = vmatprep.subr.bf16.mxu0 %v2260_v13  ;;  %v2307_v12 = vld [vmem:[%s2460_s3 + $0x380] sm:$0xff]   ;;  %v2308_v13 = vld [vmem:[%s2460_s3 + $0x348] sm:$0xff]  }
  0x61   : > { %2067 = vmatprep.subr.bf16.mxu1 %v2261_v14  ;;  %v2309_v14 = vld [vmem:[%s2460_s3 + $0x3c8] sm:$0xff]  }
  0x63   : > { %2046 = vmatpush3.bf16.msra.mxu0 %v2262_v15  ;;  %v2310_v15 = vld [vmem:[%s2460_s3 + $0x308] sm:$0xff]  }
  0x64   : > { %2068 = vmatpush3.bf16.msra.mxu1 %v2263_v16  ;;  %2047 = vmatprep.subr.bf16.mxu0 %v2264_v17  ;;  %v2311_v16 = vld [vmem:[%s2460_s3 + $0x388] sm:$0xff]   ;;  %v2312_v17 = vld [vmem:[%s2460_s3 + $0x350] sm:$0xff]  }
  0x65   : > { %2069 = vmatprep.subr.bf16.mxu1 %v2265_v18  ;;  %v2313_v18 = vld [vmem:[%s2460_s3 + $0x3d0] sm:$0xff]  }
  0x67   : > { %2048 = vmatpush3.bf16.msra.mxu0 %v2266_v19  ;;  %v2314_v19 = vld [vmem:[%s2460_s3 + $0x310] sm:$0xff]  }
  0x68   : > { %2070 = vmatpush3.bf16.msra.mxu1 %v2267_v20  ;;  %2049 = vmatprep.subr.bf16.mxu0 %v2268_v21  ;;  %v2315_v20 = vld [vmem:[%s2460_s3 + $0x390] sm:$0xff]   ;;  %v2316_v21 = vld [vmem:[%s2460_s3 + $0x358] sm:$0xff]  }
  0x69   : > { %2071 = vmatprep.subr.bf16.mxu1 %v2269_v22  ;;  %v2317_v22 = vld [vmem:[%s2460_s3 + $0x3d8] sm:$0xff]  }
  0x6b   : > { %2050 = vmatpush3.bf16.msra.mxu0 %v2270_v23  ;;  %v2318_v23 = vld [vmem:[%s2460_s3 + $0x318] sm:$0xff]  }
  0x6c   : > { %2072 = vmatpush3.bf16.msra.mxu1 %v2271_v24  ;;  %2079 = vmatprep.subr.bf16.mxu0 %v2272_v33  ;;  %v2319_v24 = vld [vmem:[%s2460_s3 + $0x398] sm:$0xff]   ;;  %v2328_v33 = vld [vmem:[%s2460_s3 + $0x370] sm:$0xff]  }
  0x6d   : > { %2101 = vmatprep.subr.bf16.mxu1 %v2273_v34  ;;  %v2329_v34 = vld [vmem:[%s2460_s3 + $0x3f0] sm:$0xff]  }
  0x6e   : > { %1506 = vmatmul.mubr.bf16.vlgmr.msra.gmra.mrb[4].mxu0 %v1845_v27  ;;  %v2322_v27 = vld [vmem:[%s2460_s3 + $0x320] sm:$0xff]  }
  0x6f   : > { %1547 = vmatmul.mubr.bf16.vlgmr.msra.gmra.mrb[4].mxu1 %v1847_v31  ;;  %2080 = vmatpush3.bf16.msra.mxu0 %v2274_v35  ;;  %v2326_v31 = vld [vmem:[%s2460_s3 + $0x328] sm:$0xff]   ;;  %v2330_v35 = vld [vmem:[%s2460_s3 + $0x330] sm:$0xff]  }
  0x70   : > { %2102 = vmatpush3.bf16.msra.mxu1 %v2275_v36  ;;  %2081 = vmatprep.subr.bf16.mxu0 %v2276_v37  ;;  %v2331_v36 = vld [vmem:[%s2460_s3 + $0x3b0] sm:$0xff]   ;;  %v2332_v37 = vld [vmem:[%s2460_s3 + $0x378] sm:$0xff]  }
  0x71   : > { %2103 = vmatprep.subr.bf16.mxu1 %v2277_v38  ;;  %1587 = vmatprep.mubr.bf16.mxu0 %v1850_v6  ;;  %v2333_v38 = vld [vmem:[%s2460_s3 + $0x3f8] sm:$0xff]  }
  0x72   : > { %1628 = vmatprep.mubr.bf16.mxu1 %v1852_v8 }
  0x73   : > { %2082 = vmatpush3.bf16.msra.mxu0 %v2278_v39  ;;  %v2334_v39 = vld [vmem:[%s2460_s3 + $0x338] sm:$0xff]  }
  0x74   : > { %2104 = vmatpush3.bf16.msra.mxu1 %v2279_v40  ;;  %2083 = vmatprep.subr.bf16.mxu0 %v2280_v41  ;;  %v2335_v40 = vld [vmem:[%s2460_s3 + $0x3b8] sm:$0xff]   ;;  %v277_v41 = vld [vmem:[%s2462_s4 + $0x30] sm:$0xff] }
  0x75   : > { %2105 = vmatprep.subr.bf16.mxu1 %v2281_v42  ;;  %v285_v42 = vld [vmem:[%s2462_s4 + $0x70] sm:$0xff] }
  0x77   : > { %2084 = vmatpush3.bf16.msra.mxu0 %v2282_v43  ;;  %v278_v43 = vld [vmem:[%s2462_s4 + $0x38] sm:$0xff] }
  0x78   : > { %2106 = vmatpush3.bf16.msra.mxu1 %v2283_v44  ;;  %2085 = vmatprep.subr.bf16.mxu0 %v2284_v45  ;;  %v1853_v44 = vcombine.low %v277_v41, %v285_v42  ;;  %v1854_v45 = vcombine.high %v277_v41, %v285_v42 }
  0x79   : > { %2107 = vmatprep.subr.bf16.mxu1 %v2285_v46  ;;  %v286_v46 = vld [vmem:[%s2462_s4 + $0x78] sm:$0xff] }
  0x7b   : > { %2086 = vmatpush3.bf16.msra.mxu0 %v2286_v47  ;;  %v1855_v47 = vcombine.low %v278_v43, %v286_v46 }
  0x7c   : > { %2108 = vmatpush3.bf16.msra.mxu1 %v2287_v48  ;;  %2087 = vmatprep.subr.bf16.mxu0 %v2288_v49  ;;  %v1856_v48 = vcombine.high %v278_v43, %v286_v46  ;;  %v269_v43 = vld [vmem:[#allocation2] sm:$0xff] }
  0x7d   : > { %2109 = vmatprep.subr.bf16.mxu1 %v2289_v50 }
  0x7f   : > { %2088 = vmatpush3.bf16.msra.mxu0 %v2290_v51 }
  0x80   : > { %2110 = vmatpush3.bf16.msra.mxu1 %v2291_v52  ;;  %2089 = vmatprep.subr.bf16.mxu0 %v2292_v53 }
  0x81   : > { %2111 = vmatprep.subr.bf16.mxu1 %v2293_v54 }
  0x83   : > { %2090 = vmatpush3.bf16.msra.mxu0 %v2294_v55 }
  0x84   : > { %2112 = vmatpush3.bf16.msra.mxu1 %v2295_v56  ;;  %2091 = vmatprep.subr.bf16.mxu0 %v2296_v57 }
  0x85   : > { %2113 = vmatprep.subr.bf16.mxu1 %v2297_v58 }
  0x87   : > { %2092 = vmatpush3.bf16.msra.mxu0 %v2298_v59 }
  0x88   : > { %2114 = vmatpush3.bf16.msra.mxu1 %v2299_v60  ;;  %2093 = vmatprep.subr.bf16.mxu0 %v2300_v61 }
  0x89   : > { %2115 = vmatprep.subr.bf16.mxu1 %v2301_v62 }
  0x8b   : > { %2094 = vmatpush3.bf16.msra.mxu0 %v2302_v63 }
  0x8c   : > { %2116 = vmatpush3.bf16.msra.mxu1 %v2303_v0  ;;  %2123 = vmatprep.subr.bf16.mxu0 %v2304_v9 }
  0x8d   : > { %2145 = vmatprep.subr.bf16.mxu1 %v2305_v10 }
  0x8e   : > { %1588 = vmatmul.mubr.bf16.vlgmr.msra.gmra.mrb[8].mxu0 %v1849_v5 }
  0x8f   : > { %1629 = vmatmul.mubr.bf16.vlgmr.msra.gmra.mrb[8].mxu1 %v1851_v7  ;;  %2124 = vmatpush3.bf16.msra.mxu0 %v2306_v11 }
  0x90   : > { %2146 = vmatpush3.bf16.msra.mxu1 %v2307_v12  ;;  %2125 = vmatprep.subr.bf16.mxu0 %v2308_v13 }
  0x91   : > { %2147 = vmatprep.subr.bf16.mxu1 %v2309_v14  ;;  %1669 = vmatprep.mubr.bf16.mxu0 %v1854_v45 }
  0x92   : > { %1710 = vmatprep.mubr.bf16.mxu1 %v1856_v48 }
  0x93   : > { %2126 = vmatpush3.bf16.msra.mxu0 %v2310_v15 }
  0x94   : > { %2148 = vmatpush3.bf16.msra.mxu1 %v2311_v16  ;;  %2127 = vmatprep.subr.bf16.mxu0 %v2312_v17 }
  0x95   : > { %2149 = vmatprep.subr.bf16.mxu1 %v2313_v18 }
  0x97   : > { %2128 = vmatpush3.bf16.msra.mxu0 %v2314_v19 }
  0x98   : > { %2150 = vmatpush3.bf16.msra.mxu1 %v2315_v20  ;;  %2129 = vmatprep.subr.bf16.mxu0 %v2316_v21 }
  0x99   : > { %2151 = vmatprep.subr.bf16.mxu1 %v2317_v22 }
  0x9b   : > { %2130 = vmatpush3.bf16.msra.mxu0 %v2318_v23 }
  0x9c   : > { %2152 = vmatpush3.bf16.msra.mxu1 %v2319_v24  ;;  %2131 = vmatprep.subr.bf16.mxu0 %v2320_v25 }
  0x9d   : > { %2153 = vmatprep.subr.bf16.mxu1 %v2321_v26 }
  0x9f   : > { %2132 = vmatpush3.bf16.msra.mxu0 %v2322_v27 }
  0xa0   : > { %2154 = vmatpush3.bf16.msra.mxu1 %v2323_v28  ;;  %2133 = vmatprep.subr.bf16.mxu0 %v2324_v29 }
  0xa1   : > { %2155 = vmatprep.subr.bf16.mxu1 %v2325_v30 }
  0xa3   : > { %2134 = vmatpush3.bf16.msra.mxu0 %v2326_v31 }
  0xa4   : > { %2156 = vmatpush3.bf16.msra.mxu1 %v2327_v32  ;;  %2135 = vmatprep.subr.bf16.mxu0 %v2328_v33 }
  0xa5   : > { %2157 = vmatprep.subr.bf16.mxu1 %v2329_v34 }
  0xa7   : > { %2136 = vmatpush3.bf16.msra.mxu0 %v2330_v35 }
  0xa8   : > { %2158 = vmatpush3.bf16.msra.mxu1 %v2331_v36  ;;  %2137 = vmatprep.subr.bf16.mxu0 %v2332_v37 }
  0xa9   : > { %2159 = vmatprep.subr.bf16.mxu1 %v2333_v38 }
  0xab   : > { %2138 = vmatpush3.bf16.msra.mxu0 %v2334_v39 }
  0xac   : > { %2160 = vmatpush3.bf16.msra.mxu1 %v2335_v40 }
  0xae   : > { %1670 = vmatmul.mubr.bf16.vlgmr.msra.gmra.mrb[12].mxu0 %v1853_v44 }
  0xaf   : > { %1711 = vmatmul.mubr.bf16.vlgmr.msra.gmra.mrb[12].mxu1 %v1855_v47  ;;  %v270_v47 = vld [vmem:[#allocation2 + $0x8] sm:$0xff] }
 0x121   : > { %v2007_v49 = vpop.f32.mrb[0].mxu0 }
 0x122   : > { %v2029_v50 = vpop.f32.mrb[0].mxu1  ;;  %v2008_v51 = vpop.f32.mrb[1].mxu0 }
 0x123   : > { %v2009_v52 = vadd.f32 %v2008_v51, %v2007_v49  ;;  %v2030_v53 = vpop.f32.mrb[1].mxu1  ;;  %v2010_v54 = vpop.f32.mrb[2].mxu0 }
 0x124   : > { %v2031_v55 = vadd.f32 %v2030_v53, %v2029_v50  ;;  %v2032_v56 = vpop.f32.mrb[2].mxu1  ;;  %v2011_v57 = vpop.f32.mrb[3].mxu0 }
 0x125   : > { %v2012_v58 = vadd.f32 %v2011_v57, %v2010_v54  ;;  %v2033_v59 = vpop.f32.mrb[3].mxu1 }
 0x126   : > { %v1467_v60 = vadd.f32 %v2031_v55, %v2009_v52  ;;  %v2034_v61 = vadd.f32 %v2033_v59, %v2032_v56 }
 0x128   : > { %v1470_v62 = vadd.f32 %v2034_v61, %v2012_v58 }
 0x141   : > { %v2051_v63 = vpop.f32.mrb[4].mxu0 }
 0x142   : > { %v2073_v0 = vpop.f32.mrb[4].mxu1  ;;  %v2052_v1 = vpop.f32.mrb[5].mxu0 }
 0x143   : > { %v2053_v2 = vadd.f32 %v2052_v1, %v2051_v63  ;;  %v2074_v3 = vpop.f32.mrb[5].mxu1  ;;  %v2054_v4 = vpop.f32.mrb[6].mxu0 }
 0x144   : > { %v2075_v5 = vadd.f32 %v2074_v3, %v2073_v0  ;;  %v2076_v6 = vpop.f32.mrb[6].mxu1  ;;  %v2055_v7 = vpop.f32.mrb[7].mxu0 }
 0x145   : > { %v1508_v8 = vadd.f32 %v2053_v2, %v1467_v60  ;;  %v2056_v9 = vadd.f32 %v2055_v7, %v2054_v4  ;;  %v2077_v10 = vpop.f32.mrb[7].mxu1 }
 0x146   : > { %v2078_v11 = vadd.f32 %v2077_v10, %v2076_v6 }
 0x147   : > { %v1549_v12 = vadd.f32 %v2075_v5, %v1508_v8  ;;  %v1511_v13 = vadd.f32 %v2056_v9, %v1470_v62 }
 0x149   : > { %v1552_v14 = vadd.f32 %v2078_v11, %v1511_v13 }
 0x161   : > { %v2095_v15 = vpop.f32.mrb[8].mxu0 }
 0x162   : > { %v2117_v16 = vpop.f32.mrb[8].mxu1  ;;  %v2096_v17 = vpop.f32.mrb[9].mxu0 }
 0x163   : > { %v2118_v18 = vpop.f32.mrb[9].mxu1  ;;  %v2097_v19 = vadd.f32 %v2096_v17, %v2095_v15  ;;  %v2098_v21 = vpop.f32.mrb[10].mxu0 }
 0x164   : > { %v2119_v20 = vadd.f32 %v2118_v18, %v2117_v16  ;;  %v2120_v22 = vpop.f32.mrb[10].mxu1  ;;  %v2099_v23 = vpop.f32.mrb[11].mxu0 }
 0x165   : > { %v2121_v24 = vpop.f32.mrb[11].mxu1  ;;  %v1590_v25 = vadd.f32 %v2097_v19, %v1549_v12  ;;  %v2100_v26 = vadd.f32 %v2099_v23, %v2098_v21 }
 0x166   : > { %v2122_v27 = vadd.f32 %v2121_v24, %v2120_v22 }
 0x167   : > { %v1631_v28 = vadd.f32 %v2119_v20, %v1590_v25  ;;  %v1593_v29 = vadd.f32 %v2100_v26, %v1552_v14 }
 0x169   : > { %v1634_v30 = vadd.f32 %v2122_v27, %v1593_v29 }
 0x181   : > { %v2139_v31 = vpop.f32.mrb[12].mxu0 }
 0x182   : > { %v2161_v32 = vpop.f32.mrb[12].mxu1  ;;  %v2140_v33 = vpop.f32.mrb[13].mxu0 }
 0x183   : > { %v2141_v34 = vadd.f32 %v2140_v33, %v2139_v31  ;;  %v2162_v35 = vpop.f32.mrb[13].mxu1  ;;  %v2142_v36 = vpop.f32.mrb[14].mxu0 }
 0x184   : > { %v2163_v37 = vadd.f32 %v2162_v35, %v2161_v32  ;;  %v2164_v38 = vpop.f32.mrb[14].mxu1  ;;  %v2143_v39 = vpop.f32.mrb[15].mxu0 }
 0x185   : > { %v1672_v40 = vadd.f32 %v2141_v34, %v1631_v28  ;;  %v2144_v41 = vadd.f32 %v2143_v39, %v2142_v36  ;;  %v2165_v42 = vpop.f32.mrb[15].mxu1 }
 0x186   : > { %v2166_v44 = vadd.f32 %v2165_v42, %v2164_v38 }
 0x187   : > { %v1713_v45 = vadd.f32 %v2163_v37, %v1672_v40  ;;  %v1675_v46 = vadd.f32 %v2144_v41, %v1634_v30  ;;  %1726 = sbr.rel (%p1985_p11) target bundleno = 406 (0x196), region = 59 }
 0x189   : > { %v1719_v48 = vadd.f32 %v1713_v45, %v269_v43  ;;  %v1716_v49 = vadd.f32 %v2166_v44, %v1675_v46 }
 0x18b   : > { %1721 = vst [vmem:[#allocation2] sm:$0xff] %v1719_v48  ;;  %v1720_v50 = vadd.f32 %v1716_v49, %v270_v47 }
 0x18d   : > { %1722 = vst [vmem:[#allocation2 + $0x8] sm:$0xff] %v1720_v50 }
 0x192   : > { %v1727_v51 = vld [vmem:[#allocation2] sm:$0xff] }
 0x193   : > { %1729 = vst [vmem:[%s2633_s2] sm:$0xff] %v1727_v51 }
 0x194   : > { %v1728_v52 = vld [vmem:[#allocation2 + $0x8] sm:$0xff] }
 0x195   : > { %1730 = vst [vmem:[%s2633_s2 + $0x8] sm:$0xff] %v1728_v52 }
 0x196 PF: > { %s12_s13 = sadd.s32 1, %s2374_s13   ;;  %s2634_s9 = smov %s2362_s10 }
 0x197   : > { %p9_p12 = scmp.ge.s32.totalorder %s12_s13, 4   ;;  %s2635_s10 = smov %s2427_s17 }
 0x198   : > { %s2636_s11 = smov %s2370_s12  ;;  %s2637_s12 = smov %s2639_s14 }
 0x199   :  { %11 = sbr.rel (!%p9_p12) target bundleno = 3 (0x3), region = 97 }

</bundles_post_ra>
